<compile_context>
chip_gen: v7x
topology: tpu7x:2x2x1
jax: 0.10.0
libtpu: 0.0.40
codegen_flags: <defaults>
</compile_context>

<pallas_src>
import numpy as np
import jax
import jax.numpy as jnp
from jax.experimental import pallas as pl
from jax.experimental.pallas import tpu as pltpu


# ----- config (mirrors the torch module's C.*) -----
class C:
    FILTERS = 32
    BOARD_SIZE = 8
    VALUE_HIDDEN_UNITS = 32
    BATCHNORM_MOMENTUM = 0.9  # irrelevant for the eval-mode forward


BN_EPS = 1e-5


# ---------------------------------------------------------------------------
# The single fused Pallas kernel: whole ResNet forward for one block of images.
# Activation layout: rows ordered [group, h, w]; lanes = 4 packed images x 32
# channels (lane 32*i + f is channel f of packed slot i).
# ---------------------------------------------------------------------------
def _resnet_fused_kernel(
        x_ref,
        wt_ref, sst_ref,
        w11_ref, ss11_ref, w12_ref, ss12_ref,
        w21_ref, ss21_ref, w22_ref, ss22_ref,
        w31_ref, ss31_ref, w32_ref, ss32_ref,
        wpv_ref, sspv_ref,
        mask_ref, seg_ref,
        wp0_ref, wp1_ref, bpol_ref,
        wv1_ref, bv1_ref, wv2_ref, bv2_ref,
        out_ref):
    B = C.BOARD_SIZE
    rows = x_ref.shape[0]          # (images_per_block / 4) * B * B
    ng = seg_ref.shape[0]          # number of 4-image lane-packed groups

    # 3x3 tap row offsets in [group, h, w] row order.  All board-edge taps are
    # zeroed by the hoisted constant masks, so the sublane-roll wraparound
    # (which stays inside this block) never leaks data across images/groups.
    offs = [(dy - 1) * B + (dx - 1) for dy in range(3) for dx in range(3)]

    def conv3x3_bn(a, w_ref, ss_ref, relu):
        # a: (rows, 128) f32.  Nine per-tap matmuls against block-diagonal
        # (128,128) bf16 weights, accumulated in f32 — no im2col patch
        # materialisation, no lane concatenation.
        acc = None
        for t, off in enumerate(offs):
            if off == 0:
                piece = a                                     # centre tap: no mask
            else:
                piece = pltpu.roll(a, (-off) % rows, axis=0) * mask_ref[t]
            z = jnp.dot(piece.astype(jnp.bfloat16), w_ref[t],
                        preferred_element_type=jnp.float32)
            acc = z if acc is None else acc + z
        ss = ss_ref[...]                                      # (2, 128) folded bias+BN
        acc = acc * ss[0:1, :] + ss[1:2, :]
        return jnp.maximum(acc, 0.0) if relu else acc

    # ---- trunk conv (pre-im2col'd on host): one (rows,72)x(72,128) matmul ----
    sst = sst_ref[...]
    h = jnp.dot(x_ref[...], wt_ref[...], preferred_element_type=jnp.float32)
    h = h * sst[0:1, :] + sst[1:2, :]

    # ---- 3 residual blocks ---------------------------------------------------
    for wa, ssa, wb, ssb in ((w11_ref, ss11_ref, w12_ref, ss12_ref),
                             (w21_ref, ss21_ref, w22_ref, ss22_ref),
                             (w31_ref, ss31_ref, w32_ref, ss32_ref)):
        t_ = conv3x3_bn(h, wa, ssa, relu=True)
        h = jnp.maximum(conv3x3_bn(t_, wb, ssb, relu=False) + h, 0.0)

    # ---- heads ----------------------------------------------------------------
    # policy (F->2) and value (F->1) 1x1 convs as one block-diagonal (128,12)
    # matmul; output column 3*i+k is packed slot i's head channel k.
    pv = jnp.dot(h.astype(jnp.bfloat16), wpv_ref[...],
                 preferred_element_type=jnp.float32)
    sspv = sspv_ref[...]
    pv = pv * sspv[0:1, :] + sspv[1:2, :]                      # (rows, 12)

    seg = seg_ref[...]                                         # (ng, rows) selector
    wp0 = wp0_ref[...]                                         # (rows, 64) f32
    wp1 = wp1_ref[...]
    wv1 = wv1_ref[...]                                         # (rows, 32) f32
    bpol = bpol_ref[...]
    bv1 = bv1_ref[...]
    wv2 = wv2_ref[...]
    bv2 = bv2_ref[...]

    pieces = []
    for i in range(4):                                         # one packed slot at a time
        p0 = pv[:, 3 * i:3 * i + 1]
        p1 = pv[:, 3 * i + 1:3 * i + 2]
        vc = pv[:, 3 * i + 2:3 * i + 3]
        # NCHW flatten + Linear folded into per-spatial-row weight slabs; the
        # per-image reduction is a selector matmul on the MXU.
        q_p = (p0 * wp0 + p1 * wp1).astype(jnp.bfloat16)       # (rows, 64)
        q_v = (vc * wv1).astype(jnp.bfloat16)                  # (rows, 32)

        logits = jnp.dot(seg, q_p, preferred_element_type=jnp.float32) + bpol
        m = jnp.max(logits, axis=-1, keepdims=True)
        e = jnp.exp(logits - m)
        probs = e / jnp.sum(e, axis=-1, keepdims=True)         # exact normalisation

        v1 = jnp.maximum(
            jnp.dot(seg, q_v, preferred_element_type=jnp.float32) + bv1, 0.0)
        v2 = jnp.dot(v1.astype(jnp.bfloat16), wv2,
                     preferred_element_type=jnp.float32) + bv2
        val = jnp.tanh(v2)                                     # (ng, 1)

        pieces.append(jnp.concatenate(
            [probs, jnp.broadcast_to(val, (ng, B * B))], axis=-1))   # (ng, 128)

    # Single lane-dense (ipb, 128) store: policy in lanes [0,64), value in [64,128).
    out_ref[...] = jnp.concatenate(pieces, axis=0).astype(out_ref.dtype)


# ---------------------------------------------------------------------------
# Wrapper: layout glue + single pallas_call (gridded over the batch)
# ---------------------------------------------------------------------------
def resnet_forward_pallas(kp, x_nchw):
    N, Cin = x_nchw.shape[0], x_nchw.shape[1]
    B = C.BOARD_SIZE

    # images per grid block (must be a multiple of 4 for lane packing); pad the
    # batch to a whole number of blocks.  ipb=32 keeps nb = N/32 >= 2 for real
    # batches so both v7x TensorCores get work via dimension_semantics.
    if N >= 32:
        ipb = 32
    else:
        ipb = 4 * ((N + 3) // 4)
    N_pad = ((N + ipb - 1) // ipb) * ipb
    nb = N_pad // ipb
    ng = ipb // 4                       # 4-image lane-packed groups per block
    rows_blk = ng * B * B

    # ---- host-side im2col of the trunk conv input (tap-major, cin-minor) ----
    x = jnp.transpose(x_nchw.astype(jnp.float32), (0, 2, 3, 1))      # NHWC
    if N_pad != N:
        x = jnp.pad(x, ((0, N_pad - N), (0, 0), (0, 0), (0, 0)))
    xp = jnp.pad(x, ((0, 0), (1, 1), (1, 1), (0, 0)))
    cols = [xp[:, dy:dy + B, dx:dx + B, :] for dy in range(3) for dx in range(3)]
    patches = jnp.concatenate(cols, axis=-1)                         # (N_pad,B,B,9*Cin)
    # Lane-pack 4 images per row.  Image n = b*ipb + i*ng + g maps to grid block
    # b, packed slot i, group g — so per-slot head results land in contiguous
    # output rows and the output needs no reordering.
    patches = patches.reshape(nb, 4, ng, B * B, 9 * Cin)
    patches = jnp.transpose(patches, (0, 2, 3, 1, 4))
    patches = patches.reshape(nb * rows_blk, 4 * 9 * Cin).astype(jnp.bfloat16)

    # ---- hoisted grid-invariant constants ------------------------------------
    hw = np.arange(B * B)
    hpos, wpos = hw // B, hw % B
    mask_list = []
    for dy in range(3):
        for dx in range(3):
            m = ((hpos + dy - 1 >= 0) & (hpos + dy - 1 < B) &
                 (wpos + dx - 1 >= 0) & (wpos + dx - 1 < B)).astype(np.float32)
            mask_list.append(np.tile(m, ng))
    masks = jnp.asarray(np.stack(mask_list)[:, :, None])             # (9, rows_blk, 1)
    seg = jnp.asarray(np.repeat(np.eye(ng, dtype=np.float32), B * B,
                                axis=1)).astype(jnp.bfloat16)        # (ng, rows_blk)

    # per-group tiled head weights (row r of the tile corresponds to hw = r % 64)
    wp0_t = jnp.tile(kp["wp0"], (ng, 1))                             # (rows_blk, 64)
    wp1_t = jnp.tile(kp["wp1"], (ng, 1))
    wv1_t = jnp.tile(kp["wv1"], (ng, 1))                             # (rows_blk, 32)

    inputs = [patches, kp["w_trunk"], kp["ss_trunk"]]
    for blk in kp["blocks"]:
        inputs += [blk["w1"], blk["ss1"], blk["w2"], blk["ss2"]]
    inputs += [kp["w_pv"], kp["ss_pv"], masks, seg,
               wp0_t, wp1_t, kp["b_pol"],
               wv1_t, kp["b_v1"], kp["w_v2"], kp["b_v2"]]

    def const_spec(a):
        nd = a.ndim
        return pl.BlockSpec(a.shape, lambda b, _nd=nd: (0,) * _nd)

    in_specs = [pl.BlockSpec((rows_blk, 4 * 9 * Cin), lambda b: (b, 0))]
    in_specs += [const_spec(a) for a in inputs[1:]]

    out = pl.pallas_call(
        _resnet_fused_kernel,
        grid=(nb,),
        in_specs=in_specs,
        out_specs=pl.BlockSpec((ipb, 128), lambda b: (b, 0)),
        out_shape=jax.ShapeDtypeStruct((N_pad, 128), jnp.float32),
        compiler_params=pltpu.CompilerParams(
            dimension_semantics=("parallel",),       # megacore-shard the batch grid
            vmem_limit_bytes=32 * 1024 * 1024,       # explicit budget (v7x-safe)
        ),
    )(*inputs)

    policy = out[:N, :B * B]
    value = out[:N, B * B:B * B + 1]
    return policy, value


# ---------------------------------------------------------------------------
# Deterministic parameter init (canonical PyTorch shapes) + kernel-layout pack
# ---------------------------------------------------------------------------
def init_canonical_params(key):
    keys = iter(jax.random.split(key, 128))

    def nrm(shape, s=0.1):
        return s * jax.random.normal(next(keys), shape, jnp.float32)

    def bn_params(c):
        gamma = 1.0 + nrm((c,))
        beta = nrm((c,))
        mean = nrm((c,))
        var = 1.0 + 0.1 * jax.random.uniform(next(keys), (c,), jnp.float32)
        return (gamma, beta, mean, var)

    def conv(cout, cin, k):
        return {"w": nrm((cout, cin, k, k)), "b": nrm((cout,)), "bn": bn_params(cout)}

    def linear(cout, cin):
        return {"w": nrm((cout, cin)), "b": nrm((cout,))}

    F, B = C.FILTERS, C.BOARD_SIZE
    return {
        "trunk": conv(F, 2, 3),
        "blocks": [{"c1": conv(F, F, 3), "c2": conv(F, F, 3)} for _ in range(3)],
        "p_conv": conv(2, F, 1),
        "p_lin": linear(B * B, 2 * B * B),
        "v_conv": conv(1, F, 1),
        "v_lin1": linear(C.VALUE_HIDDEN_UNITS, B * B),
        "v_lin2": linear(1, C.VALUE_HIDDEN_UNITS),
    }


def to_kernel_params(cp):
    F, B = C.FILTERS, C.BOARD_SIZE
    eye4 = jnp.eye(4, dtype=jnp.float32)

    def fold_bn(bn, bias):
        gamma, beta, mean, var = bn
        scale = gamma / jnp.sqrt(var + BN_EPS)
        shift = beta + (bias - mean) * scale
        return jnp.stack([scale, shift], axis=0).astype(jnp.float32)   # (2, C)

    def pack_ss(ss):                     # 4 lane-packed copies along the lane axis
        return jnp.tile(ss, (1, 4))

    def conv3_w_packed(c):               # (Cout,Cin,3,3) -> (9, 4*Cin, 4*Cout) bf16
        w = c["w"]
        taps = [jnp.kron(eye4, w[:, :, dy, dx].T)
                for dy in range(3) for dx in range(3)]
        return jnp.stack(taps, axis=0).astype(jnp.bfloat16)

    def trunk_w_packed(c):               # (Cout,2,3,3) -> (4*18, 4*Cout) bf16
        w = c["w"]
        wf = jnp.transpose(w, (2, 3, 1, 0)).reshape(9 * w.shape[1], w.shape[0])
        return jnp.kron(eye4, wf).astype(jnp.bfloat16)

    def conv1_w(c):                      # (Cout,Cin,1,1) -> (Cin, Cout) f32
        w = c["w"]
        return w.reshape(w.shape[0], w.shape[1]).T

    kp = {
        "w_trunk": trunk_w_packed(cp["trunk"]),
        "ss_trunk": pack_ss(fold_bn(cp["trunk"]["bn"], cp["trunk"]["b"])),
        "blocks": [
            {"w1": conv3_w_packed(bl["c1"]),
             "ss1": pack_ss(fold_bn(bl["c1"]["bn"], bl["c1"]["b"])),
             "w2": conv3_w_packed(bl["c2"]),
             "ss2": pack_ss(fold_bn(bl["c2"]["bn"], bl["c2"]["b"]))}
            for bl in cp["blocks"]],
        # policy (F->2) + value (F->1) 1x1 convs, block-diagonal over 4 slots
        "w_pv": jnp.kron(eye4, jnp.concatenate(
            [conv1_w(cp["p_conv"]), conv1_w(cp["v_conv"])],
            axis=1)).astype(jnp.bfloat16),
        "ss_pv": pack_ss(jnp.concatenate(
            [fold_bn(cp["p_conv"]["bn"], cp["p_conv"]["b"]),
             fold_bn(cp["v_conv"]["bn"], cp["v_conv"]["b"])], axis=1)),
    }
    # policy linear: fold PyTorch's NCHW flatten into per-channel weight slabs
    wpl = cp["p_lin"]["w"].T                                    # (2*B*B, B*B)
    kp["wp0"] = wpl[:B * B, :].astype(jnp.float32)
    kp["wp1"] = wpl[B * B:, :].astype(jnp.float32)
    kp["b_pol"] = cp["p_lin"]["b"].reshape(1, -1).astype(jnp.float32)
    kp["wv1"] = cp["v_lin1"]["w"].T.astype(jnp.float32)         # (B*B, hidden)
    kp["b_v1"] = cp["v_lin1"]["b"].reshape(1, -1).astype(jnp.float32)
    kp["w_v2"] = cp["v_lin2"]["w"].T.astype(jnp.bfloat16)       # (hidden, 1)
    kp["b_v2"] = cp["v_lin2"]["b"].reshape(1, -1).astype(jnp.float32)
    return kp


# ---------------------------------------------------------------------------
# Independent pure-JAX reference (pad-based im2col, explicit eval-mode BN,
# NCHW-flatten via transpose).  bf16 matmul operands like the kernel.
# ---------------------------------------------------------------------------
def resnet_forward_reference(cp, x_nchw):
    N = x_nchw.shape[0]
    B, F = C.BOARD_SIZE, C.FILTERS

    def bdot(a, b):
        return jnp.dot(a.astype(jnp.bfloat16), b.astype(jnp.bfloat16),
                       preferred_element_type=jnp.float32)

    def bn_eval(z, bn):
        gamma, beta, mean, var = bn
        return gamma * (z - mean) / jnp.sqrt(var + BN_EPS) + beta

    def conv3x3_bn(a_flat, cin, conv):
        a = a_flat.reshape(N, B, B, cin)
        xp = jnp.pad(a, ((0, 0), (1, 1), (1, 1), (0, 0)))
        cols = [xp[:, dy:dy + B, dx:dx + B, :] for dy in range(3) for dx in range(3)]
        patches = jnp.concatenate(cols, axis=-1).reshape(N * B * B, 9 * cin)
        w = jnp.transpose(conv["w"], (2, 3, 1, 0)).reshape(9 * cin, -1)
        return bn_eval(bdot(patches, w) + conv["b"], conv["bn"])

    x_flat = jnp.transpose(x_nchw, (0, 2, 3, 1)).reshape(N * B * B, 2)
    h = conv3x3_bn(x_flat, 2, cp["trunk"])
    for bl in cp["blocks"]:
        t = jnp.maximum(conv3x3_bn(h, F, bl["c1"]), 0.0)
        h = jnp.maximum(conv3x3_bn(t, F, bl["c2"]) + h, 0.0)

    # policy head
    wpc = cp["p_conv"]["w"].reshape(2, F).T
    p = bn_eval(bdot(h, wpc) + cp["p_conv"]["b"], cp["p_conv"]["bn"])      # (M, 2)
    p_flat = jnp.transpose(p.reshape(N, B, B, 2), (0, 3, 1, 2)).reshape(N, 2 * B * B)
    logits = bdot(p_flat, cp["p_lin"]["w"].T) + cp["p_lin"]["b"]
    policy = jax.nn.softmax(logits, axis=-1)

    # value head
    wvc = cp["v_conv"]["w"].reshape(1, F).T
    v = bn_eval(bdot(h, wvc) + cp["v_conv"]["b"], cp["v_conv"]["bn"])      # (M, 1)
    v_flat = v.reshape(N, B * B)
    v1 = jnp.maximum(bdot(v_flat, cp["v_lin1"]["w"].T) + cp["v_lin1"]["b"], 0.0)
    value = jnp.tanh(bdot(v1, cp["v_lin2"]["w"].T) + cp["v_lin2"]["b"])
    return policy, value


if __name__ == "__main__":
    key = jax.random.PRNGKey(0)
    pkey, xkey = jax.random.split(key)
    cp = init_canonical_params(pkey)
    kp = to_kernel_params(cp)

    # small input consistent with the module: (batch=2, channels=2, board 8x8)
    x = jax.random.normal(xkey, (2, 2, C.BOARD_SIZE, C.BOARD_SIZE), jnp.float32)

    policy, value = jax.jit(resnet_forward_pallas)(kp, x)
    jax.block_until_ready((policy, value))

    policy_ref, value_ref = resnet_forward_reference(cp, x)
    np.testing.assert_allclose(np.asarray(policy), np.asarray(policy_ref),
                               rtol=1e-2, atol=5e-3)
    np.testing.assert_allclose(np.asarray(value), np.asarray(value_ref),
                               rtol=1e-2, atol=5e-3)
    assert policy.shape == (2, C.BOARD_SIZE ** 2)
    assert value.shape == (2, 1)
    np.testing.assert_allclose(np.asarray(policy).sum(axis=1), np.ones(2), atol=2e-3)

    print("KERNEL_OK")
</pallas_src>

<mosaic_0001>
module attributes {stable_mosaic.version = 11 : i64} {
  func.func @_resnet_fused_kernel(%arg0: i32, %arg1: memref<64x72xbf16, #tpu.memory_space<vmem>>, %arg2: memref<72x128xbf16, #tpu.memory_space<vmem>>, %arg3: memref<2x128xf32, #tpu.memory_space<vmem>>, %arg4: memref<9x128x128xbf16, #tpu.memory_space<vmem>>, %arg5: memref<2x128xf32, #tpu.memory_space<vmem>>, %arg6: memref<9x128x128xbf16, #tpu.memory_space<vmem>>, %arg7: memref<2x128xf32, #tpu.memory_space<vmem>>, %arg8: memref<9x128x128xbf16, #tpu.memory_space<vmem>>, %arg9: memref<2x128xf32, #tpu.memory_space<vmem>>, %arg10: memref<9x128x128xbf16, #tpu.memory_space<vmem>>, %arg11: memref<2x128xf32, #tpu.memory_space<vmem>>, %arg12: memref<9x128x128xbf16, #tpu.memory_space<vmem>>, %arg13: memref<2x128xf32, #tpu.memory_space<vmem>>, %arg14: memref<9x128x128xbf16, #tpu.memory_space<vmem>>, %arg15: memref<2x128xf32, #tpu.memory_space<vmem>>, %arg16: memref<128x12xbf16, #tpu.memory_space<vmem>>, %arg17: memref<2x12xf32, #tpu.memory_space<vmem>>, %arg18: memref<9x64x1xf32, #tpu.memory_space<vmem>>, %arg19: memref<1x64xbf16, #tpu.memory_space<vmem>>, %arg20: memref<64x64xf32, #tpu.memory_space<vmem>>, %arg21: memref<64x64xf32, #tpu.memory_space<vmem>>, %arg22: memref<1x64xf32, #tpu.memory_space<vmem>>, %arg23: memref<64x32xf32, #tpu.memory_space<vmem>>, %arg24: memref<1x32xf32, #tpu.memory_space<vmem>>, %arg25: memref<32x1xbf16, #tpu.memory_space<vmem>>, %arg26: memref<1x1xf32, #tpu.memory_space<vmem>>, %arg27: memref<4x128xf32, #tpu.memory_space<vmem>>) attributes {dimension_semantics = [#tpu.dimension_semantics<parallel>], iteration_bounds = array<i64: 1>, scalar_prefetch = 0 : i64, scratch_operands = 0 : i64, tpu.core_type = #tpu.core_type<tc>, window_params = [{transform_indices = @transform_0, window_bounds = array<i64: 64, 72>}, {pipeline_mode = #tpu.pipeline_mode<synchronous>, transform_indices = @transform_1, window_bounds = array<i64: 72, 128>}, {pipeline_mode = #tpu.pipeline_mode<synchronous>, transform_indices = @transform_2, window_bounds = array<i64: 2, 128>}, {pipeline_mode = #tpu.pipeline_mode<synchronous>, transform_indices = @transform_3, window_bounds = array<i64: 9, 128, 128>}, {pipeline_mode = #tpu.pipeline_mode<synchronous>, transform_indices = @transform_4, window_bounds = array<i64: 2, 128>}, {pipeline_mode = #tpu.pipeline_mode<synchronous>, transform_indices = @transform_5, window_bounds = array<i64: 9, 128, 128>}, {pipeline_mode = #tpu.pipeline_mode<synchronous>, transform_indices = @transform_6, window_bounds = array<i64: 2, 128>}, {pipeline_mode = #tpu.pipeline_mode<synchronous>, transform_indices = @transform_7, window_bounds = array<i64: 9, 128, 128>}, {pipeline_mode = #tpu.pipeline_mode<synchronous>, transform_indices = @transform_8, window_bounds = array<i64: 2, 128>}, {pipeline_mode = #tpu.pipeline_mode<synchronous>, transform_indices = @transform_9, window_bounds = array<i64: 9, 128, 128>}, {pipeline_mode = #tpu.pipeline_mode<synchronous>, transform_indices = @transform_10, window_bounds = array<i64: 2, 128>}, {pipeline_mode = #tpu.pipeline_mode<synchronous>, transform_indices = @transform_11, window_bounds = array<i64: 9, 128, 128>}, {pipeline_mode = #tpu.pipeline_mode<synchronous>, transform_indices = @transform_12, window_bounds = array<i64: 2, 128>}, {pipeline_mode = #tpu.pipeline_mode<synchronous>, transform_indices = @transform_13, window_bounds = array<i64: 9, 128, 128>}, {pipeline_mode = #tpu.pipeline_mode<synchronous>, transform_indices = @transform_14, window_bounds = array<i64: 2, 128>}, {pipeline_mode = #tpu.pipeline_mode<synchronous>, transform_indices = @transform_15, window_bounds = array<i64: 128, 12>}, {pipeline_mode = #tpu.pipeline_mode<synchronous>, transform_indices = @transform_16, window_bounds = array<i64: 2, 12>}, {pipeline_mode = #tpu.pipeline_mode<synchronous>, transform_indices = @transform_17, window_bounds = array<i64: 9, 64, 1>}, {pipeline_mode = #tpu.pipeline_mode<synchronous>, transform_indices = @transform_18, window_bounds = array<i64: 1, 64>}, {pipeline_mode = #tpu.pipeline_mode<synchronous>, transform_indices = @transform_19, window_bounds = array<i64: 64, 64>}, {pipeline_mode = #tpu.pipeline_mode<synchronous>, transform_indices = @transform_20, window_bounds = array<i64: 64, 64>}, {pipeline_mode = #tpu.pipeline_mode<synchronous>, transform_indices = @transform_21, window_bounds = array<i64: 1, 64>}, {pipeline_mode = #tpu.pipeline_mode<synchronous>, transform_indices = @transform_22, window_bounds = array<i64: 64, 32>}, {pipeline_mode = #tpu.pipeline_mode<synchronous>, transform_indices = @transform_23, window_bounds = array<i64: 1, 32>}, {pipeline_mode = #tpu.pipeline_mode<synchronous>, transform_indices = @transform_24, window_bounds = array<i64: 32, 1>}, {pipeline_mode = #tpu.pipeline_mode<synchronous>, transform_indices = @transform_25, window_bounds = array<i64: 1, 1>}, {transform_indices = @transform_26, window_bounds = array<i64: 4, 128>}]} {
    %c0 = arith.constant 0 : index
    %c0_0 = arith.constant 0 : index
    %0 = vector.load %arg3[%c0, %c0_0] : memref<2x128xf32, #tpu.memory_space<vmem>>, vector<2x128xf32>
    %c0_1 = arith.constant 0 : index
    %c0_2 = arith.constant 0 : index
    %1 = vector.load %arg1[%c0_1, %c0_2] : memref<64x72xbf16, #tpu.memory_space<vmem>>, vector<64x72xbf16>
    %c0_3 = arith.constant 0 : index
    %c0_4 = arith.constant 0 : index
    %2 = vector.load %arg2[%c0_3, %c0_4] : memref<72x128xbf16, #tpu.memory_space<vmem>>, vector<72x128xbf16>
    %cst = arith.constant dense<0.000000e+00> : vector<64x128xf32>
    %3 = tpu.matmul %1, %2, %cst {dimension_numbers = #tpu.dot_dimension_numbers<[1], [0], [0], [1], [0, 0, 1, 1], [], []>} : vector<64x72xbf16>, vector<72x128xbf16>, vector<64x128xf32> -> vector<64x128xf32>
    %4 = vector.extract_strided_slice %0 {offsets = [0, 0], sizes = [1, 128], strides = [1, 1]} : vector<2x128xf32> to vector<1x128xf32>
    %5 = vector.broadcast %4 : vector<1x128xf32> to vector<64x128xf32>
    %6 = arith.mulf %3, %5 : vector<64x128xf32>
    %7 = vector.extract_strided_slice %0 {offsets = [1, 0], sizes = [1, 128], strides = [1, 1]} : vector<2x128xf32> to vector<1x128xf32>
    %8 = vector.broadcast %7 : vector<1x128xf32> to vector<64x128xf32>
    %9 = arith.addf %6, %8 : vector<64x128xf32>
    %c9_i32 = arith.constant 9 : i32
    %10 = tpu.dynamic_rotate %9 by %c9_i32 dim 0 : vector<64x128xf32>, i32 -> vector<64x128xf32>
    %c0_5 = arith.constant 0 : index
    %c0_6 = arith.constant 0 : index
    %c0_7 = arith.constant 0 : index
    %11 = vector.load %arg18[%c0_5, %c0_6, %c0_7] : memref<9x64x1xf32, #tpu.memory_space<vmem>>, vector<1x64x1xf32>
    %12 = vector.shape_cast %11 : vector<1x64x1xf32> to vector<64x1xf32>
    %13 = vector.broadcast %12 : vector<64x1xf32> to vector<64x128xf32>
    %14 = arith.mulf %10, %13 : vector<64x128xf32>
    %15 = arith.truncf %14 : vector<64x128xf32> to vector<64x128xbf16>
    %c0_8 = arith.constant 0 : index
    %c0_9 = arith.constant 0 : index
    %c0_10 = arith.constant 0 : index
    %16 = vector.load %arg4[%c0_8, %c0_9, %c0_10] : memref<9x128x128xbf16, #tpu.memory_space<vmem>>, vector<1x128x128xbf16>
    %17 = vector.shape_cast %16 : vector<1x128x128xbf16> to vector<128x128xbf16>
    %cst_11 = arith.constant dense<0.000000e+00> : vector<64x128xf32>
    %18 = tpu.matmul %15, %17, %cst_11 {dimension_numbers = #tpu.dot_dimension_numbers<[1], [0], [0], [1], [0, 0, 1, 1], [], []>} : vector<64x128xbf16>, vector<128x128xbf16>, vector<64x128xf32> -> vector<64x128xf32>
    %c8_i32 = arith.constant 8 : i32
    %19 = tpu.dynamic_rotate %9 by %c8_i32 dim 0 : vector<64x128xf32>, i32 -> vector<64x128xf32>
    %c1 = arith.constant 1 : index
    %c0_12 = arith.constant 0 : index
    %c0_13 = arith.constant 0 : index
    %20 = vector.load %arg18[%c1, %c0_12, %c0_13] : memref<9x64x1xf32, #tpu.memory_space<vmem>>, vector<1x64x1xf32>
    %21 = vector.shape_cast %20 : vector<1x64x1xf32> to vector<64x1xf32>
    %22 = vector.broadcast %21 : vector<64x1xf32> to vector<64x128xf32>
    %23 = arith.mulf %19, %22 : vector<64x128xf32>
    %24 = arith.truncf %23 : vector<64x128xf32> to vector<64x128xbf16>
    %c1_14 = arith.constant 1 : index
    %c0_15 = arith.constant 0 : index
    %c0_16 = arith.constant 0 : index
    %25 = vector.load %arg4[%c1_14, %c0_15, %c0_16] : memref<9x128x128xbf16, #tpu.memory_space<vmem>>, vector<1x128x128xbf16>
    %26 = vector.shape_cast %25 : vector<1x128x128xbf16> to vector<128x128xbf16>
    %cst_17 = arith.constant dense<0.000000e+00> : vector<64x128xf32>
    %27 = tpu.matmul %24, %26, %cst_17 {dimension_numbers = #tpu.dot_dimension_numbers<[1], [0], [0], [1], [0, 0, 1, 1], [], []>} : vector<64x128xbf16>, vector<128x128xbf16>, vector<64x128xf32> -> vector<64x128xf32>
    %28 = arith.addf %18, %27 : vector<64x128xf32>
    %c7_i32 = arith.constant 7 : i32
    %29 = tpu.dynamic_rotate %9 by %c7_i32 dim 0 : vector<64x128xf32>, i32 -> vector<64x128xf32>
    %c2 = arith.constant 2 : index
    %c0_18 = arith.constant 0 : index
    %c0_19 = arith.constant 0 : index
    %30 = vector.load %arg18[%c2, %c0_18, %c0_19] : memref<9x64x1xf32, #tpu.memory_space<vmem>>, vector<1x64x1xf32>
    %31 = vector.shape_cast %30 : vector<1x64x1xf32> to vector<64x1xf32>
    %32 = vector.broadcast %31 : vector<64x1xf32> to vector<64x128xf32>
    %33 = arith.mulf %29, %32 : vector<64x128xf32>
    %34 = arith.truncf %33 : vector<64x128xf32> to vector<64x128xbf16>
    %c2_20 = arith.constant 2 : index
    %c0_21 = arith.constant 0 : index
    %c0_22 = arith.constant 0 : index
    %35 = vector.load %arg4[%c2_20, %c0_21, %c0_22] : memref<9x128x128xbf16, #tpu.memory_space<vmem>>, vector<1x128x128xbf16>
    %36 = vector.shape_cast %35 : vector<1x128x128xbf16> to vector<128x128xbf16>
    %cst_23 = arith.constant dense<0.000000e+00> : vector<64x128xf32>
    %37 = tpu.matmul %34, %36, %cst_23 {dimension_numbers = #tpu.dot_dimension_numbers<[1], [0], [0], [1], [0, 0, 1, 1], [], []>} : vector<64x128xbf16>, vector<128x128xbf16>, vector<64x128xf32> -> vector<64x128xf32>
    %38 = arith.addf %28, %37 : vector<64x128xf32>
    %c1_i32 = arith.constant 1 : i32
    %39 = tpu.dynamic_rotate %9 by %c1_i32 dim 0 : vector<64x128xf32>, i32 -> vector<64x128xf32>
    %c3 = arith.constant 3 : index
    %c0_24 = arith.constant 0 : index
    %c0_25 = arith.constant 0 : index
    %40 = vector.load %arg18[%c3, %c0_24, %c0_25] : memref<9x64x1xf32, #tpu.memory_space<vmem>>, vector<1x64x1xf32>
    %41 = vector.shape_cast %40 : vector<1x64x1xf32> to vector<64x1xf32>
    %42 = vector.broadcast %41 : vector<64x1xf32> to vector<64x128xf32>
    %43 = arith.mulf %39, %42 : vector<64x128xf32>
    %44 = arith.truncf %43 : vector<64x128xf32> to vector<64x128xbf16>
    %c3_26 = arith.constant 3 : index
    %c0_27 = arith.constant 0 : index
    %c0_28 = arith.constant 0 : index
    %45 = vector.load %arg4[%c3_26, %c0_27, %c0_28] : memref<9x128x128xbf16, #tpu.memory_space<vmem>>, vector<1x128x128xbf16>
    %46 = vector.shape_cast %45 : vector<1x128x128xbf16> to vector<128x128xbf16>
    %cst_29 = arith.constant dense<0.000000e+00> : vector<64x128xf32>
    %47 = tpu.matmul %44, %46, %cst_29 {dimension_numbers = #tpu.dot_dimension_numbers<[1], [0], [0], [1], [0, 0, 1, 1], [], []>} : vector<64x128xbf16>, vector<128x128xbf16>, vector<64x128xf32> -> vector<64x128xf32>
    %48 = arith.addf %38, %47 : vector<64x128xf32>
    %49 = arith.truncf %9 : vector<64x128xf32> to vector<64x128xbf16>
    %c4 = arith.constant 4 : index
    %c0_30 = arith.constant 0 : index
    %c0_31 = arith.constant 0 : index
    %50 = vector.load %arg4[%c4, %c0_30, %c0_31] : memref<9x128x128xbf16, #tpu.memory_space<vmem>>, vector<1x128x128xbf16>
    %51 = vector.shape_cast %50 : vector<1x128x128xbf16> to vector<128x128xbf16>
    %cst_32 = arith.constant dense<0.000000e+00> : vector<64x128xf32>
    %52 = tpu.matmul %49, %51, %cst_32 {dimension_numbers = #tpu.dot_dimension_numbers<[1], [0], [0], [1], [0, 0, 1, 1], [], []>} : vector<64x128xbf16>, vector<128x128xbf16>, vector<64x128xf32> -> vector<64x128xf32>
    %53 = arith.addf %48, %52 : vector<64x128xf32>
    %c63_i32 = arith.constant 63 : i32
    %54 = tpu.dynamic_rotate %9 by %c63_i32 dim 0 : vector<64x128xf32>, i32 -> vector<64x128xf32>
    %c5 = arith.constant 5 : index
    %c0_33 = arith.constant 0 : index
    %c0_34 = arith.constant 0 : index
    %55 = vector.load %arg18[%c5, %c0_33, %c0_34] : memref<9x64x1xf32, #tpu.memory_space<vmem>>, vector<1x64x1xf32>
    %56 = vector.shape_cast %55 : vector<1x64x1xf32> to vector<64x1xf32>
    %57 = vector.broadcast %56 : vector<64x1xf32> to vector<64x128xf32>
    %58 = arith.mulf %54, %57 : vector<64x128xf32>
    %59 = arith.truncf %58 : vector<64x128xf32> to vector<64x128xbf16>
    %c5_35 = arith.constant 5 : index
    %c0_36 = arith.constant 0 : index
    %c0_37 = arith.constant 0 : index
    %60 = vector.load %arg4[%c5_35, %c0_36, %c0_37] : memref<9x128x128xbf16, #tpu.memory_space<vmem>>, vector<1x128x128xbf16>
    %61 = vector.shape_cast %60 : vector<1x128x128xbf16> to vector<128x128xbf16>
    %cst_38 = arith.constant dense<0.000000e+00> : vector<64x128xf32>
    %62 = tpu.matmul %59, %61, %cst_38 {dimension_numbers = #tpu.dot_dimension_numbers<[1], [0], [0], [1], [0, 0, 1, 1], [], []>} : vector<64x128xbf16>, vector<128x128xbf16>, vector<64x128xf32> -> vector<64x128xf32>
    %63 = arith.addf %53, %62 : vector<64x128xf32>
    %c57_i32 = arith.constant 57 : i32
    %64 = tpu.dynamic_rotate %9 by %c57_i32 dim 0 : vector<64x128xf32>, i32 -> vector<64x128xf32>
    %c6 = arith.constant 6 : index
    %c0_39 = arith.constant 0 : index
    %c0_40 = arith.constant 0 : index
    %65 = vector.load %arg18[%c6, %c0_39, %c0_40] : memref<9x64x1xf32, #tpu.memory_space<vmem>>, vector<1x64x1xf32>
    %66 = vector.shape_cast %65 : vector<1x64x1xf32> to vector<64x1xf32>
    %67 = vector.broadcast %66 : vector<64x1xf32> to vector<64x128xf32>
    %68 = arith.mulf %64, %67 : vector<64x128xf32>
    %69 = arith.truncf %68 : vector<64x128xf32> to vector<64x128xbf16>
    %c6_41 = arith.constant 6 : index
    %c0_42 = arith.constant 0 : index
    %c0_43 = arith.constant 0 : index
    %70 = vector.load %arg4[%c6_41, %c0_42, %c0_43] : memref<9x128x128xbf16, #tpu.memory_space<vmem>>, vector<1x128x128xbf16>
    %71 = vector.shape_cast %70 : vector<1x128x128xbf16> to vector<128x128xbf16>
    %cst_44 = arith.constant dense<0.000000e+00> : vector<64x128xf32>
    %72 = tpu.matmul %69, %71, %cst_44 {dimension_numbers = #tpu.dot_dimension_numbers<[1], [0], [0], [1], [0, 0, 1, 1], [], []>} : vector<64x128xbf16>, vector<128x128xbf16>, vector<64x128xf32> -> vector<64x128xf32>
    %73 = arith.addf %63, %72 : vector<64x128xf32>
    %c56_i32 = arith.constant 56 : i32
    %74 = tpu.dynamic_rotate %9 by %c56_i32 dim 0 : vector<64x128xf32>, i32 -> vector<64x128xf32>
    %c7 = arith.constant 7 : index
    %c0_45 = arith.constant 0 : index
    %c0_46 = arith.constant 0 : index
    %75 = vector.load %arg18[%c7, %c0_45, %c0_46] : memref<9x64x1xf32, #tpu.memory_space<vmem>>, vector<1x64x1xf32>
    %76 = vector.shape_cast %75 : vector<1x64x1xf32> to vector<64x1xf32>
    %77 = vector.broadcast %76 : vector<64x1xf32> to vector<64x128xf32>
    %78 = arith.mulf %74, %77 : vector<64x128xf32>
    %79 = arith.truncf %78 : vector<64x128xf32> to vector<64x128xbf16>
    %c7_47 = arith.constant 7 : index
    %c0_48 = arith.constant 0 : index
    %c0_49 = arith.constant 0 : index
    %80 = vector.load %arg4[%c7_47, %c0_48, %c0_49] : memref<9x128x128xbf16, #tpu.memory_space<vmem>>, vector<1x128x128xbf16>
    %81 = vector.shape_cast %80 : vector<1x128x128xbf16> to vector<128x128xbf16>
    %cst_50 = arith.constant dense<0.000000e+00> : vector<64x128xf32>
    %82 = tpu.matmul %79, %81, %cst_50 {dimension_numbers = #tpu.dot_dimension_numbers<[1], [0], [0], [1], [0, 0, 1, 1], [], []>} : vector<64x128xbf16>, vector<128x128xbf16>, vector<64x128xf32> -> vector<64x128xf32>
    %83 = arith.addf %73, %82 : vector<64x128xf32>
    %c55_i32 = arith.constant 55 : i32
    %84 = tpu.dynamic_rotate %9 by %c55_i32 dim 0 : vector<64x128xf32>, i32 -> vector<64x128xf32>
    %c8 = arith.constant 8 : index
    %c0_51 = arith.constant 0 : index
    %c0_52 = arith.constant 0 : index
    %85 = vector.load %arg18[%c8, %c0_51, %c0_52] : memref<9x64x1xf32, #tpu.memory_space<vmem>>, vector<1x64x1xf32>
    %86 = vector.shape_cast %85 : vector<1x64x1xf32> to vector<64x1xf32>
    %87 = vector.broadcast %86 : vector<64x1xf32> to vector<64x128xf32>
    %88 = arith.mulf %84, %87 : vector<64x128xf32>
    %89 = arith.truncf %88 : vector<64x128xf32> to vector<64x128xbf16>
    %c8_53 = arith.constant 8 : index
    %c0_54 = arith.constant 0 : index
    %c0_55 = arith.constant 0 : index
    %90 = vector.load %arg4[%c8_53, %c0_54, %c0_55] : memref<9x128x128xbf16, #tpu.memory_space<vmem>>, vector<1x128x128xbf16>
    %91 = vector.shape_cast %90 : vector<1x128x128xbf16> to vector<128x128xbf16>
    %cst_56 = arith.constant dense<0.000000e+00> : vector<64x128xf32>
    %92 = tpu.matmul %89, %91, %cst_56 {dimension_numbers = #tpu.dot_dimension_numbers<[1], [0], [0], [1], [0, 0, 1, 1], [], []>} : vector<64x128xbf16>, vector<128x128xbf16>, vector<64x128xf32> -> vector<64x128xf32>
    %93 = arith.addf %83, %92 : vector<64x128xf32>
    %c0_57 = arith.constant 0 : index
    %c0_58 = arith.constant 0 : index
    %94 = vector.load %arg5[%c0_57, %c0_58] : memref<2x128xf32, #tpu.memory_space<vmem>>, vector<2x128xf32>
    %95 = vector.extract_strided_slice %94 {offsets = [0, 0], sizes = [1, 128], strides = [1, 1]} : vector<2x128xf32> to vector<1x128xf32>
    %96 = vector.broadcast %95 : vector<1x128xf32> to vector<64x128xf32>
    %97 = arith.mulf %93, %96 : vector<64x128xf32>
    %98 = vector.extract_strided_slice %94 {offsets = [1, 0], sizes = [1, 128], strides = [1, 1]} : vector<2x128xf32> to vector<1x128xf32>
    %99 = vector.broadcast %98 : vector<1x128xf32> to vector<64x128xf32>
    %100 = arith.addf %97, %99 : vector<64x128xf32>
    %cst_59 = arith.constant 0.000000e+00 : f32
    %101 = vector.broadcast %cst_59 : f32 to vector<64x128xf32>
    %102 = arith.maximumf %100, %101 : vector<64x128xf32>
    %c9_i32_60 = arith.constant 9 : i32
    %103 = tpu.dynamic_rotate %102 by %c9_i32_60 dim 0 : vector<64x128xf32>, i32 -> vector<64x128xf32>
    %c0_61 = arith.constant 0 : index
    %c0_62 = arith.constant 0 : index
    %c0_63 = arith.constant 0 : index
    %104 = vector.load %arg18[%c0_61, %c0_62, %c0_63] : memref<9x64x1xf32, #tpu.memory_space<vmem>>, vector<1x64x1xf32>
    %105 = vector.shape_cast %104 : vector<1x64x1xf32> to vector<64x1xf32>
    %106 = vector.broadcast %105 : vector<64x1xf32> to vector<64x128xf32>
    %107 = arith.mulf %103, %106 : vector<64x128xf32>
    %108 = arith.truncf %107 : vector<64x128xf32> to vector<64x128xbf16>
    %c0_64 = arith.constant 0 : index
    %c0_65 = arith.constant 0 : index
    %c0_66 = arith.constant 0 : index
    %109 = vector.load %arg6[%c0_64, %c0_65, %c0_66] : memref<9x128x128xbf16, #tpu.memory_space<vmem>>, vector<1x128x128xbf16>
    %110 = vector.shape_cast %109 : vector<1x128x128xbf16> to vector<128x128xbf16>
    %cst_67 = arith.constant dense<0.000000e+00> : vector<64x128xf32>
    %111 = tpu.matmul %108, %110, %cst_67 {dimension_numbers = #tpu.dot_dimension_numbers<[1], [0], [0], [1], [0, 0, 1, 1], [], []>} : vector<64x128xbf16>, vector<128x128xbf16>, vector<64x128xf32> -> vector<64x128xf32>
    %c8_i32_68 = arith.constant 8 : i32
    %112 = tpu.dynamic_rotate %102 by %c8_i32_68 dim 0 : vector<64x128xf32>, i32 -> vector<64x128xf32>
    %c1_69 = arith.constant 1 : index
    %c0_70 = arith.constant 0 : index
    %c0_71 = arith.constant 0 : index
    %113 = vector.load %arg18[%c1_69, %c0_70, %c0_71] : memref<9x64x1xf32, #tpu.memory_space<vmem>>, vector<1x64x1xf32>
    %114 = vector.shape_cast %113 : vector<1x64x1xf32> to vector<64x1xf32>
    %115 = vector.broadcast %114 : vector<64x1xf32> to vector<64x128xf32>
    %116 = arith.mulf %112, %115 : vector<64x128xf32>
    %117 = arith.truncf %116 : vector<64x128xf32> to vector<64x128xbf16>
    %c1_72 = arith.constant 1 : index
    %c0_73 = arith.constant 0 : index
    %c0_74 = arith.constant 0 : index
    %118 = vector.load %arg6[%c1_72, %c0_73, %c0_74] : memref<9x128x128xbf16, #tpu.memory_space<vmem>>, vector<1x128x128xbf16>
    %119 = vector.shape_cast %118 : vector<1x128x128xbf16> to vector<128x128xbf16>
    %cst_75 = arith.constant dense<0.000000e+00> : vector<64x128xf32>
    %120 = tpu.matmul %117, %119, %cst_75 {dimension_numbers = #tpu.dot_dimension_numbers<[1], [0], [0], [1], [0, 0, 1, 1], [], []>} : vector<64x128xbf16>, vector<128x128xbf16>, vector<64x128xf32> -> vector<64x128xf32>
    %121 = arith.addf %111, %120 : vector<64x128xf32>
    %c7_i32_76 = arith.constant 7 : i32
    %122 = tpu.dynamic_rotate %102 by %c7_i32_76 dim 0 : vector<64x128xf32>, i32 -> vector<64x128xf32>
    %c2_77 = arith.constant 2 : index
    %c0_78 = arith.constant 0 : index
    %c0_79 = arith.constant 0 : index
    %123 = vector.load %arg18[%c2_77, %c0_78, %c0_79] : memref<9x64x1xf32, #tpu.memory_space<vmem>>, vector<1x64x1xf32>
    %124 = vector.shape_cast %123 : vector<1x64x1xf32> to vector<64x1xf32>
    %125 = vector.broadcast %124 : vector<64x1xf32> to vector<64x128xf32>
    %126 = arith.mulf %122, %125 : vector<64x128xf32>
    %127 = arith.truncf %126 : vector<64x128xf32> to vector<64x128xbf16>
    %c2_80 = arith.constant 2 : index
    %c0_81 = arith.constant 0 : index
    %c0_82 = arith.constant 0 : index
    %128 = vector.load %arg6[%c2_80, %c0_81, %c0_82] : memref<9x128x128xbf16, #tpu.memory_space<vmem>>, vector<1x128x128xbf16>
    %129 = vector.shape_cast %128 : vector<1x128x128xbf16> to vector<128x128xbf16>
    %cst_83 = arith.constant dense<0.000000e+00> : vector<64x128xf32>
    %130 = tpu.matmul %127, %129, %cst_83 {dimension_numbers = #tpu.dot_dimension_numbers<[1], [0], [0], [1], [0, 0, 1, 1], [], []>} : vector<64x128xbf16>, vector<128x128xbf16>, vector<64x128xf32> -> vector<64x128xf32>
    %131 = arith.addf %121, %130 : vector<64x128xf32>
    %c1_i32_84 = arith.constant 1 : i32
    %132 = tpu.dynamic_rotate %102 by %c1_i32_84 dim 0 : vector<64x128xf32>, i32 -> vector<64x128xf32>
    %c3_85 = arith.constant 3 : index
    %c0_86 = arith.constant 0 : index
    %c0_87 = arith.constant 0 : index
    %133 = vector.load %arg18[%c3_85, %c0_86, %c0_87] : memref<9x64x1xf32, #tpu.memory_space<vmem>>, vector<1x64x1xf32>
    %134 = vector.shape_cast %133 : vector<1x64x1xf32> to vector<64x1xf32>
    %135 = vector.broadcast %134 : vector<64x1xf32> to vector<64x128xf32>
    %136 = arith.mulf %132, %135 : vector<64x128xf32>
    %137 = arith.truncf %136 : vector<64x128xf32> to vector<64x128xbf16>
    %c3_88 = arith.constant 3 : index
    %c0_89 = arith.constant 0 : index
    %c0_90 = arith.constant 0 : index
    %138 = vector.load %arg6[%c3_88, %c0_89, %c0_90] : memref<9x128x128xbf16, #tpu.memory_space<vmem>>, vector<1x128x128xbf16>
    %139 = vector.shape_cast %138 : vector<1x128x128xbf16> to vector<128x128xbf16>
    %cst_91 = arith.constant dense<0.000000e+00> : vector<64x128xf32>
    %140 = tpu.matmul %137, %139, %cst_91 {dimension_numbers = #tpu.dot_dimension_numbers<[1], [0], [0], [1], [0, 0, 1, 1], [], []>} : vector<64x128xbf16>, vector<128x128xbf16>, vector<64x128xf32> -> vector<64x128xf32>
    %141 = arith.addf %131, %140 : vector<64x128xf32>
    %142 = arith.truncf %102 : vector<64x128xf32> to vector<64x128xbf16>
    %c4_92 = arith.constant 4 : index
    %c0_93 = arith.constant 0 : index
    %c0_94 = arith.constant 0 : index
    %143 = vector.load %arg6[%c4_92, %c0_93, %c0_94] : memref<9x128x128xbf16, #tpu.memory_space<vmem>>, vector<1x128x128xbf16>
    %144 = vector.shape_cast %143 : vector<1x128x128xbf16> to vector<128x128xbf16>
    %cst_95 = arith.constant dense<0.000000e+00> : vector<64x128xf32>
    %145 = tpu.matmul %142, %144, %cst_95 {dimension_numbers = #tpu.dot_dimension_numbers<[1], [0], [0], [1], [0, 0, 1, 1], [], []>} : vector<64x128xbf16>, vector<128x128xbf16>, vector<64x128xf32> -> vector<64x128xf32>
    %146 = arith.addf %141, %145 : vector<64x128xf32>
    %c63_i32_96 = arith.constant 63 : i32
    %147 = tpu.dynamic_rotate %102 by %c63_i32_96 dim 0 : vector<64x128xf32>, i32 -> vector<64x128xf32>
    %c5_97 = arith.constant 5 : index
    %c0_98 = arith.constant 0 : index
    %c0_99 = arith.constant 0 : index
    %148 = vector.load %arg18[%c5_97, %c0_98, %c0_99] : memref<9x64x1xf32, #tpu.memory_space<vmem>>, vector<1x64x1xf32>
    %149 = vector.shape_cast %148 : vector<1x64x1xf32> to vector<64x1xf32>
    %150 = vector.broadcast %149 : vector<64x1xf32> to vector<64x128xf32>
    %151 = arith.mulf %147, %150 : vector<64x128xf32>
    %152 = arith.truncf %151 : vector<64x128xf32> to vector<64x128xbf16>
    %c5_100 = arith.constant 5 : index
    %c0_101 = arith.constant 0 : index
    %c0_102 = arith.constant 0 : index
    %153 = vector.load %arg6[%c5_100, %c0_101, %c0_102] : memref<9x128x128xbf16, #tpu.memory_space<vmem>>, vector<1x128x128xbf16>
    %154 = vector.shape_cast %153 : vector<1x128x128xbf16> to vector<128x128xbf16>
    %cst_103 = arith.constant dense<0.000000e+00> : vector<64x128xf32>
    %155 = tpu.matmul %152, %154, %cst_103 {dimension_numbers = #tpu.dot_dimension_numbers<[1], [0], [0], [1], [0, 0, 1, 1], [], []>} : vector<64x128xbf16>, vector<128x128xbf16>, vector<64x128xf32> -> vector<64x128xf32>
    %156 = arith.addf %146, %155 : vector<64x128xf32>
    %c57_i32_104 = arith.constant 57 : i32
    %157 = tpu.dynamic_rotate %102 by %c57_i32_104 dim 0 : vector<64x128xf32>, i32 -> vector<64x128xf32>
    %c6_105 = arith.constant 6 : index
    %c0_106 = arith.constant 0 : index
    %c0_107 = arith.constant 0 : index
    %158 = vector.load %arg18[%c6_105, %c0_106, %c0_107] : memref<9x64x1xf32, #tpu.memory_space<vmem>>, vector<1x64x1xf32>
    %159 = vector.shape_cast %158 : vector<1x64x1xf32> to vector<64x1xf32>
    %160 = vector.broadcast %159 : vector<64x1xf32> to vector<64x128xf32>
    %161 = arith.mulf %157, %160 : vector<64x128xf32>
    %162 = arith.truncf %161 : vector<64x128xf32> to vector<64x128xbf16>
    %c6_108 = arith.constant 6 : index
    %c0_109 = arith.constant 0 : index
    %c0_110 = arith.constant 0 : index
    %163 = vector.load %arg6[%c6_108, %c0_109, %c0_110] : memref<9x128x128xbf16, #tpu.memory_space<vmem>>, vector<1x128x128xbf16>
    %164 = vector.shape_cast %163 : vector<1x128x128xbf16> to vector<128x128xbf16>
    %cst_111 = arith.constant dense<0.000000e+00> : vector<64x128xf32>
    %165 = tpu.matmul %162, %164, %cst_111 {dimension_numbers = #tpu.dot_dimension_numbers<[1], [0], [0], [1], [0, 0, 1, 1], [], []>} : vector<64x128xbf16>, vector<128x128xbf16>, vector<64x128xf32> -> vector<64x128xf32>
    %166 = arith.addf %156, %165 : vector<64x128xf32>
    %c56_i32_112 = arith.constant 56 : i32
    %167 = tpu.dynamic_rotate %102 by %c56_i32_112 dim 0 : vector<64x128xf32>, i32 -> vector<64x128xf32>
    %c7_113 = arith.constant 7 : index
    %c0_114 = arith.constant 0 : index
    %c0_115 = arith.constant 0 : index
    %168 = vector.load %arg18[%c7_113, %c0_114, %c0_115] : memref<9x64x1xf32, #tpu.memory_space<vmem>>, vector<1x64x1xf32>
    %169 = vector.shape_cast %168 : vector<1x64x1xf32> to vector<64x1xf32>
    %170 = vector.broadcast %169 : vector<64x1xf32> to vector<64x128xf32>
    %171 = arith.mulf %167, %170 : vector<64x128xf32>
    %172 = arith.truncf %171 : vector<64x128xf32> to vector<64x128xbf16>
    %c7_116 = arith.constant 7 : index
    %c0_117 = arith.constant 0 : index
    %c0_118 = arith.constant 0 : index
    %173 = vector.load %arg6[%c7_116, %c0_117, %c0_118] : memref<9x128x128xbf16, #tpu.memory_space<vmem>>, vector<1x128x128xbf16>
    %174 = vector.shape_cast %173 : vector<1x128x128xbf16> to vector<128x128xbf16>
    %cst_119 = arith.constant dense<0.000000e+00> : vector<64x128xf32>
    %175 = tpu.matmul %172, %174, %cst_119 {dimension_numbers = #tpu.dot_dimension_numbers<[1], [0], [0], [1], [0, 0, 1, 1], [], []>} : vector<64x128xbf16>, vector<128x128xbf16>, vector<64x128xf32> -> vector<64x128xf32>
    %176 = arith.addf %166, %175 : vector<64x128xf32>
    %c55_i32_120 = arith.constant 55 : i32
    %177 = tpu.dynamic_rotate %102 by %c55_i32_120 dim 0 : vector<64x128xf32>, i32 -> vector<64x128xf32>
    %c8_121 = arith.constant 8 : index
    %c0_122 = arith.constant 0 : index
    %c0_123 = arith.constant 0 : index
    %178 = vector.load %arg18[%c8_121, %c0_122, %c0_123] : memref<9x64x1xf32, #tpu.memory_space<vmem>>, vector<1x64x1xf32>
    %179 = vector.shape_cast %178 : vector<1x64x1xf32> to vector<64x1xf32>
    %180 = vector.broadcast %179 : vector<64x1xf32> to vector<64x128xf32>
    %181 = arith.mulf %177, %180 : vector<64x128xf32>
    %182 = arith.truncf %181 : vector<64x128xf32> to vector<64x128xbf16>
    %c8_124 = arith.constant 8 : index
    %c0_125 = arith.constant 0 : index
    %c0_126 = arith.constant 0 : index
    %183 = vector.load %arg6[%c8_124, %c0_125, %c0_126] : memref<9x128x128xbf16, #tpu.memory_space<vmem>>, vector<1x128x128xbf16>
    %184 = vector.shape_cast %183 : vector<1x128x128xbf16> to vector<128x128xbf16>
    %cst_127 = arith.constant dense<0.000000e+00> : vector<64x128xf32>
    %185 = tpu.matmul %182, %184, %cst_127 {dimension_numbers = #tpu.dot_dimension_numbers<[1], [0], [0], [1], [0, 0, 1, 1], [], []>} : vector<64x128xbf16>, vector<128x128xbf16>, vector<64x128xf32> -> vector<64x128xf32>
    %186 = arith.addf %176, %185 : vector<64x128xf32>
    %c0_128 = arith.constant 0 : index
    %c0_129 = arith.constant 0 : index
    %187 = vector.load %arg7[%c0_128, %c0_129] : memref<2x128xf32, #tpu.memory_space<vmem>>, vector<2x128xf32>
    %188 = vector.extract_strided_slice %187 {offsets = [0, 0], sizes = [1, 128], strides = [1, 1]} : vector<2x128xf32> to vector<1x128xf32>
    %189 = vector.broadcast %188 : vector<1x128xf32> to vector<64x128xf32>
    %190 = arith.mulf %186, %189 : vector<64x128xf32>
    %191 = vector.extract_strided_slice %187 {offsets = [1, 0], sizes = [1, 128], strides = [1, 1]} : vector<2x128xf32> to vector<1x128xf32>
    %192 = vector.broadcast %191 : vector<1x128xf32> to vector<64x128xf32>
    %193 = arith.addf %190, %192 : vector<64x128xf32>
    %194 = arith.addf %193, %9 : vector<64x128xf32>
    %cst_130 = arith.constant 0.000000e+00 : f32
    %195 = vector.broadcast %cst_130 : f32 to vector<64x128xf32>
    %196 = arith.maximumf %194, %195 : vector<64x128xf32>
    %c9_i32_131 = arith.constant 9 : i32
    %197 = tpu.dynamic_rotate %196 by %c9_i32_131 dim 0 : vector<64x128xf32>, i32 -> vector<64x128xf32>
    %c0_132 = arith.constant 0 : index
    %c0_133 = arith.constant 0 : index
    %c0_134 = arith.constant 0 : index
    %198 = vector.load %arg18[%c0_132, %c0_133, %c0_134] : memref<9x64x1xf32, #tpu.memory_space<vmem>>, vector<1x64x1xf32>
    %199 = vector.shape_cast %198 : vector<1x64x1xf32> to vector<64x1xf32>
    %200 = vector.broadcast %199 : vector<64x1xf32> to vector<64x128xf32>
    %201 = arith.mulf %197, %200 : vector<64x128xf32>
    %202 = arith.truncf %201 : vector<64x128xf32> to vector<64x128xbf16>
    %c0_135 = arith.constant 0 : index
    %c0_136 = arith.constant 0 : index
    %c0_137 = arith.constant 0 : index
    %203 = vector.load %arg8[%c0_135, %c0_136, %c0_137] : memref<9x128x128xbf16, #tpu.memory_space<vmem>>, vector<1x128x128xbf16>
    %204 = vector.shape_cast %203 : vector<1x128x128xbf16> to vector<128x128xbf16>
    %cst_138 = arith.constant dense<0.000000e+00> : vector<64x128xf32>
    %205 = tpu.matmul %202, %204, %cst_138 {dimension_numbers = #tpu.dot_dimension_numbers<[1], [0], [0], [1], [0, 0, 1, 1], [], []>} : vector<64x128xbf16>, vector<128x128xbf16>, vector<64x128xf32> -> vector<64x128xf32>
    %c8_i32_139 = arith.constant 8 : i32
    %206 = tpu.dynamic_rotate %196 by %c8_i32_139 dim 0 : vector<64x128xf32>, i32 -> vector<64x128xf32>
    %c1_140 = arith.constant 1 : index
    %c0_141 = arith.constant 0 : index
    %c0_142 = arith.constant 0 : index
    %207 = vector.load %arg18[%c1_140, %c0_141, %c0_142] : memref<9x64x1xf32, #tpu.memory_space<vmem>>, vector<1x64x1xf32>
    %208 = vector.shape_cast %207 : vector<1x64x1xf32> to vector<64x1xf32>
    %209 = vector.broadcast %208 : vector<64x1xf32> to vector<64x128xf32>
    %210 = arith.mulf %206, %209 : vector<64x128xf32>
    %211 = arith.truncf %210 : vector<64x128xf32> to vector<64x128xbf16>
    %c1_143 = arith.constant 1 : index
    %c0_144 = arith.constant 0 : index
    %c0_145 = arith.constant 0 : index
    %212 = vector.load %arg8[%c1_143, %c0_144, %c0_145] : memref<9x128x128xbf16, #tpu.memory_space<vmem>>, vector<1x128x128xbf16>
    %213 = vector.shape_cast %212 : vector<1x128x128xbf16> to vector<128x128xbf16>
    %cst_146 = arith.constant dense<0.000000e+00> : vector<64x128xf32>
    %214 = tpu.matmul %211, %213, %cst_146 {dimension_numbers = #tpu.dot_dimension_numbers<[1], [0], [0], [1], [0, 0, 1, 1], [], []>} : vector<64x128xbf16>, vector<128x128xbf16>, vector<64x128xf32> -> vector<64x128xf32>
    %215 = arith.addf %205, %214 : vector<64x128xf32>
    %c7_i32_147 = arith.constant 7 : i32
    %216 = tpu.dynamic_rotate %196 by %c7_i32_147 dim 0 : vector<64x128xf32>, i32 -> vector<64x128xf32>
    %c2_148 = arith.constant 2 : index
    %c0_149 = arith.constant 0 : index
    %c0_150 = arith.constant 0 : index
    %217 = vector.load %arg18[%c2_148, %c0_149, %c0_150] : memref<9x64x1xf32, #tpu.memory_space<vmem>>, vector<1x64x1xf32>
    %218 = vector.shape_cast %217 : vector<1x64x1xf32> to vector<64x1xf32>
    %219 = vector.broadcast %218 : vector<64x1xf32> to vector<64x128xf32>
    %220 = arith.mulf %216, %219 : vector<64x128xf32>
    %221 = arith.truncf %220 : vector<64x128xf32> to vector<64x128xbf16>
    %c2_151 = arith.constant 2 : index
    %c0_152 = arith.constant 0 : index
    %c0_153 = arith.constant 0 : index
    %222 = vector.load %arg8[%c2_151, %c0_152, %c0_153] : memref<9x128x128xbf16, #tpu.memory_space<vmem>>, vector<1x128x128xbf16>
    %223 = vector.shape_cast %222 : vector<1x128x128xbf16> to vector<128x128xbf16>
    %cst_154 = arith.constant dense<0.000000e+00> : vector<64x128xf32>
    %224 = tpu.matmul %221, %223, %cst_154 {dimension_numbers = #tpu.dot_dimension_numbers<[1], [0], [0], [1], [0, 0, 1, 1], [], []>} : vector<64x128xbf16>, vector<128x128xbf16>, vector<64x128xf32> -> vector<64x128xf32>
    %225 = arith.addf %215, %224 : vector<64x128xf32>
    %c1_i32_155 = arith.constant 1 : i32
    %226 = tpu.dynamic_rotate %196 by %c1_i32_155 dim 0 : vector<64x128xf32>, i32 -> vector<64x128xf32>
    %c3_156 = arith.constant 3 : index
    %c0_157 = arith.constant 0 : index
    %c0_158 = arith.constant 0 : index
    %227 = vector.load %arg18[%c3_156, %c0_157, %c0_158] : memref<9x64x1xf32, #tpu.memory_space<vmem>>, vector<1x64x1xf32>
    %228 = vector.shape_cast %227 : vector<1x64x1xf32> to vector<64x1xf32>
    %229 = vector.broadcast %228 : vector<64x1xf32> to vector<64x128xf32>
    %230 = arith.mulf %226, %229 : vector<64x128xf32>
    %231 = arith.truncf %230 : vector<64x128xf32> to vector<64x128xbf16>
    %c3_159 = arith.constant 3 : index
    %c0_160 = arith.constant 0 : index
    %c0_161 = arith.constant 0 : index
    %232 = vector.load %arg8[%c3_159, %c0_160, %c0_161] : memref<9x128x128xbf16, #tpu.memory_space<vmem>>, vector<1x128x128xbf16>
    %233 = vector.shape_cast %232 : vector<1x128x128xbf16> to vector<128x128xbf16>
    %cst_162 = arith.constant dense<0.000000e+00> : vector<64x128xf32>
    %234 = tpu.matmul %231, %233, %cst_162 {dimension_numbers = #tpu.dot_dimension_numbers<[1], [0], [0], [1], [0, 0, 1, 1], [], []>} : vector<64x128xbf16>, vector<128x128xbf16>, vector<64x128xf32> -> vector<64x128xf32>
    %235 = arith.addf %225, %234 : vector<64x128xf32>
    %236 = arith.truncf %196 : vector<64x128xf32> to vector<64x128xbf16>
    %c4_163 = arith.constant 4 : index
    %c0_164 = arith.constant 0 : index
    %c0_165 = arith.constant 0 : index
    %237 = vector.load %arg8[%c4_163, %c0_164, %c0_165] : memref<9x128x128xbf16, #tpu.memory_space<vmem>>, vector<1x128x128xbf16>
    %238 = vector.shape_cast %237 : vector<1x128x128xbf16> to vector<128x128xbf16>
    %cst_166 = arith.constant dense<0.000000e+00> : vector<64x128xf32>
    %239 = tpu.matmul %236, %238, %cst_166 {dimension_numbers = #tpu.dot_dimension_numbers<[1], [0], [0], [1], [0, 0, 1, 1], [], []>} : vector<64x128xbf16>, vector<128x128xbf16>, vector<64x128xf32> -> vector<64x128xf32>
    %240 = arith.addf %235, %239 : vector<64x128xf32>
    %c63_i32_167 = arith.constant 63 : i32
    %241 = tpu.dynamic_rotate %196 by %c63_i32_167 dim 0 : vector<64x128xf32>, i32 -> vector<64x128xf32>
    %c5_168 = arith.constant 5 : index
    %c0_169 = arith.constant 0 : index
    %c0_170 = arith.constant 0 : index
    %242 = vector.load %arg18[%c5_168, %c0_169, %c0_170] : memref<9x64x1xf32, #tpu.memory_space<vmem>>, vector<1x64x1xf32>
    %243 = vector.shape_cast %242 : vector<1x64x1xf32> to vector<64x1xf32>
    %244 = vector.broadcast %243 : vector<64x1xf32> to vector<64x128xf32>
    %245 = arith.mulf %241, %244 : vector<64x128xf32>
    %246 = arith.truncf %245 : vector<64x128xf32> to vector<64x128xbf16>
    %c5_171 = arith.constant 5 : index
    %c0_172 = arith.constant 0 : index
    %c0_173 = arith.constant 0 : index
    %247 = vector.load %arg8[%c5_171, %c0_172, %c0_173] : memref<9x128x128xbf16, #tpu.memory_space<vmem>>, vector<1x128x128xbf16>
    %248 = vector.shape_cast %247 : vector<1x128x128xbf16> to vector<128x128xbf16>
    %cst_174 = arith.constant dense<0.000000e+00> : vector<64x128xf32>
    %249 = tpu.matmul %246, %248, %cst_174 {dimension_numbers = #tpu.dot_dimension_numbers<[1], [0], [0], [1], [0, 0, 1, 1], [], []>} : vector<64x128xbf16>, vector<128x128xbf16>, vector<64x128xf32> -> vector<64x128xf32>
    %250 = arith.addf %240, %249 : vector<64x128xf32>
    %c57_i32_175 = arith.constant 57 : i32
    %251 = tpu.dynamic_rotate %196 by %c57_i32_175 dim 0 : vector<64x128xf32>, i32 -> vector<64x128xf32>
    %c6_176 = arith.constant 6 : index
    %c0_177 = arith.constant 0 : index
    %c0_178 = arith.constant 0 : index
    %252 = vector.load %arg18[%c6_176, %c0_177, %c0_178] : memref<9x64x1xf32, #tpu.memory_space<vmem>>, vector<1x64x1xf32>
    %253 = vector.shape_cast %252 : vector<1x64x1xf32> to vector<64x1xf32>
    %254 = vector.broadcast %253 : vector<64x1xf32> to vector<64x128xf32>
    %255 = arith.mulf %251, %254 : vector<64x128xf32>
    %256 = arith.truncf %255 : vector<64x128xf32> to vector<64x128xbf16>
    %c6_179 = arith.constant 6 : index
    %c0_180 = arith.constant 0 : index
    %c0_181 = arith.constant 0 : index
    %257 = vector.load %arg8[%c6_179, %c0_180, %c0_181] : memref<9x128x128xbf16, #tpu.memory_space<vmem>>, vector<1x128x128xbf16>
    %258 = vector.shape_cast %257 : vector<1x128x128xbf16> to vector<128x128xbf16>
    %cst_182 = arith.constant dense<0.000000e+00> : vector<64x128xf32>
    %259 = tpu.matmul %256, %258, %cst_182 {dimension_numbers = #tpu.dot_dimension_numbers<[1], [0], [0], [1], [0, 0, 1, 1], [], []>} : vector<64x128xbf16>, vector<128x128xbf16>, vector<64x128xf32> -> vector<64x128xf32>
    %260 = arith.addf %250, %259 : vector<64x128xf32>
    %c56_i32_183 = arith.constant 56 : i32
    %261 = tpu.dynamic_rotate %196 by %c56_i32_183 dim 0 : vector<64x128xf32>, i32 -> vector<64x128xf32>
    %c7_184 = arith.constant 7 : index
    %c0_185 = arith.constant 0 : index
    %c0_186 = arith.constant 0 : index
    %262 = vector.load %arg18[%c7_184, %c0_185, %c0_186] : memref<9x64x1xf32, #tpu.memory_space<vmem>>, vector<1x64x1xf32>
    %263 = vector.shape_cast %262 : vector<1x64x1xf32> to vector<64x1xf32>
    %264 = vector.broadcast %263 : vector<64x1xf32> to vector<64x128xf32>
    %265 = arith.mulf %261, %264 : vector<64x128xf32>
    %266 = arith.truncf %265 : vector<64x128xf32> to vector<64x128xbf16>
    %c7_187 = arith.constant 7 : index
    %c0_188 = arith.constant 0 : index
    %c0_189 = arith.constant 0 : index
    %267 = vector.load %arg8[%c7_187, %c0_188, %c0_189] : memref<9x128x128xbf16, #tpu.memory_space<vmem>>, vector<1x128x128xbf16>
    %268 = vector.shape_cast %267 : vector<1x128x128xbf16> to vector<128x128xbf16>
    %cst_190 = arith.constant dense<0.000000e+00> : vector<64x128xf32>
    %269 = tpu.matmul %266, %268, %cst_190 {dimension_numbers = #tpu.dot_dimension_numbers<[1], [0], [0], [1], [0, 0, 1, 1], [], []>} : vector<64x128xbf16>, vector<128x128xbf16>, vector<64x128xf32> -> vector<64x128xf32>
    %270 = arith.addf %260, %269 : vector<64x128xf32>
    %c55_i32_191 = arith.constant 55 : i32
    %271 = tpu.dynamic_rotate %196 by %c55_i32_191 dim 0 : vector<64x128xf32>, i32 -> vector<64x128xf32>
    %c8_192 = arith.constant 8 : index
    %c0_193 = arith.constant 0 : index
    %c0_194 = arith.constant 0 : index
    %272 = vector.load %arg18[%c8_192, %c0_193, %c0_194] : memref<9x64x1xf32, #tpu.memory_space<vmem>>, vector<1x64x1xf32>
    %273 = vector.shape_cast %272 : vector<1x64x1xf32> to vector<64x1xf32>
    %274 = vector.broadcast %273 : vector<64x1xf32> to vector<64x128xf32>
    %275 = arith.mulf %271, %274 : vector<64x128xf32>
    %276 = arith.truncf %275 : vector<64x128xf32> to vector<64x128xbf16>
    %c8_195 = arith.constant 8 : index
    %c0_196 = arith.constant 0 : index
    %c0_197 = arith.constant 0 : index
    %277 = vector.load %arg8[%c8_195, %c0_196, %c0_197] : memref<9x128x128xbf16, #tpu.memory_space<vmem>>, vector<1x128x128xbf16>
    %278 = vector.shape_cast %277 : vector<1x128x128xbf16> to vector<128x128xbf16>
    %cst_198 = arith.constant dense<0.000000e+00> : vector<64x128xf32>
    %279 = tpu.matmul %276, %278, %cst_198 {dimension_numbers = #tpu.dot_dimension_numbers<[1], [0], [0], [1], [0, 0, 1, 1], [], []>} : vector<64x128xbf16>, vector<128x128xbf16>, vector<64x128xf32> -> vector<64x128xf32>
    %280 = arith.addf %270, %279 : vector<64x128xf32>
    %c0_199 = arith.constant 0 : index
    %c0_200 = arith.constant 0 : index
    %281 = vector.load %arg9[%c0_199, %c0_200] : memref<2x128xf32, #tpu.memory_space<vmem>>, vector<2x128xf32>
    %282 = vector.extract_strided_slice %281 {offsets = [0, 0], sizes = [1, 128], strides = [1, 1]} : vector<2x128xf32> to vector<1x128xf32>
    %283 = vector.broadcast %282 : vector<1x128xf32> to vector<64x128xf32>
    %284 = arith.mulf %280, %283 : vector<64x128xf32>
    %285 = vector.extract_strided_slice %281 {offsets = [1, 0], sizes = [1, 128], strides = [1, 1]} : vector<2x128xf32> to vector<1x128xf32>
    %286 = vector.broadcast %285 : vector<1x128xf32> to vector<64x128xf32>
    %287 = arith.addf %284, %286 : vector<64x128xf32>
    %cst_201 = arith.constant 0.000000e+00 : f32
    %288 = vector.broadcast %cst_201 : f32 to vector<64x128xf32>
    %289 = arith.maximumf %287, %288 : vector<64x128xf32>
    %c9_i32_202 = arith.constant 9 : i32
    %290 = tpu.dynamic_rotate %289 by %c9_i32_202 dim 0 : vector<64x128xf32>, i32 -> vector<64x128xf32>
    %c0_203 = arith.constant 0 : index
    %c0_204 = arith.constant 0 : index
    %c0_205 = arith.constant 0 : index
    %291 = vector.load %arg18[%c0_203, %c0_204, %c0_205] : memref<9x64x1xf32, #tpu.memory_space<vmem>>, vector<1x64x1xf32>
    %292 = vector.shape_cast %291 : vector<1x64x1xf32> to vector<64x1xf32>
    %293 = vector.broadcast %292 : vector<64x1xf32> to vector<64x128xf32>
    %294 = arith.mulf %290, %293 : vector<64x128xf32>
    %295 = arith.truncf %294 : vector<64x128xf32> to vector<64x128xbf16>
    %c0_206 = arith.constant 0 : index
    %c0_207 = arith.constant 0 : index
    %c0_208 = arith.constant 0 : index
    %296 = vector.load %arg10[%c0_206, %c0_207, %c0_208] : memref<9x128x128xbf16, #tpu.memory_space<vmem>>, vector<1x128x128xbf16>
    %297 = vector.shape_cast %296 : vector<1x128x128xbf16> to vector<128x128xbf16>
    %cst_209 = arith.constant dense<0.000000e+00> : vector<64x128xf32>
    %298 = tpu.matmul %295, %297, %cst_209 {dimension_numbers = #tpu.dot_dimension_numbers<[1], [0], [0], [1], [0, 0, 1, 1], [], []>} : vector<64x128xbf16>, vector<128x128xbf16>, vector<64x128xf32> -> vector<64x128xf32>
    %c8_i32_210 = arith.constant 8 : i32
    %299 = tpu.dynamic_rotate %289 by %c8_i32_210 dim 0 : vector<64x128xf32>, i32 -> vector<64x128xf32>
    %c1_211 = arith.constant 1 : index
    %c0_212 = arith.constant 0 : index
    %c0_213 = arith.constant 0 : index
    %300 = vector.load %arg18[%c1_211, %c0_212, %c0_213] : memref<9x64x1xf32, #tpu.memory_space<vmem>>, vector<1x64x1xf32>
    %301 = vector.shape_cast %300 : vector<1x64x1xf32> to vector<64x1xf32>
    %302 = vector.broadcast %301 : vector<64x1xf32> to vector<64x128xf32>
    %303 = arith.mulf %299, %302 : vector<64x128xf32>
    %304 = arith.truncf %303 : vector<64x128xf32> to vector<64x128xbf16>
    %c1_214 = arith.constant 1 : index
    %c0_215 = arith.constant 0 : index
    %c0_216 = arith.constant 0 : index
    %305 = vector.load %arg10[%c1_214, %c0_215, %c0_216] : memref<9x128x128xbf16, #tpu.memory_space<vmem>>, vector<1x128x128xbf16>
    %306 = vector.shape_cast %305 : vector<1x128x128xbf16> to vector<128x128xbf16>
    %cst_217 = arith.constant dense<0.000000e+00> : vector<64x128xf32>
    %307 = tpu.matmul %304, %306, %cst_217 {dimension_numbers = #tpu.dot_dimension_numbers<[1], [0], [0], [1], [0, 0, 1, 1], [], []>} : vector<64x128xbf16>, vector<128x128xbf16>, vector<64x128xf32> -> vector<64x128xf32>
    %308 = arith.addf %298, %307 : vector<64x128xf32>
    %c7_i32_218 = arith.constant 7 : i32
    %309 = tpu.dynamic_rotate %289 by %c7_i32_218 dim 0 : vector<64x128xf32>, i32 -> vector<64x128xf32>
    %c2_219 = arith.constant 2 : index
    %c0_220 = arith.constant 0 : index
    %c0_221 = arith.constant 0 : index
    %310 = vector.load %arg18[%c2_219, %c0_220, %c0_221] : memref<9x64x1xf32, #tpu.memory_space<vmem>>, vector<1x64x1xf32>
    %311 = vector.shape_cast %310 : vector<1x64x1xf32> to vector<64x1xf32>
    %312 = vector.broadcast %311 : vector<64x1xf32> to vector<64x128xf32>
    %313 = arith.mulf %309, %312 : vector<64x128xf32>
    %314 = arith.truncf %313 : vector<64x128xf32> to vector<64x128xbf16>
    %c2_222 = arith.constant 2 : index
    %c0_223 = arith.constant 0 : index
    %c0_224 = arith.constant 0 : index
    %315 = vector.load %arg10[%c2_222, %c0_223, %c0_224] : memref<9x128x128xbf16, #tpu.memory_space<vmem>>, vector<1x128x128xbf16>
    %316 = vector.shape_cast %315 : vector<1x128x128xbf16> to vector<128x128xbf16>
    %cst_225 = arith.constant dense<0.000000e+00> : vector<64x128xf32>
    %317 = tpu.matmul %314, %316, %cst_225 {dimension_numbers = #tpu.dot_dimension_numbers<[1], [0], [0], [1], [0, 0, 1, 1], [], []>} : vector<64x128xbf16>, vector<128x128xbf16>, vector<64x128xf32> -> vector<64x128xf32>
    %318 = arith.addf %308, %317 : vector<64x128xf32>
    %c1_i32_226 = arith.constant 1 : i32
    %319 = tpu.dynamic_rotate %289 by %c1_i32_226 dim 0 : vector<64x128xf32>, i32 -> vector<64x128xf32>
    %c3_227 = arith.constant 3 : index
    %c0_228 = arith.constant 0 : index
    %c0_229 = arith.constant 0 : index
    %320 = vector.load %arg18[%c3_227, %c0_228, %c0_229] : memref<9x64x1xf32, #tpu.memory_space<vmem>>, vector<1x64x1xf32>
    %321 = vector.shape_cast %320 : vector<1x64x1xf32> to vector<64x1xf32>
    %322 = vector.broadcast %321 : vector<64x1xf32> to vector<64x128xf32>
    %323 = arith.mulf %319, %322 : vector<64x128xf32>
    %324 = arith.truncf %323 : vector<64x128xf32> to vector<64x128xbf16>
    %c3_230 = arith.constant 3 : index
    %c0_231 = arith.constant 0 : index
    %c0_232 = arith.constant 0 : index
    %325 = vector.load %arg10[%c3_230, %c0_231, %c0_232] : memref<9x128x128xbf16, #tpu.memory_space<vmem>>, vector<1x128x128xbf16>
    %326 = vector.shape_cast %325 : vector<1x128x128xbf16> to vector<128x128xbf16>
    %cst_233 = arith.constant dense<0.000000e+00> : vector<64x128xf32>
    %327 = tpu.matmul %324, %326, %cst_233 {dimension_numbers = #tpu.dot_dimension_numbers<[1], [0], [0], [1], [0, 0, 1, 1], [], []>} : vector<64x128xbf16>, vector<128x128xbf16>, vector<64x128xf32> -> vector<64x128xf32>
    %328 = arith.addf %318, %327 : vector<64x128xf32>
    %329 = arith.truncf %289 : vector<64x128xf32> to vector<64x128xbf16>
    %c4_234 = arith.constant 4 : index
    %c0_235 = arith.constant 0 : index
    %c0_236 = arith.constant 0 : index
    %330 = vector.load %arg10[%c4_234, %c0_235, %c0_236] : memref<9x128x128xbf16, #tpu.memory_space<vmem>>, vector<1x128x128xbf16>
    %331 = vector.shape_cast %330 : vector<1x128x128xbf16> to vector<128x128xbf16>
    %cst_237 = arith.constant dense<0.000000e+00> : vector<64x128xf32>
    %332 = tpu.matmul %329, %331, %cst_237 {dimension_numbers = #tpu.dot_dimension_numbers<[1], [0], [0], [1], [0, 0, 1, 1], [], []>} : vector<64x128xbf16>, vector<128x128xbf16>, vector<64x128xf32> -> vector<64x128xf32>
    %333 = arith.addf %328, %332 : vector<64x128xf32>
    %c63_i32_238 = arith.constant 63 : i32
    %334 = tpu.dynamic_rotate %289 by %c63_i32_238 dim 0 : vector<64x128xf32>, i32 -> vector<64x128xf32>
    %c5_239 = arith.constant 5 : index
    %c0_240 = arith.constant 0 : index
    %c0_241 = arith.constant 0 : index
    %335 = vector.load %arg18[%c5_239, %c0_240, %c0_241] : memref<9x64x1xf32, #tpu.memory_space<vmem>>, vector<1x64x1xf32>
    %336 = vector.shape_cast %335 : vector<1x64x1xf32> to vector<64x1xf32>
    %337 = vector.broadcast %336 : vector<64x1xf32> to vector<64x128xf32>
    %338 = arith.mulf %334, %337 : vector<64x128xf32>
    %339 = arith.truncf %338 : vector<64x128xf32> to vector<64x128xbf16>
    %c5_242 = arith.constant 5 : index
    %c0_243 = arith.constant 0 : index
    %c0_244 = arith.constant 0 : index
    %340 = vector.load %arg10[%c5_242, %c0_243, %c0_244] : memref<9x128x128xbf16, #tpu.memory_space<vmem>>, vector<1x128x128xbf16>
    %341 = vector.shape_cast %340 : vector<1x128x128xbf16> to vector<128x128xbf16>
    %cst_245 = arith.constant dense<0.000000e+00> : vector<64x128xf32>
    %342 = tpu.matmul %339, %341, %cst_245 {dimension_numbers = #tpu.dot_dimension_numbers<[1], [0], [0], [1], [0, 0, 1, 1], [], []>} : vector<64x128xbf16>, vector<128x128xbf16>, vector<64x128xf32> -> vector<64x128xf32>
    %343 = arith.addf %333, %342 : vector<64x128xf32>
    %c57_i32_246 = arith.constant 57 : i32
    %344 = tpu.dynamic_rotate %289 by %c57_i32_246 dim 0 : vector<64x128xf32>, i32 -> vector<64x128xf32>
    %c6_247 = arith.constant 6 : index
    %c0_248 = arith.constant 0 : index
    %c0_249 = arith.constant 0 : index
    %345 = vector.load %arg18[%c6_247, %c0_248, %c0_249] : memref<9x64x1xf32, #tpu.memory_space<vmem>>, vector<1x64x1xf32>
    %346 = vector.shape_cast %345 : vector<1x64x1xf32> to vector<64x1xf32>
    %347 = vector.broadcast %346 : vector<64x1xf32> to vector<64x128xf32>
    %348 = arith.mulf %344, %347 : vector<64x128xf32>
    %349 = arith.truncf %348 : vector<64x128xf32> to vector<64x128xbf16>
    %c6_250 = arith.constant 6 : index
    %c0_251 = arith.constant 0 : index
    %c0_252 = arith.constant 0 : index
    %350 = vector.load %arg10[%c6_250, %c0_251, %c0_252] : memref<9x128x128xbf16, #tpu.memory_space<vmem>>, vector<1x128x128xbf16>
    %351 = vector.shape_cast %350 : vector<1x128x128xbf16> to vector<128x128xbf16>
    %cst_253 = arith.constant dense<0.000000e+00> : vector<64x128xf32>
    %352 = tpu.matmul %349, %351, %cst_253 {dimension_numbers = #tpu.dot_dimension_numbers<[1], [0], [0], [1], [0, 0, 1, 1], [], []>} : vector<64x128xbf16>, vector<128x128xbf16>, vector<64x128xf32> -> vector<64x128xf32>
    %353 = arith.addf %343, %352 : vector<64x128xf32>
    %c56_i32_254 = arith.constant 56 : i32
    %354 = tpu.dynamic_rotate %289 by %c56_i32_254 dim 0 : vector<64x128xf32>, i32 -> vector<64x128xf32>
    %c7_255 = arith.constant 7 : index
    %c0_256 = arith.constant 0 : index
    %c0_257 = arith.constant 0 : index
    %355 = vector.load %arg18[%c7_255, %c0_256, %c0_257] : memref<9x64x1xf32, #tpu.memory_space<vmem>>, vector<1x64x1xf32>
    %356 = vector.shape_cast %355 : vector<1x64x1xf32> to vector<64x1xf32>
    %357 = vector.broadcast %356 : vector<64x1xf32> to vector<64x128xf32>
    %358 = arith.mulf %354, %357 : vector<64x128xf32>
    %359 = arith.truncf %358 : vector<64x128xf32> to vector<64x128xbf16>
    %c7_258 = arith.constant 7 : index
    %c0_259 = arith.constant 0 : index
    %c0_260 = arith.constant 0 : index
    %360 = vector.load %arg10[%c7_258, %c0_259, %c0_260] : memref<9x128x128xbf16, #tpu.memory_space<vmem>>, vector<1x128x128xbf16>
    %361 = vector.shape_cast %360 : vector<1x128x128xbf16> to vector<128x128xbf16>
    %cst_261 = arith.constant dense<0.000000e+00> : vector<64x128xf32>
    %362 = tpu.matmul %359, %361, %cst_261 {dimension_numbers = #tpu.dot_dimension_numbers<[1], [0], [0], [1], [0, 0, 1, 1], [], []>} : vector<64x128xbf16>, vector<128x128xbf16>, vector<64x128xf32> -> vector<64x128xf32>
    %363 = arith.addf %353, %362 : vector<64x128xf32>
    %c55_i32_262 = arith.constant 55 : i32
    %364 = tpu.dynamic_rotate %289 by %c55_i32_262 dim 0 : vector<64x128xf32>, i32 -> vector<64x128xf32>
    %c8_263 = arith.constant 8 : index
    %c0_264 = arith.constant 0 : index
    %c0_265 = arith.constant 0 : index
    %365 = vector.load %arg18[%c8_263, %c0_264, %c0_265] : memref<9x64x1xf32, #tpu.memory_space<vmem>>, vector<1x64x1xf32>
    %366 = vector.shape_cast %365 : vector<1x64x1xf32> to vector<64x1xf32>
    %367 = vector.broadcast %366 : vector<64x1xf32> to vector<64x128xf32>
    %368 = arith.mulf %364, %367 : vector<64x128xf32>
    %369 = arith.truncf %368 : vector<64x128xf32> to vector<64x128xbf16>
    %c8_266 = arith.constant 8 : index
    %c0_267 = arith.constant 0 : index
    %c0_268 = arith.constant 0 : index
    %370 = vector.load %arg10[%c8_266, %c0_267, %c0_268] : memref<9x128x128xbf16, #tpu.memory_space<vmem>>, vector<1x128x128xbf16>
    %371 = vector.shape_cast %370 : vector<1x128x128xbf16> to vector<128x128xbf16>
    %cst_269 = arith.constant dense<0.000000e+00> : vector<64x128xf32>
    %372 = tpu.matmul %369, %371, %cst_269 {dimension_numbers = #tpu.dot_dimension_numbers<[1], [0], [0], [1], [0, 0, 1, 1], [], []>} : vector<64x128xbf16>, vector<128x128xbf16>, vector<64x128xf32> -> vector<64x128xf32>
    %373 = arith.addf %363, %372 : vector<64x128xf32>
    %c0_270 = arith.constant 0 : index
    %c0_271 = arith.constant 0 : index
    %374 = vector.load %arg11[%c0_270, %c0_271] : memref<2x128xf32, #tpu.memory_space<vmem>>, vector<2x128xf32>
    %375 = vector.extract_strided_slice %374 {offsets = [0, 0], sizes = [1, 128], strides = [1, 1]} : vector<2x128xf32> to vector<1x128xf32>
    %376 = vector.broadcast %375 : vector<1x128xf32> to vector<64x128xf32>
    %377 = arith.mulf %373, %376 : vector<64x128xf32>
    %378 = vector.extract_strided_slice %374 {offsets = [1, 0], sizes = [1, 128], strides = [1, 1]} : vector<2x128xf32> to vector<1x128xf32>
    %379 = vector.broadcast %378 : vector<1x128xf32> to vector<64x128xf32>
    %380 = arith.addf %377, %379 : vector<64x128xf32>
    %381 = arith.addf %380, %196 : vector<64x128xf32>
    %cst_272 = arith.constant 0.000000e+00 : f32
    %382 = vector.broadcast %cst_272 : f32 to vector<64x128xf32>
    %383 = arith.maximumf %381, %382 : vector<64x128xf32>
    %c9_i32_273 = arith.constant 9 : i32
    %384 = tpu.dynamic_rotate %383 by %c9_i32_273 dim 0 : vector<64x128xf32>, i32 -> vector<64x128xf32>
    %c0_274 = arith.constant 0 : index
    %c0_275 = arith.constant 0 : index
    %c0_276 = arith.constant 0 : index
    %385 = vector.load %arg18[%c0_274, %c0_275, %c0_276] : memref<9x64x1xf32, #tpu.memory_space<vmem>>, vector<1x64x1xf32>
    %386 = vector.shape_cast %385 : vector<1x64x1xf32> to vector<64x1xf32>
    %387 = vector.broadcast %386 : vector<64x1xf32> to vector<64x128xf32>
    %388 = arith.mulf %384, %387 : vector<64x128xf32>
    %389 = arith.truncf %388 : vector<64x128xf32> to vector<64x128xbf16>
    %c0_277 = arith.constant 0 : index
    %c0_278 = arith.constant 0 : index
    %c0_279 = arith.constant 0 : index
    %390 = vector.load %arg12[%c0_277, %c0_278, %c0_279] : memref<9x128x128xbf16, #tpu.memory_space<vmem>>, vector<1x128x128xbf16>
    %391 = vector.shape_cast %390 : vector<1x128x128xbf16> to vector<128x128xbf16>
    %cst_280 = arith.constant dense<0.000000e+00> : vector<64x128xf32>
    %392 = tpu.matmul %389, %391, %cst_280 {dimension_numbers = #tpu.dot_dimension_numbers<[1], [0], [0], [1], [0, 0, 1, 1], [], []>} : vector<64x128xbf16>, vector<128x128xbf16>, vector<64x128xf32> -> vector<64x128xf32>
    %c8_i32_281 = arith.constant 8 : i32
    %393 = tpu.dynamic_rotate %383 by %c8_i32_281 dim 0 : vector<64x128xf32>, i32 -> vector<64x128xf32>
    %c1_282 = arith.constant 1 : index
    %c0_283 = arith.constant 0 : index
    %c0_284 = arith.constant 0 : index
    %394 = vector.load %arg18[%c1_282, %c0_283, %c0_284] : memref<9x64x1xf32, #tpu.memory_space<vmem>>, vector<1x64x1xf32>
    %395 = vector.shape_cast %394 : vector<1x64x1xf32> to vector<64x1xf32>
    %396 = vector.broadcast %395 : vector<64x1xf32> to vector<64x128xf32>
    %397 = arith.mulf %393, %396 : vector<64x128xf32>
    %398 = arith.truncf %397 : vector<64x128xf32> to vector<64x128xbf16>
    %c1_285 = arith.constant 1 : index
    %c0_286 = arith.constant 0 : index
    %c0_287 = arith.constant 0 : index
    %399 = vector.load %arg12[%c1_285, %c0_286, %c0_287] : memref<9x128x128xbf16, #tpu.memory_space<vmem>>, vector<1x128x128xbf16>
    %400 = vector.shape_cast %399 : vector<1x128x128xbf16> to vector<128x128xbf16>
    %cst_288 = arith.constant dense<0.000000e+00> : vector<64x128xf32>
    %401 = tpu.matmul %398, %400, %cst_288 {dimension_numbers = #tpu.dot_dimension_numbers<[1], [0], [0], [1], [0, 0, 1, 1], [], []>} : vector<64x128xbf16>, vector<128x128xbf16>, vector<64x128xf32> -> vector<64x128xf32>
    %402 = arith.addf %392, %401 : vector<64x128xf32>
    %c7_i32_289 = arith.constant 7 : i32
    %403 = tpu.dynamic_rotate %383 by %c7_i32_289 dim 0 : vector<64x128xf32>, i32 -> vector<64x128xf32>
    %c2_290 = arith.constant 2 : index
    %c0_291 = arith.constant 0 : index
    %c0_292 = arith.constant 0 : index
    %404 = vector.load %arg18[%c2_290, %c0_291, %c0_292] : memref<9x64x1xf32, #tpu.memory_space<vmem>>, vector<1x64x1xf32>
    %405 = vector.shape_cast %404 : vector<1x64x1xf32> to vector<64x1xf32>
    %406 = vector.broadcast %405 : vector<64x1xf32> to vector<64x128xf32>
    %407 = arith.mulf %403, %406 : vector<64x128xf32>
    %408 = arith.truncf %407 : vector<64x128xf32> to vector<64x128xbf16>
    %c2_293 = arith.constant 2 : index
    %c0_294 = arith.constant 0 : index
    %c0_295 = arith.constant 0 : index
    %409 = vector.load %arg12[%c2_293, %c0_294, %c0_295] : memref<9x128x128xbf16, #tpu.memory_space<vmem>>, vector<1x128x128xbf16>
    %410 = vector.shape_cast %409 : vector<1x128x128xbf16> to vector<128x128xbf16>
    %cst_296 = arith.constant dense<0.000000e+00> : vector<64x128xf32>
    %411 = tpu.matmul %408, %410, %cst_296 {dimension_numbers = #tpu.dot_dimension_numbers<[1], [0], [0], [1], [0, 0, 1, 1], [], []>} : vector<64x128xbf16>, vector<128x128xbf16>, vector<64x128xf32> -> vector<64x128xf32>
    %412 = arith.addf %402, %411 : vector<64x128xf32>
    %c1_i32_297 = arith.constant 1 : i32
    %413 = tpu.dynamic_rotate %383 by %c1_i32_297 dim 0 : vector<64x128xf32>, i32 -> vector<64x128xf32>
    %c3_298 = arith.constant 3 : index
    %c0_299 = arith.constant 0 : index
    %c0_300 = arith.constant 0 : index
    %414 = vector.load %arg18[%c3_298, %c0_299, %c0_300] : memref<9x64x1xf32, #tpu.memory_space<vmem>>, vector<1x64x1xf32>
    %415 = vector.shape_cast %414 : vector<1x64x1xf32> to vector<64x1xf32>
    %416 = vector.broadcast %415 : vector<64x1xf32> to vector<64x128xf32>
    %417 = arith.mulf %413, %416 : vector<64x128xf32>
    %418 = arith.truncf %417 : vector<64x128xf32> to vector<64x128xbf16>
    %c3_301 = arith.constant 3 : index
    %c0_302 = arith.constant 0 : index
    %c0_303 = arith.constant 0 : index
    %419 = vector.load %arg12[%c3_301, %c0_302, %c0_303] : memref<9x128x128xbf16, #tpu.memory_space<vmem>>, vector<1x128x128xbf16>
    %420 = vector.shape_cast %419 : vector<1x128x128xbf16> to vector<128x128xbf16>
    %cst_304 = arith.constant dense<0.000000e+00> : vector<64x128xf32>
    %421 = tpu.matmul %418, %420, %cst_304 {dimension_numbers = #tpu.dot_dimension_numbers<[1], [0], [0], [1], [0, 0, 1, 1], [], []>} : vector<64x128xbf16>, vector<128x128xbf16>, vector<64x128xf32> -> vector<64x128xf32>
    %422 = arith.addf %412, %421 : vector<64x128xf32>
    %423 = arith.truncf %383 : vector<64x128xf32> to vector<64x128xbf16>
    %c4_305 = arith.constant 4 : index
    %c0_306 = arith.constant 0 : index
    %c0_307 = arith.constant 0 : index
    %424 = vector.load %arg12[%c4_305, %c0_306, %c0_307] : memref<9x128x128xbf16, #tpu.memory_space<vmem>>, vector<1x128x128xbf16>
    %425 = vector.shape_cast %424 : vector<1x128x128xbf16> to vector<128x128xbf16>
    %cst_308 = arith.constant dense<0.000000e+00> : vector<64x128xf32>
    %426 = tpu.matmul %423, %425, %cst_308 {dimension_numbers = #tpu.dot_dimension_numbers<[1], [0], [0], [1], [0, 0, 1, 1], [], []>} : vector<64x128xbf16>, vector<128x128xbf16>, vector<64x128xf32> -> vector<64x128xf32>
    %427 = arith.addf %422, %426 : vector<64x128xf32>
    %c63_i32_309 = arith.constant 63 : i32
    %428 = tpu.dynamic_rotate %383 by %c63_i32_309 dim 0 : vector<64x128xf32>, i32 -> vector<64x128xf32>
    %c5_310 = arith.constant 5 : index
    %c0_311 = arith.constant 0 : index
    %c0_312 = arith.constant 0 : index
    %429 = vector.load %arg18[%c5_310, %c0_311, %c0_312] : memref<9x64x1xf32, #tpu.memory_space<vmem>>, vector<1x64x1xf32>
    %430 = vector.shape_cast %429 : vector<1x64x1xf32> to vector<64x1xf32>
    %431 = vector.broadcast %430 : vector<64x1xf32> to vector<64x128xf32>
    %432 = arith.mulf %428, %431 : vector<64x128xf32>
    %433 = arith.truncf %432 : vector<64x128xf32> to vector<64x128xbf16>
    %c5_313 = arith.constant 5 : index
    %c0_314 = arith.constant 0 : index
    %c0_315 = arith.constant 0 : index
    %434 = vector.load %arg12[%c5_313, %c0_314, %c0_315] : memref<9x128x128xbf16, #tpu.memory_space<vmem>>, vector<1x128x128xbf16>
    %435 = vector.shape_cast %434 : vector<1x128x128xbf16> to vector<128x128xbf16>
    %cst_316 = arith.constant dense<0.000000e+00> : vector<64x128xf32>
    %436 = tpu.matmul %433, %435, %cst_316 {dimension_numbers = #tpu.dot_dimension_numbers<[1], [0], [0], [1], [0, 0, 1, 1], [], []>} : vector<64x128xbf16>, vector<128x128xbf16>, vector<64x128xf32> -> vector<64x128xf32>
    %437 = arith.addf %427, %436 : vector<64x128xf32>
    %c57_i32_317 = arith.constant 57 : i32
    %438 = tpu.dynamic_rotate %383 by %c57_i32_317 dim 0 : vector<64x128xf32>, i32 -> vector<64x128xf32>
    %c6_318 = arith.constant 6 : index
    %c0_319 = arith.constant 0 : index
    %c0_320 = arith.constant 0 : index
    %439 = vector.load %arg18[%c6_318, %c0_319, %c0_320] : memref<9x64x1xf32, #tpu.memory_space<vmem>>, vector<1x64x1xf32>
    %440 = vector.shape_cast %439 : vector<1x64x1xf32> to vector<64x1xf32>
    %441 = vector.broadcast %440 : vector<64x1xf32> to vector<64x128xf32>
    %442 = arith.mulf %438, %441 : vector<64x128xf32>
    %443 = arith.truncf %442 : vector<64x128xf32> to vector<64x128xbf16>
    %c6_321 = arith.constant 6 : index
    %c0_322 = arith.constant 0 : index
    %c0_323 = arith.constant 0 : index
    %444 = vector.load %arg12[%c6_321, %c0_322, %c0_323] : memref<9x128x128xbf16, #tpu.memory_space<vmem>>, vector<1x128x128xbf16>
    %445 = vector.shape_cast %444 : vector<1x128x128xbf16> to vector<128x128xbf16>
    %cst_324 = arith.constant dense<0.000000e+00> : vector<64x128xf32>
    %446 = tpu.matmul %443, %445, %cst_324 {dimension_numbers = #tpu.dot_dimension_numbers<[1], [0], [0], [1], [0, 0, 1, 1], [], []>} : vector<64x128xbf16>, vector<128x128xbf16>, vector<64x128xf32> -> vector<64x128xf32>
    %447 = arith.addf %437, %446 : vector<64x128xf32>
    %c56_i32_325 = arith.constant 56 : i32
    %448 = tpu.dynamic_rotate %383 by %c56_i32_325 dim 0 : vector<64x128xf32>, i32 -> vector<64x128xf32>
    %c7_326 = arith.constant 7 : index
    %c0_327 = arith.constant 0 : index
    %c0_328 = arith.constant 0 : index
    %449 = vector.load %arg18[%c7_326, %c0_327, %c0_328] : memref<9x64x1xf32, #tpu.memory_space<vmem>>, vector<1x64x1xf32>
    %450 = vector.shape_cast %449 : vector<1x64x1xf32> to vector<64x1xf32>
    %451 = vector.broadcast %450 : vector<64x1xf32> to vector<64x128xf32>
    %452 = arith.mulf %448, %451 : vector<64x128xf32>
    %453 = arith.truncf %452 : vector<64x128xf32> to vector<64x128xbf16>
    %c7_329 = arith.constant 7 : index
    %c0_330 = arith.constant 0 : index
    %c0_331 = arith.constant 0 : index
    %454 = vector.load %arg12[%c7_329, %c0_330, %c0_331] : memref<9x128x128xbf16, #tpu.memory_space<vmem>>, vector<1x128x128xbf16>
    %455 = vector.shape_cast %454 : vector<1x128x128xbf16> to vector<128x128xbf16>
    %cst_332 = arith.constant dense<0.000000e+00> : vector<64x128xf32>
    %456 = tpu.matmul %453, %455, %cst_332 {dimension_numbers = #tpu.dot_dimension_numbers<[1], [0], [0], [1], [0, 0, 1, 1], [], []>} : vector<64x128xbf16>, vector<128x128xbf16>, vector<64x128xf32> -> vector<64x128xf32>
    %457 = arith.addf %447, %456 : vector<64x128xf32>
    %c55_i32_333 = arith.constant 55 : i32
    %458 = tpu.dynamic_rotate %383 by %c55_i32_333 dim 0 : vector<64x128xf32>, i32 -> vector<64x128xf32>
    %c8_334 = arith.constant 8 : index
    %c0_335 = arith.constant 0 : index
    %c0_336 = arith.constant 0 : index
    %459 = vector.load %arg18[%c8_334, %c0_335, %c0_336] : memref<9x64x1xf32, #tpu.memory_space<vmem>>, vector<1x64x1xf32>
    %460 = vector.shape_cast %459 : vector<1x64x1xf32> to vector<64x1xf32>
    %461 = vector.broadcast %460 : vector<64x1xf32> to vector<64x128xf32>
    %462 = arith.mulf %458, %461 : vector<64x128xf32>
    %463 = arith.truncf %462 : vector<64x128xf32> to vector<64x128xbf16>
    %c8_337 = arith.constant 8 : index
    %c0_338 = arith.constant 0 : index
    %c0_339 = arith.constant 0 : index
    %464 = vector.load %arg12[%c8_337, %c0_338, %c0_339] : memref<9x128x128xbf16, #tpu.memory_space<vmem>>, vector<1x128x128xbf16>
    %465 = vector.shape_cast %464 : vector<1x128x128xbf16> to vector<128x128xbf16>
    %cst_340 = arith.constant dense<0.000000e+00> : vector<64x128xf32>
    %466 = tpu.matmul %463, %465, %cst_340 {dimension_numbers = #tpu.dot_dimension_numbers<[1], [0], [0], [1], [0, 0, 1, 1], [], []>} : vector<64x128xbf16>, vector<128x128xbf16>, vector<64x128xf32> -> vector<64x128xf32>
    %467 = arith.addf %457, %466 : vector<64x128xf32>
    %c0_341 = arith.constant 0 : index
    %c0_342 = arith.constant 0 : index
    %468 = vector.load %arg13[%c0_341, %c0_342] : memref<2x128xf32, #tpu.memory_space<vmem>>, vector<2x128xf32>
    %469 = vector.extract_strided_slice %468 {offsets = [0, 0], sizes = [1, 128], strides = [1, 1]} : vector<2x128xf32> to vector<1x128xf32>
    %470 = vector.broadcast %469 : vector<1x128xf32> to vector<64x128xf32>
    %471 = arith.mulf %467, %470 : vector<64x128xf32>
    %472 = vector.extract_strided_slice %468 {offsets = [1, 0], sizes = [1, 128], strides = [1, 1]} : vector<2x128xf32> to vector<1x128xf32>
    %473 = vector.broadcast %472 : vector<1x128xf32> to vector<64x128xf32>
    %474 = arith.addf %471, %473 : vector<64x128xf32>
    %cst_343 = arith.constant 0.000000e+00 : f32
    %475 = vector.broadcast %cst_343 : f32 to vector<64x128xf32>
    %476 = arith.maximumf %474, %475 : vector<64x128xf32>
    %c9_i32_344 = arith.constant 9 : i32
    %477 = tpu.dynamic_rotate %476 by %c9_i32_344 dim 0 : vector<64x128xf32>, i32 -> vector<64x128xf32>
    %c0_345 = arith.constant 0 : index
    %c0_346 = arith.constant 0 : index
    %c0_347 = arith.constant 0 : index
    %478 = vector.load %arg18[%c0_345, %c0_346, %c0_347] : memref<9x64x1xf32, #tpu.memory_space<vmem>>, vector<1x64x1xf32>
    %479 = vector.shape_cast %478 : vector<1x64x1xf32> to vector<64x1xf32>
    %480 = vector.broadcast %479 : vector<64x1xf32> to vector<64x128xf32>
    %481 = arith.mulf %477, %480 : vector<64x128xf32>
    %482 = arith.truncf %481 : vector<64x128xf32> to vector<64x128xbf16>
    %c0_348 = arith.constant 0 : index
    %c0_349 = arith.constant 0 : index
    %c0_350 = arith.constant 0 : index
    %483 = vector.load %arg14[%c0_348, %c0_349, %c0_350] : memref<9x128x128xbf16, #tpu.memory_space<vmem>>, vector<1x128x128xbf16>
    %484 = vector.shape_cast %483 : vector<1x128x128xbf16> to vector<128x128xbf16>
    %cst_351 = arith.constant dense<0.000000e+00> : vector<64x128xf32>
    %485 = tpu.matmul %482, %484, %cst_351 {dimension_numbers = #tpu.dot_dimension_numbers<[1], [0], [0], [1], [0, 0, 1, 1], [], []>} : vector<64x128xbf16>, vector<128x128xbf16>, vector<64x128xf32> -> vector<64x128xf32>
    %c8_i32_352 = arith.constant 8 : i32
    %486 = tpu.dynamic_rotate %476 by %c8_i32_352 dim 0 : vector<64x128xf32>, i32 -> vector<64x128xf32>
    %c1_353 = arith.constant 1 : index
    %c0_354 = arith.constant 0 : index
    %c0_355 = arith.constant 0 : index
    %487 = vector.load %arg18[%c1_353, %c0_354, %c0_355] : memref<9x64x1xf32, #tpu.memory_space<vmem>>, vector<1x64x1xf32>
    %488 = vector.shape_cast %487 : vector<1x64x1xf32> to vector<64x1xf32>
    %489 = vector.broadcast %488 : vector<64x1xf32> to vector<64x128xf32>
    %490 = arith.mulf %486, %489 : vector<64x128xf32>
    %491 = arith.truncf %490 : vector<64x128xf32> to vector<64x128xbf16>
    %c1_356 = arith.constant 1 : index
    %c0_357 = arith.constant 0 : index
    %c0_358 = arith.constant 0 : index
    %492 = vector.load %arg14[%c1_356, %c0_357, %c0_358] : memref<9x128x128xbf16, #tpu.memory_space<vmem>>, vector<1x128x128xbf16>
    %493 = vector.shape_cast %492 : vector<1x128x128xbf16> to vector<128x128xbf16>
    %cst_359 = arith.constant dense<0.000000e+00> : vector<64x128xf32>
    %494 = tpu.matmul %491, %493, %cst_359 {dimension_numbers = #tpu.dot_dimension_numbers<[1], [0], [0], [1], [0, 0, 1, 1], [], []>} : vector<64x128xbf16>, vector<128x128xbf16>, vector<64x128xf32> -> vector<64x128xf32>
    %495 = arith.addf %485, %494 : vector<64x128xf32>
    %c7_i32_360 = arith.constant 7 : i32
    %496 = tpu.dynamic_rotate %476 by %c7_i32_360 dim 0 : vector<64x128xf32>, i32 -> vector<64x128xf32>
    %c2_361 = arith.constant 2 : index
    %c0_362 = arith.constant 0 : index
    %c0_363 = arith.constant 0 : index
    %497 = vector.load %arg18[%c2_361, %c0_362, %c0_363] : memref<9x64x1xf32, #tpu.memory_space<vmem>>, vector<1x64x1xf32>
    %498 = vector.shape_cast %497 : vector<1x64x1xf32> to vector<64x1xf32>
    %499 = vector.broadcast %498 : vector<64x1xf32> to vector<64x128xf32>
    %500 = arith.mulf %496, %499 : vector<64x128xf32>
    %501 = arith.truncf %500 : vector<64x128xf32> to vector<64x128xbf16>
    %c2_364 = arith.constant 2 : index
    %c0_365 = arith.constant 0 : index
    %c0_366 = arith.constant 0 : index
    %502 = vector.load %arg14[%c2_364, %c0_365, %c0_366] : memref<9x128x128xbf16, #tpu.memory_space<vmem>>, vector<1x128x128xbf16>
    %503 = vector.shape_cast %502 : vector<1x128x128xbf16> to vector<128x128xbf16>
    %cst_367 = arith.constant dense<0.000000e+00> : vector<64x128xf32>
    %504 = tpu.matmul %501, %503, %cst_367 {dimension_numbers = #tpu.dot_dimension_numbers<[1], [0], [0], [1], [0, 0, 1, 1], [], []>} : vector<64x128xbf16>, vector<128x128xbf16>, vector<64x128xf32> -> vector<64x128xf32>
    %505 = arith.addf %495, %504 : vector<64x128xf32>
    %c1_i32_368 = arith.constant 1 : i32
    %506 = tpu.dynamic_rotate %476 by %c1_i32_368 dim 0 : vector<64x128xf32>, i32 -> vector<64x128xf32>
    %c3_369 = arith.constant 3 : index
    %c0_370 = arith.constant 0 : index
    %c0_371 = arith.constant 0 : index
    %507 = vector.load %arg18[%c3_369, %c0_370, %c0_371] : memref<9x64x1xf32, #tpu.memory_space<vmem>>, vector<1x64x1xf32>
    %508 = vector.shape_cast %507 : vector<1x64x1xf32> to vector<64x1xf32>
    %509 = vector.broadcast %508 : vector<64x1xf32> to vector<64x128xf32>
    %510 = arith.mulf %506, %509 : vector<64x128xf32>
    %511 = arith.truncf %510 : vector<64x128xf32> to vector<64x128xbf16>
    %c3_372 = arith.constant 3 : index
    %c0_373 = arith.constant 0 : index
    %c0_374 = arith.constant 0 : index
    %512 = vector.load %arg14[%c3_372, %c0_373, %c0_374] : memref<9x128x128xbf16, #tpu.memory_space<vmem>>, vector<1x128x128xbf16>
    %513 = vector.shape_cast %512 : vector<1x128x128xbf16> to vector<128x128xbf16>
    %cst_375 = arith.constant dense<0.000000e+00> : vector<64x128xf32>
    %514 = tpu.matmul %511, %513, %cst_375 {dimension_numbers = #tpu.dot_dimension_numbers<[1], [0], [0], [1], [0, 0, 1, 1], [], []>} : vector<64x128xbf16>, vector<128x128xbf16>, vector<64x128xf32> -> vector<64x128xf32>
    %515 = arith.addf %505, %514 : vector<64x128xf32>
    %516 = arith.truncf %476 : vector<64x128xf32> to vector<64x128xbf16>
    %c4_376 = arith.constant 4 : index
    %c0_377 = arith.constant 0 : index
    %c0_378 = arith.constant 0 : index
    %517 = vector.load %arg14[%c4_376, %c0_377, %c0_378] : memref<9x128x128xbf16, #tpu.memory_space<vmem>>, vector<1x128x128xbf16>
    %518 = vector.shape_cast %517 : vector<1x128x128xbf16> to vector<128x128xbf16>
    %cst_379 = arith.constant dense<0.000000e+00> : vector<64x128xf32>
    %519 = tpu.matmul %516, %518, %cst_379 {dimension_numbers = #tpu.dot_dimension_numbers<[1], [0], [0], [1], [0, 0, 1, 1], [], []>} : vector<64x128xbf16>, vector<128x128xbf16>, vector<64x128xf32> -> vector<64x128xf32>
    %520 = arith.addf %515, %519 : vector<64x128xf32>
    %c63_i32_380 = arith.constant 63 : i32
    %521 = tpu.dynamic_rotate %476 by %c63_i32_380 dim 0 : vector<64x128xf32>, i32 -> vector<64x128xf32>
    %c5_381 = arith.constant 5 : index
    %c0_382 = arith.constant 0 : index
    %c0_383 = arith.constant 0 : index
    %522 = vector.load %arg18[%c5_381, %c0_382, %c0_383] : memref<9x64x1xf32, #tpu.memory_space<vmem>>, vector<1x64x1xf32>
    %523 = vector.shape_cast %522 : vector<1x64x1xf32> to vector<64x1xf32>
    %524 = vector.broadcast %523 : vector<64x1xf32> to vector<64x128xf32>
    %525 = arith.mulf %521, %524 : vector<64x128xf32>
    %526 = arith.truncf %525 : vector<64x128xf32> to vector<64x128xbf16>
    %c5_384 = arith.constant 5 : index
    %c0_385 = arith.constant 0 : index
    %c0_386 = arith.constant 0 : index
    %527 = vector.load %arg14[%c5_384, %c0_385, %c0_386] : memref<9x128x128xbf16, #tpu.memory_space<vmem>>, vector<1x128x128xbf16>
    %528 = vector.shape_cast %527 : vector<1x128x128xbf16> to vector<128x128xbf16>
    %cst_387 = arith.constant dense<0.000000e+00> : vector<64x128xf32>
    %529 = tpu.matmul %526, %528, %cst_387 {dimension_numbers = #tpu.dot_dimension_numbers<[1], [0], [0], [1], [0, 0, 1, 1], [], []>} : vector<64x128xbf16>, vector<128x128xbf16>, vector<64x128xf32> -> vector<64x128xf32>
    %530 = arith.addf %520, %529 : vector<64x128xf32>
    %c57_i32_388 = arith.constant 57 : i32
    %531 = tpu.dynamic_rotate %476 by %c57_i32_388 dim 0 : vector<64x128xf32>, i32 -> vector<64x128xf32>
    %c6_389 = arith.constant 6 : index
    %c0_390 = arith.constant 0 : index
    %c0_391 = arith.constant 0 : index
    %532 = vector.load %arg18[%c6_389, %c0_390, %c0_391] : memref<9x64x1xf32, #tpu.memory_space<vmem>>, vector<1x64x1xf32>
    %533 = vector.shape_cast %532 : vector<1x64x1xf32> to vector<64x1xf32>
    %534 = vector.broadcast %533 : vector<64x1xf32> to vector<64x128xf32>
    %535 = arith.mulf %531, %534 : vector<64x128xf32>
    %536 = arith.truncf %535 : vector<64x128xf32> to vector<64x128xbf16>
    %c6_392 = arith.constant 6 : index
    %c0_393 = arith.constant 0 : index
    %c0_394 = arith.constant 0 : index
    %537 = vector.load %arg14[%c6_392, %c0_393, %c0_394] : memref<9x128x128xbf16, #tpu.memory_space<vmem>>, vector<1x128x128xbf16>
    %538 = vector.shape_cast %537 : vector<1x128x128xbf16> to vector<128x128xbf16>
    %cst_395 = arith.constant dense<0.000000e+00> : vector<64x128xf32>
    %539 = tpu.matmul %536, %538, %cst_395 {dimension_numbers = #tpu.dot_dimension_numbers<[1], [0], [0], [1], [0, 0, 1, 1], [], []>} : vector<64x128xbf16>, vector<128x128xbf16>, vector<64x128xf32> -> vector<64x128xf32>
    %540 = arith.addf %530, %539 : vector<64x128xf32>
    %c56_i32_396 = arith.constant 56 : i32
    %541 = tpu.dynamic_rotate %476 by %c56_i32_396 dim 0 : vector<64x128xf32>, i32 -> vector<64x128xf32>
    %c7_397 = arith.constant 7 : index
    %c0_398 = arith.constant 0 : index
    %c0_399 = arith.constant 0 : index
    %542 = vector.load %arg18[%c7_397, %c0_398, %c0_399] : memref<9x64x1xf32, #tpu.memory_space<vmem>>, vector<1x64x1xf32>
    %543 = vector.shape_cast %542 : vector<1x64x1xf32> to vector<64x1xf32>
    %544 = vector.broadcast %543 : vector<64x1xf32> to vector<64x128xf32>
    %545 = arith.mulf %541, %544 : vector<64x128xf32>
    %546 = arith.truncf %545 : vector<64x128xf32> to vector<64x128xbf16>
    %c7_400 = arith.constant 7 : index
    %c0_401 = arith.constant 0 : index
    %c0_402 = arith.constant 0 : index
    %547 = vector.load %arg14[%c7_400, %c0_401, %c0_402] : memref<9x128x128xbf16, #tpu.memory_space<vmem>>, vector<1x128x128xbf16>
    %548 = vector.shape_cast %547 : vector<1x128x128xbf16> to vector<128x128xbf16>
    %cst_403 = arith.constant dense<0.000000e+00> : vector<64x128xf32>
    %549 = tpu.matmul %546, %548, %cst_403 {dimension_numbers = #tpu.dot_dimension_numbers<[1], [0], [0], [1], [0, 0, 1, 1], [], []>} : vector<64x128xbf16>, vector<128x128xbf16>, vector<64x128xf32> -> vector<64x128xf32>
    %550 = arith.addf %540, %549 : vector<64x128xf32>
    %c55_i32_404 = arith.constant 55 : i32
    %551 = tpu.dynamic_rotate %476 by %c55_i32_404 dim 0 : vector<64x128xf32>, i32 -> vector<64x128xf32>
    %c8_405 = arith.constant 8 : index
    %c0_406 = arith.constant 0 : index
    %c0_407 = arith.constant 0 : index
    %552 = vector.load %arg18[%c8_405, %c0_406, %c0_407] : memref<9x64x1xf32, #tpu.memory_space<vmem>>, vector<1x64x1xf32>
    %553 = vector.shape_cast %552 : vector<1x64x1xf32> to vector<64x1xf32>
    %554 = vector.broadcast %553 : vector<64x1xf32> to vector<64x128xf32>
    %555 = arith.mulf %551, %554 : vector<64x128xf32>
    %556 = arith.truncf %555 : vector<64x128xf32> to vector<64x128xbf16>
    %c8_408 = arith.constant 8 : index
    %c0_409 = arith.constant 0 : index
    %c0_410 = arith.constant 0 : index
    %557 = vector.load %arg14[%c8_408, %c0_409, %c0_410] : memref<9x128x128xbf16, #tpu.memory_space<vmem>>, vector<1x128x128xbf16>
    %558 = vector.shape_cast %557 : vector<1x128x128xbf16> to vector<128x128xbf16>
    %cst_411 = arith.constant dense<0.000000e+00> : vector<64x128xf32>
    %559 = tpu.matmul %556, %558, %cst_411 {dimension_numbers = #tpu.dot_dimension_numbers<[1], [0], [0], [1], [0, 0, 1, 1], [], []>} : vector<64x128xbf16>, vector<128x128xbf16>, vector<64x128xf32> -> vector<64x128xf32>
    %560 = arith.addf %550, %559 : vector<64x128xf32>
    %c0_412 = arith.constant 0 : index
    %c0_413 = arith.constant 0 : index
    %561 = vector.load %arg15[%c0_412, %c0_413] : memref<2x128xf32, #tpu.memory_space<vmem>>, vector<2x128xf32>
    %562 = vector.extract_strided_slice %561 {offsets = [0, 0], sizes = [1, 128], strides = [1, 1]} : vector<2x128xf32> to vector<1x128xf32>
    %563 = vector.broadcast %562 : vector<1x128xf32> to vector<64x128xf32>
    %564 = arith.mulf %560, %563 : vector<64x128xf32>
    %565 = vector.extract_strided_slice %561 {offsets = [1, 0], sizes = [1, 128], strides = [1, 1]} : vector<2x128xf32> to vector<1x128xf32>
    %566 = vector.broadcast %565 : vector<1x128xf32> to vector<64x128xf32>
    %567 = arith.addf %564, %566 : vector<64x128xf32>
    %568 = arith.addf %567, %383 : vector<64x128xf32>
    %cst_414 = arith.constant 0.000000e+00 : f32
    %569 = vector.broadcast %cst_414 : f32 to vector<64x128xf32>
    %570 = arith.maximumf %568, %569 : vector<64x128xf32>
    %571 = arith.truncf %570 : vector<64x128xf32> to vector<64x128xbf16>
    %c0_415 = arith.constant 0 : index
    %c0_416 = arith.constant 0 : index
    %572 = vector.load %arg16[%c0_415, %c0_416] : memref<128x12xbf16, #tpu.memory_space<vmem>>, vector<128x12xbf16>
    %cst_417 = arith.constant dense<0.000000e+00> : vector<64x12xf32>
    %573 = tpu.matmul %571, %572, %cst_417 {dimension_numbers = #tpu.dot_dimension_numbers<[1], [0], [0], [1], [0, 0, 1, 1], [], []>} : vector<64x128xbf16>, vector<128x12xbf16>, vector<64x12xf32> -> vector<64x12xf32>
    %c0_418 = arith.constant 0 : index
    %c0_419 = arith.constant 0 : index
    %574 = vector.load %arg17[%c0_418, %c0_419] : memref<2x12xf32, #tpu.memory_space<vmem>>, vector<2x12xf32>
    %575 = vector.extract_strided_slice %574 {offsets = [0, 0], sizes = [1, 12], strides = [1, 1]} : vector<2x12xf32> to vector<1x12xf32>
    %576 = vector.broadcast %575 : vector<1x12xf32> to vector<64x12xf32>
    %577 = arith.mulf %573, %576 : vector<64x12xf32>
    %578 = vector.extract_strided_slice %574 {offsets = [1, 0], sizes = [1, 12], strides = [1, 1]} : vector<2x12xf32> to vector<1x12xf32>
    %579 = vector.broadcast %578 : vector<1x12xf32> to vector<64x12xf32>
    %580 = arith.addf %577, %579 : vector<64x12xf32>
    %c0_420 = arith.constant 0 : index
    %c0_421 = arith.constant 0 : index
    %581 = vector.load %arg19[%c0_420, %c0_421] : memref<1x64xbf16, #tpu.memory_space<vmem>>, vector<1x64xbf16>
    %c0_422 = arith.constant 0 : index
    %c0_423 = arith.constant 0 : index
    %582 = vector.load %arg20[%c0_422, %c0_423] : memref<64x64xf32, #tpu.memory_space<vmem>>, vector<64x64xf32>
    %c0_424 = arith.constant 0 : index
    %c0_425 = arith.constant 0 : index
    %583 = vector.load %arg21[%c0_424, %c0_425] : memref<64x64xf32, #tpu.memory_space<vmem>>, vector<64x64xf32>
    %c0_426 = arith.constant 0 : index
    %c0_427 = arith.constant 0 : index
    %584 = vector.load %arg23[%c0_426, %c0_427] : memref<64x32xf32, #tpu.memory_space<vmem>>, vector<64x32xf32>
    %c0_428 = arith.constant 0 : index
    %c0_429 = arith.constant 0 : index
    %585 = vector.load %arg22[%c0_428, %c0_429] : memref<1x64xf32, #tpu.memory_space<vmem>>, vector<1x64xf32>
    %c0_430 = arith.constant 0 : index
    %c0_431 = arith.constant 0 : index
    %586 = vector.load %arg24[%c0_430, %c0_431] : memref<1x32xf32, #tpu.memory_space<vmem>>, vector<1x32xf32>
    %c0_432 = arith.constant 0 : index
    %c0_433 = arith.constant 0 : index
    %587 = vector.load %arg25[%c0_432, %c0_433] : memref<32x1xbf16, #tpu.memory_space<vmem>>, vector<32x1xbf16>
    %c0_434 = arith.constant 0 : index
    %c0_435 = arith.constant 0 : index
    %588 = vector.load %arg26[%c0_434, %c0_435] : memref<1x1xf32, #tpu.memory_space<vmem>>, vector<1x1xf32>
    %589 = vector.extract_strided_slice %580 {offsets = [0, 0], sizes = [64, 1], strides = [1, 1]} : vector<64x12xf32> to vector<64x1xf32>
    %590 = vector.extract_strided_slice %580 {offsets = [0, 1], sizes = [64, 1], strides = [1, 1]} : vector<64x12xf32> to vector<64x1xf32>
    %591 = vector.extract_strided_slice %580 {offsets = [0, 2], sizes = [64, 1], strides = [1, 1]} : vector<64x12xf32> to vector<64x1xf32>
    %592 = vector.broadcast %589 : vector<64x1xf32> to vector<64x64xf32>
    %593 = arith.mulf %592, %582 : vector<64x64xf32>
    %594 = vector.broadcast %590 : vector<64x1xf32> to vector<64x64xf32>
    %595 = arith.mulf %594, %583 : vector<64x64xf32>
    %596 = arith.addf %593, %595 : vector<64x64xf32>
    %597 = arith.truncf %596 : vector<64x64xf32> to vector<64x64xbf16>
    %598 = vector.broadcast %591 : vector<64x1xf32> to vector<64x32xf32>
    %599 = arith.mulf %598, %584 : vector<64x32xf32>
    %600 = arith.truncf %599 : vector<64x32xf32> to vector<64x32xbf16>
    %cst_436 = arith.constant dense<0.000000e+00> : vector<1x64xf32>
    %601 = tpu.matmul %581, %597, %cst_436 {dimension_numbers = #tpu.dot_dimension_numbers<[1], [0], [0], [1], [0, 0, 1, 1], [], []>} : vector<1x64xbf16>, vector<64x64xbf16>, vector<1x64xf32> -> vector<1x64xf32>
    %602 = arith.addf %601, %585 : vector<1x64xf32>
    %cst_437 = arith.constant dense<0xFF800000> : vector<1xf32>
    %603 = vector.multi_reduction <maximumf>, %602, %cst_437 [1] : vector<1x64xf32> to vector<1xf32>
    %604 = vector.shape_cast %603 : vector<1xf32> to vector<1x1xf32>
    %605 = vector.broadcast %604 : vector<1x1xf32> to vector<1x64xf32>
    %606 = arith.subf %602, %605 : vector<1x64xf32>
    %607 = math.exp %606 : vector<1x64xf32>
    %cst_438 = arith.constant dense<0.000000e+00> : vector<1xf32>
    %608 = vector.multi_reduction <add>, %607, %cst_438 [1] : vector<1x64xf32> to vector<1xf32>
    %609 = vector.shape_cast %608 : vector<1xf32> to vector<1x1xf32>
    %610 = vector.broadcast %609 : vector<1x1xf32> to vector<1x64xf32>
    %611 = arith.divf %607, %610 : vector<1x64xf32>
    %cst_439 = arith.constant dense<0.000000e+00> : vector<1x32xf32>
    %612 = tpu.matmul %581, %600, %cst_439 {dimension_numbers = #tpu.dot_dimension_numbers<[1], [0], [0], [1], [0, 0, 1, 1], [], []>} : vector<1x64xbf16>, vector<64x32xbf16>, vector<1x32xf32> -> vector<1x32xf32>
    %613 = arith.addf %612, %586 : vector<1x32xf32>
    %cst_440 = arith.constant 0.000000e+00 : f32
    %614 = vector.broadcast %cst_440 : f32 to vector<1x32xf32>
    %615 = arith.maximumf %613, %614 : vector<1x32xf32>
    %616 = arith.truncf %615 : vector<1x32xf32> to vector<1x32xbf16>
    %cst_441 = arith.constant dense<0.000000e+00> : vector<1x1xf32>
    %617 = tpu.matmul %616, %587, %cst_441 {dimension_numbers = #tpu.dot_dimension_numbers<[1], [0], [0], [1], [0, 0, 1, 1], [], []>} : vector<1x32xbf16>, vector<32x1xbf16>, vector<1x1xf32> -> vector<1x1xf32>
    %618 = arith.addf %617, %588 : vector<1x1xf32>
    %619 = math.tanh %618 : vector<1x1xf32>
    %620 = vector.shape_cast %619 : vector<1x1xf32> to vector<1x1xf32>
    %621 = vector.broadcast %620 : vector<1x1xf32> to vector<1x64xf32>
    %622 = tpu.concatenate %611, %621 in 1 : vector<1x64xf32>, vector<1x64xf32> -> vector<1x128xf32>
    %623 = vector.extract_strided_slice %580 {offsets = [0, 3], sizes = [64, 1], strides = [1, 1]} : vector<64x12xf32> to vector<64x1xf32>
    %624 = vector.extract_strided_slice %580 {offsets = [0, 4], sizes = [64, 1], strides = [1, 1]} : vector<64x12xf32> to vector<64x1xf32>
    %625 = vector.extract_strided_slice %580 {offsets = [0, 5], sizes = [64, 1], strides = [1, 1]} : vector<64x12xf32> to vector<64x1xf32>
    %626 = vector.broadcast %623 : vector<64x1xf32> to vector<64x64xf32>
    %627 = arith.mulf %626, %582 : vector<64x64xf32>
    %628 = vector.broadcast %624 : vector<64x1xf32> to vector<64x64xf32>
    %629 = arith.mulf %628, %583 : vector<64x64xf32>
    %630 = arith.addf %627, %629 : vector<64x64xf32>
    %631 = arith.truncf %630 : vector<64x64xf32> to vector<64x64xbf16>
    %632 = vector.broadcast %625 : vector<64x1xf32> to vector<64x32xf32>
    %633 = arith.mulf %632, %584 : vector<64x32xf32>
    %634 = arith.truncf %633 : vector<64x32xf32> to vector<64x32xbf16>
    %cst_442 = arith.constant dense<0.000000e+00> : vector<1x64xf32>
    %635 = tpu.matmul %581, %631, %cst_442 {dimension_numbers = #tpu.dot_dimension_numbers<[1], [0], [0], [1], [0, 0, 1, 1], [], []>} : vector<1x64xbf16>, vector<64x64xbf16>, vector<1x64xf32> -> vector<1x64xf32>
    %636 = arith.addf %635, %585 : vector<1x64xf32>
    %cst_443 = arith.constant dense<0xFF800000> : vector<1xf32>
    %637 = vector.multi_reduction <maximumf>, %636, %cst_443 [1] : vector<1x64xf32> to vector<1xf32>
    %638 = vector.shape_cast %637 : vector<1xf32> to vector<1x1xf32>
    %639 = vector.broadcast %638 : vector<1x1xf32> to vector<1x64xf32>
    %640 = arith.subf %636, %639 : vector<1x64xf32>
    %641 = math.exp %640 : vector<1x64xf32>
    %cst_444 = arith.constant dense<0.000000e+00> : vector<1xf32>
    %642 = vector.multi_reduction <add>, %641, %cst_444 [1] : vector<1x64xf32> to vector<1xf32>
    %643 = vector.shape_cast %642 : vector<1xf32> to vector<1x1xf32>
    %644 = vector.broadcast %643 : vector<1x1xf32> to vector<1x64xf32>
    %645 = arith.divf %641, %644 : vector<1x64xf32>
    %cst_445 = arith.constant dense<0.000000e+00> : vector<1x32xf32>
    %646 = tpu.matmul %581, %634, %cst_445 {dimension_numbers = #tpu.dot_dimension_numbers<[1], [0], [0], [1], [0, 0, 1, 1], [], []>} : vector<1x64xbf16>, vector<64x32xbf16>, vector<1x32xf32> -> vector<1x32xf32>
    %647 = arith.addf %646, %586 : vector<1x32xf32>
    %cst_446 = arith.constant 0.000000e+00 : f32
    %648 = vector.broadcast %cst_446 : f32 to vector<1x32xf32>
    %649 = arith.maximumf %647, %648 : vector<1x32xf32>
    %650 = arith.truncf %649 : vector<1x32xf32> to vector<1x32xbf16>
    %cst_447 = arith.constant dense<0.000000e+00> : vector<1x1xf32>
    %651 = tpu.matmul %650, %587, %cst_447 {dimension_numbers = #tpu.dot_dimension_numbers<[1], [0], [0], [1], [0, 0, 1, 1], [], []>} : vector<1x32xbf16>, vector<32x1xbf16>, vector<1x1xf32> -> vector<1x1xf32>
    %652 = arith.addf %651, %588 : vector<1x1xf32>
    %653 = math.tanh %652 : vector<1x1xf32>
    %654 = vector.shape_cast %653 : vector<1x1xf32> to vector<1x1xf32>
    %655 = vector.broadcast %654 : vector<1x1xf32> to vector<1x64xf32>
    %656 = tpu.concatenate %645, %655 in 1 : vector<1x64xf32>, vector<1x64xf32> -> vector<1x128xf32>
    %657 = vector.extract_strided_slice %580 {offsets = [0, 6], sizes = [64, 1], strides = [1, 1]} : vector<64x12xf32> to vector<64x1xf32>
    %658 = vector.extract_strided_slice %580 {offsets = [0, 7], sizes = [64, 1], strides = [1, 1]} : vector<64x12xf32> to vector<64x1xf32>
    %659 = vector.extract_strided_slice %580 {offsets = [0, 8], sizes = [64, 1], strides = [1, 1]} : vector<64x12xf32> to vector<64x1xf32>
    %660 = vector.broadcast %657 : vector<64x1xf32> to vector<64x64xf32>
    %661 = arith.mulf %660, %582 : vector<64x64xf32>
    %662 = vector.broadcast %658 : vector<64x1xf32> to vector<64x64xf32>
    %663 = arith.mulf %662, %583 : vector<64x64xf32>
    %664 = arith.addf %661, %663 : vector<64x64xf32>
    %665 = arith.truncf %664 : vector<64x64xf32> to vector<64x64xbf16>
    %666 = vector.broadcast %659 : vector<64x1xf32> to vector<64x32xf32>
    %667 = arith.mulf %666, %584 : vector<64x32xf32>
    %668 = arith.truncf %667 : vector<64x32xf32> to vector<64x32xbf16>
    %cst_448 = arith.constant dense<0.000000e+00> : vector<1x64xf32>
    %669 = tpu.matmul %581, %665, %cst_448 {dimension_numbers = #tpu.dot_dimension_numbers<[1], [0], [0], [1], [0, 0, 1, 1], [], []>} : vector<1x64xbf16>, vector<64x64xbf16>, vector<1x64xf32> -> vector<1x64xf32>
    %670 = arith.addf %669, %585 : vector<1x64xf32>
    %cst_449 = arith.constant dense<0xFF800000> : vector<1xf32>
    %671 = vector.multi_reduction <maximumf>, %670, %cst_449 [1] : vector<1x64xf32> to vector<1xf32>
    %672 = vector.shape_cast %671 : vector<1xf32> to vector<1x1xf32>
    %673 = vector.broadcast %672 : vector<1x1xf32> to vector<1x64xf32>
    %674 = arith.subf %670, %673 : vector<1x64xf32>
    %675 = math.exp %674 : vector<1x64xf32>
    %cst_450 = arith.constant dense<0.000000e+00> : vector<1xf32>
    %676 = vector.multi_reduction <add>, %675, %cst_450 [1] : vector<1x64xf32> to vector<1xf32>
    %677 = vector.shape_cast %676 : vector<1xf32> to vector<1x1xf32>
    %678 = vector.broadcast %677 : vector<1x1xf32> to vector<1x64xf32>
    %679 = arith.divf %675, %678 : vector<1x64xf32>
    %cst_451 = arith.constant dense<0.000000e+00> : vector<1x32xf32>
    %680 = tpu.matmul %581, %668, %cst_451 {dimension_numbers = #tpu.dot_dimension_numbers<[1], [0], [0], [1], [0, 0, 1, 1], [], []>} : vector<1x64xbf16>, vector<64x32xbf16>, vector<1x32xf32> -> vector<1x32xf32>
    %681 = arith.addf %680, %586 : vector<1x32xf32>
    %cst_452 = arith.constant 0.000000e+00 : f32
    %682 = vector.broadcast %cst_452 : f32 to vector<1x32xf32>
    %683 = arith.maximumf %681, %682 : vector<1x32xf32>
    %684 = arith.truncf %683 : vector<1x32xf32> to vector<1x32xbf16>
    %cst_453 = arith.constant dense<0.000000e+00> : vector<1x1xf32>
    %685 = tpu.matmul %684, %587, %cst_453 {dimension_numbers = #tpu.dot_dimension_numbers<[1], [0], [0], [1], [0, 0, 1, 1], [], []>} : vector<1x32xbf16>, vector<32x1xbf16>, vector<1x1xf32> -> vector<1x1xf32>
    %686 = arith.addf %685, %588 : vector<1x1xf32>
    %687 = math.tanh %686 : vector<1x1xf32>
    %688 = vector.shape_cast %687 : vector<1x1xf32> to vector<1x1xf32>
    %689 = vector.broadcast %688 : vector<1x1xf32> to vector<1x64xf32>
    %690 = tpu.concatenate %679, %689 in 1 : vector<1x64xf32>, vector<1x64xf32> -> vector<1x128xf32>
    %691 = vector.extract_strided_slice %580 {offsets = [0, 9], sizes = [64, 1], strides = [1, 1]} : vector<64x12xf32> to vector<64x1xf32>
    %692 = vector.extract_strided_slice %580 {offsets = [0, 10], sizes = [64, 1], strides = [1, 1]} : vector<64x12xf32> to vector<64x1xf32>
    %693 = vector.extract_strided_slice %580 {offsets = [0, 11], sizes = [64, 1], strides = [1, 1]} : vector<64x12xf32> to vector<64x1xf32>
    %694 = vector.broadcast %691 : vector<64x1xf32> to vector<64x64xf32>
    %695 = arith.mulf %694, %582 : vector<64x64xf32>
    %696 = vector.broadcast %692 : vector<64x1xf32> to vector<64x64xf32>
    %697 = arith.mulf %696, %583 : vector<64x64xf32>
    %698 = arith.addf %695, %697 : vector<64x64xf32>
    %699 = arith.truncf %698 : vector<64x64xf32> to vector<64x64xbf16>
    %700 = vector.broadcast %693 : vector<64x1xf32> to vector<64x32xf32>
    %701 = arith.mulf %700, %584 : vector<64x32xf32>
    %702 = arith.truncf %701 : vector<64x32xf32> to vector<64x32xbf16>
    %cst_454 = arith.constant dense<0.000000e+00> : vector<1x64xf32>
    %703 = tpu.matmul %581, %699, %cst_454 {dimension_numbers = #tpu.dot_dimension_numbers<[1], [0], [0], [1], [0, 0, 1, 1], [], []>} : vector<1x64xbf16>, vector<64x64xbf16>, vector<1x64xf32> -> vector<1x64xf32>
    %704 = arith.addf %703, %585 : vector<1x64xf32>
    %cst_455 = arith.constant dense<0xFF800000> : vector<1xf32>
    %705 = vector.multi_reduction <maximumf>, %704, %cst_455 [1] : vector<1x64xf32> to vector<1xf32>
    %706 = vector.shape_cast %705 : vector<1xf32> to vector<1x1xf32>
    %707 = vector.broadcast %706 : vector<1x1xf32> to vector<1x64xf32>
    %708 = arith.subf %704, %707 : vector<1x64xf32>
    %709 = math.exp %708 : vector<1x64xf32>
    %cst_456 = arith.constant dense<0.000000e+00> : vector<1xf32>
    %710 = vector.multi_reduction <add>, %709, %cst_456 [1] : vector<1x64xf32> to vector<1xf32>
    %711 = vector.shape_cast %710 : vector<1xf32> to vector<1x1xf32>
    %712 = vector.broadcast %711 : vector<1x1xf32> to vector<1x64xf32>
    %713 = arith.divf %709, %712 : vector<1x64xf32>
    %cst_457 = arith.constant dense<0.000000e+00> : vector<1x32xf32>
    %714 = tpu.matmul %581, %702, %cst_457 {dimension_numbers = #tpu.dot_dimension_numbers<[1], [0], [0], [1], [0, 0, 1, 1], [], []>} : vector<1x64xbf16>, vector<64x32xbf16>, vector<1x32xf32> -> vector<1x32xf32>
    %715 = arith.addf %714, %586 : vector<1x32xf32>
    %cst_458 = arith.constant 0.000000e+00 : f32
    %716 = vector.broadcast %cst_458 : f32 to vector<1x32xf32>
    %717 = arith.maximumf %715, %716 : vector<1x32xf32>
    %718 = arith.truncf %717 : vector<1x32xf32> to vector<1x32xbf16>
    %cst_459 = arith.constant dense<0.000000e+00> : vector<1x1xf32>
    %719 = tpu.matmul %718, %587, %cst_459 {dimension_numbers = #tpu.dot_dimension_numbers<[1], [0], [0], [1], [0, 0, 1, 1], [], []>} : vector<1x32xbf16>, vector<32x1xbf16>, vector<1x1xf32> -> vector<1x1xf32>
    %720 = arith.addf %719, %588 : vector<1x1xf32>
    %721 = math.tanh %720 : vector<1x1xf32>
    %722 = vector.shape_cast %721 : vector<1x1xf32> to vector<1x1xf32>
    %723 = vector.broadcast %722 : vector<1x1xf32> to vector<1x64xf32>
    %724 = tpu.concatenate %713, %723 in 1 : vector<1x64xf32>, vector<1x64xf32> -> vector<1x128xf32>
    %725 = tpu.concatenate %622, %656, %690, %724 in 0 : vector<1x128xf32>, vector<1x128xf32>, vector<1x128xf32>, vector<1x128xf32> -> vector<4x128xf32>
    %c0_460 = arith.constant 0 : index
    %c0_461 = arith.constant 0 : index
    %726 = vector.load %arg27[%c0_460, %c0_461] : memref<4x128xf32, #tpu.memory_space<vmem>>, vector<4x128xf32>
    tpu.vector_store %arg27[%c0_460, %c0_461], %725 {strides = array<i32>} : memref<4x128xf32, #tpu.memory_space<vmem>>, vector<4x128xf32>,
    return
  }
  func.func @transform_0(%arg0: i32) -> (i32, i32) {
    %c0_i32 = arith.constant 0 : i32
    %c0_i32_0 = arith.constant 0 : i32
    return %arg0, %c0_i32 : i32, i32
  }
  func.func @transform_1(%arg0: i32) -> (i32, i32) {
    %c0_i32 = arith.constant 0 : i32
    %c0_i32_0 = arith.constant 0 : i32
    %c0_i32_1 = arith.constant 0 : i32
    return %c0_i32, %c0_i32_0 : i32, i32
  }
  func.func @transform_2(%arg0: i32) -> (i32, i32) {
    %c0_i32 = arith.constant 0 : i32
    %c0_i32_0 = arith.constant 0 : i32
    %c0_i32_1 = arith.constant 0 : i32
    return %c0_i32, %c0_i32_0 : i32, i32
  }
  func.func @transform_3(%arg0: i32) -> (i32, i32, i32) {
    %c0_i32 = arith.constant 0 : i32
    %c0_i32_0 = arith.constant 0 : i32
    %c0_i32_1 = arith.constant 0 : i32
    %c0_i32_2 = arith.constant 0 : i32
    return %c0_i32, %c0_i32_0, %c0_i32_1 : i32, i32, i32
  }
  func.func @transform_4(%arg0: i32) -> (i32, i32) {
    %c0_i32 = arith.constant 0 : i32
    %c0_i32_0 = arith.constant 0 : i32
    %c0_i32_1 = arith.constant 0 : i32
    return %c0_i32, %c0_i32_0 : i32, i32
  }
  func.func @transform_5(%arg0: i32) -> (i32, i32, i32) {
    %c0_i32 = arith.constant 0 : i32
    %c0_i32_0 = arith.constant 0 : i32
    %c0_i32_1 = arith.constant 0 : i32
    %c0_i32_2 = arith.constant 0 : i32
    return %c0_i32, %c0_i32_0, %c0_i32_1 : i32, i32, i32
  }
  func.func @transform_6(%arg0: i32) -> (i32, i32) {
    %c0_i32 = arith.constant 0 : i32
    %c0_i32_0 = arith.constant 0 : i32
    %c0_i32_1 = arith.constant 0 : i32
    return %c0_i32, %c0_i32_0 : i32, i32
  }
  func.func @transform_7(%arg0: i32) -> (i32, i32, i32) {
    %c0_i32 = arith.constant 0 : i32
    %c0_i32_0 = arith.constant 0 : i32
    %c0_i32_1 = arith.constant 0 : i32
    %c0_i32_2 = arith.constant 0 : i32
    return %c0_i32, %c0_i32_0, %c0_i32_1 : i32, i32, i32
  }
  func.func @transform_8(%arg0: i32) -> (i32, i32) {
    %c0_i32 = arith.constant 0 : i32
    %c0_i32_0 = arith.constant 0 : i32
    %c0_i32_1 = arith.constant 0 : i32
    return %c0_i32, %c0_i32_0 : i32, i32
  }
  func.func @transform_9(%arg0: i32) -> (i32, i32, i32) {
    %c0_i32 = arith.constant 0 : i32
    %c0_i32_0 = arith.constant 0 : i32
    %c0_i32_1 = arith.constant 0 : i32
    %c0_i32_2 = arith.constant 0 : i32
    return %c0_i32, %c0_i32_0, %c0_i32_1 : i32, i32, i32
  }
  func.func @transform_10(%arg0: i32) -> (i32, i32) {
    %c0_i32 = arith.constant 0 : i32
    %c0_i32_0 = arith.constant 0 : i32
    %c0_i32_1 = arith.constant 0 : i32
    return %c0_i32, %c0_i32_0 : i32, i32
  }
  func.func @transform_11(%arg0: i32) -> (i32, i32, i32) {
    %c0_i32 = arith.constant 0 : i32
    %c0_i32_0 = arith.constant 0 : i32
    %c0_i32_1 = arith.constant 0 : i32
    %c0_i32_2 = arith.constant 0 : i32
    return %c0_i32, %c0_i32_0, %c0_i32_1 : i32, i32, i32
  }
  func.func @transform_12(%arg0: i32) -> (i32, i32) {
    %c0_i32 = arith.constant 0 : i32
    %c0_i32_0 = arith.constant 0 : i32
    %c0_i32_1 = arith.constant 0 : i32
    return %c0_i32, %c0_i32_0 : i32, i32
  }
  func.func @transform_13(%arg0: i32) -> (i32, i32, i32) {
    %c0_i32 = arith.constant 0 : i32
    %c0_i32_0 = arith.constant 0 : i32
    %c0_i32_1 = arith.constant 0 : i32
    %c0_i32_2 = arith.constant 0 : i32
    return %c0_i32, %c0_i32_0, %c0_i32_1 : i32, i32, i32
  }
  func.func @transform_14(%arg0: i32) -> (i32, i32) {
    %c0_i32 = arith.constant 0 : i32
    %c0_i32_0 = arith.constant 0 : i32
    %c0_i32_1 = arith.constant 0 : i32
    return %c0_i32, %c0_i32_0 : i32, i32
  }
  func.func @transform_15(%arg0: i32) -> (i32, i32) {
    %c0_i32 = arith.constant 0 : i32
    %c0_i32_0 = arith.constant 0 : i32
    %c0_i32_1 = arith.constant 0 : i32
    return %c0_i32, %c0_i32_0 : i32, i32
  }
  func.func @transform_16(%arg0: i32) -> (i32, i32) {
    %c0_i32 = arith.constant 0 : i32
    %c0_i32_0 = arith.constant 0 : i32
    %c0_i32_1 = arith.constant 0 : i32
    return %c0_i32, %c0_i32_0 : i32, i32
  }
  func.func @transform_17(%arg0: i32) -> (i32, i32, i32) {
    %c0_i32 = arith.constant 0 : i32
    %c0_i32_0 = arith.constant 0 : i32
    %c0_i32_1 = arith.constant 0 : i32
    %c0_i32_2 = arith.constant 0 : i32
    return %c0_i32, %c0_i32_0, %c0_i32_1 : i32, i32, i32
  }
  func.func @transform_18(%arg0: i32) -> (i32, i32) {
    %c0_i32 = arith.constant 0 : i32
    %c0_i32_0 = arith.constant 0 : i32
    %c0_i32_1 = arith.constant 0 : i32
    return %c0_i32, %c0_i32_0 : i32, i32
  }
  func.func @transform_19(%arg0: i32) -> (i32, i32) {
    %c0_i32 = arith.constant 0 : i32
    %c0_i32_0 = arith.constant 0 : i32
    %c0_i32_1 = arith.constant 0 : i32
    return %c0_i32, %c0_i32_0 : i32, i32
  }
  func.func @transform_20(%arg0: i32) -> (i32, i32) {
    %c0_i32 = arith.constant 0 : i32
    %c0_i32_0 = arith.constant 0 : i32
    %c0_i32_1 = arith.constant 0 : i32
    return %c0_i32, %c0_i32_0 : i32, i32
  }
  func.func @transform_21(%arg0: i32) -> (i32, i32) {
    %c0_i32 = arith.constant 0 : i32
    %c0_i32_0 = arith.constant 0 : i32
    %c0_i32_1 = arith.constant 0 : i32
    return %c0_i32, %c0_i32_0 : i32, i32
  }
  func.func @transform_22(%arg0: i32) -> (i32, i32) {
    %c0_i32 = arith.constant 0 : i32
    %c0_i32_0 = arith.constant 0 : i32
    %c0_i32_1 = arith.constant 0 : i32
    return %c0_i32, %c0_i32_0 : i32, i32
  }
  func.func @transform_23(%arg0: i32) -> (i32, i32) {
    %c0_i32 = arith.constant 0 : i32
    %c0_i32_0 = arith.constant 0 : i32
    %c0_i32_1 = arith.constant 0 : i32
    return %c0_i32, %c0_i32_0 : i32, i32
  }
  func.func @transform_24(%arg0: i32) -> (i32, i32) {
    %c0_i32 = arith.constant 0 : i32
    %c0_i32_0 = arith.constant 0 : i32
    %c0_i32_1 = arith.constant 0 : i32
    return %c0_i32, %c0_i32_0 : i32, i32
  }
  func.func @transform_25(%arg0: i32) -> (i32, i32) {
    %c0_i32 = arith.constant 0 : i32
    %c0_i32_0 = arith.constant 0 : i32
    %c0_i32_1 = arith.constant 0 : i32
    return %c0_i32, %c0_i32_0 : i32, i32
  }
  func.func @transform_26(%arg0: i32) -> (i32, i32) {
    %c0_i32 = arith.constant 0 : i32
    %c0_i32_0 = arith.constant 0 : i32
    return %arg0, %c0_i32 : i32, i32
  }
}

</mosaic_0001>

<bundles_post_ra>
// kernel: resnet_forward_pallas.1
= control target key start
LH: loop header
LB: loop body
LE: loop exit
PB: predicated region body
PF: predicated region fallthrough
CT: control target
= control target key end

     0   :  { %v19850_v0 = vmov 0   ;;  %vm151_vm0 = vcmask 588800   ;;  %vm164_vm1 = vcmask 1043456   ;;  %vm14774_vm4 = vmmov 0   ;;  %s19816_s17 = inlined_call_operand.vmem [shape: f32[9,64,1], index: 17, kind: input, shape index: {}]   ;;  %s19817_s1 = inlined_call_operand.vmem [shape: bf16[72,128], index: 1, kind: input, shape index: {}]   ;;  %s19818_s0 = inlined_call_operand.vmem [shape: bf16[64,72], index: 0, kind: input, shape index: {}]   ;;  %s19819_s3 = inlined_call_operand.vmem [shape: bf16[9,128,128], index: 3, kind: input, shape index: {}]   ;;  %s19820_s2 = inlined_call_operand.vmem [shape: f32[2,128], index: 2, kind: input, shape index: {}]   ;;  %s19821_s5 = inlined_call_operand.vmem [shape: bf16[9,128,128], index: 5, kind: input, shape index: {}]   ;;  %s19822_s4 = inlined_call_operand.vmem [shape: f32[2,128], index: 4, kind: input, shape index: {}]   ;;  %s19823_s7 = inlined_call_operand.vmem [shape: bf16[9,128,128], index: 7, kind: input, shape index: {}]   ;;  %s19824_s6 = inlined_call_operand.vmem [shape: f32[2,128], index: 6, kind: input, shape index: {}]   ;;  %s19825_s9 = inlined_call_operand.vmem [shape: bf16[9,128,128], index: 9, kind: input, shape index: {}]   ;;  %s19826_s8 = inlined_call_operand.vmem [shape: f32[2,128], index: 8, kind: input, shape index: {}]   ;;  %s19827_s11 = inlined_call_operand.vmem [shape: bf16[9,128,128], index: 11, kind: input, shape index: {}]   ;;  %s19828_s10 = inlined_call_operand.vmem [shape: f32[2,128], index: 10, kind: input, shape index: {}]   ;;  %s19829_s13 = inlined_call_operand.vmem [shape: bf16[9,128,128], index: 13, kind: input, shape index: {}]   ;;  %s19830_s12 = inlined_call_operand.vmem [shape: f32[2,128], index: 12, kind: input, shape index: {}]   ;;  %s19831_s15 = inlined_call_operand.vmem [shape: bf16[128,12], index: 15, kind: input, shape index: {}]   ;;  %s19832_s14 = inlined_call_operand.vmem [shape: f32[2,128], index: 14, kind: input, shape index: {}]   ;;  %s19833_s16 = inlined_call_operand.vmem [shape: f32[2,12], index: 16, kind: input, shape index: {}]   ;;  %s19834_s22 = inlined_call_operand.vmem [shape: f32[64,32], index: 22, kind: input, shape index: {}]   ;;  %s19835_s18 = inlined_call_operand.vmem [shape: bf16[1,64], index: 18, kind: input, shape index: {}]   ;;  %s19836_s19 = inlined_call_operand.vmem [shape: f32[64,64], index: 19, kind: input, shape index: {}]   ;;  %s19837_s20 = inlined_call_operand.vmem [shape: f32[64,64], index: 20, kind: input, shape index: {}]   ;;  %s19838_s24 = inlined_call_operand.vmem [shape: bf16[32,1], index: 24, kind: input, shape index: {}]   ;;  %s19839_s23 = inlined_call_operand.vmem [shape: f32[1,32], index: 23, kind: input, shape index: {}]   ;;  %s19840_s25 = inlined_call_operand.<no memory space> [shape: f32[1,1], index: 25, kind: input, shape index: {}]   ;;  %s19841_s21 = inlined_call_operand.vmem [shape: f32[1,64], index: 21, kind: input, shape index: {}]   ;;  %s19842_s26 = inlined_call_operand.vmem [shape: f32[4,128], index: 26, kind: output, shape index: {}]  }
   0x1   :  { %20095 = sst [smem:[#allocation88_spill]] %s19816_s17  ;;  %14246 = vset.pattern.permute.xlu1 %v19850_v0  ;;  %14245 = vset.pattern.permute.xlu0 %v19850_v0  ;;  %vm9350_vm5 = vcmask 523264   ;;  %vm9460_vm6 = vcmask 261120   ;;  %vm9394_vm7 = vcmask 516096   ;;  %vm10357_vm8 = vcmask 1040384  }
   0x2   :  { %20096 = sst [smem:[#allocation89_spill]] %s19817_s1  ;;  %vm10359_vm9 = vcmask 1041408   ;;  %vm10361_vm10 = vcmask 1042432  }
   0x3   :  { %20097 = sst [smem:[#allocation90_spill]] %s19818_s0  ;;  %s20107_s0 = sld [smem:[#allocation89_spill]] }
   0x4   :  { %20098 = sst [smem:[#allocation91_spill]] %s19819_s3  ;;  %s20108_s17 = sld [smem:[#allocation90_spill]] }
   0x5   :  { %20099 = sst [smem:[#allocation92_spill]] %s19820_s2 }
   0x6   :  { %20100 = sst [smem:[#allocation93_spill]] %s19821_s5  ;;  %s20109_s5 = sld [smem:[#allocation91_spill]] }
   0x7   :  { %20101 = sst [smem:[#allocation94_spill]] %s19822_s4  ;;  %s20205_s4 = sld [smem:[#allocation93_spill]] }
   0x8   :  { %20102 = sst [smem:[#allocation95_spill]] %s19823_s7  ;;  %s20106_s7 = sld [smem:[#allocation88_spill]] }
   0x9   :  { %20103 = sst [smem:[#allocation96_spill]] %s19824_s6  ;;  %v14295_v3 = vld [vmem:[%s20107_s0] sm:$0xff]   ;;  %v14296_v6 = vld [vmem:[%s20107_s0 + $0x8] sm:$0xff]   ;;  %v14297_v9 = vld [vmem:[%s20107_s0 + $0x10] sm:$0xff]   ;;  %s20302_s30 = sld [smem:[#allocation95_spill]] }
   0xa   :  { %20104 = sst [smem:[#allocation97_spill]] %s19825_s9  ;;  %12380 = vmatprep.subr.bf16.mxu0 %v14295_v3  ;;  %v14300_v11 = vld [vmem:[%s20108_s17] sm:$0xff]   ;;  %v14298_v13 = vld [vmem:[%s20107_s0 + $0x18] sm:$0xff]   ;;  %v14301_v20 = vld [vmem:[%s20108_s17 + $0x8] sm:$0xff]   ;;  %s20320_s6 = sld [smem:[#allocation96_spill]] }
   0xb   :  { %20105 = sst [smem:[#allocation98_spill]] %s19826_s8  ;;  %12381 = vmatpush3.bf16.msra.mxu0 %v14295_v3  ;;  %12390 = vmatprep.mubr.msk.bf16.mxu0 %vm151_vm0, %v14300_v11  ;;  %v14299_v14 = vld [vmem:[%s20107_s0 + $0x20] ss:$0 sps:$4 sm:$0xff]   ;;  %v14302_v21 = vld [vmem:[%s20108_s17 + $0x10] sm:$0xff]   ;;  %v14303_v26 = vld [vmem:[%s20108_s17 + $0x18] sm:$0xff]   ;;  %s20164_s17 = sld [smem:[#allocation92_spill]] }
   0xc   :  { %12382 = vmatprep.subr.bf16.mxu0 %v14296_v6  ;;  %v166_v17 = vsel %vm164_vm1, %v14299_v14, 0  ;;  %v14304_v59 = vld [vmem:[%s20109_s5 + $0x40] sm:$0xff]   ;;  %v14305_v62 = vld [vmem:[%s20109_s5 + $0x48] sm:$0xff]   ;;  %s20415_s3 = sld [smem:[#allocation98_spill]] }
   0xd   :  { %12398 = vmatprep.subr.bf16.mxu1 %v14304_v59 }
   0xe   :  { %v10383_v1 = vld [vmem:[%s20106_s7 + $0x50] sm:$0xff]  ;;  %v10381_v2 = vld [vmem:[%s20106_s7 + $0x40] sm:$0xff]  ;;  %v10384_v4 = vld [vmem:[%s20106_s7 + $0x58] sm:$0xff]  ;;  %12399 = vmatpush3.bf16.msra.mxu1 %v14304_v59 }
   0xf   :  { %373 = vperm.xlu1 %14246, %v10383_v1   ;;  %363 = vperm.xlu0 %14245, %v10381_v2   ;;  %v10382_v5 = vld [vmem:[%s20106_s7 + $0x48] sm:$0xff]  ;;  %v10385_v8 = vld [vmem:[%s20106_s7 + $0x60] sm:$0xff]  ;;  %v10388_v10 = vld [vmem:[%s20106_s7 + $0x78] sm:$0xff] }
  0x10   :  { %v10386_v7 = vld [vmem:[%s20106_s7 + $0x68] sm:$0xff]  ;;  %12383 = vmatpush3.bf16.msra.mxu0 %v14296_v6  ;;  %v10387_v12 = vld [vmem:[%s20106_s7 + $0x70] sm:$0xff]  ;;  %v276_v16 = vld [vmem:[%s20106_s7] sm:$0xff]  ;;  %12400 = vmatprep.subr.bf16.mxu1 %v14305_v62 }
  0x11   :  { %12384 = vmatprep.subr.bf16.mxu0 %v14297_v9  ;;  %v277_v15 = vld [vmem:[%s20106_s7 + $0x8] sm:$0xff]  ;;  %v279_v18 = vld [vmem:[%s20106_s7 + $0x18] sm:$0xff]  ;;  %v278_v19 = vld [vmem:[%s20106_s7 + $0x10] sm:$0xff] }
  0x12   :  { %v281_v22 = vld [vmem:[%s20106_s7 + $0x28] sm:$0xff]  ;;  %v280_v23 = vld [vmem:[%s20106_s7 + $0x20] sm:$0xff]  ;;  %v283_v24 = vld [vmem:[%s20106_s7 + $0x38] sm:$0xff]  ;;  %12401 = vmatpush3.bf16.msra.mxu1 %v14305_v62 }
  0x13   :  { %378 = vperm.xlu1 %14246, %v10384_v4   ;;  %368 = vperm.xlu0 %14245, %v10382_v5   ;;  %v282_v25 = vld [vmem:[%s20106_s7 + $0x30] sm:$0xff]  ;;  %v10422_v27 = vld [vmem:[%s20106_s7 + $0x88] sm:$0xff]  ;;  %v10421_v28 = vld [vmem:[%s20106_s7 + $0x80] sm:$0xff] }
  0x14   :  { %12385 = vmatpush3.bf16.msra.mxu0 %v14297_v9  ;;  %v10424_v29 = vld [vmem:[%s20106_s7 + $0x98] sm:$0xff]  ;;  %v10423_v30 = vld [vmem:[%s20106_s7 + $0x90] sm:$0xff]  ;;  %v10426_v31 = vld [vmem:[%s20106_s7 + $0xa8] sm:$0xff] }
  0x15   :  { %12386 = vmatprep.subr.bf16.mxu0 %v14298_v13  ;;  %v10425_v32 = vld [vmem:[%s20106_s7 + $0xa0] sm:$0xff]  ;;  %v10428_v33 = vld [vmem:[%s20106_s7 + $0xb8] sm:$0xff]  ;;  %v10427_v34 = vld [vmem:[%s20106_s7 + $0xb0] sm:$0xff] }
  0x16   :  { %v10454_v35 = vld [vmem:[%s20106_s7 + $0xc8] sm:$0xff]  ;;  %v10453_v36 = vld [vmem:[%s20106_s7 + $0xc0] sm:$0xff]  ;;  %v10456_v37 = vld [vmem:[%s20106_s7 + $0xd8] sm:$0xff] }
  0x17   :  { %388 = vperm.xlu1 %14246, %v10386_v7   ;;  %383 = vperm.xlu0 %14245, %v10385_v8   ;;  %v10455_v38 = vld [vmem:[%s20106_s7 + $0xd0] sm:$0xff]  ;;  %v10458_v39 = vld [vmem:[%s20106_s7 + $0xe8] sm:$0xff]  ;;  %v10457_v40 = vld [vmem:[%s20106_s7 + $0xe0] sm:$0xff] }
  0x18   :  { %12387 = vmatpush3.bf16.msra.mxu0 %v14298_v13  ;;  %v10460_v41 = vld [vmem:[%s20106_s7 + $0xf8] sm:$0xff]  ;;  %v10459_v42 = vld [vmem:[%s20106_s7 + $0xf0] sm:$0xff]  ;;  %v10510_v43 = vld [vmem:[%s20106_s7 + $0x148] sm:$0xff] }
  0x19   :  { %14230 = vmatprep.subr.msk.bf16.mxu0 %vm164_vm1, %v14299_v14  ;;  %v10509_v44 = vld [vmem:[%s20106_s7 + $0x140] sm:$0xff]  ;;  %v10512_v45 = vld [vmem:[%s20106_s7 + $0x158] sm:$0xff]  ;;  %v10511_v46 = vld [vmem:[%s20106_s7 + $0x150] sm:$0xff] }
  0x1a   :  { %v10514_v47 = vld [vmem:[%s20106_s7 + $0x168] sm:$0xff]  ;;  %v10513_v48 = vld [vmem:[%s20106_s7 + $0x160] sm:$0xff]  ;;  %v10516_v49 = vld [vmem:[%s20106_s7 + $0x178] sm:$0xff] }
  0x1b   :  { %398 = vperm.xlu1 %14246, %v10388_v10   ;;  %393 = vperm.xlu0 %14245, %v10387_v12   ;;  %v10515_v50 = vld [vmem:[%s20106_s7 + $0x170] sm:$0xff]  ;;  %v10542_v51 = vld [vmem:[%s20106_s7 + $0x188] sm:$0xff]  ;;  %v10541_v52 = vld [vmem:[%s20106_s7 + $0x180] sm:$0xff] }
  0x1c   :  { %12389 = vmatpush3.bf16.msra.mxu0 %v166_v17  ;;  %v10544_v53 = vld [vmem:[%s20106_s7 + $0x198] sm:$0xff]  ;;  %v10543_v54 = vld [vmem:[%s20106_s7 + $0x190] sm:$0xff]  ;;  %v10546_v55 = vld [vmem:[%s20106_s7 + $0x1a8] sm:$0xff] }
  0x1d   :  { %v10545_v56 = vld [vmem:[%s20106_s7 + $0x1a0] sm:$0xff]  ;;  %v10548_v57 = vld [vmem:[%s20106_s7 + $0x1b8] sm:$0xff]  ;;  %v10547_v58 = vld [vmem:[%s20106_s7 + $0x1b0] sm:$0xff] }
  0x1e   :  { %v10574_v60 = vld [vmem:[%s20106_s7 + $0x1c8] sm:$0xff]  ;;  %v10573_v61 = vld [vmem:[%s20106_s7 + $0x1c0] sm:$0xff]  ;;  %v10576_v63 = vld [vmem:[%s20106_s7 + $0x1d8] sm:$0xff] }
  0x1f   :  { %291 = vperm.xlu1 %14246, %v277_v15   ;;  %286 = vperm.xlu0 %14245, %v276_v16   ;;  %v10575_v1 = vld [vmem:[%s20106_s7 + $0x1d0] sm:$0xff]  ;;  %v10578_v3 = vld [vmem:[%s20106_s7 + $0x1e8] sm:$0xff]  ;;  %v10577_v4 = vld [vmem:[%s20106_s7 + $0x1e0] sm:$0xff] }
  0x20   :  { %12391 = vmatmul.mubr.msk.bf16.vlgmr.msra.gmra.mrb[0].mxu0 %vm151_vm0, %v14301_v20  ;;  %v14306_v2 = vld [vmem:[%s20109_s5 + $0x50] sm:$0xff]   ;;  %v14307_v5 = vld [vmem:[%s20109_s5 + $0x58] sm:$0xff]   ;;  %v10606_v8 = vld [vmem:[%s20106_s7 + $0x208] sm:$0xff] }
  0x21   :  { %12394 = vmatprep.mubr.msk.bf16.mxu0 %vm151_vm0, %v14302_v21  ;;  %12402 = vmatprep.subr.bf16.mxu1 %v14306_v2  ;;  %v10580_v6 = vld [vmem:[%s20106_s7 + $0x1f8] sm:$0xff]  ;;  %v10579_v7 = vld [vmem:[%s20106_s7 + $0x1f0] sm:$0xff]  ;;  %v10605_v9 = vld [vmem:[%s20106_s7 + $0x200] sm:$0xff] }
  0x22   :  { %12403 = vmatpush3.bf16.msra.mxu1 %v14306_v2  ;;  %v14308_v10 = vld [vmem:[%s20109_s5 + $0x60] sm:$0xff]   ;;  %v10608_v11 = vld [vmem:[%s20106_s7 + $0x218] sm:$0xff]  ;;  %v10607_v12 = vld [vmem:[%s20106_s7 + $0x210] sm:$0xff] }
  0x23   :  { %301 = vperm.xlu1 %14246, %v279_v18   ;;  %296 = vperm.xlu0 %14245, %v278_v19   ;;  %v14309_v13 = vld [vmem:[%s20109_s5 + $0x68] sm:$0xff]   ;;  %v10609_v15 = vld [vmem:[%s20106_s7 + $0x220] sm:$0xff]  ;;  %v14310_v16 = vld [vmem:[%s20109_s5 + $0x70] sm:$0xff]  }
  0x24   :  { %12404 = vmatprep.subr.bf16.mxu1 %v14307_v5  ;;  %v10610_v14 = vld [vmem:[%s20106_s7 + $0x228] sm:$0xff]  ;;  %v10612_v17 = vld [vmem:[%s20106_s7 + $0x238] sm:$0xff]  ;;  %v10611_v18 = vld [vmem:[%s20106_s7 + $0x230] sm:$0xff]  ;;  %s20225_s7 = sld [smem:[#allocation94_spill]] }
  0x25   :  { %v14311_v19 = vld [vmem:[%s20109_s5 + $0x78] sm:$0xff]   ;;  %v15171_v20 = vld [vmem:[%s20109_s5] sm:$0xff]  }
  0x26   :  { %12405 = vmatpush3.bf16.msra.mxu1 %v14307_v5 }
  0x27   :  { %311 = vperm.xlu1 %14246, %v281_v22   ;;  %306 = vperm.xlu0 %14245, %v280_v23  }
  0x28   :  { %12395 = vmatmul.mubr.msk.bf16.gmra.mrb[4].mxu0 %vm151_vm0, %v14303_v26  ;;  %12406 = vmatprep.subr.bf16.mxu1 %v14308_v10 }
  0x2a   :  { %12407 = vmatpush3.bf16.msra.mxu1 %v14308_v10 }
  0x2b   :  { %321 = vperm.xlu1 %14246, %v283_v24   ;;  %316 = vperm.xlu0 %14245, %v282_v25  }
  0x2c   :  { %12408 = vmatprep.subr.bf16.mxu1 %v14309_v13 }
  0x2e   :  { %12409 = vmatpush3.bf16.msra.mxu1 %v14309_v13 }
  0x2f   :  { %689 = vperm.xlu1 %14246, %v10422_v27   ;;  %684 = vperm.xlu0 %14245, %v10421_v28  }
  0x30   :  { %12410 = vmatprep.subr.bf16.mxu1 %v14310_v16 }
  0x32   :  { %12411 = vmatpush3.bf16.msra.mxu1 %v14310_v16 }
  0x33   :  { %699 = vperm.xlu1 %14246, %v10424_v29   ;;  %694 = vperm.xlu0 %14245, %v10423_v30  }
  0x34   :  { %12412 = vmatprep.subr.bf16.mxu1 %v14311_v19 }
  0x36   :  { %12413 = vmatpush3.bf16.msra.mxu1 %v14311_v19 }
  0x37   :  { %709 = vperm.xlu1 %14246, %v10426_v31   ;;  %704 = vperm.xlu0 %14245, %v10425_v32  }
  0x38   :  { %12422 = vmatprep.subr.bf16.mxu1 %v15171_v20 }
  0x3b   :  { %719 = vperm.xlu1 %14246, %v10428_v33   ;;  %714 = vperm.xlu0 %14245, %v10427_v34  }
  0x3f   :  { %888 = vperm.xlu1 %14246, %v10454_v35   ;;  %883 = vperm.xlu0 %14245, %v10453_v36  }
  0x43   :  { %898 = vperm.xlu1 %14246, %v10456_v37   ;;  %893 = vperm.xlu0 %14245, %v10455_v38  }
  0x47   :  { %908 = vperm.xlu1 %14246, %v10458_v39   ;;  %903 = vperm.xlu0 %14245, %v10457_v40  }
  0x4b   :  { %918 = vperm.xlu1 %14246, %v10460_v41   ;;  %913 = vperm.xlu0 %14245, %v10459_v42  }
  0x4f   :  { %1229 = vperm.xlu1 %14246, %v10510_v43   ;;  %1224 = vperm.xlu0 %14245, %v10509_v44  }
  0x53   :  { %1239 = vperm.xlu1 %14246, %v10512_v45   ;;  %1234 = vperm.xlu0 %14245, %v10511_v46  }
  0x57   :  { %1249 = vperm.xlu1 %14246, %v10514_v47   ;;  %1244 = vperm.xlu0 %14245, %v10513_v48  }
  0x5b   :  { %1259 = vperm.xlu1 %14246, %v10516_v49   ;;  %1254 = vperm.xlu0 %14245, %v10515_v50  }
  0x5f   :  { %1428 = vperm.xlu1 %14246, %v10542_v51   ;;  %1423 = vperm.xlu0 %14245, %v10541_v52  }
  0x63   :  { %1438 = vperm.xlu1 %14246, %v10544_v53   ;;  %1433 = vperm.xlu0 %14245, %v10543_v54  }
  0x67   :  { %1448 = vperm.xlu1 %14246, %v10546_v55   ;;  %1443 = vperm.xlu0 %14245, %v10545_v56  }
  0x6b   :  { %1458 = vperm.xlu1 %14246, %v10548_v57   ;;  %1453 = vperm.xlu0 %14245, %v10547_v58  }
  0x6f   :  { %1627 = vperm.xlu1 %14246, %v10574_v60   ;;  %1622 = vperm.xlu0 %14245, %v10573_v61  }
  0x73   :  { %1637 = vperm.xlu1 %14246, %v10576_v63   ;;  %1632 = vperm.xlu0 %14245, %v10575_v1  }
  0x77   :  { %1647 = vperm.xlu1 %14246, %v10578_v3   ;;  %1642 = vperm.xlu0 %14245, %v10577_v4  }
  0x7b   :  { %1657 = vperm.xlu1 %14246, %v10580_v6   ;;  %1652 = vperm.xlu0 %14245, %v10579_v7   ;;  %v233_v6 = vlaneseq }
  0x7f   :  { %1826 = vperm.xlu1 %14246, %v10606_v8   ;;  %1821 = vperm.xlu0 %14245, %v10605_v9   ;;  %v15274_v9 = vshrl.u32 %v233_v6, 7 }
  0x81   :  { %20160 = vst [vmem:[#allocation53_spill] sm:$0xff] %v15274_v9  ;;  %vm267_vm2 = vcmp.lt.s32.totalorder %v15274_v9, 1  ;;  %vm664_vm3 = vcmp.lt.s32.totalorder %v15274_v9, 7 }
  0x83   :  { %1836 = vperm.xlu1 %14246, %v10608_v11   ;;  %1831 = vperm.xlu0 %14245, %v10607_v12   ;;  %v15279_v12 = vsub.s32 0, %v15274_v9 }
  0x85   :  { %20162 = vst [vmem:[#allocation55_spill] sm:$0xff] %v15279_v12 }
  0x87   :  { %1846 = vperm.xlu1 %14246, %v10610_v14   ;;  %1841 = vperm.xlu0 %14245, %v10609_v15   ;;  %v86_v14 = vld [vmem:[%s20164_s17] sm:$0x3] }
  0x8b   :  { %1856 = vperm.xlu1 %14246, %v10612_v17   ;;  %1851 = vperm.xlu0 %14245, %v10611_v18   ;;  %v236_v17 = vrot.slane %v86_v14, %v15279_v12  ;;  %v15288_v18 = vsub.s32 1, %v15274_v9 }
  0x8d   :  { %20165 = vst [vmem:[#allocation57_spill] sm:$0xff] %v15288_v18 }
  0x8e   :  { %v15174_v21 = vpop.permute.xlu1 %373  ;;  %v15176_v22 = vpop.permute.xlu0 %363 }
  0x8f   :  { %20110 = vst [vmem:[#allocation3_spill] sm:$0xff] %v15174_v21  ;;  %20111 = vst [vmem:[#allocation4_spill] sm:$0xff] %v15176_v22 }
  0x92   :  { %v15178_v23 = vpop.permute.xlu1 %378  ;;  %v15180_v24 = vpop.permute.xlu0 %368 }
  0x93   :  { %20112 = vst [vmem:[#allocation5_spill] sm:$0xff] %v15178_v23  ;;  %20113 = vst [vmem:[#allocation6_spill] sm:$0xff] %v15180_v24 }
  0x96   :  { %v15182_v25 = vpop.permute.xlu1 %388  ;;  %v15184_v26 = vpop.permute.xlu0 %383 }
  0x97   :  { %20114 = vst [vmem:[#allocation7_spill] sm:$0xff] %v15182_v25  ;;  %20115 = vst [vmem:[#allocation8_spill] sm:$0xff] %v15184_v26 }
  0x9a   :  { %v15186_v27 = vpop.permute.xlu1 %398  ;;  %v15188_v28 = vpop.permute.xlu0 %393 }
  0x9b   :  { %20116 = vst [vmem:[#allocation9_spill] sm:$0xff] %v15186_v27  ;;  %20117 = vst [vmem:[#allocation10_spill] sm:$0xff] %v15188_v28 }
  0x9e   :  { %v15190_v29 = vpop.permute.xlu1 %291  ;;  %v15192_v30 = vpop.permute.xlu0 %286 }
  0x9f   :  { %20118 = vst [vmem:[#allocation11_spill] sm:$0xff] %v15190_v29  ;;  %20119 = vst [vmem:[#allocation12_spill] sm:$0xff] %v15192_v30 }
  0xa2   :  { %v15194_v31 = vpop.permute.xlu1 %301  ;;  %v15196_v32 = vpop.permute.xlu0 %296 }
  0xa3   :  { %20120 = vst [vmem:[#allocation13_spill] sm:$0xff] %v15194_v31  ;;  %20121 = vst [vmem:[#allocation14_spill] sm:$0xff] %v15196_v32 }
  0xa6   :  { %v15198_v33 = vpop.permute.xlu1 %311  ;;  %v15200_v34 = vpop.permute.xlu0 %306 }
  0xa7   :  { %20122 = vst [vmem:[#allocation15_spill] sm:$0xff] %v15198_v33  ;;  %20123 = vst [vmem:[#allocation16_spill] sm:$0xff] %v15200_v34 }
  0xaa   :  { %v15202_v35 = vpop.permute.xlu1 %321  ;;  %v15204_v36 = vpop.permute.xlu0 %316 }
  0xab   :  { %20124 = vst [vmem:[#allocation17_spill] sm:$0xff] %v15202_v35  ;;  %20125 = vst [vmem:[#allocation18_spill] sm:$0xff] %v15204_v36 }
  0xae   :  { %v15206_v37 = vpop.permute.xlu1 %689  ;;  %v15208_v38 = vpop.permute.xlu0 %684 }
  0xaf   :  { %20126 = vst [vmem:[#allocation19_spill] sm:$0xff] %v15206_v37  ;;  %20127 = vst [vmem:[#allocation20_spill] sm:$0xff] %v15208_v38 }
  0xb2   :  { %v15210_v39 = vpop.permute.xlu1 %699  ;;  %v15212_v40 = vpop.permute.xlu0 %694 }
  0xb3   :  { %20128 = vst [vmem:[#allocation21_spill] sm:$0xff] %v15210_v39  ;;  %20129 = vst [vmem:[#allocation22_spill] sm:$0xff] %v15212_v40 }
  0xb6   :  { %v15214_v41 = vpop.permute.xlu1 %709  ;;  %v15216_v42 = vpop.permute.xlu0 %704 }
  0xb7   :  { %20130 = vst [vmem:[#allocation23_spill] sm:$0xff] %v15214_v41  ;;  %20131 = vst [vmem:[#allocation24_spill] sm:$0xff] %v15216_v42 }
  0xba   :  { %v15218_v43 = vpop.permute.xlu1 %719  ;;  %v15220_v44 = vpop.permute.xlu0 %714 }
  0xbb   :  { %20132 = vst [vmem:[#allocation25_spill] sm:$0xff] %v15218_v43  ;;  %20133 = vst [vmem:[#allocation26_spill] sm:$0xff] %v15220_v44 }
  0xbe   :  { %v15222_v45 = vpop.permute.xlu1 %888  ;;  %v15224_v46 = vpop.permute.xlu0 %883 }
  0xbf   :  { %20134 = vst [vmem:[#allocation27_spill] sm:$0xff] %v15222_v45  ;;  %20135 = vst [vmem:[#allocation28_spill] sm:$0xff] %v15224_v46 }
  0xc2   :  { %v15226_v47 = vpop.permute.xlu1 %898  ;;  %v15228_v48 = vpop.permute.xlu0 %893 }
  0xc3   :  { %20136 = vst [vmem:[#allocation29_spill] sm:$0xff] %v15226_v47  ;;  %20137 = vst [vmem:[#allocation30_spill] sm:$0xff] %v15228_v48 }
  0xc6   :  { %v15230_v49 = vpop.permute.xlu1 %908  ;;  %v15232_v50 = vpop.permute.xlu0 %903 }
  0xc7   :  { %20138 = vst [vmem:[#allocation31_spill] sm:$0xff] %v15230_v49  ;;  %20139 = vst [vmem:[#allocation32_spill] sm:$0xff] %v15232_v50 }
  0xca   :  { %v15234_v51 = vpop.permute.xlu1 %918  ;;  %v15236_v52 = vpop.permute.xlu0 %913 }
  0xcb   :  { %20140 = vst [vmem:[#allocation33_spill] sm:$0xff] %v15234_v51  ;;  %20141 = vst [vmem:[#allocation34_spill] sm:$0xff] %v15236_v52 }
  0xce   :  { %v15238_v53 = vpop.permute.xlu1 %1229  ;;  %v15240_v54 = vpop.permute.xlu0 %1224 }
  0xcf   :  { %20142 = vst [vmem:[#allocation35_spill] sm:$0xff] %v15238_v53  ;;  %20143 = vst [vmem:[#allocation36_spill] sm:$0xff] %v15240_v54 }
  0xd2   :  { %v15242_v55 = vpop.permute.xlu1 %1239  ;;  %v15244_v56 = vpop.permute.xlu0 %1234 }
  0xd3   :  { %20144 = vst [vmem:[#allocation37_spill] sm:$0xff] %v15242_v55  ;;  %20145 = vst [vmem:[#allocation38_spill] sm:$0xff] %v15244_v56 }
  0xd6   :  { %v15246_v57 = vpop.permute.xlu1 %1249  ;;  %v15248_v58 = vpop.permute.xlu0 %1244 }
  0xd7   :  { %20146 = vst [vmem:[#allocation39_spill] sm:$0xff] %v15246_v57  ;;  %20147 = vst [vmem:[#allocation40_spill] sm:$0xff] %v15248_v58 }
  0xda   :  { %v15250_v59 = vpop.permute.xlu1 %1259  ;;  %v15252_v60 = vpop.permute.xlu0 %1254 }
  0xdb   :  { %20148 = vst [vmem:[#allocation41_spill] sm:$0xff] %v15250_v59  ;;  %20149 = vst [vmem:[#allocation42_spill] sm:$0xff] %v15252_v60 }
  0xde   :  { %v15254_v61 = vpop.permute.xlu1 %1428  ;;  %v15256_v62 = vpop.permute.xlu0 %1423  ;;  %v20263_v9 = vld [vmem:[#allocation39_spill] sm:$0xff] }
  0xdf   :  { %20150 = vst [vmem:[#allocation43_spill] sm:$0xff] %v15254_v61  ;;  %20151 = vst [vmem:[#allocation44_spill] sm:$0xff] %v15256_v62 }
  0xe2   :  { %v15258_v63 = vpop.permute.xlu1 %1438  ;;  %v15260_v1 = vpop.permute.xlu0 %1433 }
  0xe3   :  { %20152 = vst [vmem:[#allocation45_spill] sm:$0xff] %v15258_v63  ;;  %20153 = vst [vmem:[#allocation46_spill] sm:$0xff] %v15260_v1 }
  0xe6   :  { %v15262_v2 = vpop.permute.xlu1 %1448  ;;  %v15264_v3 = vpop.permute.xlu0 %1443 }
  0xe7   :  { %20154 = vst [vmem:[#allocation47_spill] sm:$0xff] %v15262_v2  ;;  %20155 = vst [vmem:[#allocation48_spill] sm:$0xff] %v15264_v3 }
  0xea   :  { %v15266_v4 = vpop.permute.xlu1 %1458  ;;  %v15268_v5 = vpop.permute.xlu0 %1453 }
  0xeb   :  { %20156 = vst [vmem:[#allocation49_spill] sm:$0xff] %v15266_v4  ;;  %20157 = vst [vmem:[#allocation50_spill] sm:$0xff] %v15268_v5 }
  0xee   :  { %v15270_v7 = vpop.permute.xlu1 %1627  ;;  %v15272_v8 = vpop.permute.xlu0 %1622 }
  0xef   :  { %20158 = vst [vmem:[#allocation51_spill] sm:$0xff] %v15270_v7  ;;  %20159 = vst [vmem:[#allocation52_spill] sm:$0xff] %v15272_v8  ;;  %v248_v7 = vrot.slane %v86_v14, %v15288_v18 }
  0xf2   :  { %v15276_v10 = vpop.permute.xlu1 %1637  ;;  %v15281_v13 = vpop.permute.xlu0 %1632 }
  0xf3   :  { %20161 = vst [vmem:[#allocation54_spill] sm:$0xff] %v15276_v10  ;;  %v12392_v11 = vpop.f32.mrb[0].mxu0  ;;  %20163 = vst [vmem:[#allocation56_spill] sm:$0xff] %v15281_v13 }
  0xf4   :  { %v202_v15 = vpop.f32.mrb[1].mxu0  ;;  %v239_v50 = vmul.f32 %v12392_v11, %v236_v17 }
  0xf5   :  { %v12393_v16 = vpop.f32.mrb[2].mxu0  ;;  %v237_v13 = vmul.f32 %v236_v17, %v202_v15 }
  0xf6   :  { %v205_v19 = vpop.f32.mrb[3].mxu0  ;;  %v15290_v6 = vpop.permute.xlu1 %1647  ;;  %v240_v48 = vmul.f32 %v12393_v16, %v236_v17 }
  0xf7   :  { %20166 = vst [vmem:[#allocation58_spill] sm:$0xff] %v15290_v6  ;;  %v15292_v0 = vpop.permute.xlu0 %1642  ;;  %v238_v10 = vmul.f32 %v236_v17, %v205_v19  ;;  %v15297_v43 = vadd.f32 %v248_v7, %v237_v13 }
  0xf8   :  { %20167 = vst [vmem:[#allocation59_spill] sm:$0xff] %v15292_v0  ;;  %v15301_v0 = vadd.f32 %v248_v7, %v239_v50  ;;  %v15307_v15 = vadd.f32 %v248_v7, %v240_v48 }
  0xf9   :  { %v15295_v45 = vadd.f32 %v248_v7, %v238_v10  ;;  %20169 = vst [vmem:[#allocation61_spill] sm:$0xff] %v15297_v43 }
  0xfa   :  { %20171 = vst [vmem:[#allocation63_spill] sm:$0xff] %v15301_v0  ;;  %v15303_v19 = vpop.permute.xlu1 %1657  ;;  %20174 = vst [vmem:[#allocation66_spill] sm:$0xff] %v15307_v15  ;;  %v405_v16 = vmul.f32 %v15184_v26, %v15307_v15 }
  0xfb   :  { %v12396_v8 = vpop.f32.mrb[4].mxu0  ;;  %20168 = vst [vmem:[#allocation60_spill] sm:$0xff] %v15295_v45  ;;  %20172 = vst [vmem:[#allocation64_spill] sm:$0xff] %v15303_v19  ;;  %v15305_v14 = vpop.permute.xlu0 %1652  ;;  %v658_v19 = vrot.slane %v15301_v0, 1 }
  0xfc   :  { %v218_v49 = vpop.f32.mrb[5].mxu0  ;;  %v243_v12 = vmul.f32 %v12396_v8, %v236_v17  ;;  %20173 = vst [vmem:[#allocation65_spill] sm:$0xff] %v15305_v14  ;;  %v403_v8 = vmul.f32 %v15174_v21, %v15295_v45  ;;  %v260_v21 = vrot.slane %v15307_v15, 7  ;;  %v656_v14 = vrot.slane %v15297_v43, 1 }
  0xfd   :  { %v241_v47 = vmul.f32 %v236_v17, %v218_v49  ;;  %v12397_v46 = vpop.f32.mrb[6].mxu0 }
  0xfe   :  { %v244_v6 = vmul.f32 %v12397_v46, %v236_v17  ;;  %v221_v42 = vpop.f32.mrb[7].mxu0  ;;  %v15311_v10 = vadd.f32 %v248_v7, %v243_v12 }
  0xff   :  { %v15299_v44 = vadd.f32 %v248_v7, %v241_v47  ;;  %v242_v11 = vmul.f32 %v236_v17, %v221_v42  ;;  %v402_v47 = vmul.f32 %v15180_v24, %v15297_v43  ;;  %v404_v42 = vmul.f32 %v15178_v23, %v15301_v0  ;;  %v15329_v17 = vpop.permute.xlu1 %1826 }
 0x100   :  { %v15309_v49 = vadd.f32 %v248_v7, %v244_v6  ;;  %20176 = vst [vmem:[#allocation68_spill] sm:$0xff] %v15311_v10  ;;  %20178 = vst [vmem:[#allocation70_spill] sm:$0xff] %v15329_v17  ;;  %v15331_v6 = vpop.permute.xlu0 %1821 }
 0x101   :  { %20170 = vst [vmem:[#allocation62_spill] sm:$0xff] %v15299_v44  ;;  %v406_v50 = vmul.f32 %v15182_v25, %v15299_v44  ;;  %v15321_v13 = vadd.f32 %v248_v7, %v242_v11  ;;  %20179 = vst [vmem:[#allocation71_spill] sm:$0xff] %v15331_v6  ;;  %v14313_v7 = vld [vmem:[%s20109_s5 + $0x8] sm:$0xff]   ;;  %v257_v11 = vrot.slane %v15297_v43, 7  ;;  %v263_v25 = vrot.slane %v15311_v10, 7 }
 0x102   :  { %20175 = vst [vmem:[#allocation67_spill] sm:$0xff] %v15309_v49  ;;  %v401_v46 = vmul.f32 %v15176_v22, %v15309_v49  ;;  %v264_v48 = vrot.slane %v15309_v49, 7  ;;  %v410_v22 = vpack.c.bf16 %v404_v42, %v403_v8  ;;  %v261_v24 = vrot.slane %v15299_v44, 7 }
 0x103   :  { %20177 = vst [vmem:[#allocation69_spill] sm:$0xff] %v15321_v13  ;;  %v411_v26 = vpack.c.bf16 %v406_v50, %v405_v16  ;;  %v258_v8 = vrot.slane %v15295_v45, 7  ;;  %v262_v18 = vrot.slane %v15321_v13, 7  ;;  %v657_v50 = vrot.slane %v15295_v45, 1 }
 0x104   :  { %v409_v12 = vpack.c.bf16 %v402_v47, %v401_v46  ;;  %v259_v46 = vrot.slane %v15301_v0, 7  ;;  %v659_v47 = vrot.slane %v15307_v15, 1  ;;  %v15345_v42 = vsel %vm267_vm2, %v263_v25, %v264_v48  ;;  %v15377_v0 = vpop.permute.xlu1 %1836  ;;  %v15379_v45 = vpop.permute.xlu0 %1831 }
 0x105   :  { %v15349_v23 = vsel %vm267_vm2, %v264_v48, %v257_v11  ;;  %v407_v48 = vmul.f32 %v15188_v28, %v15321_v13  ;;  %v15374_v15 = vsel %vm267_vm2, %v260_v21, %v261_v24  ;;  %v663_v28 = vrot.slane %v15309_v49, 1  ;;  %20180 = vst [vmem:[#allocation72_spill] sm:$0xff] %v15377_v0  ;;  %20181 = vst [vmem:[#allocation73_spill] sm:$0xff] %v15379_v45 }
 0x106   :  { %12414 = vmatprep.mubr.bf16.mxu1 %v409_v12  ;;  %v14314_v12 = vld [vmem:[%s20109_s5 + $0x10] sm:$0xff]   ;;  %v15364_v16 = vsel %vm267_vm2, %v259_v46, %v260_v21  ;;  %v408_v43 = vmul.f32 %v15186_v27, %v15311_v10  ;;  %v15393_v21 = vsel %vm664_vm3, %v658_v19, %v659_v47 }
 0x107   :  { %12415 = vmatmul.mubr.bf16.vlgmr.msra.gmra.mrb[0].mxu1 %v410_v22  ;;  %v660_v22 = vrot.slane %v15299_v44, 1  ;;  %v325_v44 = vmul.f32 %v15190_v29, %v15349_v23  ;;  %v15389_v29 = vsel %vm267_vm2, %v262_v18, %v263_v25  ;;  %v15401_v27 = vmul.f32 %v15260_v1, %v15364_v16 }
 0x108   :  { %12423 = vmatpush3.bf16.msra.mxu1 %v15171_v20  ;;  %12418 = vmatprep.mubr.bf16.mxu1 %v411_v26  ;;  %v661_v20 = vrot.slane %v15321_v13, 1  ;;  %v324_v26 = vmul.f32 %v15192_v30, %v15345_v42  ;;  %v15385_v13 = vsel %vm267_vm2, %v258_v8, %v259_v46  ;;  %v15397_v30 = vsel %vm267_vm2, %v257_v11, %v258_v8 }
 0x109   :  { %12424 = vmatprep.subr.bf16.mxu1 %v14313_v7  ;;  %v15405_v46 = vsel %vm664_vm3, %v656_v14, %v657_v50  ;;  %v15409_v25 = vsel %vm664_vm3, %v659_v47, %v660_v22  ;;  %v412_v49 = vpack.c.bf16 %v408_v43, %v407_v48  ;;  %v15416_v11 = vmul.f32 %v15258_v63, %v15374_v15 }
 0x10a   :  { %v15420_v8 = vsel %vm664_vm3, %v660_v22, %v661_v20  ;;  %v662_v1 = vrot.slane %v15311_v10, 1  ;;  %v332_v41 = vpack.c.bf16 %v325_v44, %v324_v26  ;;  %v15425_v47 = vsel %vm664_vm3, %v663_v28, %v656_v14 }
 0x10b   :  { %v15429_v43 = vsel %vm664_vm3, %v657_v50, %v658_v19  ;;  %v15433_v48 = vmul.f32 %v15236_v52, %v15389_v29  ;;  %v15437_v22 = vmul.f32 %v15242_v55, %v15409_v25  ;;  %v15449_v19 = vmul.f32 %v15234_v51, %v15345_v42 }
 0x10c   :  { %12425 = vmatpush3.bf16.msra.mxu1 %v14313_v7  ;;  %v14315_v7 = vld [vmem:[%s20109_s5 + $0x18] sm:$0xff]   ;;  %v15441_v44 = vsel %vm664_vm3, %v662_v1, %v663_v28  ;;  %v15445_v14 = vsel %vm664_vm3, %v661_v20, %v662_v1  ;;  %v15457_v50 = vmul.f32 %v15377_v0, %v15420_v8  ;;  %v15461_v28 = vmul.f32 %v15240_v54, %v15405_v46  ;;  %v15463_v1 = vpop.permute.xlu1 %1846  ;;  %v15465_v20 = vpop.permute.xlu0 %1841 }
 0x10d   :  { %12426 = vmatprep.subr.bf16.mxu1 %v14314_v12  ;;  %20182 = vst [vmem:[#allocation74_spill] sm:$0xff] %v15463_v1  ;;  %20183 = vst [vmem:[#allocation75_spill] sm:$0xff] %v15465_v20  ;;  %v15482_v26 = vmul.f32 %v15248_v58, %v15420_v8  ;;  %v15486_v54 = vmul.f32 %v15246_v57, %v15445_v14  ;;  %v15490_v51 = vmul.f32 %v15252_v60, %v15441_v44  ;;  %v14317_v60 = vld [vmem:[%s20109_s5 + $0x28] sm:$0xff]  }
 0x10e   :  { %v15506_v57 = vmul.f32 %v15254_v61, %v15385_v13  ;;  %v328_v0 = vmul.f32 %v15200_v34, %v15364_v16 }
 0x10f   :  { %12419 = vmatmul.mubr.bf16.gmra.mrb[4].mxu1 %v412_v49  ;;  %v15453_v49 = vsel %vm267_vm2, %v261_v24, %v262_v18  ;;  %v15474_v18 = vmul.f32 %v15238_v53, %v15429_v43  ;;  %v15494_v24 = vmul.f32 %v15250_v59, %v15425_v47  ;;  %v15520_v53 = vmul.f32 %v15262_v2, %v15389_v29 }
 0x110   :  { %12427 = vmatpush3.bf16.msra.mxu1 %v14314_v12  ;;  %12438 = vmatprep.mubr.bf16.mxu1 %v332_v41  ;;  %v14316_v41 = vld [vmem:[%s20109_s5 + $0x20] sm:$0xff]   ;;  %v15478_v12 = vmul.f32 %v15244_v56, %v15393_v21  ;;  %v15498_v56 = vmul.f32 %v15256_v62, %v15397_v30  ;;  %v15516_v58 = vmul.f32 %v15264_v3, %v15453_v49  ;;  %v15541_v61 = vpop.permute.xlu1 %1856  ;;  %v15543_v52 = vpop.permute.xlu0 %1851  ;;  %v14318_v3 = vld [vmem:[%s20109_s5 + $0x30] sm:$0xff]  }
 0x111   :  { %12428 = vmatprep.subr.bf16.mxu1 %v14315_v7  ;;  %v15529_v59 = vmul.f32 %v15268_v5, %v15345_v42  ;;  %v15533_v62 = vmul.f32 %v15266_v4, %v15349_v23  ;;  %v15537_v2 = vmul.f32 %v15379_v45, %v15409_v25  ;;  %20184 = vst [vmem:[#allocation76_spill] sm:$0xff] %v15541_v61  ;;  %20185 = vst [vmem:[#allocation77_spill] sm:$0xff] %v15543_v52 }
 0x112   :  { %v15549_v42 = vmul.f32 %v15331_v6, %v15429_v43  ;;  %v15553_v4 = vmul.f32 %v15329_v17, %v15393_v21  ;;  %v15572_v6 = vmul.f32 %v15543_v52, %v15425_v47  ;;  %v15576_v5 = vmul.f32 %v15541_v61, %v15405_v46  ;;  %v14319_v17 = vld [vmem:[%s20109_s5 + $0x38] sm:$0xff]  }
 0x113   :  { %v326_v52 = vmul.f32 %v15196_v32, %v15397_v30  ;;  %v327_v61 = vmul.f32 %v15194_v31, %v15385_v13  ;;  %v330_v55 = vmul.f32 %v15204_v36, %v15453_v49 }
 0x114   :  { %12429 = vmatpush3.bf16.msra.mxu1 %v14315_v7  ;;  %v15562_v7 = vmul.f32 %v15465_v20, %v15445_v14  ;;  %v329_v20 = vmul.f32 %v15198_v33, %v15374_v15 }
 0x115   :  { %12430 = vmatprep.subr.bf16.mxu1 %v14316_v41 }
 0x116   :  { %v334_v45 = vpack.c.bf16 %v329_v20, %v328_v0  ;;  %v723_v0 = vmul.f32 %v15206_v37, %v15405_v46  ;;  %v14326_v46 = vld [vmem:[%s20109_s5 + $0xb0] sm:$0xff]  }
 0x118   :  { %12431 = vmatpush3.bf16.msra.mxu1 %v14316_v41  ;;  %v15566_v41 = vmul.f32 %v15463_v1, %v15441_v44  ;;  %v333_v1 = vpack.c.bf16 %v327_v61, %v326_v52  ;;  %v14322_v52 = vld [vmem:[%s20109_s5 + $0x90] sm:$0xff]   ;;  %v722_v61 = vmul.f32 %v15208_v38, %v15425_v47  ;;  %v14327_v47 = vld [vmem:[%s20109_s5 + $0xb8] sm:$0xff]  }
 0x119   :  { %12432 = vmatprep.subr.bf16.mxu1 %v14317_v60 }
 0x11a   :  { %v730_v20 = vpack.c.bf16 %v723_v0, %v722_v61  ;;  %v20187_v0 = vld [vmem:[#allocation24_spill] sm:$0xff] }
 0x11c   :  { %12433 = vmatpush3.bf16.msra.mxu1 %v14317_v60  ;;  %v14320_v60 = vld [vmem:[%s20109_s5 + $0x80] sm:$0xff]  }
 0x11d   :  { %12434 = vmatprep.subr.bf16.mxu1 %v14318_v3 }
 0x120   :  { %12435 = vmatpush3.bf16.msra.mxu1 %v14318_v3  ;;  %v14321_v3 = vld [vmem:[%s20109_s5 + $0x88] sm:$0xff]  }
 0x121   :  { %12436 = vmatprep.subr.bf16.mxu1 %v14319_v17 }
 0x124   :  { %12437 = vmatpush3.bf16.msra.mxu1 %v14319_v17  ;;  %v331_v17 = vmul.f32 %v15202_v35, %v15389_v29  ;;  %v14324_v29 = vld [vmem:[%s20109_s5 + $0xa0] sm:$0xff]  }
 0x125   :  { %12446 = vmatprep.subr.bf16.mxu1 %v14320_v60 }
 0x127   :  { %12439 = vmatmul.mubr.bf16.vlgmr.msra.gmra.mrb[0].mxu1 %v333_v1  ;;  %v14323_v1 = vld [vmem:[%s20109_s5 + $0x98] sm:$0xff]  }
 0x128   :  { %12442 = vmatprep.mubr.bf16.mxu1 %v334_v45  ;;  %12447 = vmatpush3.bf16.msra.mxu1 %v14320_v60  ;;  %v335_v45 = vpack.c.bf16 %v331_v17, %v330_v55  ;;  %v14325_v55 = vld [vmem:[%s20109_s5 + $0xa8] sm:$0xff]   ;;  %v724_v60 = vmul.f32 %v15212_v40, %v15429_v43  ;;  %v14328_v17 = vld [vmem:[%s20109_s5 + $0xc0] sm:$0xff]  }
 0x129   :  { %12448 = vmatprep.subr.bf16.mxu1 %v14321_v3  ;;  %v14329_v43 = vld [vmem:[%s20109_s5 + $0xc8] sm:$0xff]  }
 0x12c   :  { %12449 = vmatpush3.bf16.msra.mxu1 %v14321_v3  ;;  %v725_v3 = vmul.f32 %v15210_v39, %v15393_v21  ;;  %v20188_v21 = vld [vmem:[#allocation26_spill] sm:$0xff] }
 0x12d   :  { %12450 = vmatprep.subr.bf16.mxu1 %v14322_v52 }
 0x12f   :  { %12443 = vmatmul.mubr.bf16.gmra.mrb[4].mxu1 %v335_v45  ;;  %v726_v45 = vmul.f32 %v20187_v0, %v15409_v25  ;;  %v14330_v25 = vld [vmem:[%s20109_s5 + $0xd0] sm:$0xff]  }
 0x130   :  { %12451 = vmatpush3.bf16.msra.mxu1 %v14322_v52  ;;  %12462 = vmatprep.mubr.bf16.mxu1 %v730_v20  ;;  %v20186_v52 = vld [vmem:[#allocation23_spill] sm:$0xff] }
 0x131   :  { %12452 = vmatprep.subr.bf16.mxu1 %v14323_v1  ;;  %v727_v61 = vmul.f32 %v20186_v52, %v15420_v8  ;;  %v20189_v8 = vld [vmem:[#allocation25_spill] sm:$0xff] }
 0x133   :  { %v732_v20 = vpack.c.bf16 %v727_v61, %v726_v45  ;;  %v14335_v45 = vld [vmem:[%s20109_s5 + $0xf8] sm:$0xff]  }
 0x134   :  { %12453 = vmatpush3.bf16.msra.mxu1 %v14323_v1  ;;  %v731_v1 = vpack.c.bf16 %v725_v3, %v724_v60  ;;  %v20191_v60 = vld [vmem:[#allocation27_spill] sm:$0xff] }
 0x135   :  { %12454 = vmatprep.subr.bf16.mxu1 %v14324_v29  ;;  %v922_v3 = vmul.f32 %v20191_v60, %v15397_v30  ;;  %v14334_v30 = vld [vmem:[%s20109_s5 + $0xf0] sm:$0xff]  }
 0x138   :  { %12455 = vmatpush3.bf16.msra.mxu1 %v14324_v29  ;;  %v728_v29 = vmul.f32 %v20188_v21, %v15445_v14  ;;  %v14331_v14 = vld [vmem:[%s20109_s5 + $0xd8] sm:$0xff]  }
 0x139   :  { %12456 = vmatprep.subr.bf16.mxu1 %v14325_v55 }
 0x13c   :  { %12457 = vmatpush3.bf16.msra.mxu1 %v14325_v55  ;;  %v729_v55 = vmul.f32 %v20189_v8, %v15441_v44  ;;  %v14332_v44 = vld [vmem:[%s20109_s5 + $0xe0] sm:$0xff]  }
 0x13d   :  { %12458 = vmatprep.subr.bf16.mxu1 %v14326_v46 }
 0x13e   :  { %v733_v61 = vpack.c.bf16 %v729_v55, %v728_v29  ;;  %v14336_v55 = vld [vmem:[%s20109_s5 + $0x100] sm:$0xff]  }
 0x140   :  { %12459 = vmatpush3.bf16.msra.mxu1 %v14326_v46  ;;  %v20190_v46 = vld [vmem:[#allocation28_spill] sm:$0xff] }
 0x141   :  { %12460 = vmatprep.subr.bf16.mxu1 %v14327_v47 }
 0x144   :  { %12461 = vmatpush3.bf16.msra.mxu1 %v14327_v47  ;;  %v921_v47 = vmul.f32 %v20190_v46, %v15349_v23  ;;  %v14333_v23 = vld [vmem:[%s20109_s5 + $0xe8] sm:$0xff]  }
 0x145   :  { %12470 = vmatprep.subr.bf16.mxu1 %v14328_v17 }
 0x147   :  { %12463 = vmatmul.mubr.bf16.vlgmr.msra.gmra.mrb[0].mxu1 %v731_v1  ;;  %v20192_v1 = vld [vmem:[#allocation29_spill] sm:$0xff] }
 0x148   :  { %12466 = vmatprep.mubr.bf16.mxu1 %v732_v20  ;;  %12471 = vmatpush3.bf16.msra.mxu1 %v14328_v17  ;;  %v929_v17 = vpack.c.bf16 %v922_v3, %v921_v47  ;;  %v20193_v20 = vld [vmem:[#allocation30_spill] sm:$0xff]  ;;  %v20195_v3 = vld [vmem:[#allocation32_spill] sm:$0xff] }
 0x149   :  { %12472 = vmatprep.subr.bf16.mxu1 %v14329_v43  ;;  %v923_v29 = vmul.f32 %v20193_v20, %v15385_v13  ;;  %v14338_v13 = vld [vmem:[%s20109_s5 + $0x110] sm:$0xff]  }
 0x14c   :  { %12473 = vmatpush3.bf16.msra.mxu1 %v14329_v43  ;;  %v924_v43 = vmul.f32 %v20192_v1, %v15364_v16  ;;  %v14337_v16 = vld [vmem:[%s20109_s5 + $0x108] sm:$0xff]  }
 0x14d   :  { %12474 = vmatprep.subr.bf16.mxu1 %v14330_v25 }
 0x14f   :  { %12467 = vmatmul.mubr.bf16.gmra.mrb[4].mxu1 %v733_v61  ;;  %v925_v61 = vmul.f32 %v20195_v3, %v15374_v15  ;;  %v14339_v15 = vld [vmem:[%s20109_s5 + $0x118] sm:$0xff]  }
 0x150   :  { %12475 = vmatpush3.bf16.msra.mxu1 %v14330_v25  ;;  %12486 = vmatprep.mubr.bf16.mxu1 %v929_v17  ;;  %v20194_v25 = vld [vmem:[#allocation31_spill] sm:$0xff] }
 0x151   :  { %12476 = vmatprep.subr.bf16.mxu1 %v14331_v14  ;;  %v926_v47 = vmul.f32 %v20194_v25, %v15453_v49  ;;  %v20196_v49 = vld [vmem:[#allocation61_spill] sm:$0xff] }
 0x153   :  { %v931_v17 = vpack.c.bf16 %v926_v47, %v925_v61  ;;  %v20200_v47 = vld [vmem:[#allocation66_spill] sm:$0xff] }
 0x154   :  { %12477 = vmatpush3.bf16.msra.mxu1 %v14331_v14  ;;  %v930_v14 = vpack.c.bf16 %v924_v43, %v923_v29  ;;  %v14341_v43 = vld [vmem:[%s20109_s5 + $0x128] sm:$0xff]   ;;  %v14344_v29 = vld [vmem:[%s20109_s5 + $0x140] sm:$0xff]  }
 0x155   :  { %12478 = vmatprep.subr.bf16.mxu1 %v14332_v44 }
 0x158   :  { %12479 = vmatpush3.bf16.msra.mxu1 %v14332_v44  ;;  %v20197_v44 = vld [vmem:[#allocation60_spill] sm:$0xff] }
 0x159   :  { %12480 = vmatprep.subr.bf16.mxu1 %v14333_v23 }
 0x15c   :  { %12481 = vmatpush3.bf16.msra.mxu1 %v14333_v23  ;;  %v1071_v23 = vpack.c.bf16 %v20197_v44, %v20196_v49 }
 0x15d   :  { %12482 = vmatprep.subr.bf16.mxu1 %v14334_v30 }
 0x160   :  { %12483 = vmatpush3.bf16.msra.mxu1 %v14334_v30  ;;  %v20198_v30 = vpack.c.bf16 %v15449_v19, %v15433_v48  ;;  %v14342_v48 = vld [vmem:[%s20109_s5 + $0x130] sm:$0xff]   ;;  %v14343_v19 = vld [vmem:[%s20109_s5 + $0x138] sm:$0xff]  }
 0x161   :  { %12484 = vmatprep.subr.bf16.mxu1 %v14335_v45 }
 0x164   :  { %12485 = vmatpush3.bf16.msra.mxu1 %v14335_v45  ;;  %v14340_v45 = vld [vmem:[%s20109_s5 + $0x120] sm:$0xff]  }
 0x165   :  { %12494 = vmatprep.subr.bf16.mxu1 %v14336_v55 }
 0x167   :  { %12487 = vmatmul.mubr.bf16.vlgmr.msra.gmra.mrb[0].mxu1 %v930_v14  ;;  %v14345_v14 = vld [vmem:[%s20109_s5 + $0x148] sm:$0xff]  }
 0x168   :  { %12490 = vmatprep.mubr.bf16.mxu1 %v931_v17  ;;  %12495 = vmatpush3.bf16.msra.mxu1 %v14336_v55  ;;  %v20199_v55 = vld [vmem:[#allocation63_spill] sm:$0xff]  ;;  %v20202_v17 = vld [vmem:[#allocation69_spill] sm:$0xff] }
 0x169   :  { %12496 = vmatprep.subr.bf16.mxu1 %v14337_v16  ;;  %v1072_v61 = vpack.c.bf16 %v20200_v47, %v20199_v55 }
 0x16c   :  { %12497 = vmatpush3.bf16.msra.mxu1 %v14337_v16  ;;  %v20201_v16 = vld [vmem:[#allocation62_spill] sm:$0xff] }
 0x16d   :  { %12498 = vmatprep.subr.bf16.mxu1 %v14338_v13 }
 0x16f   :  { %12491 = vmatmul.mubr.bf16.gmra.mrb[4].mxu1 %v20198_v30 }
 0x170   :  { %12499 = vmatpush3.bf16.msra.mxu1 %v14338_v13  ;;  %12510 = vmatprep.mubr.bf16.mxu1 %v1071_v23  ;;  %v1073_v13 = vpack.c.bf16 %v20202_v17, %v20201_v16  ;;  %v20203_v23 = vld [vmem:[#allocation67_spill] sm:$0xff] }
 0x171   :  { %12500 = vmatprep.subr.bf16.mxu1 %v14339_v15  ;;  %v1074_v30 = vpack.c.bf16 %v20203_v23, %v15311_v10 }
 0x174   :  { %12501 = vmatpush3.bf16.msra.mxu1 %v14339_v15  ;;  %v14346_v15 = vld [vmem:[%s20109_s5 + $0x150] sm:$0xff]  }
 0x175   :  { %12502 = vmatprep.subr.bf16.mxu1 %v14340_v45 }
 0x178   :  { %12503 = vmatpush3.bf16.msra.mxu1 %v14340_v45  ;;  %v14347_v45 = vld [vmem:[%s20109_s5 + $0x158] sm:$0xff]  }
 0x179   :  { %12504 = vmatprep.subr.bf16.mxu1 %v14341_v43 }
 0x17c   :  { %12505 = vmatpush3.bf16.msra.mxu1 %v14341_v43  ;;  %v14348_v43 = vld [vmem:[%s20109_s5 + $0x160] sm:$0xff]  }
 0x17d   :  { %12506 = vmatprep.subr.bf16.mxu1 %v14342_v48 }
 0x180   :  { %12507 = vmatpush3.bf16.msra.mxu1 %v14342_v48  ;;  %v20204_v48 = vpack.c.bf16 %v15474_v18, %v15461_v28  ;;  %v14350_v28 = vld [vmem:[%s20109_s5 + $0x170] sm:$0xff]   ;;  %v14351_v18 = vld [vmem:[%s20109_s5 + $0x178] sm:$0xff]  }
 0x181   :  { %12508 = vmatprep.subr.bf16.mxu1 %v14343_v19 }
 0x184   :  { %12509 = vmatpush3.bf16.msra.mxu1 %v14343_v19  ;;  %v14376_v19 = vld [vmem:[%s20205_s4 + $0x40] sm:$0xff]  }
 0x185   :  { %12518 = vmatprep.subr.bf16.mxu1 %v14344_v29  ;;  %12614 = vmatprep.subr.bf16.mxu0 %v14376_v19 }
 0x186   :  { %12615 = vmatpush3.bf16.msra.mxu0 %v14376_v19  ;;  %v20210_v19 = vpack.c.bf16 %v15416_v11, %v15401_v27  ;;  %v14363_v27 = vld [vmem:[%s20109_s5 + $0x1d8] sm:$0xff]   ;;  %v14364_v11 = vld [vmem:[%s20109_s5 + $0x1e0] sm:$0xff]  }
 0x187   :  { %12511 = vmatmul.mubr.bf16.vlgmr.msra.gmra.mrb[0].mxu1 %v1072_v61  ;;  %v14378_v61 = vld [vmem:[%s20205_s4 + $0x50] sm:$0xff]  }
 0x188   :  { %12514 = vmatprep.mubr.bf16.mxu1 %v1073_v13  ;;  %12519 = vmatpush3.bf16.msra.mxu1 %v14344_v29  ;;  %v14377_v29 = vld [vmem:[%s20205_s4 + $0x48] sm:$0xff]   ;;  %v14352_v13 = vld [vmem:[%s20109_s5 + $0x180] sm:$0xff]  }
 0x189   :  { %12520 = vmatprep.subr.bf16.mxu1 %v14345_v14  ;;  %12616 = vmatprep.subr.bf16.mxu0 %v14377_v29 }
 0x18a   :  { %12617 = vmatpush3.bf16.msra.mxu0 %v14377_v29  ;;  %v20211_v29 = vpack.c.bf16 %v15520_v53, %v15516_v58  ;;  %v20214_v58 = vpack.c.bf16 %v15533_v62, %v15529_v59  ;;  %v14366_v59 = vld [vmem:[%s20109_s5 + $0x1f0] sm:$0xff]   ;;  %v14367_v62 = vld [vmem:[%s20109_s5 + $0x1f8] sm:$0xff]  }
 0x18b   :  { %12618 = vmatprep.subr.bf16.mxu0 %v14378_v61 }
 0x18c   :  { %12521 = vmatpush3.bf16.msra.mxu1 %v14345_v14  ;;  %v14349_v14 = vld [vmem:[%s20109_s5 + $0x168] sm:$0xff]  }
 0x18d   :  { %12522 = vmatprep.subr.bf16.mxu1 %v14346_v15 }
 0x18e   :  { %12619 = vmatpush3.bf16.msra.mxu0 %v14378_v61  ;;  %v14362_v61 = vld [vmem:[%s20109_s5 + $0x1d0] sm:$0xff]  }
 0x18f   :  { %12515 = vmatmul.mubr.bf16.gmra.mrb[4].mxu1 %v1074_v30  ;;  %v20206_v30 = vpack.c.bf16 %v15437_v22, %v15478_v12  ;;  %v20208_v22 = vpack.c.bf16 %v15494_v24, %v15490_v51  ;;  %v14356_v12 = vld [vmem:[%s20109_s5 + $0x1a0] sm:$0xff]   ;;  %v14358_v51 = vld [vmem:[%s20109_s5 + $0x1b0] sm:$0xff]   ;;  %v14359_v24 = vld [vmem:[%s20109_s5 + $0x1b8] sm:$0xff]  }
 0x190   :  { %12523 = vmatpush3.bf16.msra.mxu1 %v14346_v15  ;;  %12534 = vmatprep.mubr.bf16.mxu1 %v20204_v48  ;;  %v14353_v15 = vld [vmem:[%s20109_s5 + $0x188] sm:$0xff]   ;;  %v14355_v48 = vld [vmem:[%s20109_s5 + $0x198] sm:$0xff]  }
 0x191   :  { %12524 = vmatprep.subr.bf16.mxu1 %v14347_v45 }
 0x194   :  { %12525 = vmatpush3.bf16.msra.mxu1 %v14347_v45  ;;  %v14354_v45 = vld [vmem:[%s20109_s5 + $0x190] sm:$0xff]  }
 0x195   :  { %12526 = vmatprep.subr.bf16.mxu1 %v14348_v43 }
 0x198   :  { %12527 = vmatpush3.bf16.msra.mxu1 %v14348_v43  ;;  %v20207_v43 = vpack.c.bf16 %v15486_v54, %v15482_v26  ;;  %v20209_v54 = vpack.c.bf16 %v15506_v57, %v15498_v56  ;;  %v14357_v26 = vld [vmem:[%s20109_s5 + $0x1a8] sm:$0xff]   ;;  %v14360_v56 = vld [vmem:[%s20109_s5 + $0x1c0] sm:$0xff]  }
 0x199   :  { %12528 = vmatprep.subr.bf16.mxu1 %v14349_v14  ;;  %v14361_v57 = vld [vmem:[%s20109_s5 + $0x1c8] sm:$0xff]  }
 0x19c   :  { %12529 = vmatpush3.bf16.msra.mxu1 %v14349_v14  ;;  %v20212_v14 = vld [vmem:[#allocation52_spill] sm:$0xff] }
 0x19d   :  { %12530 = vmatprep.subr.bf16.mxu1 %v14350_v28 }
 0x1a0   :  { %12531 = vmatpush3.bf16.msra.mxu1 %v14350_v28  ;;  %v1660_v28 = vmul.f32 %v20212_v14, %v20197_v44 }
 0x1a1   :  { %12532 = vmatprep.subr.bf16.mxu1 %v14351_v18 }
 0x1a4   :  { %12533 = vmatpush3.bf16.msra.mxu1 %v14351_v18  ;;  %v20213_v18 = vld [vmem:[#allocation51_spill] sm:$0xff] }
 0x1a5   :  { %12542 = vmatprep.subr.bf16.mxu1 %v14352_v13 }
 0x1a7   :  { %12535 = vmatmul.mubr.bf16.vlgmr.msra.gmra.mrb[0].mxu1 %v20206_v30  ;;  %v20215_v30 = vld [vmem:[#allocation54_spill] sm:$0xff] }
 0x1a8   :  { %12538 = vmatprep.mubr.bf16.mxu1 %v20207_v43  ;;  %12543 = vmatpush3.bf16.msra.mxu1 %v14352_v13  ;;  %v1661_v13 = vmul.f32 %v20213_v18, %v20199_v55  ;;  %v14368_v43 = vld [vmem:[%s20109_s5 + $0x200] sm:$0xff]  }
 0x1a9   :  { %12544 = vmatprep.subr.bf16.mxu1 %v14353_v15 }
 0x1aa   :  { %v1668_v53 = vpack.c.bf16 %v1661_v13, %v1660_v28  ;;  %v20220_v28 = vld [vmem:[#allocation64_spill] sm:$0xff] }
 0x1ab   :  { %v1667_v13 = vmul.f32 %v20220_v28, %v20196_v49 }
 0x1ac   :  { %12545 = vmatpush3.bf16.msra.mxu1 %v14353_v15  ;;  %v14365_v15 = vld [vmem:[%s20109_s5 + $0x1e8] sm:$0xff]  }
 0x1ad   :  { %12546 = vmatprep.subr.bf16.mxu1 %v14354_v45 }
 0x1af   :  { %12539 = vmatmul.mubr.bf16.gmra.mrb[4].mxu1 %v20208_v22 }
 0x1b0   :  { %12547 = vmatpush3.bf16.msra.mxu1 %v14354_v45  ;;  %12558 = vmatprep.mubr.bf16.mxu1 %v20209_v54  ;;  %v1663_v45 = vmul.f32 %v20215_v30, %v20201_v16 }
 0x1b1   :  { %12548 = vmatprep.subr.bf16.mxu1 %v14355_v48 }
 0x1b4   :  { %12549 = vmatpush3.bf16.msra.mxu1 %v14355_v48  ;;  %v20216_v48 = vld [vmem:[#allocation59_spill] sm:$0xff] }
 0x1b5   :  { %12550 = vmatprep.subr.bf16.mxu1 %v14356_v12  ;;  %v1664_v22 = vmul.f32 %v20216_v48, %v20202_v17 }
 0x1b8   :  { %12551 = vmatpush3.bf16.msra.mxu1 %v14356_v12  ;;  %v20217_v12 = vld [vmem:[#allocation56_spill] sm:$0xff] }
 0x1b9   :  { %12552 = vmatprep.subr.bf16.mxu1 %v14357_v26  ;;  %v1662_v54 = vmul.f32 %v20217_v12, %v20200_v47 }
 0x1bc   :  { %12553 = vmatpush3.bf16.msra.mxu1 %v14357_v26  ;;  %v20218_v26 = vld [vmem:[#allocation58_spill] sm:$0xff] }
 0x1bd   :  { %12554 = vmatprep.subr.bf16.mxu1 %v14358_v51 }
 0x1c0   :  { %12555 = vmatpush3.bf16.msra.mxu1 %v14358_v51  ;;  %v1665_v51 = vmul.f32 %v20218_v26, %v15311_v10 }
 0x1c1   :  { %12556 = vmatprep.subr.bf16.mxu1 %v14359_v24 }
 0x1c4   :  { %12557 = vmatpush3.bf16.msra.mxu1 %v14359_v24  ;;  %v1669_v24 = vpack.c.bf16 %v1663_v45, %v1662_v54  ;;  %v20224_v45 = vpack.c.bf16 %v15576_v5, %v15572_v6  ;;  %v14382_v5 = vld [vmem:[%s20205_s4 + $0x70] sm:$0xff]   ;;  %v14383_v6 = vld [vmem:[%s20205_s4 + $0x78] sm:$0xff]  }
 0x1c5   :  { %12566 = vmatprep.subr.bf16.mxu1 %v14360_v56 }
 0x1c7   :  { %12559 = vmatmul.mubr.bf16.vlgmr.msra.gmra.mrb[0].mxu1 %v20210_v19  ;;  %v20219_v19 = vld [vmem:[#allocation65_spill] sm:$0xff] }
 0x1c8   :  { %12562 = vmatprep.mubr.bf16.mxu1 %v20211_v29  ;;  %12567 = vmatpush3.bf16.msra.mxu1 %v14360_v56  ;;  %v14369_v56 = vld [vmem:[%s20109_s5 + $0x208] sm:$0xff]   ;;  %v1666_v29 = vmul.f32 %v20219_v19, %v20203_v23 }
 0x1c9   :  { %12568 = vmatprep.subr.bf16.mxu1 %v14361_v57 }
 0x1cc   :  { %12569 = vmatpush3.bf16.msra.mxu1 %v14361_v57  ;;  %v1670_v57 = vpack.c.bf16 %v1665_v51, %v1664_v22  ;;  %v14380_v22 = vld [vmem:[%s20205_s4 + $0x60] sm:$0xff]   ;;  %v20227_v51 = vld [vmem:[#allocation57_spill] sm:$0xff] }
 0x1cd   :  { %12570 = vmatprep.subr.bf16.mxu1 %v14362_v61 }
 0x1cf   :  { %12563 = vmatmul.mubr.bf16.gmra.mrb[4].mxu1 %v20214_v58  ;;  %v20221_v58 = vpack.c.bf16 %v15553_v4, %v15549_v42  ;;  %v14375_v4 = vld [vmem:[%s20109_s5 + $0x238] sm:$0xff]   ;;  %v20222_v42 = vpack.c.bf16 %v15457_v50, %v15537_v2  ;;  %v14381_v2 = vld [vmem:[%s20205_s4 + $0x68] sm:$0xff]   ;;  %v15883_v50 = vld [vmem:[%s20205_s4] sm:$0xff]  }
 0x1d0   :  { %12571 = vmatpush3.bf16.msra.mxu1 %v14362_v61  ;;  %12582 = vmatprep.mubr.bf16.mxu1 %v1668_v53  ;;  %v14370_v61 = vld [vmem:[%s20109_s5 + $0x210] sm:$0xff]   ;;  %v14371_v53 = vld [vmem:[%s20109_s5 + $0x218] sm:$0xff]  }
 0x1d1   :  { %12572 = vmatprep.subr.bf16.mxu1 %v14363_v27 }
 0x1d4   :  { %12573 = vmatpush3.bf16.msra.mxu1 %v14363_v27  ;;  %v1671_v27 = vpack.c.bf16 %v1667_v13, %v1666_v29 }
 0x1d5   :  { %12574 = vmatprep.subr.bf16.mxu1 %v14364_v11 }
 0x1d8   :  { %12575 = vmatpush3.bf16.msra.mxu1 %v14364_v11  ;;  %v14372_v11 = vld [vmem:[%s20109_s5 + $0x220] sm:$0xff]  }
 0x1d9   :  { %12576 = vmatprep.subr.bf16.mxu1 %v14365_v15 }
 0x1dc   :  { %12577 = vmatpush3.bf16.msra.mxu1 %v14365_v15  ;;  %v14373_v15 = vld [vmem:[%s20109_s5 + $0x228] sm:$0xff]  }
 0x1dd   :  { %12578 = vmatprep.subr.bf16.mxu1 %v14366_v59 }
 0x1e0   :  { %12579 = vmatpush3.bf16.msra.mxu1 %v14366_v59  ;;  %v14374_v59 = vld [vmem:[%s20109_s5 + $0x230] sm:$0xff]   ;;  %s20395_s5 = sld [smem:[#allocation97_spill]] }
 0x1e1   :  { %12580 = vmatprep.subr.bf16.mxu1 %v14367_v62 }
 0x1e4   :  { %12581 = vmatpush3.bf16.msra.mxu1 %v14367_v62  ;;  %v20223_v62 = vpack.c.bf16 %v15566_v41, %v15562_v7  ;;  %v2009_v7 = vld [vmem:[%s20225_s7] sm:$0x3] }
 0x1e5   :  { %12590 = vmatprep.subr.bf16.mxu1 %v14368_v43  ;;  %v20226_v41 = vld [vmem:[#allocation55_spill] sm:$0xff] }
 0x1e6   :  { %v2013_v54 = vrot.slane %v2009_v7, %v20226_v41 }
 0x1e7   :  { %12583 = vmatmul.mubr.bf16.vlgmr.msra.gmra.mrb[0].mxu1 %v1669_v24  ;;  %v2025_v24 = vrot.slane %v2009_v7, %v20227_v51  ;;  %v20240_v51 = vld [vmem:[#allocation10_spill] sm:$0xff] }
 0x1e8   :  { %12586 = vmatprep.mubr.bf16.mxu1 %v1670_v57  ;;  %12591 = vmatpush3.bf16.msra.mxu1 %v14368_v43  ;;  %v14379_v43 = vld [vmem:[%s20205_s4 + $0x58] sm:$0xff]  }
 0x1e9   :  { %12592 = vmatprep.subr.bf16.mxu1 %v14369_v56  ;;  %12620 = vmatprep.subr.bf16.mxu0 %v14379_v43 }
 0x1ea   :  { %12621 = vmatpush3.bf16.msra.mxu0 %v14379_v43 }
 0x1eb   :  { %12622 = vmatprep.subr.bf16.mxu0 %v14380_v22 }
 0x1ec   :  { %12593 = vmatpush3.bf16.msra.mxu1 %v14369_v56 }
 0x1ed   :  { %12594 = vmatprep.subr.bf16.mxu1 %v14370_v61 }
 0x1ee   :  { %12623 = vmatpush3.bf16.msra.mxu0 %v14380_v22 }
 0x1ef   :  { %12587 = vmatmul.mubr.bf16.gmra.mrb[4].mxu1 %v1671_v27  ;;  %12624 = vmatprep.subr.bf16.mxu0 %v14381_v2 }
 0x1f0   :  { %12595 = vmatpush3.bf16.msra.mxu1 %v14370_v61  ;;  %12606 = vmatprep.mubr.bf16.mxu1 %v20221_v58 }
 0x1f1   :  { %12596 = vmatprep.subr.bf16.mxu1 %v14371_v53 }
 0x1f2   :  { %12625 = vmatpush3.bf16.msra.mxu0 %v14381_v2  ;;  %v20228_v2 = vld [vmem:[#allocation5_spill] sm:$0xff] }
 0x1f3   :  { %12626 = vmatprep.subr.bf16.mxu0 %v14382_v5 }
 0x1f4   :  { %12597 = vmatpush3.bf16.msra.mxu1 %v14371_v53 }
 0x1f5   :  { %12598 = vmatprep.subr.bf16.mxu1 %v14372_v11 }
 0x1f6   :  { %12627 = vmatpush3.bf16.msra.mxu0 %v14382_v5 }
 0x1f7   :  { %12628 = vmatprep.subr.bf16.mxu0 %v14383_v6 }
 0x1f8   :  { %12599 = vmatpush3.bf16.msra.mxu1 %v14372_v11 }
 0x1f9   :  { %12600 = vmatprep.subr.bf16.mxu1 %v14373_v15 }
 0x1fa   :  { %12629 = vmatpush3.bf16.msra.mxu0 %v14383_v6 }
 0x1fb   :  { %12638 = vmatprep.subr.bf16.mxu0 %v15883_v50 }
 0x1fc   :  { %12601 = vmatpush3.bf16.msra.mxu1 %v14373_v15 }
 0x1fd   :  { %12602 = vmatprep.subr.bf16.mxu1 %v14374_v59 }
 0x200   :  { %12603 = vmatpush3.bf16.msra.mxu1 %v14374_v59 }
 0x201   :  { %12604 = vmatprep.subr.bf16.mxu1 %v14375_v4 }
 0x204   :  { %12605 = vmatpush3.bf16.msra.mxu1 %v14375_v4 }
 0x207   :  { %12607 = vmatmul.mubr.bf16.vlgmr.msra.gmra.mrb[0].mxu1 %v20222_v42 }
 0x208   :  { %12610 = vmatprep.mubr.bf16.mxu1 %v20223_v62 }
 0x20f   :  { %12611 = vmatmul.mubr.bf16.gmra.mrb[4].mxu1 %v20224_v45 }
 0x2da   :  { %v12608_v56 = vpop.f32.mrb[0].mxu1 }
 0x2db   :  { %v2016_v57 = vmul.f32 %v12608_v56, %v2013_v54  ;;  %v1970_v29 = vpop.f32.mrb[1].mxu1  ;;  %v20229_v56 = vld [vmem:[#allocation6_spill] sm:$0xff] }
 0x2dc   :  { %v2014_v61 = vmul.f32 %v2013_v54, %v1970_v29  ;;  %v12609_v13 = vpop.f32.mrb[2].mxu1 }
 0x2dd   :  { %v2028_v27 = vadd.f32 %v2025_v24, %v2016_v57  ;;  %v2017_v53 = vmul.f32 %v12609_v13, %v2013_v54  ;;  %v1973_v58 = vpop.f32.mrb[3].mxu1 }
 0x2de   :  { %v2026_v11 = vadd.f32 %v2025_v24, %v2014_v61  ;;  %v2015_v15 = vmul.f32 %v2013_v54, %v1973_v58  ;;  %v20230_v58 = vld [vmem:[#allocation8_spill] sm:$0xff] }
 0x2df   :  { %v15891_v59 = vmax.f32 %v2028_v27, 0.0  ;;  %v2029_v4 = vadd.f32 %v2025_v24, %v2017_v53 }
 0x2e0   :  { %v15893_v42 = vmax.f32 %v2026_v11, 0.0  ;;  %v2027_v62 = vadd.f32 %v2025_v24, %v2015_v15 }
 0x2e1   :  { %v2044_v45 = vrot.slane %v15891_v59, 7  ;;  %v15897_v22 = vmax.f32 %v2029_v4, 0.0  ;;  %v15901_v5 = vmul.f32 %v15891_v59, %v20228_v2  ;;  %v20231_v2 = vld [vmem:[#allocation3_spill] sm:$0xff] }
 0x2e2   :  { %v15903_v6 = vmax.f32 %v2027_v62, 0.0  ;;  %v12612_v7 = vpop.f32.mrb[4].mxu1  ;;  %v2087_v57 = vmul.f32 %v15893_v42, %v20229_v56  ;;  %v2042_v29 = vrot.slane %v15893_v42, 7 }
 0x2e3   :  { %v19966_v13 = vrot.slane %v15897_v22, 1  ;;  %v2020_v27 = vmul.f32 %v12612_v7, %v2013_v54  ;;  %v1986_v53 = vpop.f32.mrb[5].mxu1  ;;  %v2090_v11 = vmul.f32 %v15897_v22, %v20230_v58  ;;  %v2045_v15 = vrot.slane %v15897_v22, 7 }
 0x2e4   :  { %v2043_v4 = vrot.slane %v15903_v6, 7  ;;  %v2018_v62 = vmul.f32 %v2013_v54, %v1986_v53  ;;  %v12613_v43 = vpop.f32.mrb[6].mxu1  ;;  %v2088_v56 = vmul.f32 %v15903_v6, %v20231_v2  ;;  %v2342_v17 = vrot.slane %v15903_v6, 1 }
 0x2e5   :  { %v2032_v23 = vadd.f32 %v2025_v24, %v2020_v27  ;;  %v2021_v61 = vmul.f32 %v12613_v43, %v2013_v54  ;;  %v1989_v16 = vpop.f32.mrb[7].mxu1  ;;  %v2054_v7 = vsel %vm267_vm2, %v2044_v45, %v2045_v15  ;;  %v20232_v58 = vrot.slane %v15891_v59, 1 }
 0x2e6   :  { %v2030_v53 = vadd.f32 %v2025_v24, %v2018_v62  ;;  %v2019_v47 = vmul.f32 %v2013_v54, %v1989_v16  ;;  %v2095_v2 = vpack.c.bf16 %v15901_v5, %v2088_v56  ;;  %v15930_v27 = vsel %vm267_vm2, %v2043_v4, %v2044_v45  ;;  %v20235_v5 = vld [vmem:[#allocation9_spill] sm:$0xff] }
 0x2e7   :  { %v15925_v10 = vsel %vm664_vm3, %v20232_v58, %v19966_v13  ;;  %v15932_v43 = vmax.f32 %v2032_v23, 0.0  ;;  %v2033_v55 = vadd.f32 %v2025_v24, %v2021_v61  ;;  %v15936_v49 = vsel %vm267_vm2, %v2042_v29, %v2043_v4  ;;  %v20237_v13 = vld [vmem:[#allocation4_spill] sm:$0xff] }
 0x2e8   :  { %v15940_v44 = vmul.f32 %v15930_v27, %v15194_v31  ;;  %v15942_v58 = vmax.f32 %v2030_v53, 0.0  ;;  %v2031_v16 = vadd.f32 %v2025_v24, %v2019_v47  ;;  %v15946_v54 = vmul.f32 %v15936_v49, %v15196_v32  ;;  %v20236_v47 = vld [vmem:[#allocation7_spill] sm:$0xff]  ;;  %v20238_v32 = vld [vmem:[#allocation46_spill] sm:$0xff] }
 0x2e9   :  { %v15949_v45 = vmul.f32 %v2054_v7, %v15200_v34  ;;  %v15951_v23 = vmax.f32 %v2033_v55, 0.0  ;;  %v15955_v56 = vmul.f32 %v15932_v43, %v20235_v5  ;;  %v2048_v61 = vrot.slane %v15932_v43, 7 }
 0x2ea   :  { %20233 = vst [vmem:[#allocation78_spill] sm:$0xff] %v15940_v44  ;;  %20234 = vst [vmem:[#allocation79_spill] sm:$0xff] %v15946_v54  ;;  %v15959_v4 = vmul.f32 %v2054_v7, %v20192_v1  ;;  %v15961_v62 = vmax.f32 %v2031_v16, 0.0  ;;  %v2091_v24 = vmul.f32 %v15942_v58, %v20236_v47  ;;  %v2046_v55 = vrot.slane %v15942_v58, 7 }
 0x2eb   :  { %v2086_v34 = vmul.f32 %v15951_v23, %v20237_v13  ;;  %v2049_v31 = vrot.slane %v15951_v23, 7  ;;  %v15972_v5 = vmul.f32 %v2054_v7, %v20238_v32  ;;  %v2348_v1 = vrot.slane %v15951_v23, 1 }
 0x2ec   :  { %v2096_v16 = vpack.c.bf16 %v2091_v24, %v2090_v11  ;;  %v2092_v41 = vmul.f32 %v15961_v62, %v20240_v51  ;;  %v2053_v47 = vsel %vm267_vm2, %v2045_v15, %v2046_v55  ;;  %v2047_v53 = vrot.slane %v15961_v62, 7  ;;  %v14385_v11 = vld [vmem:[%s20205_s4 + $0x8] sm:$0xff]  }
 0x2ed   :  { %20239 = vst [vmem:[#allocation80_spill] sm:$0xff] %v15972_v5  ;;  %v2094_v54 = vpack.c.bf16 %v2087_v57, %v2086_v34  ;;  %v15982_v13 = vsel %vm267_vm2, %v2048_v61, %v2049_v31  ;;  %v15986_v7 = vsel %vm267_vm2, %v2049_v31, %v2042_v29  ;;  %v15989_v32 = vmul.f32 %v2053_v47, %v15198_v33  ;;  %v20241_v24 = vld [vmem:[#allocation12_spill] sm:$0xff]  ;;  %v20242_v57 = vld [vmem:[#allocation11_spill] sm:$0xff] }
 0x2ee   :  { %v2097_v15 = vpack.c.bf16 %v15955_v56, %v2092_v41  ;;  %v2058_v34 = vmul.f32 %v15982_v13, %v20241_v24  ;;  %v2059_v51 = vmul.f32 %v15986_v7, %v20242_v57  ;;  %v16000_v44 = vmul.f32 %v2053_v47, %v15258_v63 }
 0x2ef   :  { %12630 = vmatprep.mubr.bf16.mxu0 %v2094_v54  ;;  %v16006_v29 = vsel %vm267_vm2, %v2047_v53, %v2048_v61  ;;  %v16010_v41 = vsel %vm267_vm2, %v2046_v55, %v2047_v53  ;;  %v20244_v56 = vrot.slane %v15893_v42, 1  ;;  %v20249_v55 = vrot.slane %v15891_v59, 1 }
 0x2f0   :  { %20243 = vst [vmem:[#allocation81_spill] sm:$0xff] %v16000_v44  ;;  %12631 = vmatmul.mubr.bf16.vlgmr.msra.gmra.mrb[8].mxu0 %v2095_v2  ;;  %v2066_v63 = vpack.c.bf16 %v2059_v51, %v2058_v34  ;;  %v16020_v54 = vmul.f32 %v16010_v41, %v15204_v36  ;;  %v16024_v61 = vmul.f32 %v16006_v29, %v15202_v35  ;;  %v20271_v44 = vld [vmem:[#allocation49_spill] sm:$0xff] }
 0x2f1   :  { %v16016_v33 = vsel %vm664_vm3, %v20244_v56, %v2342_v17  ;;  %v20246_v31 = vmov %v20244_v56  ;;  %12639 = vmatpush3.bf16.msra.mxu0 %v15883_v50  ;;  %12634 = vmatprep.mubr.bf16.mxu0 %v2096_v16  ;;  %v16045_v34 = vsel %vm664_vm3, %v2342_v17, %v20249_v55  ;;  %v14386_v50 = vld [vmem:[%s20205_s4 + $0x10] sm:$0xff]   ;;  %v2346_v17 = vrot.slane %v15961_v62, 1 }
 0x2f2   :  { %20245 = vst [vmem:[#allocation82_spill] sm:$0xff] %v16020_v54  ;;  %v16030_v53 = vsel %vm664_vm3, %v2348_v1, %v20246_v31  ;;  %v16039_v2 = vmul.f32 %v16016_v33, %v15206_v37  ;;  %v2345_v31 = vrot.slane %v15942_v58, 1  ;;  %12640 = vmatprep.subr.bf16.mxu0 %v14385_v11  ;;  %v16055_v56 = vmul.f32 %v16045_v34, %v15212_v40  ;;  %v20251_v55 = vld [vmem:[#allocation37_spill] sm:$0xff] }
 0x2f3   :  { %v16035_v51 = vmul.f32 %v16030_v53, %v15208_v38  ;;  %v16059_v37 = vmul.f32 %v15925_v10, %v15210_v39  ;;  %v20250_v38 = vrot.slane %v15897_v22, 1  ;;  %v2347_v16 = vrot.slane %v15932_v43, 1 }
 0x2f4   :  { %20248 = vst [vmem:[#allocation84_spill] sm:$0xff] %v16039_v2  ;;  %v16071_v40 = vmul.f32 %v15986_v7, %v20190_v46  ;;  %v2351_v36 = vsel %vm664_vm3, %v2345_v31, %v2346_v17  ;;  %v20253_v46 = vld [vmem:[#allocation72_spill] sm:$0xff] }
 0x2f5   :  { %20247 = vst [vmem:[#allocation83_spill] sm:$0xff] %v16035_v51  ;;  %v2352_v35 = vsel %vm664_vm3, %v20250_v38, %v2345_v31  ;;  %12641 = vmatpush3.bf16.msra.mxu0 %v14385_v11  ;;  %v16084_v38 = vmul.f32 %v2351_v36, %v20186_v52  ;;  %v20252_v51 = vld [vmem:[#allocation73_spill] sm:$0xff]  ;;  %v16090_v54 = vmul.f32 %v2351_v36, %v20253_v46 }
 0x2f6   :  { %v16078_v57 = vmul.f32 %v2352_v35, %v20187_v0  ;;  %v16081_v24 = vmul.f32 %v2352_v35, %v20251_v55  ;;  %v16087_v2 = vmul.f32 %v2352_v35, %v20252_v51  ;;  %v16094_v39 = vsel %vm664_vm3, %v2347_v16, %v2348_v1  ;;  %12642 = vmatprep.subr.bf16.mxu0 %v14386_v50  ;;  %v14387_v31 = vld [vmem:[%s20205_s4 + $0x18] sm:$0xff]  }
 0x2f7   :  { %v16101_v11 = vsel %vm664_vm3, %v2346_v17, %v2347_v16  ;;  %v16105_v35 = vmul.f32 %v16094_v39, %v20189_v8  ;;  %v16109_v0 = vmul.f32 %v15936_v49, %v20191_v60  ;;  %v16113_v1 = vmul.f32 %v15930_v27, %v20193_v20  ;;  %v20255_v8 = vld [vmem:[#allocation34_spill] sm:$0xff] }
 0x2f8   :  { %v16119_v51 = vmul.f32 %v16101_v11, %v20188_v21  ;;  %v16122_v16 = vmul.f32 %v2053_v47, %v20195_v3  ;;  %v16126_v17 = vmul.f32 %v16010_v41, %v20194_v25  ;;  %12635 = vmatmul.mubr.bf16.gmra.mrb[12].mxu0 %v2097_v15  ;;  %v16134_v52 = vmul.f32 %v16006_v29, %v20255_v8  ;;  %v20257_v21 = vld [vmem:[#allocation33_spill] sm:$0xff]  ;;  %v14388_v20 = vld [vmem:[%s20205_s4 + $0x20] sm:$0xff]   ;;  %v20259_v47 = vld [vmem:[#allocation36_spill] sm:$0xff] }
 0x2f9   :  { %v16138_v46 = vmul.f32 %v15982_v13, %v20257_v21  ;;  %12643 = vmatpush3.bf16.msra.mxu0 %v14386_v50  ;;  %12654 = vmatprep.mubr.bf16.mxu0 %v2066_v63  ;;  %v16159_v60 = vmul.f32 %v16016_v33, %v20259_v47  ;;  %v20260_v25 = vld [vmem:[#allocation35_spill] sm:$0xff]  ;;  %v20261_v55 = vld [vmem:[#allocation38_spill] sm:$0xff]  ;;  %v20262_v8 = vld [vmem:[#allocation40_spill] sm:$0xff]  ;;  %v16174_v50 = vmul.f32 %v16101_v11, %v20263_v9 }
 0x2fa   :  { %20254 = vst [vmem:[#allocation85_spill] sm:$0xff] %v16122_v16  ;;  %20256 = vst [vmem:[#allocation86_spill] sm:$0xff] %v16134_v52  ;;  %12644 = vmatprep.subr.bf16.mxu0 %v14387_v31  ;;  %v16163_v21 = vmul.f32 %v16045_v34, %v20260_v25  ;;  %v16167_v3 = vmul.f32 %v15925_v10, %v20261_v55  ;;  %v16170_v63 = vmul.f32 %v2351_v36, %v20262_v8  ;;  %v20264_v15 = vld [vmem:[#allocation42_spill] sm:$0xff]  ;;  %v20265_v47 = vld [vmem:[#allocation41_spill] sm:$0xff] }
 0x2fb   :  { %20258 = vst [vmem:[#allocation87_spill] sm:$0xff] %v16138_v46  ;;  %v16178_v52 = vmul.f32 %v16094_v39, %v20264_v15  ;;  %v16182_v46 = vmul.f32 %v16030_v53, %v20265_v47  ;;  %v20266_v25 = vld [vmem:[#allocation44_spill] sm:$0xff]  ;;  %v20267_v8 = vld [vmem:[#allocation43_spill] sm:$0xff]  ;;  %v20270_v47 = vld [vmem:[#allocation50_spill] sm:$0xff]  ;;  %v16225_v36 = vmul.f32 %v15903_v6, %v20212_v14  ;;  %v16235_v15 = vmul.f32 %v15897_v22, %v20217_v12 }
 0x2fc   :  { %v16186_v16 = vmul.f32 %v15936_v49, %v20266_v25  ;;  %v16194_v55 = vmul.f32 %v15930_v27, %v20267_v8  ;;  %v14389_v49 = vld [vmem:[%s20205_s4 + $0x28] sm:$0xff]   ;;  %v16217_v5 = vmul.f32 %v15982_v13, %v20270_v47  ;;  %v16239_v13 = vmul.f32 %v15942_v58, %v20215_v30 }
 0x2fd   :  { %12645 = vmatpush3.bf16.msra.mxu0 %v14387_v31  ;;  %v20268_v25 = vld [vmem:[#allocation48_spill] sm:$0xff]  ;;  %v20269_v27 = vld [vmem:[#allocation47_spill] sm:$0xff]  ;;  %v16221_v31 = vmul.f32 %v15986_v7, %v20271_v44  ;;  %v16245_v14 = vmul.f32 %v15961_v62, %v20216_v48  ;;  %v16253_v12 = vmul.f32 %v15951_v23, %v20219_v19  ;;  %v16264_v30 = vmul.f32 %v15893_v42, %v20220_v28  ;;  %v20273_v44 = vld [vmem:[#allocation70_spill] sm:$0xff] }
 0x2fe   :  { %12646 = vmatprep.subr.bf16.mxu0 %v14388_v20  ;;  %v16207_v9 = vmul.f32 %v16010_v41, %v20268_v25  ;;  %v16211_v8 = vmul.f32 %v16006_v29, %v20269_v27  ;;  %v16231_v29 = vmul.f32 %v15891_v59, %v20213_v18  ;;  %v16249_v41 = vmul.f32 %v15932_v43, %v20218_v26  ;;  %v20272_v26 = vld [vmem:[#allocation71_spill] sm:$0xff]  ;;  %v20275_v25 = vld [vmem:[#allocation74_spill] sm:$0xff] }
 0x2ff   :  { %v16268_v18 = vmul.f32 %v16045_v34, %v20272_v26  ;;  %v16274_v47 = vmul.f32 %v15925_v10, %v20273_v44  ;;  %v20274_v27 = vld [vmem:[#allocation75_spill] sm:$0xff]  ;;  %v16286_v34 = vmul.f32 %v16094_v39, %v20275_v25  ;;  %v20276_v26 = vld [vmem:[#allocation77_spill] sm:$0xff]  ;;  %v20277_v10 = vld [vmem:[#allocation76_spill] sm:$0xff]  ;;  %v20281_v39 = vpack.c.bf16 %v15989_v32, %v15949_v45 }
 0x300   :  { %v16280_v48 = vmul.f32 %v16101_v11, %v20274_v27  ;;  %v16290_v19 = vmul.f32 %v16030_v53, %v20276_v26  ;;  %v16294_v44 = vmul.f32 %v16016_v33, %v20277_v10  ;;  %v14391_v7 = vld [vmem:[%s20205_s4 + $0x38] sm:$0xff]   ;;  %v14392_v33 = vld [vmem:[%s20205_s4 + $0x80] sm:$0xff]  }
 0x301   :  { %12647 = vmatpush3.bf16.msra.mxu0 %v14388_v20  ;;  %v14390_v20 = vld [vmem:[%s20205_s4 + $0x30] sm:$0xff]   ;;  %v20278_v11 = vld [vmem:[#allocation78_spill] sm:$0xff]  ;;  %v20279_v28 = vld [vmem:[#allocation79_spill] sm:$0xff] }
 0x302   :  { %12648 = vmatprep.subr.bf16.mxu0 %v14389_v49  ;;  %v20280_v10 = vpack.c.bf16 %v20278_v11, %v20279_v28  ;;  %v20282_v53 = vld [vmem:[#allocation82_spill] sm:$0xff]  ;;  %v20285_v32 = vld [vmem:[#allocation83_spill] sm:$0xff] }
 0x303   :  { %v20283_v28 = vpack.c.bf16 %v16024_v61, %v20282_v53  ;;  %v14396_v11 = vld [vmem:[%s20205_s4 + $0xa0] sm:$0xff]   ;;  %v14398_v61 = vld [vmem:[%s20205_s4 + $0xb0] sm:$0xff]   ;;  %v14399_v53 = vld [vmem:[%s20205_s4 + $0xb8] sm:$0xff]  }
 0x305   :  { %12649 = vmatpush3.bf16.msra.mxu0 %v14389_v49  ;;  %v14393_v49 = vld [vmem:[%s20205_s4 + $0x88] sm:$0xff]  }
 0x306   :  { %12650 = vmatprep.subr.bf16.mxu0 %v14390_v20 }
 0x309   :  { %12651 = vmatpush3.bf16.msra.mxu0 %v14390_v20  ;;  %v14394_v20 = vld [vmem:[%s20205_s4 + $0x90] sm:$0xff]  }
 0x30a   :  { %12652 = vmatprep.subr.bf16.mxu0 %v14391_v7 }
 0x30d   :  { %12653 = vmatpush3.bf16.msra.mxu0 %v14391_v7  ;;  %v14395_v7 = vld [vmem:[%s20205_s4 + $0x98] sm:$0xff]  }
 0x30e   :  { %12662 = vmatprep.subr.bf16.mxu0 %v14392_v33 }
 0x310   :  { %12655 = vmatmul.mubr.bf16.vlgmr.msra.gmra.mrb[8].mxu0 %v20280_v10  ;;  %v20284_v10 = vld [vmem:[#allocation84_spill] sm:$0xff] }
 0x311   :  { %12658 = vmatprep.mubr.bf16.mxu0 %v20281_v39  ;;  %12663 = vmatpush3.bf16.msra.mxu0 %v14392_v33  ;;  %v20286_v45 = vpack.c.bf16 %v20284_v10, %v20285_v32  ;;  %v14397_v39 = vld [vmem:[%s20205_s4 + $0xa8] sm:$0xff]   ;;  %v14400_v33 = vld [vmem:[%s20205_s4 + $0xc0] sm:$0xff]   ;;  %v14403_v10 = vld [vmem:[%s20205_s4 + $0xd8] sm:$0xff]   ;;  %v20291_v32 = vpack.c.bf16 %v15959_v4, %v16113_v1  ;;  %v20297_v1 = vpack.c.bf16 %v15903_v6, %v15893_v42 }
 0x312   :  { %12664 = vmatprep.subr.bf16.mxu0 %v14393_v49  ;;  %v14415_v42 = vld [vmem:[%s20205_s4 + $0x138] sm:$0xff]   ;;  %v14416_v6 = vld [vmem:[%s20205_s4 + $0x140] sm:$0xff]  }
 0x315   :  { %12665 = vmatpush3.bf16.msra.mxu0 %v14393_v49  ;;  %v14401_v49 = vld [vmem:[%s20205_s4 + $0xc8] sm:$0xff]  }
 0x316   :  { %12666 = vmatprep.subr.bf16.mxu0 %v14394_v20 }
 0x318   :  { %12659 = vmatmul.mubr.bf16.gmra.mrb[12].mxu0 %v20283_v28  ;;  %v14402_v28 = vld [vmem:[%s20205_s4 + $0xd0] sm:$0xff]  }
 0x319   :  { %12667 = vmatpush3.bf16.msra.mxu0 %v14394_v20  ;;  %12678 = vmatprep.mubr.bf16.mxu0 %v20286_v45  ;;  %v20287_v20 = vpack.c.bf16 %v16059_v37, %v16055_v56  ;;  %v20289_v37 = vpack.c.bf16 %v16105_v35, %v16119_v51  ;;  %v14404_v56 = vld [vmem:[%s20205_s4 + $0xe0] sm:$0xff]   ;;  %v14406_v51 = vld [vmem:[%s20205_s4 + $0xf0] sm:$0xff]   ;;  %v14409_v35 = vld [vmem:[%s20205_s4 + $0x108] sm:$0xff]  }
 0x31a   :  { %12668 = vmatprep.subr.bf16.mxu0 %v14395_v7  ;;  %v20292_v45 = vld [vmem:[#allocation85_spill] sm:$0xff] }
 0x31d   :  { %12669 = vmatpush3.bf16.msra.mxu0 %v14395_v7  ;;  %v20288_v7 = vpack.c.bf16 %v16084_v38, %v16078_v57  ;;  %v20290_v57 = vpack.c.bf16 %v16109_v0, %v16071_v40  ;;  %v14405_v38 = vld [vmem:[%s20205_s4 + $0xe8] sm:$0xff]   ;;  %v14407_v40 = vld [vmem:[%s20205_s4 + $0xf8] sm:$0xff]   ;;  %v14408_v0 = vld [vmem:[%s20205_s4 + $0x100] sm:$0xff]  }
 0x31e   :  { %12670 = vmatprep.subr.bf16.mxu0 %v14396_v11 }
 0x321   :  { %12671 = vmatpush3.bf16.msra.mxu0 %v14396_v11  ;;  %v20293_v11 = vpack.c.bf16 %v16126_v17, %v20292_v45  ;;  %v14412_v17 = vld [vmem:[%s20205_s4 + $0x120] sm:$0xff]   ;;  %v20307_v45 = vld [vmem:[#allocation81_spill] sm:$0xff] }
 0x322   :  { %12672 = vmatprep.subr.bf16.mxu0 %v14397_v39 }
 0x325   :  { %12673 = vmatpush3.bf16.msra.mxu0 %v14397_v39  ;;  %v14410_v39 = vld [vmem:[%s20205_s4 + $0x110] sm:$0xff]  }
 0x326   :  { %12674 = vmatprep.subr.bf16.mxu0 %v14398_v61 }
 0x329   :  { %12675 = vmatpush3.bf16.msra.mxu0 %v14398_v61  ;;  %v14411_v61 = vld [vmem:[%s20205_s4 + $0x118] sm:$0xff]  }
 0x32a   :  { %12676 = vmatprep.subr.bf16.mxu0 %v14399_v53 }
 0x32d   :  { %12677 = vmatpush3.bf16.msra.mxu0 %v14399_v53  ;;  %v20294_v53 = vld [vmem:[#allocation87_spill] sm:$0xff] }
 0x32e   :  { %12686 = vmatprep.subr.bf16.mxu0 %v14400_v33 }
 0x330   :  { %12679 = vmatmul.mubr.bf16.vlgmr.msra.gmra.mrb[8].mxu0 %v20287_v20  ;;  %v14414_v20 = vld [vmem:[%s20205_s4 + $0x130] sm:$0xff]  }
 0x331   :  { %12682 = vmatprep.mubr.bf16.mxu0 %v20288_v7  ;;  %12687 = vmatpush3.bf16.msra.mxu0 %v14400_v33  ;;  %v20295_v33 = vld [vmem:[#allocation86_spill] sm:$0xff]  ;;  %v14417_v7 = vld [vmem:[%s20205_s4 + $0x148] sm:$0xff]  }
 0x332   :  { %12688 = vmatprep.subr.bf16.mxu0 %v14401_v49  ;;  %v20296_v4 = vpack.c.bf16 %v20294_v53, %v20295_v33  ;;  %v14434_v53 = vld [vmem:[%s20205_s4 + $0x1d0] sm:$0xff]   ;;  %v14435_v33 = vld [vmem:[%s20205_s4 + $0x1d8] sm:$0xff]  }
 0x335   :  { %12689 = vmatpush3.bf16.msra.mxu0 %v14401_v49  ;;  %v14413_v49 = vld [vmem:[%s20205_s4 + $0x128] sm:$0xff]  }
 0x336   :  { %12690 = vmatprep.subr.bf16.mxu0 %v14402_v28 }
 0x338   :  { %12683 = vmatmul.mubr.bf16.gmra.mrb[12].mxu0 %v20289_v37  ;;  %v14418_v37 = vld [vmem:[%s20205_s4 + $0x150] sm:$0xff]  }
 0x339   :  { %12691 = vmatpush3.bf16.msra.mxu0 %v14402_v28  ;;  %12702 = vmatprep.mubr.bf16.mxu0 %v20290_v57  ;;  %v20298_v28 = vpack.c.bf16 %v15897_v22, %v15891_v59  ;;  %v14419_v57 = vld [vmem:[%s20205_s4 + $0x158] sm:$0xff]   ;;  %v20300_v59 = vpack.c.bf16 %v15951_v23, %v15932_v43  ;;  %v14420_v22 = vld [vmem:[%s20205_s4 + $0x160] sm:$0xff]   ;;  %v14450_v43 = vld [vmem:[%s20302_s30 + $0x50] sm:$0xff]  }
 0x33a   :  { %12692 = vmatprep.subr.bf16.mxu0 %v14403_v10  ;;  %v14421_v23 = vld [vmem:[%s20205_s4 + $0x168] sm:$0xff]  }
 0x33d   :  { %12693 = vmatpush3.bf16.msra.mxu0 %v14403_v10  ;;  %v20299_v10 = vpack.c.bf16 %v15961_v62, %v15942_v58  ;;  %v20301_v58 = vpack.c.bf16 %v16163_v21, %v16159_v60  ;;  %v14448_v62 = vld [vmem:[%s20302_s30 + $0x40] sm:$0xff]   ;;  %v14422_v21 = vld [vmem:[%s20205_s4 + $0x170] sm:$0xff]   ;;  %v14423_v60 = vld [vmem:[%s20205_s4 + $0x178] sm:$0xff]  }
 0x33e   :  { %12694 = vmatprep.subr.bf16.mxu0 %v14404_v56  ;;  %12830 = vmatprep.subr.bf16.mxu1 %v14448_v62 }
 0x33f   :  { %12831 = vmatpush3.bf16.msra.mxu1 %v14448_v62 }
 0x341   :  { %12695 = vmatpush3.bf16.msra.mxu0 %v14404_v56  ;;  %v14449_v56 = vld [vmem:[%s20302_s30 + $0x48] sm:$0xff]  }
 0x342   :  { %12696 = vmatprep.subr.bf16.mxu0 %v14405_v38  ;;  %12832 = vmatprep.subr.bf16.mxu1 %v14449_v56 }
 0x343   :  { %12833 = vmatpush3.bf16.msra.mxu1 %v14449_v56 }
 0x344   :  { %12834 = vmatprep.subr.bf16.mxu1 %v14450_v43 }
 0x345   :  { %12697 = vmatpush3.bf16.msra.mxu0 %v14405_v38  ;;  %v14424_v38 = vld [vmem:[%s20205_s4 + $0x180] sm:$0xff]  }
 0x346   :  { %12698 = vmatprep.subr.bf16.mxu0 %v14406_v51 }
 0x347   :  { %12835 = vmatpush3.bf16.msra.mxu1 %v14450_v43 }
 0x349   :  { %12699 = vmatpush3.bf16.msra.mxu0 %v14406_v51  ;;  %v14425_v51 = vld [vmem:[%s20205_s4 + $0x188] sm:$0xff]  }
 0x34a   :  { %12700 = vmatprep.subr.bf16.mxu0 %v14407_v40 }
 0x34d   :  { %12701 = vmatpush3.bf16.msra.mxu0 %v14407_v40  ;;  %v20303_v40 = vpack.c.bf16 %v16081_v24, %v16167_v3  ;;  %v20305_v3 = vpack.c.bf16 %v16182_v46, %v16178_v52  ;;  %v14428_v24 = vld [vmem:[%s20205_s4 + $0x1a0] sm:$0xff]   ;;  %v14430_v52 = vld [vmem:[%s20205_s4 + $0x1b0] sm:$0xff]   ;;  %v14431_v46 = vld [vmem:[%s20205_s4 + $0x1b8] sm:$0xff]  }
 0x34e   :  { %12710 = vmatprep.subr.bf16.mxu0 %v14408_v0 }
 0x350   :  { %12703 = vmatmul.mubr.bf16.vlgmr.msra.gmra.mrb[8].mxu0 %v20291_v32  ;;  %v14427_v32 = vld [vmem:[%s20205_s4 + $0x198] sm:$0xff]  }
 0x351   :  { %12706 = vmatprep.mubr.bf16.mxu0 %v20293_v11  ;;  %12711 = vmatpush3.bf16.msra.mxu0 %v14408_v0  ;;  %v14426_v0 = vld [vmem:[%s20205_s4 + $0x190] sm:$0xff]  }
 0x352   :  { %12712 = vmatprep.subr.bf16.mxu0 %v14409_v35  ;;  %v20308_v11 = vld [vmem:[#allocation80_spill] sm:$0xff] }
 0x355   :  { %12713 = vmatpush3.bf16.msra.mxu0 %v14409_v35  ;;  %v20304_v35 = vpack.c.bf16 %v16174_v50, %v16170_v63  ;;  %v20306_v63 = vpack.c.bf16 %v16194_v55, %v16186_v16  ;;  %v14429_v50 = vld [vmem:[%s20205_s4 + $0x1a8] sm:$0xff]   ;;  %v14432_v55 = vld [vmem:[%s20205_s4 + $0x1c0] sm:$0xff]  }
 0x356   :  { %12714 = vmatprep.subr.bf16.mxu0 %v14410_v39  ;;  %v14433_v16 = vld [vmem:[%s20205_s4 + $0x1c8] sm:$0xff]  }
 0x358   :  { %12707 = vmatmul.mubr.bf16.gmra.mrb[12].mxu0 %v20296_v4  ;;  %v20311_v4 = vpack.c.bf16 %v16221_v31, %v16217_v5  ;;  %v14438_v5 = vld [vmem:[%s20205_s4 + $0x1f0] sm:$0xff]   ;;  %v14440_v31 = vld [vmem:[%s20205_s4 + $0x200] sm:$0xff]  }
 0x359   :  { %12715 = vmatpush3.bf16.msra.mxu0 %v14410_v39  ;;  %12726 = vmatprep.mubr.bf16.mxu0 %v20297_v1  ;;  %v20309_v39 = vpack.c.bf16 %v20307_v45, %v20308_v11  ;;  %v14437_v1 = vld [vmem:[%s20205_s4 + $0x1e8] sm:$0xff]  }
 0x35a   :  { %12716 = vmatprep.subr.bf16.mxu0 %v14411_v61  ;;  %v20325_v11 = vld [vmem:[#allocation63_spill] sm:$0xff] }
 0x35d   :  { %12717 = vmatpush3.bf16.msra.mxu0 %v14411_v61  ;;  %v20310_v61 = vpack.c.bf16 %v16211_v8, %v16207_v9  ;;  %v20312_v9 = vpack.c.bf16 %v16231_v29, %v16225_v36  ;;  %v14436_v8 = vld [vmem:[%s20205_s4 + $0x1e0] sm:$0xff]   ;;  %v14439_v36 = vld [vmem:[%s20205_s4 + $0x1f8] sm:$0xff]   ;;  %v14441_v29 = vld [vmem:[%s20205_s4 + $0x208] sm:$0xff]  }
 0x35e   :  { %12718 = vmatprep.subr.bf16.mxu0 %v14412_v17 }
 0x361   :  { %12719 = vmatpush3.bf16.msra.mxu0 %v14412_v17  ;;  %v20313_v17 = vpack.c.bf16 %v16239_v13, %v16235_v15  ;;  %v20315_v15 = vpack.c.bf16 %v16264_v30, %v16253_v12  ;;  %v14445_v13 = vld [vmem:[%s20205_s4 + $0x228] sm:$0xff]   ;;  %v14446_v30 = vld [vmem:[%s20205_s4 + $0x230] sm:$0xff]   ;;  %v20317_v12 = vpack.c.bf16 %v16090_v54, %v16087_v2  ;;  %v16593_v54 = vld [vmem:[%s20302_s30] sm:$0xff]  }
 0x362   :  { %12720 = vmatprep.subr.bf16.mxu0 %v14413_v49  ;;  %v3399_v2 = vld [vmem:[%s20320_s6] sm:$0x3] }
 0x365   :  { %12721 = vmatpush3.bf16.msra.mxu0 %v14413_v49  ;;  %v20314_v49 = vpack.c.bf16 %v16249_v41, %v16245_v14  ;;  %v20316_v14 = vpack.c.bf16 %v16274_v47, %v16268_v18  ;;  %v14444_v41 = vld [vmem:[%s20205_s4 + $0x220] sm:$0xff]   ;;  %v14447_v18 = vld [vmem:[%s20205_s4 + $0x238] sm:$0xff]   ;;  %v20318_v47 = vpack.c.bf16 %v16286_v34, %v16280_v48  ;;  %v14453_v48 = vld [vmem:[%s20302_s30 + $0x68] sm:$0xff]  }
 0x366   :  { %12722 = vmatprep.subr.bf16.mxu0 %v14414_v20  ;;  %v20321_v34 = vld [vmem:[#allocation55_spill] sm:$0xff] }
 0x369   :  { %12723 = vmatpush3.bf16.msra.mxu0 %v14414_v20  ;;  %v14442_v20 = vld [vmem:[%s20205_s4 + $0x210] sm:$0xff]  }
 0x36a   :  { %12724 = vmatprep.subr.bf16.mxu0 %v14415_v42 }
 0x36d   :  { %12725 = vmatpush3.bf16.msra.mxu0 %v14415_v42  ;;  %v14443_v42 = vld [vmem:[%s20205_s4 + $0x218] sm:$0xff]  }
 0x36e   :  { %12734 = vmatprep.subr.bf16.mxu0 %v14416_v6 }
 0x370   :  { %12727 = vmatmul.mubr.bf16.vlgmr.msra.gmra.mrb[8].mxu0 %v20298_v28  ;;  %v14452_v28 = vld [vmem:[%s20302_s30 + $0x60] sm:$0xff]  }
 0x371   :  { %12730 = vmatprep.mubr.bf16.mxu0 %v20299_v10  ;;  %12735 = vmatpush3.bf16.msra.mxu0 %v14416_v6  ;;  %v20319_v6 = vpack.c.bf16 %v16294_v44, %v16290_v19  ;;  %v14454_v44 = vld [vmem:[%s20302_s30 + $0x70] sm:$0xff]   ;;  %v14455_v19 = vld [vmem:[%s20302_s30 + $0x78] sm:$0xff]   ;;  %v3403_v10 = vrot.slane %v3399_v2, %v20321_v34 }
 0x372   :  { %12736 = vmatprep.subr.bf16.mxu0 %v14417_v7 }
 0x375   :  { %12737 = vmatpush3.bf16.msra.mxu0 %v14417_v7  ;;  %v14451_v7 = vld [vmem:[%s20302_s30 + $0x58] sm:$0xff]  }
 0x376   :  { %12738 = vmatprep.subr.bf16.mxu0 %v14418_v37  ;;  %12836 = vmatprep.subr.bf16.mxu1 %v14451_v7 }
 0x377   :  { %12837 = vmatpush3.bf16.msra.mxu1 %v14451_v7 }
 0x378   :  { %12731 = vmatmul.mubr.bf16.gmra.mrb[12].mxu0 %v20300_v59  ;;  %12838 = vmatprep.subr.bf16.mxu1 %v14452_v28 }
 0x379   :  { %12739 = vmatpush3.bf16.msra.mxu0 %v14418_v37  ;;  %12750 = vmatprep.mubr.bf16.mxu0 %v20301_v58 }
 0x37a   :  { %12740 = vmatprep.subr.bf16.mxu0 %v14419_v57 }
 0x37b   :  { %12839 = vmatpush3.bf16.msra.mxu1 %v14452_v28  ;;  %v20340_v28 = vld [vmem:[#allocation6_spill] sm:$0xff] }
 0x37c   :  { %12840 = vmatprep.subr.bf16.mxu1 %v14453_v48 }
 0x37d   :  { %12741 = vmatpush3.bf16.msra.mxu0 %v14419_v57 }
 0x37e   :  { %12742 = vmatprep.subr.bf16.mxu0 %v14420_v22 }
 0x37f   :  { %12841 = vmatpush3.bf16.msra.mxu1 %v14453_v48 }
 0x380   :  { %12842 = vmatprep.subr.bf16.mxu1 %v14454_v44 }
 0x381   :  { %12743 = vmatpush3.bf16.msra.mxu0 %v14420_v22  ;;  %v20322_v22 = vld [vmem:[#allocation57_spill] sm:$0xff] }
 0x382   :  { %12744 = vmatprep.subr.bf16.mxu0 %v14421_v23  ;;  %v3415_v58 = vrot.slane %v3399_v2, %v20322_v22  ;;  %v20342_v2 = vld [vmem:[#allocation5_spill] sm:$0xff] }
 0x383   :  { %12843 = vmatpush3.bf16.msra.mxu1 %v14454_v44  ;;  %v20341_v44 = vld [vmem:[#allocation7_spill] sm:$0xff]  ;;  %v20378_v22 = vld [vmem:[#allocation17_spill] sm:$0xff] }
 0x384   :  { %12844 = vmatprep.subr.bf16.mxu1 %v14455_v19 }
 0x385   :  { %12745 = vmatpush3.bf16.msra.mxu0 %v14421_v23 }
 0x386   :  { %12746 = vmatprep.subr.bf16.mxu0 %v14422_v21 }
 0x387   :  { %12845 = vmatpush3.bf16.msra.mxu1 %v14455_v19 }
 0x388   :  { %12854 = vmatprep.subr.bf16.mxu1 %v16593_v54 }
 0x389   :  { %12747 = vmatpush3.bf16.msra.mxu0 %v14422_v21 }
 0x38a   :  { %12748 = vmatprep.subr.bf16.mxu0 %v14423_v60 }
 0x38d   :  { %12749 = vmatpush3.bf16.msra.mxu0 %v14423_v60 }
 0x38e   :  { %12758 = vmatprep.subr.bf16.mxu0 %v14424_v38 }
 0x390   :  { %12751 = vmatmul.mubr.bf16.vlgmr.msra.gmra.mrb[8].mxu0 %v20303_v40 }
 0x391   :  { %12754 = vmatprep.mubr.bf16.mxu0 %v20304_v35  ;;  %12759 = vmatpush3.bf16.msra.mxu0 %v14424_v38 }
 0x392   :  { %12760 = vmatprep.subr.bf16.mxu0 %v14425_v51 }
 0x395   :  { %12761 = vmatpush3.bf16.msra.mxu0 %v14425_v51 }
 0x396   :  { %12762 = vmatprep.subr.bf16.mxu0 %v14426_v0 }
 0x398   :  { %12755 = vmatmul.mubr.bf16.gmra.mrb[12].mxu0 %v20305_v3  ;;  %v20323_v3 = vld [vmem:[#allocation60_spill] sm:$0xff] }
 0x399   :  { %12763 = vmatpush3.bf16.msra.mxu0 %v14426_v0  ;;  %12774 = vmatprep.mubr.bf16.mxu0 %v20306_v63 }
 0x39a   :  { %12764 = vmatprep.subr.bf16.mxu0 %v14427_v32 }
 0x39d   :  { %12765 = vmatpush3.bf16.msra.mxu0 %v14427_v32 }
 0x39e   :  { %12766 = vmatprep.subr.bf16.mxu0 %v14428_v24 }
 0x3a1   :  { %12767 = vmatpush3.bf16.msra.mxu0 %v14428_v24 }
 0x3a2   :  { %12768 = vmatprep.subr.bf16.mxu0 %v14429_v50 }
 0x3a5   :  { %12769 = vmatpush3.bf16.msra.mxu0 %v14429_v50 }
 0x3a6   :  { %12770 = vmatprep.subr.bf16.mxu0 %v14430_v52 }
 0x3a9   :  { %12771 = vmatpush3.bf16.msra.mxu0 %v14430_v52  ;;  %v20324_v52 = vld [vmem:[#allocation61_spill] sm:$0xff] }
 0x3aa   :  { %12772 = vmatprep.subr.bf16.mxu0 %v14431_v46 }
 0x3ad   :  { %12773 = vmatpush3.bf16.msra.mxu0 %v14431_v46 }
 0x3ae   :  { %12782 = vmatprep.subr.bf16.mxu0 %v14432_v55 }
 0x3b0   :  { %12775 = vmatmul.mubr.bf16.vlgmr.msra.gmra.mrb[8].mxu0 %v20309_v39 }
 0x3b1   :  { %12778 = vmatprep.mubr.bf16.mxu0 %v20310_v61  ;;  %12783 = vmatpush3.bf16.msra.mxu0 %v14432_v55 }
 0x3b2   :  { %12784 = vmatprep.subr.bf16.mxu0 %v14433_v16 }
 0x3b5   :  { %12785 = vmatpush3.bf16.msra.mxu0 %v14433_v16 }
 0x3b6   :  { %12786 = vmatprep.subr.bf16.mxu0 %v14434_v53 }
 0x3b8   :  { %12779 = vmatmul.mubr.bf16.gmra.mrb[12].mxu0 %v20311_v4 }
 0x3b9   :  { %12787 = vmatpush3.bf16.msra.mxu0 %v14434_v53  ;;  %12798 = vmatprep.mubr.bf16.mxu0 %v20312_v9 }
 0x3ba   :  { %12788 = vmatprep.subr.bf16.mxu0 %v14435_v33 }
 0x3bd   :  { %12789 = vmatpush3.bf16.msra.mxu0 %v14435_v33  ;;  %v20326_v33 = vld [vmem:[#allocation66_spill] sm:$0xff] }
 0x3be   :  { %12790 = vmatprep.subr.bf16.mxu0 %v14436_v8 }
 0x3c1   :  { %12791 = vmatpush3.bf16.msra.mxu0 %v14436_v8 }
 0x3c2   :  { %12792 = vmatprep.subr.bf16.mxu0 %v14437_v1 }
 0x3c5   :  { %12793 = vmatpush3.bf16.msra.mxu0 %v14437_v1  ;;  %v20328_v1 = vld [vmem:[#allocation68_spill] sm:$0xff] }
 0x3c6   :  { %12794 = vmatprep.subr.bf16.mxu0 %v14438_v5 }
 0x3c9   :  { %12795 = vmatpush3.bf16.msra.mxu0 %v14438_v5 }
 0x3ca   :  { %12796 = vmatprep.subr.bf16.mxu0 %v14439_v36 }
 0x3cd   :  { %12797 = vmatpush3.bf16.msra.mxu0 %v14439_v36  ;;  %v20329_v36 = vld [vmem:[#allocation62_spill] sm:$0xff] }
 0x3ce   :  { %12806 = vmatprep.subr.bf16.mxu0 %v14440_v31 }
 0x3d0   :  { %12799 = vmatmul.mubr.bf16.vlgmr.msra.gmra.mrb[8].mxu0 %v20313_v17 }
 0x3d1   :  { %12802 = vmatprep.mubr.bf16.mxu0 %v20314_v49  ;;  %12807 = vmatpush3.bf16.msra.mxu0 %v14440_v31  ;;  %v20331_v49 = vld [vmem:[#allocation67_spill] sm:$0xff] }
 0x3d2   :  { %12808 = vmatprep.subr.bf16.mxu0 %v14441_v29 }
 0x3d5   :  { %12809 = vmatpush3.bf16.msra.mxu0 %v14441_v29 }
 0x3d6   :  { %12810 = vmatprep.subr.bf16.mxu0 %v14442_v20 }
 0x3d8   :  { %12803 = vmatmul.mubr.bf16.gmra.mrb[12].mxu0 %v20315_v15 }
 0x3d9   :  { %12811 = vmatpush3.bf16.msra.mxu0 %v14442_v20  ;;  %12822 = vmatprep.mubr.bf16.mxu0 %v20316_v14 }
 0x3da   :  { %12812 = vmatprep.subr.bf16.mxu0 %v14443_v42 }
 0x3dd   :  { %12813 = vmatpush3.bf16.msra.mxu0 %v14443_v42 }
 0x3de   :  { %12814 = vmatprep.subr.bf16.mxu0 %v14444_v41 }
 0x3e1   :  { %12815 = vmatpush3.bf16.msra.mxu0 %v14444_v41 }
 0x3e2   :  { %12816 = vmatprep.subr.bf16.mxu0 %v14445_v13 }
 0x3e5   :  { %12817 = vmatpush3.bf16.msra.mxu0 %v14445_v13 }
 0x3e6   :  { %12818 = vmatprep.subr.bf16.mxu0 %v14446_v30 }
 0x3e9   :  { %12819 = vmatpush3.bf16.msra.mxu0 %v14446_v30  ;;  %v20337_v30 = vld [vmem:[#allocation69_spill] sm:$0xff] }
 0x3ea   :  { %12820 = vmatprep.subr.bf16.mxu0 %v14447_v18 }
 0x3ed   :  { %12821 = vmatpush3.bf16.msra.mxu0 %v14447_v18 }
 0x3f0   :  { %12823 = vmatmul.mubr.bf16.vlgmr.msra.gmra.mrb[8].mxu0 %v20317_v12  ;;  %v20338_v12 = vld [vmem:[#allocation3_spill] sm:$0xff] }
 0x3f1   :  { %12826 = vmatprep.mubr.bf16.mxu0 %v20318_v47 }
 0x3f8   :  { %12827 = vmatmul.mubr.bf16.gmra.mrb[12].mxu0 %v20319_v6  ;;  %v20339_v6 = vld [vmem:[#allocation4_spill] sm:$0xff] }
 0x4c3   :  { %v12824_v37 = vpop.f32.mrb[8].mxu0 }
 0x4c4   :  { %v3360_v57 = vpop.f32.mrb[9].mxu0  ;;  %v3406_v43 = vmul.f32 %v12824_v37, %v3403_v10 }
 0x4c5   :  { %v12825_v59 = vpop.f32.mrb[10].mxu0  ;;  %v3404_v62 = vmul.f32 %v3403_v10, %v3360_v57 }
 0x4c6   :  { %v3363_v56 = vpop.f32.mrb[11].mxu0  ;;  %v3407_v21 = vmul.f32 %v12825_v59, %v3403_v10  ;;  %v3418_v51 = vadd.f32 %v3415_v58, %v3406_v43  ;;  %v20343_v59 = vld [vmem:[#allocation8_spill] sm:$0xff] }
 0x4c7   :  { %v3405_v23 = vmul.f32 %v3403_v10, %v3363_v56  ;;  %v3416_v38 = vadd.f32 %v3415_v58, %v3404_v62  ;;  %v14457_v43 = vld [vmem:[%s20302_s30 + $0x8] sm:$0xff]  }
 0x4c8   :  { %v3419_v0 = vadd.f32 %v3415_v58, %v3407_v21  ;;  %v3426_v39 = vadd.f32 %v3418_v51, %v20325_v11 }
 0x4c9   :  { %v3417_v60 = vadd.f32 %v3415_v58, %v3405_v23  ;;  %v3424_v46 = vadd.f32 %v3416_v38, %v20324_v52 }
 0x4ca   :  { %v3427_v4 = vadd.f32 %v3419_v0, %v20326_v33  ;;  %v16612_v42 = vmax.f32 %v3426_v39, 0.0 }
 0x4cb   :  { %v12828_v40 = vpop.f32.mrb[12].mxu0  ;;  %v3425_v24 = vadd.f32 %v3417_v60, %v20323_v3  ;;  %v16609_v17 = vmax.f32 %v3424_v46, 0.0  ;;  %v20346_v3 = vld [vmem:[#allocation10_spill] sm:$0xff]  ;;  %v20347_v46 = vld [vmem:[#allocation9_spill] sm:$0xff] }
 0x4cc   :  { %v3410_v35 = vmul.f32 %v12828_v40, %v3403_v10  ;;  %v3376_v32 = vpop.f32.mrb[13].mxu0  ;;  %20332 = vst [vmem:[#allocation82_spill] sm:$0xff] %v16612_v42  ;;  %v16616_v14 = vmax.f32 %v3427_v4, 0.0 }
 0x4cd   :  { %v3408_v63 = vmul.f32 %v3403_v10, %v3376_v32  ;;  %v12829_v50 = vpop.f32.mrb[14].mxu0  ;;  %v16605_v8 = vmax.f32 %v3425_v24, 0.0  ;;  %20330 = vst [vmem:[#allocation79_spill] sm:$0xff] %v16609_v17  ;;  %v3485_v48 = vmul.f32 %v16609_v17, %v20340_v28  ;;  %v3440_v23 = vrot.slane %v16609_v17, 7  ;;  %v14458_v32 = vld [vmem:[%s20302_s30 + $0x10] sm:$0xff]  }
 0x4ce   :  { %v3422_v55 = vadd.f32 %v3415_v58, %v3410_v35  ;;  %v3411_v16 = vmul.f32 %v12829_v50, %v3403_v10  ;;  %v3379_v45 = vpop.f32.mrb[15].mxu0  ;;  %20334 = vst [vmem:[#allocation83_spill] sm:$0xff] %v16616_v14  ;;  %v3443_v35 = vrot.slane %v16616_v14, 7  ;;  %v3442_v50 = vrot.slane %v16612_v42, 7 }
 0x4cf   :  { %v3420_v61 = vadd.f32 %v3415_v58, %v3408_v63  ;;  %v3409_v53 = vmul.f32 %v3403_v10, %v3379_v45  ;;  %20327 = vst [vmem:[#allocation78_spill] sm:$0xff] %v16605_v8  ;;  %v3486_v47 = vmul.f32 %v16605_v8, %v20338_v12  ;;  %v3487_v10 = vmul.f32 %v16612_v42, %v20342_v2  ;;  %v20349_v45 = vld [vmem:[#allocation11_spill] sm:$0xff] }
 0x4d0   :  { %v3423_v9 = vadd.f32 %v3415_v58, %v3411_v16  ;;  %v3430_v5 = vadd.f32 %v3422_v55, %v20328_v1  ;;  %v3441_v63 = vrot.slane %v16605_v8, 7  ;;  %v20348_v55 = vld [vmem:[#allocation12_spill] sm:$0xff]  ;;  %v3742_v4 = vrot.slane %v16616_v14, 1  ;;  %v14464_v12 = vld [vmem:[%s20302_s30 + $0x80] sm:$0xff]  }
 0x4d1   :  { %v3428_v31 = vadd.f32 %v3420_v61, %v20329_v36  ;;  %v3421_v29 = vadd.f32 %v3415_v58, %v3409_v53  ;;  %v3488_v58 = vmul.f32 %v16616_v14, %v20343_v59  ;;  %v3493_v56 = vpack.c.bf16 %v3487_v10, %v3486_v47  ;;  %v14459_v36 = vld [vmem:[%s20302_s30 + $0x18] sm:$0xff]   ;;  %v20375_v59 = vld [vmem:[#allocation15_spill] sm:$0xff] }
 0x4d2   :  { %v3431_v20 = vadd.f32 %v3423_v9, %v20331_v49  ;;  %v16620_v13 = vmax.f32 %v3430_v5, 0.0  ;;  %v3740_v53 = vrot.slane %v16605_v8, 1  ;;  %v16678_v9 = vsel %vm267_vm2, %v3442_v50, %v3443_v35 }
 0x4d3   :  { %v16614_v15 = vmax.f32 %v3428_v31, 0.0  ;;  %v3429_v18 = vadd.f32 %v3421_v29, %v20337_v30  ;;  %v3739_v29 = vrot.slane %v16609_v17, 1  ;;  %v3741_v49 = vrot.slane %v16612_v42, 1 }
 0x4d4   :  { %v16618_v41 = vmax.f32 %v3431_v20, 0.0  ;;  %20336 = vst [vmem:[#allocation87_spill] sm:$0xff] %v16620_v13  ;;  %v3446_v21 = vrot.slane %v16620_v13, 7  ;;  %v16692_v30 = vsel %vm267_vm2, %v3440_v23, %v3441_v63 }
 0x4d5   :  { %20333 = vst [vmem:[#allocation84_spill] sm:$0xff] %v16614_v15  ;;  %v3489_v19 = vmul.f32 %v16614_v15, %v20341_v44  ;;  %v16636_v62 = vmax.f32 %v3429_v18, 0.0  ;;  %v3444_v0 = vrot.slane %v16614_v15, 7  ;;  %v3743_v39 = vrot.slane %v16614_v15, 1  ;;  %v20350_v18 = vld [vmem:[#allocation45_spill] sm:$0xff] }
 0x4d6   :  { %20335 = vst [vmem:[#allocation85_spill] sm:$0xff] %v16618_v41  ;;  %v3484_v7 = vmul.f32 %v16618_v41, %v20339_v6  ;;  %v3447_v37 = vrot.slane %v16618_v41, 7  ;;  %v3746_v33 = vrot.slane %v16618_v41, 1  ;;  %v16712_v10 = vsel %vm664_vm3, %v3741_v49, %v3742_v4 }
 0x4d7   :  { %20344 = vst [vmem:[#allocation86_spill] sm:$0xff] %v16636_v62  ;;  %v3494_v60 = vpack.c.bf16 %v3489_v19, %v3488_v58  ;;  %v3490_v24 = vmul.f32 %v16636_v62, %v20346_v3  ;;  %v3445_v52 = vrot.slane %v16636_v62, 7  ;;  %v16671_v61 = vsel %vm267_vm2, %v3443_v35, %v3444_v0  ;;  %v20367_v3 = vld [vmem:[#allocation50_spill] sm:$0xff] }
 0x4d8   :  { %v3492_v57 = vpack.c.bf16 %v3485_v48, %v3484_v7  ;;  %v16645_v51 = vsel %vm267_vm2, %v3446_v21, %v3447_v37  ;;  %v16649_v40 = vsel %vm267_vm2, %v3447_v37, %v3440_v23  ;;  %v3744_v1 = vrot.slane %v16636_v62, 1  ;;  %v14460_v23 = vld [vmem:[%s20302_s30 + $0x20] sm:$0xff]  }
 0x4d9   :  { %v3456_v16 = vmul.f32 %v16645_v51, %v20348_v55  ;;  %v3457_v11 = vmul.f32 %v16649_v40, %v20349_v45  ;;  %v16686_v31 = vsel %vm267_vm2, %v3445_v52, %v3446_v21  ;;  %v16696_v47 = vmul.f32 %v16671_v61, %v20350_v18  ;;  %v20352_v21 = vld [vmem:[#allocation37_spill] sm:$0xff]  ;;  %v20364_v18 = vld [vmem:[#allocation48_spill] sm:$0xff] }
 0x4da   :  { %12846 = vmatprep.mubr.bf16.mxu1 %v3492_v57  ;;  %v16700_v7 = vsel %vm664_vm3, %v3742_v4, %v3743_v39  ;;  %v16704_v48 = vsel %vm664_vm3, %v3739_v29, %v3740_v53  ;;  %v16708_v19 = vsel %vm664_vm3, %v3746_v33, %v3739_v29  ;;  %v3745_v37 = vrot.slane %v16620_v13, 1  ;;  %v20366_v55 = vld [vmem:[#allocation72_spill] sm:$0xff] }
 0x4db   :  { %12847 = vmatmul.mubr.bf16.vlgmr.msra.gmra.mrb[8].mxu1 %v3493_v56  ;;  %v3464_v20 = vpack.c.bf16 %v3457_v11, %v3456_v16  ;;  %v16717_v57 = vsel %vm664_vm3, %v3740_v53, %v3741_v49  ;;  %v16721_v58 = vsel %vm664_vm3, %v3743_v39, %v3744_v1  ;;  %v20351_v56 = vld [vmem:[#allocation34_spill] sm:$0xff]  ;;  %v16748_v16 = vsel %vm267_vm2, %v3441_v63, %v3442_v50  ;;  %v20358_v49 = vld [vmem:[#allocation40_spill] sm:$0xff] }
 0x4dc   :  { %12855 = vmatpush3.bf16.msra.mxu1 %v16593_v54  ;;  %12850 = vmatprep.mubr.bf16.mxu1 %v3494_v60  ;;  %v3491_v54 = vmul.f32 %v16620_v13, %v20347_v46  ;;  %v16732_v60 = vmul.f32 %v16700_v7, %v20352_v21  ;;  %v16736_v35 = vsel %vm664_vm3, %v3745_v37, %v3746_v33  ;;  %v20354_v11 = vld [vmem:[#allocation46_spill] sm:$0xff]  ;;  %v20355_v33 = vld [vmem:[#allocation36_spill] sm:$0xff]  ;;  %v20368_v21 = vld [vmem:[#allocation49_spill] sm:$0xff] }
 0x4dd   :  { %12856 = vmatprep.subr.bf16.mxu1 %v14457_v43  ;;  %v16752_v39 = vmul.f32 %v16678_v9, %v20354_v11  ;;  %v16756_v53 = vsel %vm267_vm2, %v3444_v0, %v3445_v52  ;;  %v16760_v4 = vmul.f32 %v16704_v48, %v20355_v33  ;;  %v20357_v63 = vld [vmem:[#allocation38_spill] sm:$0xff]  ;;  %v20359_v0 = vld [vmem:[#allocation39_spill] sm:$0xff]  ;;  %v20361_v33 = vld [vmem:[#allocation41_spill] sm:$0xff]  ;;  %v16829_v11 = vmul.f32 %v16649_v40, %v20368_v21 }
 0x4de   :  { %v3495_v5 = vpack.c.bf16 %v3491_v54, %v3490_v24  ;;  %v20353_v24 = vld [vmem:[#allocation33_spill] sm:$0xff]  ;;  %v16770_v50 = vmul.f32 %v16712_v10, %v20357_v63  ;;  %v16811_v45 = vmul.f32 %v16756_v53, %v20364_v18 }
 0x4df   :  { %v16744_v54 = vmul.f32 %v16645_v51, %v20353_v24  ;;  %v20362_v24 = vld [vmem:[#allocation44_spill] sm:$0xff]  ;;  %v20374_v46 = vld [vmem:[#allocation13_spill] sm:$0xff] }
 0x4e0   :  { %12857 = vmatpush3.bf16.msra.mxu1 %v14457_v43  ;;  %v16725_v43 = vmul.f32 %v16686_v31, %v20351_v56  ;;  %v16790_v63 = vmul.f32 %v16692_v30, %v20362_v24  ;;  %v16825_v24 = vmul.f32 %v16645_v51, %v20367_v3  ;;  %v14462_v18 = vld [vmem:[%s20302_s30 + $0x30] sm:$0xff]   ;;  %v20370_v3 = vld [vmem:[#allocation71_spill] sm:$0xff]  ;;  %v16862_v51 = vmul.f32 %v16708_v19, %v20276_v26  ;;  %v20373_v26 = vld [vmem:[#allocation14_spill] sm:$0xff] }
 0x4e1   :  { %12858 = vmatprep.subr.bf16.mxu1 %v14458_v32  ;;  %v16844_v21 = vmul.f32 %v16717_v57, %v20370_v3  ;;  %v20372_v3 = vld [vmem:[#allocation76_spill] sm:$0xff]  ;;  %v3459_v38 = vmul.f32 %v16748_v16, %v20374_v46  ;;  %v20377_v46 = vld [vmem:[#allocation18_spill] sm:$0xff] }
 0x4e2   :  { %v3462_v2 = vmul.f32 %v16756_v53, %v20377_v46 }
 0x4e3   :  { %12851 = vmatmul.mubr.bf16.gmra.mrb[12].mxu1 %v3495_v5  ;;  %v20356_v5 = vld [vmem:[#allocation35_spill] sm:$0xff] }
 0x4e4   :  { %12859 = vmatpush3.bf16.msra.mxu1 %v14458_v32  ;;  %12870 = vmatprep.mubr.bf16.mxu1 %v3464_v20  ;;  %v16740_v32 = vsel %vm664_vm3, %v3744_v1, %v3745_v37  ;;  %v16766_v29 = vmul.f32 %v16717_v57, %v20356_v5  ;;  %v16774_v20 = vmul.f32 %v16721_v58, %v20358_v49  ;;  %v20360_v37 = vld [vmem:[#allocation42_spill] sm:$0xff]  ;;  %v20363_v49 = vld [vmem:[#allocation43_spill] sm:$0xff] }
 0x4e5   :  { %12860 = vmatprep.subr.bf16.mxu1 %v14459_v36  ;;  %v16778_v52 = vmul.f32 %v16740_v32, %v20359_v0  ;;  %v16782_v1 = vmul.f32 %v16736_v35, %v20360_v37  ;;  %v16786_v5 = vmul.f32 %v16708_v19, %v20361_v33  ;;  %v16801_v56 = vmul.f32 %v16748_v16, %v20363_v49  ;;  %v20365_v0 = vld [vmem:[#allocation47_spill] sm:$0xff] }
 0x4e6   :  { %v16815_v37 = vmul.f32 %v16686_v31, %v20365_v0  ;;  %v16819_v49 = vmul.f32 %v16721_v58, %v20366_v55  ;;  %v20369_v55 = vld [vmem:[#allocation73_spill] sm:$0xff]  ;;  %v16854_v44 = vmul.f32 %v16740_v32, %v20274_v27 }
 0x4e7   :  { %v16838_v33 = vmul.f32 %v16700_v7, %v20369_v55  ;;  %v16858_v55 = vmul.f32 %v16736_v35, %v20275_v25  ;;  %v14463_v0 = vld [vmem:[%s20302_s30 + $0x38] sm:$0xff]   ;;  %v20376_v25 = vld [vmem:[#allocation16_spill] sm:$0xff] }
 0x4e8   :  { %12861 = vmatpush3.bf16.msra.mxu1 %v14459_v36  ;;  %v14461_v36 = vld [vmem:[%s20302_s30 + $0x28] sm:$0xff]   ;;  %v3460_v28 = vmul.f32 %v16678_v9, %v20376_v25 }
 0x4e9   :  { %12862 = vmatprep.subr.bf16.mxu1 %v14460_v23  ;;  %v20380_v25 = vld [vmem:[#allocation19_spill] sm:$0xff] }
 0x4ec   :  { %12863 = vmatpush3.bf16.msra.mxu1 %v14460_v23  ;;  %v20371_v23 = vld [vmem:[#allocation70_spill] sm:$0xff] }
 0x4ed   :  { %12864 = vmatprep.subr.bf16.mxu1 %v14461_v36  ;;  %v16848_v6 = vmul.f32 %v16712_v10, %v20371_v23  ;;  %v16866_v23 = vmul.f32 %v16704_v48, %v20372_v3  ;;  %v3458_v3 = vmul.f32 %v16692_v30, %v20373_v26 }
 0x4ef   :  { %v3465_v27 = vpack.c.bf16 %v3459_v38, %v3458_v3  ;;  %v14466_v38 = vld [vmem:[%s20302_s30 + $0x90] sm:$0xff]  }
 0x4f0   :  { %12865 = vmatpush3.bf16.msra.mxu1 %v14461_v36  ;;  %v3461_v36 = vmul.f32 %v16671_v61, %v20375_v59  ;;  %v20379_v3 = vld [vmem:[#allocation20_spill] sm:$0xff] }
 0x4f1   :  { %12866 = vmatprep.subr.bf16.mxu1 %v14462_v18  ;;  %v3755_v59 = vmul.f32 %v16708_v19, %v20379_v3  ;;  %v20381_v19 = vld [vmem:[#allocation22_spill] sm:$0xff] }
 0x4f2   :  { %v3466_v26 = vpack.c.bf16 %v3461_v36, %v3460_v28  ;;  %v3757_v36 = vmul.f32 %v16717_v57, %v20381_v19  ;;  %v14473_v57 = vld [vmem:[%s20302_s30 + $0xc8] sm:$0xff]  }
 0x4f4   :  { %12867 = vmatpush3.bf16.msra.mxu1 %v14462_v18  ;;  %v14465_v18 = vld [vmem:[%s20302_s30 + $0x88] sm:$0xff]  }
 0x4f5   :  { %12868 = vmatprep.subr.bf16.mxu1 %v14463_v0 }
 0x4f8   :  { %12869 = vmatpush3.bf16.msra.mxu1 %v14463_v0  ;;  %v3463_v0 = vmul.f32 %v16686_v31, %v20378_v22  ;;  %v14468_v31 = vld [vmem:[%s20302_s30 + $0xa0] sm:$0xff]  }
 0x4f9   :  { %12878 = vmatprep.subr.bf16.mxu1 %v14464_v12 }
 0x4fb   :  { %12871 = vmatmul.mubr.bf16.vlgmr.msra.gmra.mrb[8].mxu1 %v3465_v27  ;;  %v3756_v27 = vmul.f32 %v16704_v48, %v20380_v25  ;;  %v14471_v48 = vld [vmem:[%s20302_s30 + $0xb8] sm:$0xff]  }
 0x4fc   :  { %12874 = vmatprep.mubr.bf16.mxu1 %v3466_v26  ;;  %12879 = vmatpush3.bf16.msra.mxu1 %v14464_v12  ;;  %v3467_v26 = vpack.c.bf16 %v3463_v0, %v3462_v2  ;;  %v14467_v12 = vld [vmem:[%s20302_s30 + $0x98] sm:$0xff]   ;;  %v14469_v2 = vld [vmem:[%s20302_s30 + $0xa8] sm:$0xff]  }
 0x4fd   :  { %12880 = vmatprep.subr.bf16.mxu1 %v14465_v18  ;;  %v3763_v28 = vpack.c.bf16 %v3756_v27, %v3755_v59  ;;  %v14470_v59 = vld [vmem:[%s20302_s30 + $0xb0] sm:$0xff]   ;;  %v20383_v27 = vld [vmem:[#allocation23_spill] sm:$0xff] }
 0x500   :  { %12881 = vmatpush3.bf16.msra.mxu1 %v14465_v18  ;;  %v20382_v18 = vld [vmem:[#allocation21_spill] sm:$0xff] }
 0x501   :  { %12882 = vmatprep.subr.bf16.mxu1 %v14466_v38  ;;  %v3758_v0 = vmul.f32 %v16712_v10, %v20382_v18  ;;  %v20385_v10 = vld [vmem:[#allocation26_spill] sm:$0xff]  ;;  %v20386_v18 = vld [vmem:[#allocation25_spill] sm:$0xff] }
 0x503   :  { %12875 = vmatmul.mubr.bf16.gmra.mrb[12].mxu1 %v3467_v26  ;;  %v3760_v26 = vmul.f32 %v16721_v58, %v20383_v27  ;;  %v3762_v58 = vmul.f32 %v16736_v35, %v20386_v18  ;;  %v14476_v35 = vld [vmem:[%s20302_s30 + $0xe0] sm:$0xff]  }
 0x504   :  { %12883 = vmatpush3.bf16.msra.mxu1 %v14466_v38  ;;  %12894 = vmatprep.mubr.bf16.mxu1 %v3763_v28  ;;  %v14472_v38 = vld [vmem:[%s20302_s30 + $0xc0] sm:$0xff]  }
 0x505   :  { %12884 = vmatprep.subr.bf16.mxu1 %v14467_v12 }
 0x508   :  { %12885 = vmatpush3.bf16.msra.mxu1 %v14467_v12  ;;  %v20384_v12 = vld [vmem:[#allocation24_spill] sm:$0xff] }
 0x509   :  { %12886 = vmatprep.subr.bf16.mxu1 %v14468_v31  ;;  %v3759_v28 = vmul.f32 %v16700_v7, %v20384_v12  ;;  %v14474_v7 = vld [vmem:[%s20302_s30 + $0xd0] sm:$0xff]  }
 0x50c   :  { %12887 = vmatpush3.bf16.msra.mxu1 %v14468_v31  ;;  %v3764_v31 = vpack.c.bf16 %v3758_v0, %v3757_v36  ;;  %v20388_v0 = vld [vmem:[#allocation27_spill] sm:$0xff] }
 0x50d   :  { %12888 = vmatprep.subr.bf16.mxu1 %v14469_v2 }
 0x510   :  { %12889 = vmatpush3.bf16.msra.mxu1 %v14469_v2  ;;  %v3765_v2 = vpack.c.bf16 %v3760_v26, %v3759_v28  ;;  %v3906_v26 = vmul.f32 %v16692_v30, %v20388_v0  ;;  %v14478_v30 = vld [vmem:[%s20302_s30 + $0xf0] sm:$0xff]  }
 0x511   :  { %12890 = vmatprep.subr.bf16.mxu1 %v14470_v59 }
 0x514   :  { %12891 = vmatpush3.bf16.msra.mxu1 %v14470_v59  ;;  %v3761_v59 = vmul.f32 %v16740_v32, %v20385_v10  ;;  %v14475_v32 = vld [vmem:[%s20302_s30 + $0xd8] sm:$0xff]  }
 0x515   :  { %12892 = vmatprep.subr.bf16.mxu1 %v14471_v48 }
 0x516   :  { %v3766_v28 = vpack.c.bf16 %v3762_v58, %v3761_v59  ;;  %v20390_v59 = vld [vmem:[#allocation30_spill] sm:$0xff] }
 0x517   :  { %v3907_v58 = vmul.f32 %v16748_v16, %v20390_v59  ;;  %v14482_v16 = vld [vmem:[%s20302_s30 + $0x110] sm:$0xff]  }
 0x518   :  { %12893 = vmatpush3.bf16.msra.mxu1 %v14471_v48  ;;  %v20387_v48 = vld [vmem:[#allocation28_spill] sm:$0xff] }
 0x519   :  { %12902 = vmatprep.subr.bf16.mxu1 %v14472_v38  ;;  %v3905_v36 = vmul.f32 %v16649_v40, %v20387_v48  ;;  %v14477_v40 = vld [vmem:[%s20302_s30 + $0xe8] sm:$0xff]  }
 0x51b   :  { %12895 = vmatmul.mubr.bf16.vlgmr.msra.gmra.mrb[8].mxu1 %v3764_v31  ;;  %v14479_v31 = vld [vmem:[%s20302_s30 + $0xf8] sm:$0xff]  }
 0x51c   :  { %12898 = vmatprep.mubr.bf16.mxu1 %v3765_v2  ;;  %12903 = vmatpush3.bf16.msra.mxu1 %v14472_v38  ;;  %v3913_v38 = vpack.c.bf16 %v3906_v26, %v3905_v36  ;;  %v20391_v36 = vld [vmem:[#allocation31_spill] sm:$0xff] }
 0x51d   :  { %12904 = vmatprep.subr.bf16.mxu1 %v14473_v57  ;;  %v3910_v26 = vmul.f32 %v16756_v53, %v20391_v36  ;;  %v4055_v53 = vpack.c.bf16 %v16605_v8, %v16609_v17 }
 0x520   :  { %12905 = vmatpush3.bf16.msra.mxu1 %v14473_v57  ;;  %v20389_v57 = vld [vmem:[#allocation29_spill] sm:$0xff] }
 0x521   :  { %12906 = vmatprep.subr.bf16.mxu1 %v14474_v7  ;;  %v3908_v2 = vmul.f32 %v16678_v9, %v20389_v57  ;;  %v14481_v9 = vld [vmem:[%s20302_s30 + $0x108] sm:$0xff]  }
 0x523   :  { %12899 = vmatmul.mubr.bf16.gmra.mrb[12].mxu1 %v3766_v28  ;;  %v20392_v28 = vld [vmem:[#allocation32_spill] sm:$0xff] }
 0x524   :  { %12907 = vmatpush3.bf16.msra.mxu1 %v14474_v7  ;;  %12918 = vmatprep.mubr.bf16.mxu1 %v3913_v38  ;;  %v14480_v7 = vld [vmem:[%s20302_s30 + $0x100] sm:$0xff]   ;;  %v3914_v38 = vpack.c.bf16 %v3908_v2, %v3907_v58  ;;  %v4056_v58 = vpack.c.bf16 %v16616_v14, %v16612_v42 }
 0x525   :  { %12908 = vmatprep.subr.bf16.mxu1 %v14475_v32  ;;  %v14488_v2 = vld [vmem:[%s20302_s30 + $0x140] sm:$0xff]  }
 0x528   :  { %12909 = vmatpush3.bf16.msra.mxu1 %v14475_v32  ;;  %v3909_v32 = vmul.f32 %v16671_v61, %v20392_v28  ;;  %v14483_v61 = vld [vmem:[%s20302_s30 + $0x118] sm:$0xff]  }
 0x529   :  { %12910 = vmatprep.subr.bf16.mxu1 %v14476_v35 }
 0x52c   :  { %12911 = vmatpush3.bf16.msra.mxu1 %v14476_v35  ;;  %v3915_v35 = vpack.c.bf16 %v3910_v26, %v3909_v32  ;;  %v4057_v26 = vpack.c.bf16 %v16636_v62, %v16614_v15  ;;  %v14490_v32 = vld [vmem:[%s20302_s30 + $0x150] sm:$0xff]  }
 0x52d   :  { %12912 = vmatprep.subr.bf16.mxu1 %v14477_v40 }
 0x530   :  { %12913 = vmatpush3.bf16.msra.mxu1 %v14477_v40  ;;  %v20393_v40 = vpack.c.bf16 %v16744_v54, %v16725_v43  ;;  %v14486_v43 = vld [vmem:[%s20302_s30 + $0x130] sm:$0xff]   ;;  %v14487_v54 = vld [vmem:[%s20302_s30 + $0x138] sm:$0xff]  }
 0x531   :  { %12914 = vmatprep.subr.bf16.mxu1 %v14478_v30 }
 0x534   :  { %12915 = vmatpush3.bf16.msra.mxu1 %v14478_v30  ;;  %v14484_v30 = vld [vmem:[%s20302_s30 + $0x120] sm:$0xff]  }
 0x535   :  { %12916 = vmatprep.subr.bf16.mxu1 %v14479_v31 }
 0x538   :  { %12917 = vmatpush3.bf16.msra.mxu1 %v14479_v31  ;;  %v14485_v31 = vld [vmem:[%s20302_s30 + $0x128] sm:$0xff]  }
 0x539   :  { %12926 = vmatprep.subr.bf16.mxu1 %v14480_v7 }
 0x53b   :  { %12919 = vmatmul.mubr.bf16.vlgmr.msra.gmra.mrb[8].mxu1 %v3914_v38  ;;  %v4058_v38 = vpack.c.bf16 %v16618_v41, %v16620_v13 }
 0x53c   :  { %12922 = vmatprep.mubr.bf16.mxu1 %v3915_v35  ;;  %12927 = vmatpush3.bf16.msra.mxu1 %v14480_v7  ;;  %v14489_v7 = vld [vmem:[%s20302_s30 + $0x148] sm:$0xff]   ;;  %v14492_v35 = vld [vmem:[%s20302_s30 + $0x160] sm:$0xff]  }
 0x53d   :  { %12928 = vmatprep.subr.bf16.mxu1 %v14481_v9 }
 0x540   :  { %12929 = vmatpush3.bf16.msra.mxu1 %v14481_v9  ;;  %v14491_v9 = vld [vmem:[%s20302_s30 + $0x158] sm:$0xff]  }
 0x541   :  { %12930 = vmatprep.subr.bf16.mxu1 %v14482_v16 }
 0x543   :  { %12923 = vmatmul.mubr.bf16.gmra.mrb[12].mxu1 %v20393_v40  ;;  %v14522_v40 = vld [vmem:[%s20395_s5 + $0x50] sm:$0xff]  }
 0x544   :  { %12931 = vmatpush3.bf16.msra.mxu1 %v14482_v16  ;;  %12942 = vmatprep.mubr.bf16.mxu1 %v4055_v53  ;;  %v20394_v16 = vpack.c.bf16 %v16766_v29, %v16760_v4  ;;  %v14521_v53 = vld [vmem:[%s20395_s5 + $0x48] sm:$0xff]   ;;  %v14494_v4 = vld [vmem:[%s20302_s30 + $0x170] sm:$0xff]   ;;  %v14495_v29 = vld [vmem:[%s20302_s30 + $0x178] sm:$0xff]  }
 0x545   :  { %12932 = vmatprep.subr.bf16.mxu1 %v14483_v61 }
 0x548   :  { %12933 = vmatpush3.bf16.msra.mxu1 %v14483_v61  ;;  %v14520_v61 = vld [vmem:[%s20395_s5 + $0x40] sm:$0xff]  }
 0x549   :  { %12934 = vmatprep.subr.bf16.mxu1 %v14484_v30  ;;  %13046 = vmatprep.subr.bf16.mxu0 %v14520_v61 }
 0x54a   :  { %13047 = vmatpush3.bf16.msra.mxu0 %v14520_v61 }
 0x54b   :  { %13048 = vmatprep.subr.bf16.mxu0 %v14521_v53 }
 0x54c   :  { %12935 = vmatpush3.bf16.msra.mxu1 %v14484_v30  ;;  %v14493_v30 = vld [vmem:[%s20302_s30 + $0x168] sm:$0xff]  }
 0x54d   :  { %12936 = vmatprep.subr.bf16.mxu1 %v14485_v31 }
 0x54e   :  { %13049 = vmatpush3.bf16.msra.mxu0 %v14521_v53  ;;  %v14509_v53 = vld [vmem:[%s20302_s30 + $0x1e8] sm:$0xff]  }
 0x54f   :  { %13050 = vmatprep.subr.bf16.mxu0 %v14522_v40 }
 0x550   :  { %12937 = vmatpush3.bf16.msra.mxu1 %v14485_v31  ;;  %v14496_v31 = vld [vmem:[%s20302_s30 + $0x180] sm:$0xff]  }
 0x551   :  { %12938 = vmatprep.subr.bf16.mxu1 %v14486_v43 }
 0x552   :  { %13051 = vmatpush3.bf16.msra.mxu0 %v14522_v40  ;;  %v20405_v40 = vld [vmem:[#allocation54_spill] sm:$0xff] }
 0x554   :  { %12939 = vmatpush3.bf16.msra.mxu1 %v14486_v43  ;;  %v14497_v43 = vld [vmem:[%s20302_s30 + $0x188] sm:$0xff]  }
 0x555   :  { %12940 = vmatprep.subr.bf16.mxu1 %v14487_v54 }
 0x558   :  { %12941 = vmatpush3.bf16.msra.mxu1 %v14487_v54  ;;  %v20396_v54 = vpack.c.bf16 %v16732_v60, %v16770_v50  ;;  %v20398_v60 = vpack.c.bf16 %v16786_v5, %v16782_v1  ;;  %v14500_v50 = vld [vmem:[%s20302_s30 + $0x1a0] sm:$0xff]   ;;  %v14502_v1 = vld [vmem:[%s20302_s30 + $0x1b0] sm:$0xff]   ;;  %v14503_v5 = vld [vmem:[%s20302_s30 + $0x1b8] sm:$0xff]  }
 0x559   :  { %12950 = vmatprep.subr.bf16.mxu1 %v14488_v2 }
 0x55b   :  { %12943 = vmatmul.mubr.bf16.vlgmr.msra.gmra.mrb[8].mxu1 %v4056_v58  ;;  %v20397_v58 = vpack.c.bf16 %v16778_v52, %v16774_v20  ;;  %v20399_v20 = vpack.c.bf16 %v16801_v56, %v16790_v63  ;;  %v14501_v52 = vld [vmem:[%s20302_s30 + $0x1a8] sm:$0xff]   ;;  %v14504_v56 = vld [vmem:[%s20302_s30 + $0x1c0] sm:$0xff]  }
 0x55c   :  { %12946 = vmatprep.mubr.bf16.mxu1 %v4057_v26  ;;  %12951 = vmatpush3.bf16.msra.mxu1 %v14488_v2  ;;  %v14498_v2 = vld [vmem:[%s20302_s30 + $0x190] sm:$0xff]   ;;  %v14505_v63 = vld [vmem:[%s20302_s30 + $0x1c8] sm:$0xff]   ;;  %v20400_v26 = vpack.c.bf16 %v16696_v47, %v16752_v39  ;;  %v14507_v47 = vld [vmem:[%s20302_s30 + $0x1d8] sm:$0xff]   ;;  %v20404_v39 = vpack.c.bf16 %v16829_v11, %v16825_v24 }
 0x55d   :  { %12952 = vmatprep.subr.bf16.mxu1 %v14489_v7  ;;  %v14510_v24 = vld [vmem:[%s20302_s30 + $0x1f0] sm:$0xff]   ;;  %v14511_v11 = vld [vmem:[%s20302_s30 + $0x1f8] sm:$0xff]  }
 0x560   :  { %12953 = vmatpush3.bf16.msra.mxu1 %v14489_v7  ;;  %v14499_v7 = vld [vmem:[%s20302_s30 + $0x198] sm:$0xff]  }
 0x561   :  { %12954 = vmatprep.subr.bf16.mxu1 %v14490_v32 }
 0x563   :  { %12947 = vmatmul.mubr.bf16.gmra.mrb[12].mxu1 %v4058_v38  ;;  %v14506_v38 = vld [vmem:[%s20302_s30 + $0x1d0] sm:$0xff]  }
 0x564   :  { %12955 = vmatpush3.bf16.msra.mxu1 %v14490_v32  ;;  %12966 = vmatprep.mubr.bf16.mxu1 %v20394_v16  ;;  %v20401_v32 = vpack.c.bf16 %v16815_v37, %v16811_v45  ;;  %v20403_v16 = vld [vmem:[#allocation51_spill] sm:$0xff] }
 0x565   :  { %12956 = vmatprep.subr.bf16.mxu1 %v14491_v9  ;;  %v4498_v61 = vmul.f32 %v16612_v42, %v20403_v16  ;;  %v14508_v37 = vld [vmem:[%s20302_s30 + $0x1e0] sm:$0xff]  }
 0x566   :  { %v20431_v42 = vld [vmem:[#allocation10_spill] sm:$0xff] }
 0x568   :  { %12957 = vmatpush3.bf16.msra.mxu1 %v14491_v9  ;;  %v20402_v9 = vld [vmem:[#allocation52_spill] sm:$0xff] }
 0x569   :  { %12958 = vmatprep.subr.bf16.mxu1 %v14492_v35 }
 0x56c   :  { %12959 = vmatpush3.bf16.msra.mxu1 %v14492_v35  ;;  %v4497_v35 = vmul.f32 %v16605_v8, %v20402_v9 }
 0x56d   :  { %12960 = vmatprep.subr.bf16.mxu1 %v14493_v30 }
 0x56e   :  { %v4505_v45 = vpack.c.bf16 %v4498_v61, %v4497_v35  ;;  %v14517_v35 = vld [vmem:[%s20302_s30 + $0x228] sm:$0xff]   ;;  %v14518_v61 = vld [vmem:[%s20302_s30 + $0x230] sm:$0xff]  }
 0x570   :  { %12961 = vmatpush3.bf16.msra.mxu1 %v14493_v30  ;;  %v4500_v30 = vmul.f32 %v16614_v15, %v20405_v40 }
 0x571   :  { %12962 = vmatprep.subr.bf16.mxu1 %v14494_v4 }
 0x574   :  { %12963 = vmatpush3.bf16.msra.mxu1 %v14494_v4  ;;  %v14512_v4 = vld [vmem:[%s20302_s30 + $0x200] sm:$0xff]  }
 0x575   :  { %12964 = vmatprep.subr.bf16.mxu1 %v14495_v29 }
 0x578   :  { %12965 = vmatpush3.bf16.msra.mxu1 %v14495_v29  ;;  %v20406_v29 = vld [vmem:[#allocation59_spill] sm:$0xff] }
 0x579   :  { %12974 = vmatprep.subr.bf16.mxu1 %v14496_v31 }
 0x57b   :  { %12967 = vmatmul.mubr.bf16.vlgmr.msra.gmra.mrb[8].mxu1 %v20396_v54 }
 0x57c   :  { %12970 = vmatprep.mubr.bf16.mxu1 %v20397_v58  ;;  %12975 = vmatpush3.bf16.msra.mxu1 %v14496_v31  ;;  %v4501_v31 = vmul.f32 %v16636_v62, %v20406_v29 }
 0x57d   :  { %12976 = vmatprep.subr.bf16.mxu1 %v14497_v43 }
 0x580   :  { %12977 = vmatpush3.bf16.msra.mxu1 %v14497_v43  ;;  %v20407_v43 = vld [vmem:[#allocation56_spill] sm:$0xff] }
 0x581   :  { %12978 = vmatprep.subr.bf16.mxu1 %v14498_v2  ;;  %v4499_v54 = vmul.f32 %v16616_v14, %v20407_v43 }
 0x583   :  { %12971 = vmatmul.mubr.bf16.gmra.mrb[12].mxu1 %v20398_v60  ;;  %v14513_v60 = vld [vmem:[%s20302_s30 + $0x208] sm:$0xff]  }
 0x584   :  { %12979 = vmatpush3.bf16.msra.mxu1 %v14498_v2  ;;  %12990 = vmatprep.mubr.bf16.mxu1 %v20399_v20  ;;  %v20408_v2 = vld [vmem:[#allocation58_spill] sm:$0xff]  ;;  %v20409_v20 = vld [vmem:[#allocation65_spill] sm:$0xff] }
 0x585   :  { %12980 = vmatprep.subr.bf16.mxu1 %v14499_v7  ;;  %v4502_v58 = vmul.f32 %v16620_v13, %v20408_v2  ;;  %v20429_v13 = vld [vmem:[#allocation46_spill] sm:$0xff] }
 0x588   :  { %12981 = vmatpush3.bf16.msra.mxu1 %v14499_v7  ;;  %v4506_v7 = vpack.c.bf16 %v4500_v30, %v4499_v54 }
 0x589   :  { %12982 = vmatprep.subr.bf16.mxu1 %v14500_v50 }
 0x58c   :  { %12983 = vmatpush3.bf16.msra.mxu1 %v14500_v50  ;;  %v4507_v50 = vpack.c.bf16 %v4502_v58, %v4501_v31 }
 0x58d   :  { %12984 = vmatprep.subr.bf16.mxu1 %v14501_v52 }
 0x590   :  { %12985 = vmatpush3.bf16.msra.mxu1 %v14501_v52  ;;  %v4503_v52 = vmul.f32 %v16618_v41, %v20409_v20  ;;  %v20422_v41 = vld [vmem:[#allocation13_spill] sm:$0xff] }
 0x591   :  { %12986 = vmatprep.subr.bf16.mxu1 %v14502_v1 }
 0x594   :  { %12987 = vmatpush3.bf16.msra.mxu1 %v14502_v1  ;;  %v14514_v1 = vld [vmem:[%s20302_s30 + $0x210] sm:$0xff]  }
 0x595   :  { %12988 = vmatprep.subr.bf16.mxu1 %v14503_v5 }
 0x598   :  { %12989 = vmatpush3.bf16.msra.mxu1 %v14503_v5  ;;  %v20410_v5 = vld [vmem:[#allocation64_spill] sm:$0xff] }
 0x599   :  { %12998 = vmatprep.subr.bf16.mxu1 %v14504_v56 }
 0x59b   :  { %12991 = vmatmul.mubr.bf16.vlgmr.msra.gmra.mrb[8].mxu1 %v20400_v26  ;;  %v14515_v26 = vld [vmem:[%s20302_s30 + $0x218] sm:$0xff]  }
 0x59c   :  { %12994 = vmatprep.mubr.bf16.mxu1 %v20401_v32  ;;  %12999 = vmatpush3.bf16.msra.mxu1 %v14504_v56  ;;  %v4504_v56 = vmul.f32 %v16609_v17, %v20410_v5  ;;  %v20411_v32 = vpack.c.bf16 %v16848_v6, %v16844_v21  ;;  %v14519_v6 = vld [vmem:[%s20302_s30 + $0x238] sm:$0xff]   ;;  %v20412_v21 = vpack.c.bf16 %v16819_v49, %v16838_v33  ;;  %v17175_v49 = vld [vmem:[%s20395_s5] sm:$0xff]  }
 0x59d   :  { %13000 = vmatprep.subr.bf16.mxu1 %v14505_v63  ;;  %v14527_v33 = vld [vmem:[%s20395_s5 + $0x78] sm:$0xff]  }
 0x5a0   :  { %13001 = vmatpush3.bf16.msra.mxu1 %v14505_v63  ;;  %v4508_v63 = vpack.c.bf16 %v4504_v56, %v4503_v52 }
 0x5a1   :  { %13002 = vmatprep.subr.bf16.mxu1 %v14506_v38 }
 0x5a3   :  { %12995 = vmatmul.mubr.bf16.gmra.mrb[12].mxu1 %v20404_v39  ;;  %v14523_v39 = vld [vmem:[%s20395_s5 + $0x58] sm:$0xff]  }
 0x5a4   :  { %13003 = vmatpush3.bf16.msra.mxu1 %v14506_v38  ;;  %13014 = vmatprep.mubr.bf16.mxu1 %v4505_v45  ;;  %v14516_v38 = vld [vmem:[%s20302_s30 + $0x220] sm:$0xff]   ;;  %v20414_v45 = vpack.c.bf16 %v16866_v23, %v16862_v51 }
 0x5a5   :  { %13004 = vmatprep.subr.bf16.mxu1 %v14507_v47  ;;  %13052 = vmatprep.subr.bf16.mxu0 %v14523_v39  ;;  %v4797_v51 = vld [vmem:[%s20415_s3] sm:$0x3] }
 0x5a6   :  { %13053 = vmatpush3.bf16.msra.mxu0 %v14523_v39  ;;  %v4801_v23 = vrot.slane %v4797_v51, %v20321_v34  ;;  %v20435_v34 = vld [vmem:[#allocation45_spill] sm:$0xff] }
 0x5a8   :  { %13005 = vmatpush3.bf16.msra.mxu1 %v14507_v47  ;;  %v20413_v47 = vpack.c.bf16 %v16858_v55, %v16854_v44  ;;  %v14525_v44 = vld [vmem:[%s20395_s5 + $0x68] sm:$0xff]   ;;  %v14526_v55 = vld [vmem:[%s20395_s5 + $0x70] sm:$0xff]  }
 0x5a9   :  { %13006 = vmatprep.subr.bf16.mxu1 %v14508_v37 }
 0x5ac   :  { %13007 = vmatpush3.bf16.msra.mxu1 %v14508_v37  ;;  %v14524_v37 = vld [vmem:[%s20395_s5 + $0x60] sm:$0xff]  }
 0x5ad   :  { %13008 = vmatprep.subr.bf16.mxu1 %v14509_v53  ;;  %13054 = vmatprep.subr.bf16.mxu0 %v14524_v37 }
 0x5ae   :  { %13055 = vmatpush3.bf16.msra.mxu0 %v14524_v37 }
 0x5af   :  { %13056 = vmatprep.subr.bf16.mxu0 %v14525_v44 }
 0x5b0   :  { %13009 = vmatpush3.bf16.msra.mxu1 %v14509_v53  ;;  %v20416_v53 = vld [vmem:[#allocation57_spill] sm:$0xff] }
 0x5b1   :  { %13010 = vmatprep.subr.bf16.mxu1 %v14510_v24 }
 0x5b2   :  { %13057 = vmatpush3.bf16.msra.mxu0 %v14525_v44  ;;  %v20458_v44 = vld [vmem:[#allocation39_spill] sm:$0xff] }
 0x5b3   :  { %13058 = vmatprep.subr.bf16.mxu0 %v14526_v55 }
 0x5b4   :  { %13011 = vmatpush3.bf16.msra.mxu1 %v14510_v24  ;;  %v4813_v24 = vrot.slane %v4797_v51, %v20416_v53 }
 0x5b5   :  { %13012 = vmatprep.subr.bf16.mxu1 %v14511_v11 }
 0x5b6   :  { %13059 = vmatpush3.bf16.msra.mxu0 %v14526_v55 }
 0x5b7   :  { %13060 = vmatprep.subr.bf16.mxu0 %v14527_v33 }
 0x5b8   :  { %13013 = vmatpush3.bf16.msra.mxu1 %v14511_v11 }
 0x5b9   :  { %13022 = vmatprep.subr.bf16.mxu1 %v14512_v4 }
 0x5ba   :  { %13061 = vmatpush3.bf16.msra.mxu0 %v14527_v33 }
 0x5bb   :  { %13015 = vmatmul.mubr.bf16.vlgmr.msra.gmra.mrb[8].mxu1 %v4506_v7  ;;  %13070 = vmatprep.subr.bf16.mxu0 %v17175_v49 }
 0x5bc   :  { %13018 = vmatprep.mubr.bf16.mxu1 %v4507_v50  ;;  %13023 = vmatpush3.bf16.msra.mxu1 %v14512_v4 }
 0x5bd   :  { %13024 = vmatprep.subr.bf16.mxu1 %v14513_v60 }
 0x5c0   :  { %13025 = vmatpush3.bf16.msra.mxu1 %v14513_v60 }
 0x5c1   :  { %13026 = vmatprep.subr.bf16.mxu1 %v14514_v1 }
 0x5c3   :  { %13019 = vmatmul.mubr.bf16.gmra.mrb[12].mxu1 %v4508_v63 }
 0x5c4   :  { %13027 = vmatpush3.bf16.msra.mxu1 %v14514_v1  ;;  %13038 = vmatprep.mubr.bf16.mxu1 %v20411_v32 }
 0x5c5   :  { %13028 = vmatprep.subr.bf16.mxu1 %v14515_v26 }
 0x5c8   :  { %13029 = vmatpush3.bf16.msra.mxu1 %v14515_v26 }
 0x5c9   :  { %13030 = vmatprep.subr.bf16.mxu1 %v14516_v38 }
 0x5cc   :  { %13031 = vmatpush3.bf16.msra.mxu1 %v14516_v38 }
 0x5cd   :  { %13032 = vmatprep.subr.bf16.mxu1 %v14517_v35 }
 0x5d0   :  { %13033 = vmatpush3.bf16.msra.mxu1 %v14517_v35 }
 0x5d1   :  { %13034 = vmatprep.subr.bf16.mxu1 %v14518_v61 }
 0x5d4   :  { %13035 = vmatpush3.bf16.msra.mxu1 %v14518_v61  ;;  %v20417_v61 = vld [vmem:[#allocation5_spill] sm:$0xff] }
 0x5d5   :  { %13036 = vmatprep.subr.bf16.mxu1 %v14519_v6 }
 0x5d8   :  { %13037 = vmatpush3.bf16.msra.mxu1 %v14519_v6 }
 0x5db   :  { %13039 = vmatmul.mubr.bf16.vlgmr.msra.gmra.mrb[8].mxu1 %v20412_v21 }
 0x5dc   :  { %13042 = vmatprep.mubr.bf16.mxu1 %v20413_v47 }
 0x5e3   :  { %13043 = vmatmul.mubr.bf16.gmra.mrb[12].mxu1 %v20414_v45  ;;  %v20418_v45 = vld [vmem:[#allocation6_spill] sm:$0xff] }
 0x6ae   :  { %v13040_v11 = vpop.f32.mrb[8].mxu1 }
 0x6af   :  { %v4804_v30 = vmul.f32 %v13040_v11, %v4801_v23  ;;  %v4758_v4 = vpop.f32.mrb[9].mxu1  ;;  %v20419_v11 = vld [vmem:[#allocation8_spill] sm:$0xff] }
 0x6b0   :  { %v4802_v31 = vmul.f32 %v4801_v23, %v4758_v4  ;;  %v13041_v54 = vpop.f32.mrb[10].mxu1 }
 0x6b1   :  { %v4816_v58 = vadd.f32 %v4813_v24, %v4804_v30  ;;  %v4805_v7 = vmul.f32 %v13041_v54, %v4801_v23  ;;  %v4761_v60 = vpop.f32.mrb[11].mxu1 }
 0x6b2   :  { %v4814_v50 = vadd.f32 %v4813_v24, %v4802_v31  ;;  %v4803_v52 = vmul.f32 %v4801_v23, %v4761_v60 }
 0x6b3   :  { %v17183_v1 = vmax.f32 %v4816_v58, 0.0  ;;  %v4817_v56 = vadd.f32 %v4813_v24, %v4805_v7  ;;  %v20420_v7 = vld [vmem:[#allocation3_spill] sm:$0xff] }
 0x6b4   :  { %v17185_v63 = vmax.f32 %v4814_v50, 0.0  ;;  %v4815_v26 = vadd.f32 %v4813_v24, %v4803_v52 }
 0x6b5   :  { %v4832_v32 = vrot.slane %v17183_v1, 7  ;;  %v20027_v38 = vrot.slane %v17183_v1, 1  ;;  %v17189_v35 = vmax.f32 %v4817_v56, 0.0  ;;  %v17193_v6 = vmul.f32 %v17183_v1, %v20417_v61 }
 0x6b6   :  { %v17195_v21 = vmax.f32 %v4815_v26, 0.0  ;;  %v13044_v47 = vpop.f32.mrb[12].mxu1  ;;  %v4875_v39 = vmul.f32 %v17185_v63, %v20418_v45  ;;  %v4830_v37 = vrot.slane %v17185_v63, 7 }
 0x6b7   :  { %v20026_v55 = vrot.slane %v17189_v35, 1  ;;  %v4808_v33 = vmul.f32 %v13044_v47, %v4801_v23  ;;  %v4774_v51 = vpop.f32.mrb[13].mxu1  ;;  %v4878_v30 = vmul.f32 %v17189_v35, %v20419_v11  ;;  %v4833_v4 = vrot.slane %v17189_v35, 7 }
 0x6b8   :  { %v4831_v31 = vrot.slane %v17195_v21, 7  ;;  %v4806_v54 = vmul.f32 %v4801_v23, %v4774_v51  ;;  %v13045_v58 = vpop.f32.mrb[14].mxu1  ;;  %v4876_v60 = vmul.f32 %v17195_v21, %v20420_v7  ;;  %v5130_v50 = vrot.slane %v17195_v21, 1 }
 0x6b9   :  { %v4820_v52 = vadd.f32 %v4813_v24, %v4808_v33  ;;  %v4809_v56 = vmul.f32 %v13045_v58, %v4801_v23  ;;  %v4777_v26 = vpop.f32.mrb[15].mxu1  ;;  %v4842_v47 = vsel %vm267_vm2, %v4832_v32, %v4833_v4  ;;  %v17217_v11 = vsel %vm664_vm3, %v20027_v38, %v20026_v55 }
 0x6ba   :  { %v4818_v51 = vadd.f32 %v4813_v24, %v4806_v54  ;;  %v4807_v61 = vmul.f32 %v4801_v23, %v4777_v26  ;;  %v4883_v45 = vpack.c.bf16 %v17193_v6, %v4876_v60  ;;  %v17222_v33 = vsel %vm267_vm2, %v4831_v31, %v4832_v32  ;;  %v20423_v54 = vld [vmem:[#allocation14_spill] sm:$0xff]  ;;  %v20425_v32 = vld [vmem:[#allocation16_spill] sm:$0xff] }
 0x6bb   :  { %v17224_v58 = vmax.f32 %v4820_v52, 0.0  ;;  %v4821_v7 = vadd.f32 %v4813_v24, %v4809_v56  ;;  %v17228_v62 = vsel %vm267_vm2, %v4830_v37, %v4831_v31  ;;  %v17232_v15 = vmul.f32 %v17222_v33, %v20422_v41  ;;  %v20426_v56 = vld [vmem:[#allocation9_spill] sm:$0xff]  ;;  %v20428_v41 = vld [vmem:[#allocation4_spill] sm:$0xff] }
 0x6bc   :  { %v17234_v55 = vmax.f32 %v4818_v51, 0.0  ;;  %v4819_v23 = vadd.f32 %v4813_v24, %v4807_v61  ;;  %v17238_v6 = vmul.f32 %v17228_v62, %v20423_v54  ;;  %v17241_v60 = vmul.f32 %v4842_v47, %v20425_v32  ;;  %v20427_v24 = vld [vmem:[#allocation7_spill] sm:$0xff] }
 0x6bd   :  { %v17243_v52 = vmax.f32 %v4821_v7, 0.0  ;;  %v17247_v31 = vmul.f32 %v17224_v58, %v20426_v56  ;;  %v4836_v26 = vrot.slane %v17224_v58, 7  ;;  %v17251_v38 = vmul.f32 %v4842_v47, %v20389_v57 }
 0x6be   :  { %20424 = vst [vmem:[#allocation81_spill] sm:$0xff] %v17238_v6  ;;  %v17253_v51 = vmax.f32 %v4819_v23, 0.0  ;;  %v4879_v61 = vmul.f32 %v17234_v55, %v20427_v24  ;;  %v4834_v7 = vrot.slane %v17234_v55, 7  ;;  %v17264_v14 = vmul.f32 %v4842_v47, %v20429_v13  ;;  %v20432_v13 = vld [vmem:[#allocation15_spill] sm:$0xff] }
 0x6bf   :  { %v4874_v54 = vmul.f32 %v17243_v52, %v20428_v41  ;;  %v4837_v56 = vrot.slane %v17243_v52, 7  ;;  %v5136_v57 = vrot.slane %v17243_v52, 1 }
 0x6c0   :  { %20430 = vst [vmem:[#allocation80_spill] sm:$0xff] %v17264_v14  ;;  %v4884_v23 = vpack.c.bf16 %v4879_v61, %v4878_v30  ;;  %v4880_v17 = vmul.f32 %v17253_v51, %v20431_v42  ;;  %v4841_v24 = vsel %vm267_vm2, %v4833_v4, %v4834_v7  ;;  %v4835_v32 = vrot.slane %v17253_v51, 7  ;;  %v14529_v30 = vld [vmem:[%s20395_s5 + $0x8] sm:$0xff]  }
 0x6c1   :  { %v4882_v8 = vpack.c.bf16 %v4875_v39, %v4874_v54  ;;  %v17274_v41 = vsel %vm267_vm2, %v4836_v26, %v4837_v56  ;;  %v17278_v47 = vsel %vm267_vm2, %v4837_v56, %v4830_v37  ;;  %v17281_v53 = vmul.f32 %v4841_v24, %v20432_v13  ;;  %v20433_v61 = vld [vmem:[#allocation12_spill] sm:$0xff]  ;;  %v20434_v54 = vld [vmem:[#allocation11_spill] sm:$0xff] }
 0x6c2   :  { %v4885_v4 = vpack.c.bf16 %v17247_v31, %v4880_v17  ;;  %v4846_v39 = vmul.f32 %v17274_v41, %v20433_v61  ;;  %v4847_v42 = vmul.f32 %v17278_v47, %v20434_v54  ;;  %v17292_v6 = vmul.f32 %v4841_v24, %v20435_v34 }
 0x6c3   :  { %13062 = vmatprep.mubr.bf16.mxu0 %v4882_v8  ;;  %v17298_v56 = vsel %vm267_vm2, %v4835_v32, %v4836_v26  ;;  %v17302_v17 = vsel %vm267_vm2, %v4834_v7, %v4835_v32  ;;  %v20437_v31 = vrot.slane %v17185_v63, 1  ;;  %v20443_v7 = vrot.slane %v17183_v1, 1 }
 0x6c4   :  { %20436 = vst [vmem:[#allocation60_spill] sm:$0xff] %v17292_v6  ;;  %13063 = vmatmul.mubr.bf16.vlgmr.msra.gmra.mrb[16].mxu0 %v4883_v45  ;;  %v4854_v34 = vpack.c.bf16 %v4847_v42, %v4846_v39  ;;  %v17312_v8 = vmul.f32 %v17302_v17, %v20377_v46  ;;  %v17316_v26 = vmul.f32 %v17298_v56, %v20378_v22  ;;  %v20445_v22 = vrot.slane %v17189_v35, 1  ;;  %v20466_v6 = vld [vmem:[#allocation49_spill] sm:$0xff] }
 0x6c5   :  { %v17308_v13 = vsel %vm664_vm3, %v20437_v31, %v5130_v50  ;;  %v20440_v37 = vmov %v20437_v31  ;;  %13071 = vmatpush3.bf16.msra.mxu0 %v17175_v49  ;;  %13066 = vmatprep.mubr.bf16.mxu0 %v4884_v23  ;;  %v17337_v39 = vsel %vm664_vm3, %v5130_v50, %v20443_v7  ;;  %v14530_v49 = vld [vmem:[%s20395_s5 + $0x10] sm:$0xff]   ;;  %v5134_v50 = vrot.slane %v17253_v51, 1 }
 0x6c6   :  { %20438 = vst [vmem:[#allocation61_spill] sm:$0xff] %v17312_v8  ;;  %20439 = vst [vmem:[#allocation63_spill] sm:$0xff] %v17316_v26  ;;  %v17322_v32 = vsel %vm664_vm3, %v5136_v57, %v20440_v37  ;;  %v17331_v45 = vmul.f32 %v17308_v13, %v20380_v25  ;;  %v5133_v37 = vrot.slane %v17234_v55, 1  ;;  %13072 = vmatprep.subr.bf16.mxu0 %v14529_v30  ;;  %v20444_v25 = vld [vmem:[#allocation21_spill] sm:$0xff]  ;;  %v5135_v23 = vrot.slane %v17224_v58, 1 }
 0x6c7   :  { %v17327_v42 = vmul.f32 %v17322_v32, %v20379_v3  ;;  %v17347_v31 = vmul.f32 %v17337_v39, %v20381_v19  ;;  %v17351_v3 = vmul.f32 %v17217_v11, %v20444_v25  ;;  %v17363_v19 = vmul.f32 %v17278_v47, %v20387_v48  ;;  %v20446_v7 = vld [vmem:[#allocation37_spill] sm:$0xff]  ;;  %v20448_v48 = vld [vmem:[#allocation72_spill] sm:$0xff] }
 0x6c8   :  { %20442 = vst [vmem:[#allocation68_spill] sm:$0xff] %v17331_v45  ;;  %v5140_v46 = vsel %vm664_vm3, %v20445_v22, %v5133_v37  ;;  %v5139_v54 = vsel %vm664_vm3, %v5133_v37, %v5134_v50  ;;  %v20447_v45 = vld [vmem:[#allocation73_spill] sm:$0xff]  ;;  %v17386_v25 = vsel %vm664_vm3, %v5135_v23, %v5136_v57  ;;  %v17405_v57 = vmul.f32 %v17222_v33, %v20390_v59  ;;  %v14532_v59 = vld [vmem:[%s20395_s5 + $0x20] sm:$0xff]  }
 0x6c9   :  { %20441 = vst [vmem:[#allocation66_spill] sm:$0xff] %v17327_v42  ;;  %v17370_v61 = vmul.f32 %v5140_v46, %v20384_v12  ;;  %v17373_v42 = vmul.f32 %v5140_v46, %v20446_v7  ;;  %13073 = vmatpush3.bf16.msra.mxu0 %v14529_v30  ;;  %v17376_v22 = vmul.f32 %v5139_v54, %v20383_v27  ;;  %v14531_v37 = vld [vmem:[%s20395_s5 + $0x18] sm:$0xff]  }
 0x6ca   :  { %v17379_v8 = vmul.f32 %v5140_v46, %v20447_v45  ;;  %v17382_v26 = vmul.f32 %v5139_v54, %v20448_v48  ;;  %13074 = vmatprep.subr.bf16.mxu0 %v14530_v49  ;;  %v17393_v30 = vsel %vm664_vm3, %v5134_v50, %v5135_v23  ;;  %v17397_v46 = vmul.f32 %v17386_v25, %v20386_v18  ;;  %v20450_v18 = vld [vmem:[#allocation34_spill] sm:$0xff] }
 0x6cb   :  { %v17401_v12 = vmul.f32 %v17228_v62, %v20388_v0  ;;  %v17411_v45 = vmul.f32 %v17393_v30, %v20385_v10  ;;  %v17414_v23 = vmul.f32 %v4841_v24, %v20392_v28  ;;  %v17418_v50 = vmul.f32 %v17302_v17, %v20391_v36  ;;  %v20452_v10 = vld [vmem:[#allocation33_spill] sm:$0xff]  ;;  %v20454_v24 = vld [vmem:[#allocation36_spill] sm:$0xff]  ;;  %v20455_v36 = vld [vmem:[#allocation35_spill] sm:$0xff] }
 0x6cc   :  { %13067 = vmatmul.mubr.bf16.gmra.mrb[20].mxu0 %v4885_v4  ;;  %v17426_v27 = vmul.f32 %v17298_v56, %v20450_v18  ;;  %v17430_v48 = vmul.f32 %v17274_v41, %v20452_v10  ;;  %v17451_v0 = vmul.f32 %v17308_v13, %v20454_v24  ;;  %v17455_v10 = vmul.f32 %v17337_v39, %v20455_v36  ;;  %v20456_v7 = vld [vmem:[#allocation38_spill] sm:$0xff]  ;;  %v20457_v18 = vld [vmem:[#allocation40_spill] sm:$0xff]  ;;  %v20460_v24 = vld [vmem:[#allocation41_spill] sm:$0xff] }
 0x6cd   :  { %20449 = vst [vmem:[#allocation62_spill] sm:$0xff] %v17414_v23  ;;  %13075 = vmatpush3.bf16.msra.mxu0 %v14530_v49  ;;  %13086 = vmatprep.mubr.bf16.mxu0 %v4854_v34  ;;  %v17459_v28 = vmul.f32 %v17217_v11, %v20456_v7  ;;  %v17462_v34 = vmul.f32 %v5139_v54, %v20457_v18  ;;  %v20459_v4 = vld [vmem:[#allocation42_spill] sm:$0xff]  ;;  %v20461_v36 = vld [vmem:[#allocation44_spill] sm:$0xff]  ;;  %v20462_v18 = vld [vmem:[#allocation43_spill] sm:$0xff] }
 0x6ce   :  { %20451 = vst [vmem:[#allocation67_spill] sm:$0xff] %v17426_v27  ;;  %20453 = vst [vmem:[#allocation69_spill] sm:$0xff] %v17430_v48  ;;  %13076 = vmatprep.subr.bf16.mxu0 %v14531_v37  ;;  %v17466_v49 = vmul.f32 %v17393_v30, %v20458_v44  ;;  %v17470_v27 = vmul.f32 %v17386_v25, %v20459_v4  ;;  %v17474_v48 = vmul.f32 %v17322_v32, %v20460_v24  ;;  %v20465_v24 = vld [vmem:[#allocation50_spill] sm:$0xff] }
 0x6cf   :  { %v17478_v23 = vmul.f32 %v17228_v62, %v20461_v36  ;;  %v17486_v7 = vmul.f32 %v17222_v33, %v20462_v18  ;;  %v14533_v62 = vld [vmem:[%s20395_s5 + $0x28] sm:$0xff]   ;;  %v17509_v14 = vmul.f32 %v17274_v41, %v20465_v24  ;;  %v17517_v54 = vmul.f32 %v17195_v21, %v20402_v9 }
 0x6d0   :  { %v20463_v36 = vld [vmem:[#allocation48_spill] sm:$0xff]  ;;  %v20464_v33 = vld [vmem:[#allocation47_spill] sm:$0xff]  ;;  %v17527_v4 = vmul.f32 %v17189_v35, %v20407_v43  ;;  %v17531_v41 = vmul.f32 %v17234_v55, %v20405_v40  ;;  %v17537_v9 = vmul.f32 %v17253_v51, %v20406_v29  ;;  %v17545_v43 = vmul.f32 %v17243_v52, %v20409_v20 }
 0x6d1   :  { %13077 = vmatpush3.bf16.msra.mxu0 %v14531_v37  ;;  %v17499_v44 = vmul.f32 %v17302_v17, %v20463_v36  ;;  %v17503_v18 = vmul.f32 %v17298_v56, %v20464_v33  ;;  %v17513_v37 = vmul.f32 %v17278_v47, %v20466_v6  ;;  %v17523_v56 = vmul.f32 %v17183_v1, %v20403_v16  ;;  %v20468_v6 = vld [vmem:[#allocation70_spill] sm:$0xff]  ;;  %v20469_v33 = vld [vmem:[#allocation75_spill] sm:$0xff] }
 0x6d2   :  { %13078 = vmatprep.subr.bf16.mxu0 %v14532_v59  ;;  %v17541_v17 = vmul.f32 %v17224_v58, %v20408_v2  ;;  %v17556_v40 = vmul.f32 %v17185_v63, %v20410_v5  ;;  %v20467_v2 = vld [vmem:[#allocation71_spill] sm:$0xff]  ;;  %v17566_v24 = vmul.f32 %v17217_v11, %v20468_v6  ;;  %v17572_v29 = vmul.f32 %v17393_v30, %v20469_v33  ;;  %v20470_v36 = vld [vmem:[#allocation74_spill] sm:$0xff]  ;;  %v20472_v11 = vld [vmem:[#allocation76_spill] sm:$0xff] }
 0x6d3   :  { %v17560_v16 = vmul.f32 %v17337_v39, %v20467_v2  ;;  %v17578_v39 = vmul.f32 %v17386_v25, %v20470_v36  ;;  %v20471_v2 = vld [vmem:[#allocation77_spill] sm:$0xff]  ;;  %v17586_v6 = vmul.f32 %v17308_v13, %v20472_v11  ;;  %v14536_v13 = vld [vmem:[%s20395_s5 + $0x80] sm:$0xff]   ;;  %v20475_v25 = vpack.c.bf16 %v17281_v53, %v17241_v60 }
 0x6d4   :  { %v17582_v20 = vmul.f32 %v17322_v32, %v20471_v2  ;;  %v14535_v47 = vld [vmem:[%s20395_s5 + $0x38] sm:$0xff]   ;;  %v20476_v32 = vld [vmem:[#allocation63_spill] sm:$0xff] }
 0x6d5   :  { %13079 = vmatpush3.bf16.msra.mxu0 %v14532_v59  ;;  %v14534_v59 = vld [vmem:[%s20395_s5 + $0x30] sm:$0xff]   ;;  %v20480_v53 = vld [vmem:[#allocation66_spill] sm:$0xff] }
 0x6d6   :  { %13080 = vmatprep.subr.bf16.mxu0 %v14533_v62  ;;  %v20473_v30 = vld [vmem:[#allocation81_spill] sm:$0xff] }
 0x6d7   :  { %v20474_v5 = vpack.c.bf16 %v17232_v15, %v20473_v30  ;;  %v20477_v11 = vld [vmem:[#allocation61_spill] sm:$0xff]  ;;  %v14540_v30 = vld [vmem:[%s20395_s5 + $0xa0] sm:$0xff]  }
 0x6d8   :  { %v20478_v15 = vpack.c.bf16 %v20476_v32, %v20477_v11  ;;  %v14542_v11 = vld [vmem:[%s20395_s5 + $0xb0] sm:$0xff]   ;;  %v14543_v32 = vld [vmem:[%s20395_s5 + $0xb8] sm:$0xff]  }
 0x6d9   :  { %13081 = vmatpush3.bf16.msra.mxu0 %v14533_v62  ;;  %v14537_v62 = vld [vmem:[%s20395_s5 + $0x88] sm:$0xff]  }
 0x6da   :  { %13082 = vmatprep.subr.bf16.mxu0 %v14534_v59 }
 0x6dd   :  { %13083 = vmatpush3.bf16.msra.mxu0 %v14534_v59  ;;  %v14538_v59 = vld [vmem:[%s20395_s5 + $0x90] sm:$0xff]  }
 0x6de   :  { %13084 = vmatprep.subr.bf16.mxu0 %v14535_v47 }
 0x6e1   :  { %13085 = vmatpush3.bf16.msra.mxu0 %v14535_v47  ;;  %v14539_v47 = vld [vmem:[%s20395_s5 + $0x98] sm:$0xff]  }
 0x6e2   :  { %13094 = vmatprep.subr.bf16.mxu0 %v14536_v13 }
 0x6e4   :  { %13087 = vmatmul.mubr.bf16.vlgmr.msra.gmra.mrb[16].mxu0 %v20474_v5  ;;  %v20479_v5 = vld [vmem:[#allocation68_spill] sm:$0xff] }
 0x6e5   :  { %13090 = vmatprep.mubr.bf16.mxu0 %v20475_v25  ;;  %13095 = vmatpush3.bf16.msra.mxu0 %v14536_v13  ;;  %v20481_v60 = vpack.c.bf16 %v20479_v5, %v20480_v53  ;;  %v14541_v25 = vld [vmem:[%s20395_s5 + $0xa8] sm:$0xff]   ;;  %v14544_v13 = vld [vmem:[%s20395_s5 + $0xc0] sm:$0xff]   ;;  %v14547_v5 = vld [vmem:[%s20395_s5 + $0xd8] sm:$0xff]   ;;  %v20486_v53 = vpack.c.bf16 %v17251_v38, %v17405_v57  ;;  %v20492_v57 = vpack.c.bf16 %v17195_v21, %v17185_v63 }
 0x6e6   :  { %13096 = vmatprep.subr.bf16.mxu0 %v14537_v62  ;;  %v14559_v63 = vld [vmem:[%s20395_s5 + $0x138] sm:$0xff]   ;;  %v14560_v21 = vld [vmem:[%s20395_s5 + $0x140] sm:$0xff]  }
 0x6e9   :  { %13097 = vmatpush3.bf16.msra.mxu0 %v14537_v62  ;;  %v14545_v62 = vld [vmem:[%s20395_s5 + $0xc8] sm:$0xff]  }
 0x6ea   :  { %13098 = vmatprep.subr.bf16.mxu0 %v14538_v59 }
 0x6ec   :  { %13091 = vmatmul.mubr.bf16.gmra.mrb[20].mxu0 %v20478_v15  ;;  %v14546_v15 = vld [vmem:[%s20395_s5 + $0xd0] sm:$0xff]  }
 0x6ed   :  { %13099 = vmatpush3.bf16.msra.mxu0 %v14538_v59  ;;  %13110 = vmatprep.mubr.bf16.mxu0 %v20481_v60  ;;  %v20482_v59 = vpack.c.bf16 %v17351_v3, %v17347_v31  ;;  %v20484_v3 = vpack.c.bf16 %v17397_v46, %v17411_v45  ;;  %v14548_v31 = vld [vmem:[%s20395_s5 + $0xe0] sm:$0xff]   ;;  %v14550_v45 = vld [vmem:[%s20395_s5 + $0xf0] sm:$0xff]   ;;  %v14553_v46 = vld [vmem:[%s20395_s5 + $0x108] sm:$0xff]  }
 0x6ee   :  { %13100 = vmatprep.subr.bf16.mxu0 %v14539_v47  ;;  %v20487_v60 = vld [vmem:[#allocation62_spill] sm:$0xff] }
 0x6f1   :  { %13101 = vmatpush3.bf16.msra.mxu0 %v14539_v47  ;;  %v20483_v47 = vpack.c.bf16 %v17376_v22, %v17370_v61  ;;  %v20485_v61 = vpack.c.bf16 %v17401_v12, %v17363_v19  ;;  %v14549_v22 = vld [vmem:[%s20395_s5 + $0xe8] sm:$0xff]   ;;  %v14551_v19 = vld [vmem:[%s20395_s5 + $0xf8] sm:$0xff]   ;;  %v14552_v12 = vld [vmem:[%s20395_s5 + $0x100] sm:$0xff]  }
 0x6f2   :  { %13102 = vmatprep.subr.bf16.mxu0 %v14540_v30 }
 0x6f5   :  { %13103 = vmatpush3.bf16.msra.mxu0 %v14540_v30  ;;  %v20488_v30 = vpack.c.bf16 %v17418_v50, %v20487_v60  ;;  %v14556_v50 = vld [vmem:[%s20395_s5 + $0x120] sm:$0xff]   ;;  %v20501_v60 = vld [vmem:[#allocation60_spill] sm:$0xff] }
 0x6f6   :  { %13104 = vmatprep.subr.bf16.mxu0 %v14541_v25 }
 0x6f9   :  { %13105 = vmatpush3.bf16.msra.mxu0 %v14541_v25  ;;  %v14554_v25 = vld [vmem:[%s20395_s5 + $0x110] sm:$0xff]  }
 0x6fa   :  { %13106 = vmatprep.subr.bf16.mxu0 %v14542_v11 }
 0x6fd   :  { %13107 = vmatpush3.bf16.msra.mxu0 %v14542_v11  ;;  %v14555_v11 = vld [vmem:[%s20395_s5 + $0x118] sm:$0xff]  }
 0x6fe   :  { %13108 = vmatprep.subr.bf16.mxu0 %v14543_v32 }
 0x701   :  { %13109 = vmatpush3.bf16.msra.mxu0 %v14543_v32  ;;  %v20489_v32 = vld [vmem:[#allocation69_spill] sm:$0xff] }
 0x702   :  { %13118 = vmatprep.subr.bf16.mxu0 %v14544_v13 }
 0x704   :  { %13111 = vmatmul.mubr.bf16.vlgmr.msra.gmra.mrb[16].mxu0 %v20482_v59  ;;  %v14558_v59 = vld [vmem:[%s20395_s5 + $0x130] sm:$0xff]  }
 0x705   :  { %13114 = vmatprep.mubr.bf16.mxu0 %v20483_v47  ;;  %13119 = vmatpush3.bf16.msra.mxu0 %v14544_v13  ;;  %v20490_v13 = vld [vmem:[#allocation67_spill] sm:$0xff] }
 0x706   :  { %13120 = vmatprep.subr.bf16.mxu0 %v14545_v62  ;;  %v20491_v38 = vpack.c.bf16 %v20489_v32, %v20490_v13  ;;  %v14561_v47 = vld [vmem:[%s20395_s5 + $0x148] sm:$0xff]   ;;  %v14578_v32 = vld [vmem:[%s20395_s5 + $0x1d0] sm:$0xff]   ;;  %v14579_v13 = vld [vmem:[%s20395_s5 + $0x1d8] sm:$0xff]  }
 0x709   :  { %13121 = vmatpush3.bf16.msra.mxu0 %v14545_v62  ;;  %v14557_v62 = vld [vmem:[%s20395_s5 + $0x128] sm:$0xff]  }
 0x70a   :  { %13122 = vmatprep.subr.bf16.mxu0 %v14546_v15 }
 0x70c   :  { %13115 = vmatmul.mubr.bf16.gmra.mrb[20].mxu0 %v20484_v3  ;;  %v14562_v3 = vld [vmem:[%s20395_s5 + $0x150] sm:$0xff]  }
 0x70d   :  { %13123 = vmatpush3.bf16.msra.mxu0 %v14546_v15  ;;  %13134 = vmatprep.mubr.bf16.mxu0 %v20485_v61  ;;  %v20493_v15 = vpack.c.bf16 %v17189_v35, %v17183_v1  ;;  %v14563_v61 = vld [vmem:[%s20395_s5 + $0x158] sm:$0xff]   ;;  %v20495_v1 = vpack.c.bf16 %v17243_v52, %v17224_v58  ;;  %v14564_v35 = vld [vmem:[%s20395_s5 + $0x160] sm:$0xff]   ;;  %v14594_v58 = vld [vmem:[%s19827_s11 + $0x50] sm:$0xff]  }
 0x70e   :  { %13124 = vmatprep.subr.bf16.mxu0 %v14547_v5  ;;  %v14565_v52 = vld [vmem:[%s20395_s5 + $0x168] sm:$0xff]  }
 0x711   :  { %13125 = vmatpush3.bf16.msra.mxu0 %v14547_v5  ;;  %v20494_v5 = vpack.c.bf16 %v17253_v51, %v17234_v55  ;;  %v20496_v55 = vpack.c.bf16 %v17455_v10, %v17451_v0  ;;  %v14592_v51 = vld [vmem:[%s19827_s11 + $0x40] sm:$0xff]   ;;  %v14566_v10 = vld [vmem:[%s20395_s5 + $0x170] sm:$0xff]   ;;  %v14567_v0 = vld [vmem:[%s20395_s5 + $0x178] sm:$0xff]  }
 0x712   :  { %13126 = vmatprep.subr.bf16.mxu0 %v14548_v31  ;;  %13262 = vmatprep.subr.bf16.mxu1 %v14592_v51 }
 0x713   :  { %13263 = vmatpush3.bf16.msra.mxu1 %v14592_v51 }
 0x715   :  { %13127 = vmatpush3.bf16.msra.mxu0 %v14548_v31  ;;  %v14593_v31 = vld [vmem:[%s19827_s11 + $0x48] sm:$0xff]  }
 0x716   :  { %13128 = vmatprep.subr.bf16.mxu0 %v14549_v22  ;;  %13264 = vmatprep.subr.bf16.mxu1 %v14593_v31 }
 0x717   :  { %13265 = vmatpush3.bf16.msra.mxu1 %v14593_v31 }
 0x718   :  { %13266 = vmatprep.subr.bf16.mxu1 %v14594_v58 }
 0x719   :  { %13129 = vmatpush3.bf16.msra.mxu0 %v14549_v22  ;;  %v14568_v22 = vld [vmem:[%s20395_s5 + $0x180] sm:$0xff]  }
 0x71a   :  { %13130 = vmatprep.subr.bf16.mxu0 %v14550_v45 }
 0x71b   :  { %13267 = vmatpush3.bf16.msra.mxu1 %v14594_v58 }
 0x71d   :  { %13131 = vmatpush3.bf16.msra.mxu0 %v14550_v45  ;;  %v14569_v45 = vld [vmem:[%s20395_s5 + $0x188] sm:$0xff]  }
 0x71e   :  { %13132 = vmatprep.subr.bf16.mxu0 %v14551_v19 }
 0x721   :  { %13133 = vmatpush3.bf16.msra.mxu0 %v14551_v19  ;;  %v20497_v19 = vpack.c.bf16 %v17373_v42, %v17459_v28  ;;  %v20499_v28 = vpack.c.bf16 %v17474_v48, %v17470_v27  ;;  %v14572_v42 = vld [vmem:[%s20395_s5 + $0x1a0] sm:$0xff]   ;;  %v14574_v27 = vld [vmem:[%s20395_s5 + $0x1b0] sm:$0xff]   ;;  %v14575_v48 = vld [vmem:[%s20395_s5 + $0x1b8] sm:$0xff]  }
 0x722   :  { %13142 = vmatprep.subr.bf16.mxu0 %v14552_v12 }
 0x724   :  { %13135 = vmatmul.mubr.bf16.vlgmr.msra.gmra.mrb[16].mxu0 %v20486_v53  ;;  %v14571_v53 = vld [vmem:[%s20395_s5 + $0x198] sm:$0xff]  }
 0x725   :  { %13138 = vmatprep.mubr.bf16.mxu0 %v20488_v30  ;;  %13143 = vmatpush3.bf16.msra.mxu0 %v14552_v12  ;;  %v14570_v12 = vld [vmem:[%s20395_s5 + $0x190] sm:$0xff]  }
 0x726   :  { %13144 = vmatprep.subr.bf16.mxu0 %v14553_v46  ;;  %v20502_v30 = vld [vmem:[#allocation80_spill] sm:$0xff] }
 0x729   :  { %13145 = vmatpush3.bf16.msra.mxu0 %v14553_v46  ;;  %v20498_v46 = vpack.c.bf16 %v17466_v49, %v17462_v34  ;;  %v20500_v34 = vpack.c.bf16 %v17486_v7, %v17478_v23  ;;  %v14573_v49 = vld [vmem:[%s20395_s5 + $0x1a8] sm:$0xff]   ;;  %v14576_v7 = vld [vmem:[%s20395_s5 + $0x1c0] sm:$0xff]  }
 0x72a   :  { %13146 = vmatprep.subr.bf16.mxu0 %v14554_v25  ;;  %v14577_v23 = vld [vmem:[%s20395_s5 + $0x1c8] sm:$0xff]  }
 0x72c   :  { %13139 = vmatmul.mubr.bf16.gmra.mrb[20].mxu0 %v20491_v38  ;;  %v20505_v38 = vpack.c.bf16 %v17513_v37, %v17509_v14  ;;  %v14582_v14 = vld [vmem:[%s20395_s5 + $0x1f0] sm:$0xff]   ;;  %v14584_v37 = vld [vmem:[%s20395_s5 + $0x200] sm:$0xff]  }
 0x72d   :  { %13147 = vmatpush3.bf16.msra.mxu0 %v14554_v25  ;;  %13158 = vmatprep.mubr.bf16.mxu0 %v20492_v57  ;;  %v20503_v25 = vpack.c.bf16 %v20501_v60, %v20502_v30  ;;  %v14581_v57 = vld [vmem:[%s20395_s5 + $0x1e8] sm:$0xff]   ;;  %v20518_v30 = vld [vmem:[#allocation82_spill] sm:$0xff] }
 0x72e   :  { %13148 = vmatprep.subr.bf16.mxu0 %v14555_v11 }
 0x731   :  { %13149 = vmatpush3.bf16.msra.mxu0 %v14555_v11  ;;  %v20504_v11 = vpack.c.bf16 %v17503_v18, %v17499_v44  ;;  %v20506_v18 = vpack.c.bf16 %v17523_v56, %v17517_v54  ;;  %v14580_v44 = vld [vmem:[%s20395_s5 + $0x1e0] sm:$0xff]   ;;  %v14583_v54 = vld [vmem:[%s20395_s5 + $0x1f8] sm:$0xff]   ;;  %v14585_v56 = vld [vmem:[%s20395_s5 + $0x208] sm:$0xff]  }
 0x732   :  { %13150 = vmatprep.subr.bf16.mxu0 %v14556_v50 }
 0x735   :  { %13151 = vmatpush3.bf16.msra.mxu0 %v14556_v50  ;;  %v20507_v50 = vpack.c.bf16 %v17531_v41, %v17527_v4  ;;  %v20509_v4 = vpack.c.bf16 %v17556_v40, %v17545_v43  ;;  %v14589_v41 = vld [vmem:[%s20395_s5 + $0x228] sm:$0xff]   ;;  %v14590_v40 = vld [vmem:[%s20395_s5 + $0x230] sm:$0xff]   ;;  %v20511_v43 = vpack.c.bf16 %v17382_v26, %v17379_v8  ;;  %v17885_v8 = vld [vmem:[%s19827_s11] sm:$0xff]  }
 0x736   :  { %13152 = vmatprep.subr.bf16.mxu0 %v14557_v62  ;;  %v6187_v26 = vld [vmem:[%s19828_s10] sm:$0x3] }
 0x739   :  { %13153 = vmatpush3.bf16.msra.mxu0 %v14557_v62  ;;  %v20508_v62 = vpack.c.bf16 %v17541_v17, %v17537_v9  ;;  %v20510_v9 = vpack.c.bf16 %v17566_v24, %v17560_v16  ;;  %v14588_v17 = vld [vmem:[%s20395_s5 + $0x220] sm:$0xff]   ;;  %v14591_v16 = vld [vmem:[%s20395_s5 + $0x238] sm:$0xff]   ;;  %v20512_v24 = vpack.c.bf16 %v17578_v39, %v17572_v29  ;;  %v14597_v29 = vld [vmem:[%s19827_s11 + $0x68] sm:$0xff]  }
 0x73a   :  { %13154 = vmatprep.subr.bf16.mxu0 %v14558_v59  ;;  %v20514_v39 = vld [vmem:[#allocation55_spill] sm:$0xff] }
 0x73d   :  { %13155 = vmatpush3.bf16.msra.mxu0 %v14558_v59  ;;  %v14586_v59 = vld [vmem:[%s20395_s5 + $0x210] sm:$0xff]  }
 0x73e   :  { %13156 = vmatprep.subr.bf16.mxu0 %v14559_v63 }
 0x741   :  { %13157 = vmatpush3.bf16.msra.mxu0 %v14559_v63  ;;  %v14587_v63 = vld [vmem:[%s20395_s5 + $0x218] sm:$0xff]  }
 0x742   :  { %13166 = vmatprep.subr.bf16.mxu0 %v14560_v21 }
 0x744   :  { %13159 = vmatmul.mubr.bf16.vlgmr.msra.gmra.mrb[16].mxu0 %v20493_v15  ;;  %v14596_v15 = vld [vmem:[%s19827_s11 + $0x60] sm:$0xff]  }
 0x745   :  { %13162 = vmatprep.mubr.bf16.mxu0 %v20494_v5  ;;  %13167 = vmatpush3.bf16.msra.mxu0 %v14560_v21  ;;  %v20513_v21 = vpack.c.bf16 %v17586_v6, %v17582_v20  ;;  %v14598_v20 = vld [vmem:[%s19827_s11 + $0x70] sm:$0xff]   ;;  %v14599_v6 = vld [vmem:[%s19827_s11 + $0x78] sm:$0xff]   ;;  %v6191_v5 = vrot.slane %v6187_v26, %v20514_v39 }
 0x746   :  { %13168 = vmatprep.subr.bf16.mxu0 %v14561_v47 }
 0x749   :  { %13169 = vmatpush3.bf16.msra.mxu0 %v14561_v47  ;;  %v14595_v47 = vld [vmem:[%s19827_s11 + $0x58] sm:$0xff]  }
 0x74a   :  { %13170 = vmatprep.subr.bf16.mxu0 %v14562_v3  ;;  %13268 = vmatprep.subr.bf16.mxu1 %v14595_v47 }
 0x74b   :  { %13269 = vmatpush3.bf16.msra.mxu1 %v14595_v47 }
 0x74c   :  { %13163 = vmatmul.mubr.bf16.gmra.mrb[20].mxu0 %v20495_v1  ;;  %13270 = vmatprep.subr.bf16.mxu1 %v14596_v15 }
 0x74d   :  { %13171 = vmatpush3.bf16.msra.mxu0 %v14562_v3  ;;  %13182 = vmatprep.mubr.bf16.mxu0 %v20496_v55 }
 0x74e   :  { %13172 = vmatprep.subr.bf16.mxu0 %v14563_v61 }
 0x74f   :  { %13271 = vmatpush3.bf16.msra.mxu1 %v14596_v15  ;;  %v20533_v15 = vld [vmem:[#allocation6_spill] sm:$0xff] }
 0x750   :  { %13272 = vmatprep.subr.bf16.mxu1 %v14597_v29 }
 0x751   :  { %13173 = vmatpush3.bf16.msra.mxu0 %v14563_v61 }
 0x752   :  { %13174 = vmatprep.subr.bf16.mxu0 %v14564_v35 }
 0x753   :  { %13273 = vmatpush3.bf16.msra.mxu1 %v14597_v29 }
 0x754   :  { %13274 = vmatprep.subr.bf16.mxu1 %v14598_v20 }
 0x755   :  { %13175 = vmatpush3.bf16.msra.mxu0 %v14564_v35  ;;  %v20515_v35 = vld [vmem:[#allocation57_spill] sm:$0xff] }
 0x756   :  { %13176 = vmatprep.subr.bf16.mxu0 %v14565_v52  ;;  %v6203_v55 = vrot.slane %v6187_v26, %v20515_v35  ;;  %v20535_v26 = vld [vmem:[#allocation5_spill] sm:$0xff] }
 0x757   :  { %13275 = vmatpush3.bf16.msra.mxu1 %v14598_v20  ;;  %v20534_v20 = vld [vmem:[#allocation7_spill] sm:$0xff]  ;;  %v20571_v35 = vld [vmem:[#allocation17_spill] sm:$0xff] }
 0x758   :  { %13276 = vmatprep.subr.bf16.mxu1 %v14599_v6 }
 0x759   :  { %13177 = vmatpush3.bf16.msra.mxu0 %v14565_v52 }
 0x75a   :  { %13178 = vmatprep.subr.bf16.mxu0 %v14566_v10 }
 0x75b   :  { %13277 = vmatpush3.bf16.msra.mxu1 %v14599_v6 }
 0x75c   :  { %13286 = vmatprep.subr.bf16.mxu1 %v17885_v8 }
 0x75d   :  { %13179 = vmatpush3.bf16.msra.mxu0 %v14566_v10 }
 0x75e   :  { %13180 = vmatprep.subr.bf16.mxu0 %v14567_v0 }
 0x761   :  { %13181 = vmatpush3.bf16.msra.mxu0 %v14567_v0 }
 0x762   :  { %13190 = vmatprep.subr.bf16.mxu0 %v14568_v22 }
 0x764   :  { %13183 = vmatmul.mubr.bf16.vlgmr.msra.gmra.mrb[16].mxu0 %v20497_v19 }
 0x765   :  { %13186 = vmatprep.mubr.bf16.mxu0 %v20498_v46  ;;  %13191 = vmatpush3.bf16.msra.mxu0 %v14568_v22 }
 0x766   :  { %13192 = vmatprep.subr.bf16.mxu0 %v14569_v45 }
 0x769   :  { %13193 = vmatpush3.bf16.msra.mxu0 %v14569_v45 }
 0x76a   :  { %13194 = vmatprep.subr.bf16.mxu0 %v14570_v12 }
 0x76c   :  { %13187 = vmatmul.mubr.bf16.gmra.mrb[20].mxu0 %v20499_v28  ;;  %v20516_v28 = vld [vmem:[#allocation78_spill] sm:$0xff] }
 0x76d   :  { %13195 = vmatpush3.bf16.msra.mxu0 %v14570_v12  ;;  %13206 = vmatprep.mubr.bf16.mxu0 %v20500_v34 }
 0x76e   :  { %13196 = vmatprep.subr.bf16.mxu0 %v14571_v53 }
 0x771   :  { %13197 = vmatpush3.bf16.msra.mxu0 %v14571_v53 }
 0x772   :  { %13198 = vmatprep.subr.bf16.mxu0 %v14572_v42 }
 0x775   :  { %13199 = vmatpush3.bf16.msra.mxu0 %v14572_v42 }
 0x776   :  { %13200 = vmatprep.subr.bf16.mxu0 %v14573_v49 }
 0x779   :  { %13201 = vmatpush3.bf16.msra.mxu0 %v14573_v49 }
 0x77a   :  { %13202 = vmatprep.subr.bf16.mxu0 %v14574_v27 }
 0x77d   :  { %13203 = vmatpush3.bf16.msra.mxu0 %v14574_v27  ;;  %v20517_v27 = vld [vmem:[#allocation79_spill] sm:$0xff] }
 0x77e   :  { %13204 = vmatprep.subr.bf16.mxu0 %v14575_v48 }
 0x781   :  { %13205 = vmatpush3.bf16.msra.mxu0 %v14575_v48 }
 0x782   :  { %13214 = vmatprep.subr.bf16.mxu0 %v14576_v7 }
 0x784   :  { %13207 = vmatmul.mubr.bf16.vlgmr.msra.gmra.mrb[16].mxu0 %v20503_v25 }
 0x785   :  { %13210 = vmatprep.mubr.bf16.mxu0 %v20504_v11  ;;  %13215 = vmatpush3.bf16.msra.mxu0 %v14576_v7 }
 0x786   :  { %13216 = vmatprep.subr.bf16.mxu0 %v14577_v23 }
 0x789   :  { %13217 = vmatpush3.bf16.msra.mxu0 %v14577_v23 }
 0x78a   :  { %13218 = vmatprep.subr.bf16.mxu0 %v14578_v32 }
 0x78c   :  { %13211 = vmatmul.mubr.bf16.gmra.mrb[20].mxu0 %v20505_v38 }
 0x78d   :  { %13219 = vmatpush3.bf16.msra.mxu0 %v14578_v32  ;;  %13230 = vmatprep.mubr.bf16.mxu0 %v20506_v18 }
 0x78e   :  { %13220 = vmatprep.subr.bf16.mxu0 %v14579_v13 }
 0x791   :  { %13221 = vmatpush3.bf16.msra.mxu0 %v14579_v13  ;;  %v20519_v13 = vld [vmem:[#allocation83_spill] sm:$0xff] }
 0x792   :  { %13222 = vmatprep.subr.bf16.mxu0 %v14580_v44 }
 0x795   :  { %13223 = vmatpush3.bf16.msra.mxu0 %v14580_v44 }
 0x796   :  { %13224 = vmatprep.subr.bf16.mxu0 %v14581_v57 }
 0x799   :  { %13225 = vmatpush3.bf16.msra.mxu0 %v14581_v57  ;;  %v20521_v57 = vld [vmem:[#allocation87_spill] sm:$0xff] }
 0x79a   :  { %13226 = vmatprep.subr.bf16.mxu0 %v14582_v14 }
 0x79d   :  { %13227 = vmatpush3.bf16.msra.mxu0 %v14582_v14 }
 0x79e   :  { %13228 = vmatprep.subr.bf16.mxu0 %v14583_v54 }
 0x7a1   :  { %13229 = vmatpush3.bf16.msra.mxu0 %v14583_v54  ;;  %v20522_v54 = vld [vmem:[#allocation84_spill] sm:$0xff] }
 0x7a2   :  { %13238 = vmatprep.subr.bf16.mxu0 %v14584_v37 }
 0x7a4   :  { %13231 = vmatmul.mubr.bf16.vlgmr.msra.gmra.mrb[16].mxu0 %v20507_v50 }
 0x7a5   :  { %13234 = vmatprep.mubr.bf16.mxu0 %v20508_v62  ;;  %13239 = vmatpush3.bf16.msra.mxu0 %v14584_v37  ;;  %v20524_v62 = vld [vmem:[#allocation85_spill] sm:$0xff] }
 0x7a6   :  { %13240 = vmatprep.subr.bf16.mxu0 %v14585_v56 }
 0x7a9   :  { %13241 = vmatpush3.bf16.msra.mxu0 %v14585_v56 }
 0x7aa   :  { %13242 = vmatprep.subr.bf16.mxu0 %v14586_v59 }
 0x7ac   :  { %13235 = vmatmul.mubr.bf16.gmra.mrb[20].mxu0 %v20509_v4 }
 0x7ad   :  { %13243 = vmatpush3.bf16.msra.mxu0 %v14586_v59  ;;  %13254 = vmatprep.mubr.bf16.mxu0 %v20510_v9 }
 0x7ae   :  { %13244 = vmatprep.subr.bf16.mxu0 %v14587_v63 }
 0x7b1   :  { %13245 = vmatpush3.bf16.msra.mxu0 %v14587_v63 }
 0x7b2   :  { %13246 = vmatprep.subr.bf16.mxu0 %v14588_v17 }
 0x7b5   :  { %13247 = vmatpush3.bf16.msra.mxu0 %v14588_v17 }
 0x7b6   :  { %13248 = vmatprep.subr.bf16.mxu0 %v14589_v41 }
 0x7b9   :  { %13249 = vmatpush3.bf16.msra.mxu0 %v14589_v41 }
 0x7ba   :  { %13250 = vmatprep.subr.bf16.mxu0 %v14590_v40 }
 0x7bd   :  { %13251 = vmatpush3.bf16.msra.mxu0 %v14590_v40  ;;  %v20530_v40 = vld [vmem:[#allocation86_spill] sm:$0xff] }
 0x7be   :  { %13252 = vmatprep.subr.bf16.mxu0 %v14591_v16 }
 0x7c1   :  { %13253 = vmatpush3.bf16.msra.mxu0 %v14591_v16 }
 0x7c4   :  { %13255 = vmatmul.mubr.bf16.vlgmr.msra.gmra.mrb[16].mxu0 %v20511_v43  ;;  %v20531_v43 = vld [vmem:[#allocation3_spill] sm:$0xff] }
 0x7c5   :  { %13258 = vmatprep.mubr.bf16.mxu0 %v20512_v24 }
 0x7cc   :  { %13259 = vmatmul.mubr.bf16.gmra.mrb[20].mxu0 %v20513_v21  ;;  %v20532_v21 = vld [vmem:[#allocation4_spill] sm:$0xff] }
 0x897   :  { %v13256_v3 = vpop.f32.mrb[16].mxu0 }
 0x898   :  { %v6148_v61 = vpop.f32.mrb[17].mxu0  ;;  %v6194_v58 = vmul.f32 %v13256_v3, %v6191_v5 }
 0x899   :  { %v13257_v1 = vpop.f32.mrb[18].mxu0  ;;  %v6192_v51 = vmul.f32 %v6191_v5, %v6148_v61 }
 0x89a   :  { %v6151_v31 = vpop.f32.mrb[19].mxu0  ;;  %v6195_v10 = vmul.f32 %v13257_v1, %v6191_v5  ;;  %v6206_v45 = vadd.f32 %v6203_v55, %v6194_v58  ;;  %v20536_v1 = vld [vmem:[#allocation8_spill] sm:$0xff] }
 0x89b   :  { %v6193_v52 = vmul.f32 %v6191_v5, %v6151_v31  ;;  %v6204_v22 = vadd.f32 %v6203_v55, %v6192_v51  ;;  %v14601_v58 = vld [vmem:[%s19827_s11 + $0x8] sm:$0xff]  }
 0x89c   :  { %v6207_v12 = vadd.f32 %v6203_v55, %v6195_v10  ;;  %v6214_v25 = vadd.f32 %v6206_v45, %v20518_v30 }
 0x89d   :  { %v6205_v0 = vadd.f32 %v6203_v55, %v6193_v52  ;;  %v6212_v48 = vadd.f32 %v6204_v22, %v20517_v27 }
 0x89e   :  { %v6215_v38 = vadd.f32 %v6207_v12, %v20519_v13  ;;  %v17904_v63 = vmax.f32 %v6214_v25, 0.0 }
 0x89f   :  { %v13260_v19 = vpop.f32.mrb[20].mxu0  ;;  %v6213_v42 = vadd.f32 %v6205_v0, %v20516_v28  ;;  %v17901_v50 = vmax.f32 %v6212_v48, 0.0  ;;  %v20539_v28 = vld [vmem:[#allocation10_spill] sm:$0xff]  ;;  %v20540_v48 = vld [vmem:[#allocation9_spill] sm:$0xff] }
 0x8a0   :  { %v6198_v46 = vmul.f32 %v13260_v19, %v6191_v5  ;;  %v6164_v53 = vpop.f32.mrb[21].mxu0  ;;  %20525 = vst [vmem:[#allocation61_spill] sm:$0xff] %v17904_v63  ;;  %v17908_v9 = vmax.f32 %v6215_v38, 0.0 }
 0x8a1   :  { %v6196_v34 = vmul.f32 %v6191_v5, %v6164_v53  ;;  %v13261_v49 = vpop.f32.mrb[22].mxu0  ;;  %v17897_v44 = vmax.f32 %v6213_v42, 0.0  ;;  %20523 = vst [vmem:[#allocation63_spill] sm:$0xff] %v17901_v50  ;;  %v6273_v29 = vmul.f32 %v17901_v50, %v20533_v15  ;;  %v6228_v52 = vrot.slane %v17901_v50, 7  ;;  %v14602_v53 = vld [vmem:[%s19827_s11 + $0x10] sm:$0xff]  }
 0x8a2   :  { %v6210_v7 = vadd.f32 %v6203_v55, %v6198_v46  ;;  %v6199_v23 = vmul.f32 %v13261_v49, %v6191_v5  ;;  %v6167_v60 = vpop.f32.mrb[23].mxu0  ;;  %20527 = vst [vmem:[#allocation66_spill] sm:$0xff] %v17908_v9  ;;  %v6231_v46 = vrot.slane %v17908_v9, 7  ;;  %v6230_v49 = vrot.slane %v17904_v63, 7 }
 0x8a3   :  { %v6208_v11 = vadd.f32 %v6203_v55, %v6196_v34  ;;  %v6197_v32 = vmul.f32 %v6191_v5, %v6167_v60  ;;  %20520 = vst [vmem:[#allocation81_spill] sm:$0xff] %v17897_v44  ;;  %v6274_v24 = vmul.f32 %v17897_v44, %v20531_v43  ;;  %v6275_v5 = vmul.f32 %v17904_v63, %v20535_v26  ;;  %v20542_v60 = vld [vmem:[#allocation11_spill] sm:$0xff] }
 0x8a4   :  { %v6211_v18 = vadd.f32 %v6203_v55, %v6199_v23  ;;  %v6218_v14 = vadd.f32 %v6210_v7, %v20521_v57  ;;  %v6229_v34 = vrot.slane %v17897_v44, 7  ;;  %v20541_v7 = vld [vmem:[#allocation12_spill] sm:$0xff]  ;;  %v6530_v38 = vrot.slane %v17908_v9, 1  ;;  %v14608_v43 = vld [vmem:[%s19827_s11 + $0x80] sm:$0xff]  }
 0x8a5   :  { %v6216_v37 = vadd.f32 %v6208_v11, %v20522_v54  ;;  %v6209_v56 = vadd.f32 %v6203_v55, %v6197_v32  ;;  %v6276_v55 = vmul.f32 %v17908_v9, %v20536_v1  ;;  %v6281_v31 = vpack.c.bf16 %v6275_v5, %v6274_v24  ;;  %v14603_v54 = vld [vmem:[%s19827_s11 + $0x18] sm:$0xff]   ;;  %v20568_v1 = vld [vmem:[#allocation15_spill] sm:$0xff] }
 0x8a6   :  { %v6219_v59 = vadd.f32 %v6211_v18, %v20524_v62  ;;  %v17912_v41 = vmax.f32 %v6218_v14, 0.0  ;;  %v6528_v32 = vrot.slane %v17897_v44, 1  ;;  %v17970_v18 = vsel %vm267_vm2, %v6230_v49, %v6231_v46 }
 0x8a7   :  { %v17906_v4 = vmax.f32 %v6216_v37, 0.0  ;;  %v6217_v16 = vadd.f32 %v6209_v56, %v20530_v40  ;;  %v6527_v56 = vrot.slane %v17901_v50, 1  ;;  %v6529_v62 = vrot.slane %v17904_v63, 1 }
 0x8a8   :  { %v17910_v17 = vmax.f32 %v6219_v59, 0.0  ;;  %20529 = vst [vmem:[#allocation69_spill] sm:$0xff] %v17912_v41  ;;  %v6234_v10 = vrot.slane %v17912_v41, 7  ;;  %v17984_v40 = vsel %vm267_vm2, %v6228_v52, %v6229_v34 }
 0x8a9   :  { %20526 = vst [vmem:[#allocation68_spill] sm:$0xff] %v17906_v4  ;;  %v6277_v6 = vmul.f32 %v17906_v4, %v20534_v20  ;;  %v17928_v51 = vmax.f32 %v6217_v16, 0.0  ;;  %v6232_v12 = vrot.slane %v17906_v4, 7  ;;  %v6531_v25 = vrot.slane %v17906_v4, 1  ;;  %v20543_v16 = vld [vmem:[#allocation45_spill] sm:$0xff] }
 0x8aa   :  { %20528 = vst [vmem:[#allocation62_spill] sm:$0xff] %v17910_v17  ;;  %v6272_v47 = vmul.f32 %v17910_v17, %v20532_v21  ;;  %v6235_v3 = vrot.slane %v17910_v17, 7  ;;  %v6534_v13 = vrot.slane %v17910_v17, 1  ;;  %v18004_v5 = vsel %vm664_vm3, %v6529_v62, %v6530_v38 }
 0x8ab   :  { %20537 = vst [vmem:[#allocation67_spill] sm:$0xff] %v17928_v51  ;;  %v6282_v0 = vpack.c.bf16 %v6277_v6, %v6276_v55  ;;  %v6278_v42 = vmul.f32 %v17928_v51, %v20539_v28  ;;  %v6233_v27 = vrot.slane %v17928_v51, 7  ;;  %v17963_v11 = vsel %vm267_vm2, %v6231_v46, %v6232_v12  ;;  %v20560_v28 = vld [vmem:[#allocation50_spill] sm:$0xff] }
 0x8ac   :  { %v6280_v61 = vpack.c.bf16 %v6273_v29, %v6272_v47  ;;  %v17937_v45 = vsel %vm267_vm2, %v6234_v10, %v6235_v3  ;;  %v17941_v19 = vsel %vm267_vm2, %v6235_v3, %v6228_v52  ;;  %v6532_v57 = vrot.slane %v17928_v51, 1  ;;  %v14604_v52 = vld [vmem:[%s19827_s11 + $0x20] sm:$0xff]  }
 0x8ad   :  { %v6244_v23 = vmul.f32 %v17937_v45, %v20541_v7  ;;  %v6245_v30 = vmul.f32 %v17941_v19, %v20542_v60  ;;  %v17978_v37 = vsel %vm267_vm2, %v6233_v27, %v6234_v10  ;;  %v17988_v24 = vmul.f32 %v17963_v11, %v20543_v16  ;;  %v20545_v10 = vld [vmem:[#allocation37_spill] sm:$0xff]  ;;  %v20557_v16 = vld [vmem:[#allocation48_spill] sm:$0xff] }
 0x8ae   :  { %13278 = vmatprep.mubr.bf16.mxu1 %v6280_v61  ;;  %v17992_v47 = vsel %vm664_vm3, %v6530_v38, %v6531_v25  ;;  %v17996_v29 = vsel %vm664_vm3, %v6527_v56, %v6528_v32  ;;  %v18000_v6 = vsel %vm664_vm3, %v6534_v13, %v6527_v56  ;;  %v6533_v3 = vrot.slane %v17912_v41, 1  ;;  %v20559_v7 = vld [vmem:[#allocation72_spill] sm:$0xff] }
 0x8af   :  { %13279 = vmatmul.mubr.bf16.vlgmr.msra.gmra.mrb[16].mxu1 %v6281_v31  ;;  %v6252_v59 = vpack.c.bf16 %v6245_v30, %v6244_v23  ;;  %v18009_v61 = vsel %vm664_vm3, %v6528_v32, %v6529_v62  ;;  %v18013_v55 = vsel %vm664_vm3, %v6531_v25, %v6532_v57  ;;  %v20544_v31 = vld [vmem:[#allocation34_spill] sm:$0xff]  ;;  %v18040_v23 = vsel %vm267_vm2, %v6229_v34, %v6230_v49  ;;  %v20551_v62 = vld [vmem:[#allocation40_spill] sm:$0xff] }
 0x8b0   :  { %13287 = vmatpush3.bf16.msra.mxu1 %v17885_v8  ;;  %13282 = vmatprep.mubr.bf16.mxu1 %v6282_v0  ;;  %v6279_v8 = vmul.f32 %v17912_v41, %v20540_v48  ;;  %v18024_v0 = vmul.f32 %v17992_v47, %v20545_v10  ;;  %v18028_v46 = vsel %vm664_vm3, %v6533_v3, %v6534_v13  ;;  %v20547_v30 = vld [vmem:[#allocation46_spill] sm:$0xff]  ;;  %v20548_v13 = vld [vmem:[#allocation36_spill] sm:$0xff]  ;;  %v20561_v10 = vld [vmem:[#allocation49_spill] sm:$0xff] }
 0x8b1   :  { %13288 = vmatprep.subr.bf16.mxu1 %v14601_v58  ;;  %v18044_v25 = vmul.f32 %v17970_v18, %v20547_v30  ;;  %v18048_v32 = vsel %vm267_vm2, %v6232_v12, %v6233_v27  ;;  %v18052_v38 = vmul.f32 %v17996_v29, %v20548_v13  ;;  %v20550_v34 = vld [vmem:[#allocation38_spill] sm:$0xff]  ;;  %v20552_v12 = vld [vmem:[#allocation39_spill] sm:$0xff]  ;;  %v20554_v13 = vld [vmem:[#allocation41_spill] sm:$0xff]  ;;  %v18121_v30 = vmul.f32 %v17941_v19, %v20561_v10 }
 0x8b2   :  { %v6283_v14 = vpack.c.bf16 %v6279_v8, %v6278_v42  ;;  %v20546_v42 = vld [vmem:[#allocation33_spill] sm:$0xff]  ;;  %v18062_v49 = vmul.f32 %v18004_v5, %v20550_v34  ;;  %v18103_v60 = vmul.f32 %v18048_v32, %v20557_v16 }
 0x8b3   :  { %v18036_v8 = vmul.f32 %v17937_v45, %v20546_v42  ;;  %v20555_v42 = vld [vmem:[#allocation44_spill] sm:$0xff]  ;;  %v20567_v48 = vld [vmem:[#allocation13_spill] sm:$0xff] }
 0x8b4   :  { %13289 = vmatpush3.bf16.msra.mxu1 %v14601_v58  ;;  %v18017_v58 = vmul.f32 %v17978_v37, %v20544_v31  ;;  %v18082_v34 = vmul.f32 %v17984_v40, %v20555_v42  ;;  %v18117_v42 = vmul.f32 %v17937_v45, %v20560_v28  ;;  %v14606_v16 = vld [vmem:[%s19827_s11 + $0x30] sm:$0xff]   ;;  %v20563_v28 = vld [vmem:[#allocation71_spill] sm:$0xff]  ;;  %v18154_v45 = vmul.f32 %v18000_v6, %v20471_v2  ;;  %v20566_v2 = vld [vmem:[#allocation14_spill] sm:$0xff] }
 0x8b5   :  { %13290 = vmatprep.subr.bf16.mxu1 %v14602_v53  ;;  %v18136_v10 = vmul.f32 %v18009_v61, %v20563_v28  ;;  %v20565_v28 = vld [vmem:[#allocation76_spill] sm:$0xff]  ;;  %v6247_v22 = vmul.f32 %v18040_v23, %v20567_v48  ;;  %v20570_v48 = vld [vmem:[#allocation18_spill] sm:$0xff] }
 0x8b6   :  { %v6250_v26 = vmul.f32 %v18048_v32, %v20570_v48 }
 0x8b7   :  { %13283 = vmatmul.mubr.bf16.gmra.mrb[20].mxu1 %v6283_v14  ;;  %v20549_v14 = vld [vmem:[#allocation35_spill] sm:$0xff] }
 0x8b8   :  { %13291 = vmatpush3.bf16.msra.mxu1 %v14602_v53  ;;  %13302 = vmatprep.mubr.bf16.mxu1 %v6252_v59  ;;  %v18032_v53 = vsel %vm664_vm3, %v6532_v57, %v6533_v3  ;;  %v18058_v56 = vmul.f32 %v18009_v61, %v20549_v14  ;;  %v18066_v59 = vmul.f32 %v18013_v55, %v20551_v62  ;;  %v20553_v3 = vld [vmem:[#allocation42_spill] sm:$0xff]  ;;  %v20556_v62 = vld [vmem:[#allocation43_spill] sm:$0xff] }
 0x8b9   :  { %13292 = vmatprep.subr.bf16.mxu1 %v14603_v54  ;;  %v18070_v27 = vmul.f32 %v18032_v53, %v20552_v12  ;;  %v18074_v57 = vmul.f32 %v18028_v46, %v20553_v3  ;;  %v18078_v14 = vmul.f32 %v18000_v6, %v20554_v13  ;;  %v18093_v31 = vmul.f32 %v18040_v23, %v20556_v62  ;;  %v20558_v12 = vld [vmem:[#allocation47_spill] sm:$0xff] }
 0x8ba   :  { %v18107_v3 = vmul.f32 %v17978_v37, %v20558_v12  ;;  %v18111_v62 = vmul.f32 %v18013_v55, %v20559_v7  ;;  %v20562_v7 = vld [vmem:[#allocation73_spill] sm:$0xff]  ;;  %v18146_v20 = vmul.f32 %v18032_v53, %v20469_v33 }
 0x8bb   :  { %v18130_v13 = vmul.f32 %v17992_v47, %v20562_v7  ;;  %v18150_v7 = vmul.f32 %v18028_v46, %v20470_v36  ;;  %v14607_v12 = vld [vmem:[%s19827_s11 + $0x38] sm:$0xff]   ;;  %v20569_v36 = vld [vmem:[#allocation16_spill] sm:$0xff] }
 0x8bc   :  { %13293 = vmatpush3.bf16.msra.mxu1 %v14603_v54  ;;  %v14605_v54 = vld [vmem:[%s19827_s11 + $0x28] sm:$0xff]   ;;  %v6248_v15 = vmul.f32 %v17970_v18, %v20569_v36 }
 0x8bd   :  { %13294 = vmatprep.subr.bf16.mxu1 %v14604_v52  ;;  %v20573_v36 = vld [vmem:[#allocation19_spill] sm:$0xff] }
 0x8c0   :  { %13295 = vmatpush3.bf16.msra.mxu1 %v14604_v52  ;;  %v20564_v52 = vld [vmem:[#allocation70_spill] sm:$0xff] }
 0x8c1   :  { %13296 = vmatprep.subr.bf16.mxu1 %v14605_v54  ;;  %v18140_v21 = vmul.f32 %v18004_v5, %v20564_v52  ;;  %v18158_v52 = vmul.f32 %v17996_v29, %v20565_v28  ;;  %v6246_v28 = vmul.f32 %v17984_v40, %v20566_v2 }
 0x8c3   :  { %v6253_v33 = vpack.c.bf16 %v6247_v22, %v6246_v28  ;;  %v14610_v22 = vld [vmem:[%s19827_s11 + $0x90] sm:$0xff]  }
 0x8c4   :  { %13297 = vmatpush3.bf16.msra.mxu1 %v14605_v54  ;;  %v6249_v54 = vmul.f32 %v17963_v11, %v20568_v1  ;;  %v20572_v28 = vld [vmem:[#allocation20_spill] sm:$0xff] }
 0x8c5   :  { %13298 = vmatprep.subr.bf16.mxu1 %v14606_v16  ;;  %v6543_v1 = vmul.f32 %v18000_v6, %v20572_v28  ;;  %v20574_v6 = vld [vmem:[#allocation22_spill] sm:$0xff] }
 0x8c6   :  { %v6254_v2 = vpack.c.bf16 %v6249_v54, %v6248_v15  ;;  %v6545_v54 = vmul.f32 %v18009_v61, %v20574_v6  ;;  %v14617_v61 = vld [vmem:[%s19827_s11 + $0xc8] sm:$0xff]  }
 0x8c8   :  { %13299 = vmatpush3.bf16.msra.mxu1 %v14606_v16  ;;  %v14609_v16 = vld [vmem:[%s19827_s11 + $0x88] sm:$0xff]  }
 0x8c9   :  { %13300 = vmatprep.subr.bf16.mxu1 %v14607_v12 }
 0x8cc   :  { %13301 = vmatpush3.bf16.msra.mxu1 %v14607_v12  ;;  %v6251_v12 = vmul.f32 %v17978_v37, %v20571_v35  ;;  %v14612_v37 = vld [vmem:[%s19827_s11 + $0xa0] sm:$0xff]  }
 0x8cd   :  { %13310 = vmatprep.subr.bf16.mxu1 %v14608_v43 }
 0x8cf   :  { %13303 = vmatmul.mubr.bf16.vlgmr.msra.gmra.mrb[16].mxu1 %v6253_v33  ;;  %v6544_v33 = vmul.f32 %v17996_v29, %v20573_v36  ;;  %v14615_v29 = vld [vmem:[%s19827_s11 + $0xb8] sm:$0xff]  }
 0x8d0   :  { %13306 = vmatprep.mubr.bf16.mxu1 %v6254_v2  ;;  %13311 = vmatpush3.bf16.msra.mxu1 %v14608_v43  ;;  %v6255_v2 = vpack.c.bf16 %v6251_v12, %v6250_v26  ;;  %v14611_v43 = vld [vmem:[%s19827_s11 + $0x98] sm:$0xff]   ;;  %v14613_v26 = vld [vmem:[%s19827_s11 + $0xa8] sm:$0xff]  }
 0x8d1   :  { %13312 = vmatprep.subr.bf16.mxu1 %v14609_v16  ;;  %v6551_v15 = vpack.c.bf16 %v6544_v33, %v6543_v1  ;;  %v14614_v1 = vld [vmem:[%s19827_s11 + $0xb0] sm:$0xff]   ;;  %v20576_v33 = vld [vmem:[#allocation23_spill] sm:$0xff] }
 0x8d4   :  { %13313 = vmatpush3.bf16.msra.mxu1 %v14609_v16  ;;  %v20575_v16 = vld [vmem:[#allocation21_spill] sm:$0xff] }
 0x8d5   :  { %13314 = vmatprep.subr.bf16.mxu1 %v14610_v22  ;;  %v6546_v12 = vmul.f32 %v18004_v5, %v20575_v16  ;;  %v20578_v5 = vld [vmem:[#allocation26_spill] sm:$0xff]  ;;  %v20579_v16 = vld [vmem:[#allocation25_spill] sm:$0xff] }
 0x8d7   :  { %13307 = vmatmul.mubr.bf16.gmra.mrb[20].mxu1 %v6255_v2  ;;  %v6548_v2 = vmul.f32 %v18013_v55, %v20576_v33  ;;  %v6550_v55 = vmul.f32 %v18028_v46, %v20579_v16  ;;  %v14620_v46 = vld [vmem:[%s19827_s11 + $0xe0] sm:$0xff]  }
 0x8d8   :  { %13315 = vmatpush3.bf16.msra.mxu1 %v14610_v22  ;;  %13326 = vmatprep.mubr.bf16.mxu1 %v6551_v15  ;;  %v14616_v22 = vld [vmem:[%s19827_s11 + $0xc0] sm:$0xff]  }
 0x8d9   :  { %13316 = vmatprep.subr.bf16.mxu1 %v14611_v43 }
 0x8dc   :  { %13317 = vmatpush3.bf16.msra.mxu1 %v14611_v43  ;;  %v20577_v43 = vld [vmem:[#allocation24_spill] sm:$0xff] }
 0x8dd   :  { %13318 = vmatprep.subr.bf16.mxu1 %v14612_v37  ;;  %v6547_v15 = vmul.f32 %v17992_v47, %v20577_v43  ;;  %v14618_v47 = vld [vmem:[%s19827_s11 + $0xd0] sm:$0xff]  }
 0x8e0   :  { %13319 = vmatpush3.bf16.msra.mxu1 %v14612_v37  ;;  %v6552_v37 = vpack.c.bf16 %v6546_v12, %v6545_v54  ;;  %v20581_v12 = vld [vmem:[#allocation27_spill] sm:$0xff] }
 0x8e1   :  { %13320 = vmatprep.subr.bf16.mxu1 %v14613_v26 }
 0x8e4   :  { %13321 = vmatpush3.bf16.msra.mxu1 %v14613_v26  ;;  %v6553_v26 = vpack.c.bf16 %v6548_v2, %v6547_v15  ;;  %v6694_v2 = vmul.f32 %v17984_v40, %v20581_v12  ;;  %v14622_v40 = vld [vmem:[%s19827_s11 + $0xf0] sm:$0xff]  }
 0x8e5   :  { %13322 = vmatprep.subr.bf16.mxu1 %v14614_v1 }
 0x8e8   :  { %13323 = vmatpush3.bf16.msra.mxu1 %v14614_v1  ;;  %v6549_v1 = vmul.f32 %v18032_v53, %v20578_v5  ;;  %v14619_v53 = vld [vmem:[%s19827_s11 + $0xd8] sm:$0xff]  }
 0x8e9   :  { %13324 = vmatprep.subr.bf16.mxu1 %v14615_v29 }
 0x8ea   :  { %v6554_v15 = vpack.c.bf16 %v6550_v55, %v6549_v1  ;;  %v20583_v1 = vld [vmem:[#allocation30_spill] sm:$0xff] }
 0x8eb   :  { %v6695_v55 = vmul.f32 %v18040_v23, %v20583_v1  ;;  %v14626_v23 = vld [vmem:[%s19827_s11 + $0x110] sm:$0xff]  }
 0x8ec   :  { %13325 = vmatpush3.bf16.msra.mxu1 %v14615_v29  ;;  %v20580_v29 = vld [vmem:[#allocation28_spill] sm:$0xff] }
 0x8ed   :  { %13334 = vmatprep.subr.bf16.mxu1 %v14616_v22  ;;  %v6693_v54 = vmul.f32 %v17941_v19, %v20580_v29  ;;  %v14621_v19 = vld [vmem:[%s19827_s11 + $0xe8] sm:$0xff]  }
 0x8ef   :  { %13327 = vmatmul.mubr.bf16.vlgmr.msra.gmra.mrb[16].mxu1 %v6552_v37  ;;  %v14623_v37 = vld [vmem:[%s19827_s11 + $0xf8] sm:$0xff]  }
 0x8f0   :  { %13330 = vmatprep.mubr.bf16.mxu1 %v6553_v26  ;;  %13335 = vmatpush3.bf16.msra.mxu1 %v14616_v22  ;;  %v6701_v22 = vpack.c.bf16 %v6694_v2, %v6693_v54  ;;  %v20584_v54 = vld [vmem:[#allocation31_spill] sm:$0xff] }
 0x8f1   :  { %13336 = vmatprep.subr.bf16.mxu1 %v14617_v61  ;;  %v6698_v2 = vmul.f32 %v18048_v32, %v20584_v54  ;;  %v6843_v32 = vpack.c.bf16 %v17897_v44, %v17901_v50 }
 0x8f4   :  { %13337 = vmatpush3.bf16.msra.mxu1 %v14617_v61  ;;  %v20582_v61 = vld [vmem:[#allocation29_spill] sm:$0xff] }
 0x8f5   :  { %13338 = vmatprep.subr.bf16.mxu1 %v14618_v47  ;;  %v6696_v26 = vmul.f32 %v17970_v18, %v20582_v61  ;;  %v14625_v18 = vld [vmem:[%s19827_s11 + $0x108] sm:$0xff]  }
 0x8f7   :  { %13331 = vmatmul.mubr.bf16.gmra.mrb[20].mxu1 %v6554_v15  ;;  %v20585_v15 = vld [vmem:[#allocation32_spill] sm:$0xff] }
 0x8f8   :  { %13339 = vmatpush3.bf16.msra.mxu1 %v14618_v47  ;;  %13350 = vmatprep.mubr.bf16.mxu1 %v6701_v22  ;;  %v14624_v47 = vld [vmem:[%s19827_s11 + $0x100] sm:$0xff]   ;;  %v6702_v22 = vpack.c.bf16 %v6696_v26, %v6695_v55  ;;  %v6844_v55 = vpack.c.bf16 %v17908_v9, %v17904_v63 }
 0x8f9   :  { %13340 = vmatprep.subr.bf16.mxu1 %v14619_v53  ;;  %v14632_v26 = vld [vmem:[%s19827_s11 + $0x140] sm:$0xff]  }
 0x8fc   :  { %13341 = vmatpush3.bf16.msra.mxu1 %v14619_v53  ;;  %v6697_v53 = vmul.f32 %v17963_v11, %v20585_v15  ;;  %v14627_v11 = vld [vmem:[%s19827_s11 + $0x118] sm:$0xff]  }
 0x8fd   :  { %13342 = vmatprep.subr.bf16.mxu1 %v14620_v46 }
 0x900   :  { %13343 = vmatpush3.bf16.msra.mxu1 %v14620_v46  ;;  %v6703_v46 = vpack.c.bf16 %v6698_v2, %v6697_v53  ;;  %v6845_v2 = vpack.c.bf16 %v17928_v51, %v17906_v4  ;;  %v14634_v53 = vld [vmem:[%s19827_s11 + $0x150] sm:$0xff]  }
 0x901   :  { %13344 = vmatprep.subr.bf16.mxu1 %v14621_v19 }
 0x904   :  { %13345 = vmatpush3.bf16.msra.mxu1 %v14621_v19  ;;  %v20586_v19 = vpack.c.bf16 %v18036_v8, %v18017_v58  ;;  %v14630_v58 = vld [vmem:[%s19827_s11 + $0x130] sm:$0xff]   ;;  %v14631_v8 = vld [vmem:[%s19827_s11 + $0x138] sm:$0xff]  }
 0x905   :  { %13346 = vmatprep.subr.bf16.mxu1 %v14622_v40 }
 0x908   :  { %13347 = vmatpush3.bf16.msra.mxu1 %v14622_v40  ;;  %v14628_v40 = vld [vmem:[%s19827_s11 + $0x120] sm:$0xff]  }
 0x909   :  { %13348 = vmatprep.subr.bf16.mxu1 %v14623_v37 }
 0x90c   :  { %13349 = vmatpush3.bf16.msra.mxu1 %v14623_v37  ;;  %v14629_v37 = vld [vmem:[%s19827_s11 + $0x128] sm:$0xff]  }
 0x90d   :  { %13358 = vmatprep.subr.bf16.mxu1 %v14624_v47 }
 0x90f   :  { %13351 = vmatmul.mubr.bf16.vlgmr.msra.gmra.mrb[16].mxu1 %v6702_v22  ;;  %v6846_v22 = vpack.c.bf16 %v17910_v17, %v17912_v41 }
 0x910   :  { %13354 = vmatprep.mubr.bf16.mxu1 %v6703_v46  ;;  %13359 = vmatpush3.bf16.msra.mxu1 %v14624_v47  ;;  %v14633_v47 = vld [vmem:[%s19827_s11 + $0x148] sm:$0xff]   ;;  %v14636_v46 = vld [vmem:[%s19827_s11 + $0x160] sm:$0xff]  }
 0x911   :  { %13360 = vmatprep.subr.bf16.mxu1 %v14625_v18 }
 0x914   :  { %13361 = vmatpush3.bf16.msra.mxu1 %v14625_v18  ;;  %v14635_v18 = vld [vmem:[%s19827_s11 + $0x158] sm:$0xff]  }
 0x915   :  { %13362 = vmatprep.subr.bf16.mxu1 %v14626_v23 }
 0x917   :  { %13355 = vmatmul.mubr.bf16.gmra.mrb[20].mxu1 %v20586_v19  ;;  %v14666_v19 = vld [vmem:[%s19829_s13 + $0x50] sm:$0xff]  }
 0x918   :  { %13363 = vmatpush3.bf16.msra.mxu1 %v14626_v23  ;;  %13374 = vmatprep.mubr.bf16.mxu1 %v6843_v32  ;;  %v20587_v23 = vpack.c.bf16 %v18058_v56, %v18052_v38  ;;  %v14665_v32 = vld [vmem:[%s19829_s13 + $0x48] sm:$0xff]   ;;  %v14638_v38 = vld [vmem:[%s19827_s11 + $0x170] sm:$0xff]   ;;  %v14639_v56 = vld [vmem:[%s19827_s11 + $0x178] sm:$0xff]  }
 0x919   :  { %13364 = vmatprep.subr.bf16.mxu1 %v14627_v11 }
 0x91c   :  { %13365 = vmatpush3.bf16.msra.mxu1 %v14627_v11  ;;  %v14664_v11 = vld [vmem:[%s19829_s13 + $0x40] sm:$0xff]  }
 0x91d   :  { %13366 = vmatprep.subr.bf16.mxu1 %v14628_v40  ;;  %13478 = vmatprep.subr.bf16.mxu0 %v14664_v11 }
 0x91e   :  { %13479 = vmatpush3.bf16.msra.mxu0 %v14664_v11 }
 0x91f   :  { %13480 = vmatprep.subr.bf16.mxu0 %v14665_v32 }
 0x920   :  { %13367 = vmatpush3.bf16.msra.mxu1 %v14628_v40  ;;  %v14637_v40 = vld [vmem:[%s19827_s11 + $0x168] sm:$0xff]  }
 0x921   :  { %13368 = vmatprep.subr.bf16.mxu1 %v14629_v37 }
 0x922   :  { %13481 = vmatpush3.bf16.msra.mxu0 %v14665_v32  ;;  %v14653_v32 = vld [vmem:[%s19827_s11 + $0x1e8] sm:$0xff]  }
 0x923   :  { %13482 = vmatprep.subr.bf16.mxu0 %v14666_v19 }
 0x924   :  { %13369 = vmatpush3.bf16.msra.mxu1 %v14629_v37  ;;  %v14640_v37 = vld [vmem:[%s19827_s11 + $0x180] sm:$0xff]  }
 0x925   :  { %13370 = vmatprep.subr.bf16.mxu1 %v14630_v58 }
 0x926   :  { %13483 = vmatpush3.bf16.msra.mxu0 %v14666_v19  ;;  %v20597_v19 = vld [vmem:[#allocation54_spill] sm:$0xff] }
 0x928   :  { %13371 = vmatpush3.bf16.msra.mxu1 %v14630_v58  ;;  %v14641_v58 = vld [vmem:[%s19827_s11 + $0x188] sm:$0xff]  }
 0x929   :  { %13372 = vmatprep.subr.bf16.mxu1 %v14631_v8 }
 0x92c   :  { %13373 = vmatpush3.bf16.msra.mxu1 %v14631_v8  ;;  %v20588_v8 = vpack.c.bf16 %v18024_v0, %v18062_v49  ;;  %v20590_v0 = vpack.c.bf16 %v18078_v14, %v18074_v57  ;;  %v14644_v49 = vld [vmem:[%s19827_s11 + $0x1a0] sm:$0xff]   ;;  %v14646_v57 = vld [vmem:[%s19827_s11 + $0x1b0] sm:$0xff]   ;;  %v14647_v14 = vld [vmem:[%s19827_s11 + $0x1b8] sm:$0xff]  }
 0x92d   :  { %13382 = vmatprep.subr.bf16.mxu1 %v14632_v26 }
 0x92f   :  { %13375 = vmatmul.mubr.bf16.vlgmr.msra.gmra.mrb[16].mxu1 %v6844_v55  ;;  %v20589_v55 = vpack.c.bf16 %v18070_v27, %v18066_v59  ;;  %v20591_v59 = vpack.c.bf16 %v18093_v31, %v18082_v34  ;;  %v14645_v27 = vld [vmem:[%s19827_s11 + $0x1a8] sm:$0xff]   ;;  %v14648_v31 = vld [vmem:[%s19827_s11 + $0x1c0] sm:$0xff]  }
 0x930   :  { %13378 = vmatprep.mubr.bf16.mxu1 %v6845_v2  ;;  %13383 = vmatpush3.bf16.msra.mxu1 %v14632_v26  ;;  %v14642_v26 = vld [vmem:[%s19827_s11 + $0x190] sm:$0xff]   ;;  %v14649_v34 = vld [vmem:[%s19827_s11 + $0x1c8] sm:$0xff]   ;;  %v20592_v2 = vpack.c.bf16 %v17988_v24, %v18044_v25  ;;  %v14651_v24 = vld [vmem:[%s19827_s11 + $0x1d8] sm:$0xff]   ;;  %v20596_v25 = vpack.c.bf16 %v18121_v30, %v18117_v42 }
 0x931   :  { %13384 = vmatprep.subr.bf16.mxu1 %v14633_v47  ;;  %v14654_v42 = vld [vmem:[%s19827_s11 + $0x1f0] sm:$0xff]   ;;  %v14655_v30 = vld [vmem:[%s19827_s11 + $0x1f8] sm:$0xff]  }
 0x934   :  { %13385 = vmatpush3.bf16.msra.mxu1 %v14633_v47  ;;  %v14643_v47 = vld [vmem:[%s19827_s11 + $0x198] sm:$0xff]  }
 0x935   :  { %13386 = vmatprep.subr.bf16.mxu1 %v14634_v53 }
 0x937   :  { %13379 = vmatmul.mubr.bf16.gmra.mrb[20].mxu1 %v6846_v22  ;;  %v14650_v22 = vld [vmem:[%s19827_s11 + $0x1d0] sm:$0xff]  }
 0x938   :  { %13387 = vmatpush3.bf16.msra.mxu1 %v14634_v53  ;;  %13398 = vmatprep.mubr.bf16.mxu1 %v20587_v23  ;;  %v20593_v53 = vpack.c.bf16 %v18107_v3, %v18103_v60  ;;  %v20595_v23 = vld [vmem:[#allocation51_spill] sm:$0xff] }
 0x939   :  { %13388 = vmatprep.subr.bf16.mxu1 %v14635_v18  ;;  %v7286_v11 = vmul.f32 %v17904_v63, %v20595_v23  ;;  %v14652_v3 = vld [vmem:[%s19827_s11 + $0x1e0] sm:$0xff]  }
 0x93c   :  { %13389 = vmatpush3.bf16.msra.mxu1 %v14635_v18  ;;  %v20594_v18 = vld [vmem:[#allocation52_spill] sm:$0xff] }
 0x93d   :  { %13390 = vmatprep.subr.bf16.mxu1 %v14636_v46 }
 0x940   :  { %13391 = vmatpush3.bf16.msra.mxu1 %v14636_v46  ;;  %v7285_v46 = vmul.f32 %v17897_v44, %v20594_v18 }
 0x941   :  { %13392 = vmatprep.subr.bf16.mxu1 %v14637_v40 }
 0x942   :  { %v7293_v60 = vpack.c.bf16 %v7286_v11, %v7285_v46  ;;  %v14661_v46 = vld [vmem:[%s19827_s11 + $0x228] sm:$0xff]   ;;  %v14662_v11 = vld [vmem:[%s19827_s11 + $0x230] sm:$0xff]  }
 0x944   :  { %13393 = vmatpush3.bf16.msra.mxu1 %v14637_v40  ;;  %v7288_v40 = vmul.f32 %v17906_v4, %v20597_v19 }
 0x945   :  { %13394 = vmatprep.subr.bf16.mxu1 %v14638_v38 }
 0x948   :  { %13395 = vmatpush3.bf16.msra.mxu1 %v14638_v38  ;;  %v14656_v38 = vld [vmem:[%s19827_s11 + $0x200] sm:$0xff]  }
 0x949   :  { %13396 = vmatprep.subr.bf16.mxu1 %v14639_v56 }
 0x94c   :  { %13397 = vmatpush3.bf16.msra.mxu1 %v14639_v56  ;;  %v20598_v56 = vld [vmem:[#allocation59_spill] sm:$0xff] }
 0x94d   :  { %13406 = vmatprep.subr.bf16.mxu1 %v14640_v37 }
 0x94f   :  { %13399 = vmatmul.mubr.bf16.vlgmr.msra.gmra.mrb[16].mxu1 %v20588_v8 }
 0x950   :  { %13402 = vmatprep.mubr.bf16.mxu1 %v20589_v55  ;;  %13407 = vmatpush3.bf16.msra.mxu1 %v14640_v37  ;;  %v7289_v37 = vmul.f32 %v17928_v51, %v20598_v56 }
 0x951   :  { %13408 = vmatprep.subr.bf16.mxu1 %v14641_v58 }
 0x954   :  { %13409 = vmatpush3.bf16.msra.mxu1 %v14641_v58  ;;  %v20599_v58 = vld [vmem:[#allocation56_spill] sm:$0xff] }
 0x955   :  { %13410 = vmatprep.subr.bf16.mxu1 %v14642_v26  ;;  %v7287_v8 = vmul.f32 %v17908_v9, %v20599_v58  ;;  %v20622_v9 = vld [vmem:[#allocation10_spill] sm:$0xff] }
 0x957   :  { %13403 = vmatmul.mubr.bf16.gmra.mrb[20].mxu1 %v20590_v0  ;;  %v14657_v0 = vld [vmem:[%s19827_s11 + $0x208] sm:$0xff]  }
 0x958   :  { %13411 = vmatpush3.bf16.msra.mxu1 %v14642_v26  ;;  %13422 = vmatprep.mubr.bf16.mxu1 %v20591_v59  ;;  %v20600_v26 = vld [vmem:[#allocation58_spill] sm:$0xff]  ;;  %v20601_v59 = vld [vmem:[#allocation65_spill] sm:$0xff] }
 0x959   :  { %13412 = vmatprep.subr.bf16.mxu1 %v14643_v47  ;;  %v7290_v55 = vmul.f32 %v17912_v41, %v20600_v26  ;;  %v20620_v41 = vld [vmem:[#allocation46_spill] sm:$0xff] }
 0x95c   :  { %13413 = vmatpush3.bf16.msra.mxu1 %v14643_v47  ;;  %v7294_v47 = vpack.c.bf16 %v7288_v40, %v7287_v8 }
 0x95d   :  { %13414 = vmatprep.subr.bf16.mxu1 %v14644_v49 }
 0x960   :  { %13415 = vmatpush3.bf16.msra.mxu1 %v14644_v49  ;;  %v7295_v49 = vpack.c.bf16 %v7290_v55, %v7289_v37 }
 0x961   :  { %13416 = vmatprep.subr.bf16.mxu1 %v14645_v27 }
 0x964   :  { %13417 = vmatpush3.bf16.msra.mxu1 %v14645_v27  ;;  %v7291_v27 = vmul.f32 %v17910_v17, %v20601_v59  ;;  %v20613_v17 = vld [vmem:[#allocation13_spill] sm:$0xff] }
 0x965   :  { %13418 = vmatprep.subr.bf16.mxu1 %v14646_v57 }
 0x968   :  { %13419 = vmatpush3.bf16.msra.mxu1 %v14646_v57  ;;  %v14658_v57 = vld [vmem:[%s19827_s11 + $0x210] sm:$0xff]  }
 0x969   :  { %13420 = vmatprep.subr.bf16.mxu1 %v14647_v14 }
 0x96c   :  { %13421 = vmatpush3.bf16.msra.mxu1 %v14647_v14  ;;  %v20602_v14 = vld [vmem:[#allocation64_spill] sm:$0xff] }
 0x96d   :  { %13430 = vmatprep.subr.bf16.mxu1 %v14648_v31 }
 0x96f   :  { %13423 = vmatmul.mubr.bf16.vlgmr.msra.gmra.mrb[16].mxu1 %v20592_v2  ;;  %v14659_v2 = vld [vmem:[%s19827_s11 + $0x218] sm:$0xff]  }
 0x970   :  { %13426 = vmatprep.mubr.bf16.mxu1 %v20593_v53  ;;  %13431 = vmatpush3.bf16.msra.mxu1 %v14648_v31  ;;  %v7292_v31 = vmul.f32 %v17901_v50, %v20602_v14  ;;  %v20603_v53 = vpack.c.bf16 %v18140_v21, %v18136_v10  ;;  %v14663_v21 = vld [vmem:[%s19827_s11 + $0x238] sm:$0xff]   ;;  %v20604_v10 = vpack.c.bf16 %v18111_v62, %v18130_v13  ;;  %v18467_v62 = vld [vmem:[%s19829_s13] sm:$0xff]  }
 0x971   :  { %13432 = vmatprep.subr.bf16.mxu1 %v14649_v34  ;;  %v14671_v13 = vld [vmem:[%s19829_s13 + $0x78] sm:$0xff]  }
 0x974   :  { %13433 = vmatpush3.bf16.msra.mxu1 %v14649_v34  ;;  %v7296_v34 = vpack.c.bf16 %v7292_v31, %v7291_v27 }
 0x975   :  { %13434 = vmatprep.subr.bf16.mxu1 %v14650_v22 }
 0x977   :  { %13427 = vmatmul.mubr.bf16.gmra.mrb[20].mxu1 %v20596_v25  ;;  %v14667_v25 = vld [vmem:[%s19829_s13 + $0x58] sm:$0xff]  }
 0x978   :  { %13435 = vmatpush3.bf16.msra.mxu1 %v14650_v22  ;;  %13446 = vmatprep.mubr.bf16.mxu1 %v7293_v60  ;;  %v14660_v22 = vld [vmem:[%s19827_s11 + $0x220] sm:$0xff]   ;;  %v20606_v60 = vpack.c.bf16 %v18158_v52, %v18154_v45 }
 0x979   :  { %13436 = vmatprep.subr.bf16.mxu1 %v14651_v24  ;;  %13484 = vmatprep.subr.bf16.mxu0 %v14667_v25  ;;  %v7585_v45 = vld [vmem:[%s19830_s12] sm:$0x3] }
 0x97a   :  { %13485 = vmatpush3.bf16.msra.mxu0 %v14667_v25  ;;  %v7589_v52 = vrot.slane %v7585_v45, %v20514_v39  ;;  %v20626_v39 = vld [vmem:[#allocation45_spill] sm:$0xff] }
 0x97c   :  { %13437 = vmatpush3.bf16.msra.mxu1 %v14651_v24  ;;  %v20605_v24 = vpack.c.bf16 %v18150_v7, %v18146_v20  ;;  %v14669_v20 = vld [vmem:[%s19829_s13 + $0x68] sm:$0xff]   ;;  %v14670_v7 = vld [vmem:[%s19829_s13 + $0x70] sm:$0xff]  }
 0x97d   :  { %13438 = vmatprep.subr.bf16.mxu1 %v14652_v3 }
 0x980   :  { %13439 = vmatpush3.bf16.msra.mxu1 %v14652_v3  ;;  %v14668_v3 = vld [vmem:[%s19829_s13 + $0x60] sm:$0xff]  }
 0x981   :  { %13440 = vmatprep.subr.bf16.mxu1 %v14653_v32  ;;  %13486 = vmatprep.subr.bf16.mxu0 %v14668_v3 }
 0x982   :  { %13487 = vmatpush3.bf16.msra.mxu0 %v14668_v3 }
 0x983   :  { %13488 = vmatprep.subr.bf16.mxu0 %v14669_v20 }
 0x984   :  { %13441 = vmatpush3.bf16.msra.mxu1 %v14653_v32  ;;  %v20607_v32 = vld [vmem:[#allocation57_spill] sm:$0xff] }
 0x985   :  { %13442 = vmatprep.subr.bf16.mxu1 %v14654_v42 }
 0x986   :  { %13489 = vmatpush3.bf16.msra.mxu0 %v14669_v20 }
 0x987   :  { %13490 = vmatprep.subr.bf16.mxu0 %v14670_v7 }
 0x988   :  { %13443 = vmatpush3.bf16.msra.mxu1 %v14654_v42  ;;  %v7601_v42 = vrot.slane %v7585_v45, %v20607_v32 }
 0x989   :  { %13444 = vmatprep.subr.bf16.mxu1 %v14655_v30 }
 0x98a   :  { %13491 = vmatpush3.bf16.msra.mxu0 %v14670_v7 }
 0x98b   :  { %13492 = vmatprep.subr.bf16.mxu0 %v14671_v13 }
 0x98c   :  { %13445 = vmatpush3.bf16.msra.mxu1 %v14655_v30 }
 0x98d   :  { %13454 = vmatprep.subr.bf16.mxu1 %v14656_v38 }
 0x98e   :  { %13493 = vmatpush3.bf16.msra.mxu0 %v14671_v13 }
 0x98f   :  { %13447 = vmatmul.mubr.bf16.vlgmr.msra.gmra.mrb[16].mxu1 %v7294_v47  ;;  %13502 = vmatprep.subr.bf16.mxu0 %v18467_v62 }
 0x990   :  { %13450 = vmatprep.mubr.bf16.mxu1 %v7295_v49  ;;  %13455 = vmatpush3.bf16.msra.mxu1 %v14656_v38 }
 0x991   :  { %13456 = vmatprep.subr.bf16.mxu1 %v14657_v0 }
 0x994   :  { %13457 = vmatpush3.bf16.msra.mxu1 %v14657_v0 }
 0x995   :  { %13458 = vmatprep.subr.bf16.mxu1 %v14658_v57 }
 0x997   :  { %13451 = vmatmul.mubr.bf16.gmra.mrb[20].mxu1 %v7296_v34 }
 0x998   :  { %13459 = vmatpush3.bf16.msra.mxu1 %v14658_v57  ;;  %13470 = vmatprep.mubr.bf16.mxu1 %v20603_v53 }
 0x999   :  { %13460 = vmatprep.subr.bf16.mxu1 %v14659_v2 }
 0x99c   :  { %13461 = vmatpush3.bf16.msra.mxu1 %v14659_v2 }
 0x99d   :  { %13462 = vmatprep.subr.bf16.mxu1 %v14660_v22 }
 0x9a0   :  { %13463 = vmatpush3.bf16.msra.mxu1 %v14660_v22 }
 0x9a1   :  { %13464 = vmatprep.subr.bf16.mxu1 %v14661_v46 }
 0x9a4   :  { %13465 = vmatpush3.bf16.msra.mxu1 %v14661_v46 }
 0x9a5   :  { %13466 = vmatprep.subr.bf16.mxu1 %v14662_v11 }
 0x9a8   :  { %13467 = vmatpush3.bf16.msra.mxu1 %v14662_v11  ;;  %v20608_v11 = vld [vmem:[#allocation5_spill] sm:$0xff] }
 0x9a9   :  { %13468 = vmatprep.subr.bf16.mxu1 %v14663_v21 }
 0x9ac   :  { %13469 = vmatpush3.bf16.msra.mxu1 %v14663_v21 }
 0x9af   :  { %13471 = vmatmul.mubr.bf16.vlgmr.msra.gmra.mrb[16].mxu1 %v20604_v10 }
 0x9b0   :  { %13474 = vmatprep.mubr.bf16.mxu1 %v20605_v24 }
 0x9b7   :  { %13475 = vmatmul.mubr.bf16.gmra.mrb[20].mxu1 %v20606_v60  ;;  %v20609_v60 = vld [vmem:[#allocation6_spill] sm:$0xff] }
 0xa82   :  { %v13472_v30 = vpop.f32.mrb[16].mxu1 }
 0xa83   :  { %v7592_v40 = vmul.f32 %v13472_v30, %v7589_v52  ;;  %v7546_v38 = vpop.f32.mrb[17].mxu1  ;;  %v20610_v30 = vld [vmem:[#allocation8_spill] sm:$0xff] }
 0xa84   :  { %v7590_v37 = vmul.f32 %v7589_v52, %v7546_v38  ;;  %v13473_v8 = vpop.f32.mrb[18].mxu1 }
 0xa85   :  { %v7604_v55 = vadd.f32 %v7601_v42, %v7592_v40  ;;  %v7593_v47 = vmul.f32 %v13473_v8, %v7589_v52  ;;  %v7549_v0 = vpop.f32.mrb[19].mxu1 }
 0xa86   :  { %v7602_v49 = vadd.f32 %v7601_v42, %v7590_v37  ;;  %v7591_v27 = vmul.f32 %v7589_v52, %v7549_v0 }
 0xa87   :  { %v18475_v57 = vmax.f32 %v7604_v55, 0.0  ;;  %v7605_v31 = vadd.f32 %v7601_v42, %v7593_v47  ;;  %v20611_v47 = vld [vmem:[#allocation3_spill] sm:$0xff] }
 0xa88   :  { %v18477_v34 = vmax.f32 %v7602_v49, 0.0  ;;  %v7603_v2 = vadd.f32 %v7601_v42, %v7591_v27 }
 0xa89   :  { %v7620_v53 = vrot.slane %v18475_v57, 7  ;;  %v20076_v22 = vrot.slane %v18475_v57, 1  ;;  %v18481_v46 = vmax.f32 %v7605_v31, 0.0  ;;  %v18485_v21 = vmul.f32 %v18475_v57, %v20608_v11 }
 0xa8a   :  { %v18487_v10 = vmax.f32 %v7603_v2, 0.0  ;;  %v13476_v24 = vpop.f32.mrb[20].mxu1  ;;  %v7663_v25 = vmul.f32 %v18477_v34, %v20609_v60  ;;  %v7618_v3 = vrot.slane %v18477_v34, 7 }
 0xa8b   :  { %v20075_v7 = vrot.slane %v18481_v46, 1  ;;  %v7596_v13 = vmul.f32 %v13476_v24, %v7589_v52  ;;  %v7562_v45 = vpop.f32.mrb[21].mxu1  ;;  %v7666_v40 = vmul.f32 %v18481_v46, %v20610_v30  ;;  %v7621_v38 = vrot.slane %v18481_v46, 7 }
 0xa8c   :  { %v7619_v37 = vrot.slane %v18487_v10, 7  ;;  %v7594_v8 = vmul.f32 %v7589_v52, %v7562_v45  ;;  %v13477_v55 = vpop.f32.mrb[22].mxu1  ;;  %v7664_v0 = vmul.f32 %v18487_v10, %v20611_v47  ;;  %v7918_v49 = vrot.slane %v18487_v10, 1 }
 0xa8d   :  { %v7608_v27 = vadd.f32 %v7601_v42, %v7596_v13  ;;  %v7597_v31 = vmul.f32 %v13477_v55, %v7589_v52  ;;  %v7565_v2 = vpop.f32.mrb[23].mxu1  ;;  %v7630_v24 = vsel %vm267_vm2, %v7620_v53, %v7621_v38  ;;  %v18509_v60 = vsel %vm664_vm3, %v20076_v22, %v20075_v7 }
 0xa8e   :  { %v7606_v45 = vadd.f32 %v7601_v42, %v7594_v8  ;;  %v7595_v30 = vmul.f32 %v7589_v52, %v7565_v2  ;;  %v7671_v47 = vpack.c.bf16 %v18485_v21, %v7664_v0  ;;  %v18514_v13 = vsel %vm267_vm2, %v7619_v37, %v7620_v53  ;;  %v20614_v8 = vld [vmem:[#allocation14_spill] sm:$0xff]  ;;  %v20616_v53 = vld [vmem:[#allocation16_spill] sm:$0xff] }
 0xa8f   :  { %v18516_v55 = vmax.f32 %v7608_v27, 0.0  ;;  %v7609_v20 = vadd.f32 %v7601_v42, %v7597_v31  ;;  %v18520_v51 = vsel %vm267_vm2, %v7618_v3, %v7619_v37  ;;  %v18524_v4 = vmul.f32 %v18514_v13, %v20613_v17  ;;  %v20617_v31 = vld [vmem:[#allocation9_spill] sm:$0xff] }
 0xa90   :  { %v18526_v7 = vmax.f32 %v7606_v45, 0.0  ;;  %v7607_v52 = vadd.f32 %v7601_v42, %v7595_v30  ;;  %v18530_v21 = vmul.f32 %v18520_v51, %v20614_v8  ;;  %v18533_v0 = vmul.f32 %v7630_v24, %v20616_v53  ;;  %v20618_v42 = vld [vmem:[#allocation7_spill] sm:$0xff]  ;;  %v20619_v53 = vld [vmem:[#allocation4_spill] sm:$0xff] }
 0xa91   :  { %v18535_v27 = vmax.f32 %v7609_v20, 0.0  ;;  %v18539_v37 = vmul.f32 %v18516_v55, %v20617_v31  ;;  %v7624_v2 = vrot.slane %v18516_v55, 7  ;;  %v18543_v17 = vmul.f32 %v7630_v24, %v20582_v61 }
 0xa92   :  { %20615 = vst [vmem:[#allocation60_spill] sm:$0xff] %v18530_v21  ;;  %v18545_v45 = vmax.f32 %v7607_v52, 0.0  ;;  %v7667_v30 = vmul.f32 %v18526_v7, %v20618_v42  ;;  %v7622_v20 = vrot.slane %v18526_v7, 7  ;;  %v18556_v44 = vmul.f32 %v7630_v24, %v20620_v41  ;;  %v20623_v24 = vld [vmem:[#allocation15_spill] sm:$0xff] }
 0xa93   :  { %v7662_v22 = vmul.f32 %v18535_v27, %v20619_v53  ;;  %v7625_v31 = vrot.slane %v18535_v27, 7  ;;  %v7924_v61 = vrot.slane %v18535_v27, 1 }
 0xa94   :  { %20621 = vst [vmem:[#allocation80_spill] sm:$0xff] %v18556_v44  ;;  %v7672_v52 = vpack.c.bf16 %v7667_v30, %v7666_v40  ;;  %v7668_v50 = vmul.f32 %v18545_v45, %v20622_v9  ;;  %v7629_v42 = vsel %vm267_vm2, %v7621_v38, %v7622_v20  ;;  %v7623_v8 = vrot.slane %v18545_v45, 7  ;;  %v14673_v9 = vld [vmem:[%s19829_s13 + $0x8] sm:$0xff]  }
 0xa95   :  { %v7670_v63 = vpack.c.bf16 %v7663_v25, %v7662_v22  ;;  %v18566_v53 = vsel %vm267_vm2, %v7624_v2, %v7625_v31  ;;  %v18570_v41 = vsel %vm267_vm2, %v7625_v31, %v7618_v3  ;;  %v18573_v32 = vmul.f32 %v7629_v42, %v20623_v24  ;;  %v20624_v38 = vld [vmem:[#allocation12_spill] sm:$0xff]  ;;  %v20625_v25 = vld [vmem:[#allocation11_spill] sm:$0xff] }
 0xa96   :  { %v7673_v40 = vpack.c.bf16 %v18539_v37, %v7668_v50  ;;  %v7634_v22 = vmul.f32 %v18566_v53, %v20624_v38  ;;  %v7635_v30 = vmul.f32 %v18570_v41, %v20625_v25  ;;  %v18584_v21 = vmul.f32 %v7629_v42, %v20626_v39 }
 0xa97   :  { %13494 = vmatprep.mubr.bf16.mxu0 %v7670_v63  ;;  %v18590_v31 = vsel %vm267_vm2, %v7623_v8, %v7624_v2  ;;  %v18594_v50 = vsel %vm267_vm2, %v7622_v20, %v7623_v8  ;;  %v20628_v37 = vrot.slane %v18477_v34, 1 }
 0xa98   :  { %20627 = vst [vmem:[#allocation78_spill] sm:$0xff] %v18584_v21  ;;  %13495 = vmatmul.mubr.bf16.vlgmr.msra.gmra.mrb[24].mxu0 %v7671_v47  ;;  %v7642_v39 = vpack.c.bf16 %v7635_v30, %v7634_v22  ;;  %v18604_v63 = vmul.f32 %v18594_v50, %v20570_v48  ;;  %v18608_v2 = vmul.f32 %v18590_v31, %v20571_v35  ;;  %v20634_v35 = vrot.slane %v18475_v57, 1  ;;  %v20637_v30 = vld [vmem:[#allocation37_spill] sm:$0xff] }
 0xa99   :  { %v18600_v24 = vsel %vm664_vm3, %v20628_v37, %v7918_v49  ;;  %v20631_v38 = vmov %v20628_v37  ;;  %13503 = vmatpush3.bf16.msra.mxu0 %v18467_v62  ;;  %13498 = vmatprep.mubr.bf16.mxu0 %v7672_v52  ;;  %v7921_v22 = vrot.slane %v18526_v7, 1  ;;  %v14674_v62 = vld [vmem:[%s19829_s13 + $0x10] sm:$0xff]   ;;  %v20636_v37 = vrot.slane %v18481_v46, 1 }
 0xa9a   :  { %20629 = vst [vmem:[#allocation79_spill] sm:$0xff] %v18604_v63  ;;  %20630 = vst [vmem:[#allocation82_spill] sm:$0xff] %v18608_v2  ;;  %v18614_v8 = vsel %vm664_vm3, %v7924_v61, %v20631_v38  ;;  %v18623_v48 = vmul.f32 %v18600_v24, %v20573_v36  ;;  %v18629_v20 = vsel %vm664_vm3, %v7918_v49, %v20634_v35  ;;  %13504 = vmatprep.subr.bf16.mxu0 %v14673_v9  ;;  %v20635_v52 = vld [vmem:[#allocation21_spill] sm:$0xff] }
 0xa9b   :  { %v18619_v47 = vmul.f32 %v18614_v8, %v20572_v28  ;;  %v18639_v36 = vmul.f32 %v18629_v20, %v20574_v6  ;;  %v18643_v25 = vmul.f32 %v18509_v60, %v20635_v52  ;;  %v7922_v49 = vrot.slane %v18545_v45, 1  ;;  %v20657_v21 = vld [vmem:[#allocation49_spill] sm:$0xff] }
 0xa9c   :  { %20633 = vst [vmem:[#allocation87_spill] sm:$0xff] %v18623_v48  ;;  %v7928_v38 = vsel %vm664_vm3, %v20636_v37, %v7921_v22  ;;  %v7923_v35 = vrot.slane %v18516_v55, 1  ;;  %v18655_v6 = vmul.f32 %v18570_v41, %v20580_v29  ;;  %v20638_v48 = vld [vmem:[#allocation73_spill] sm:$0xff]  ;;  %v20639_v29 = vld [vmem:[#allocation72_spill] sm:$0xff] }
 0xa9d   :  { %20632 = vst [vmem:[#allocation83_spill] sm:$0xff] %v18619_v47  ;;  %v7927_v28 = vsel %vm664_vm3, %v7921_v22, %v7922_v49  ;;  %v18662_v3 = vmul.f32 %v7928_v38, %v20577_v43  ;;  %v18665_v47 = vmul.f32 %v7928_v38, %v20637_v30  ;;  %13505 = vmatpush3.bf16.msra.mxu0 %v14673_v9  ;;  %v14675_v43 = vld [vmem:[%s19829_s13 + $0x18] sm:$0xff]   ;;  %v20649_v22 = vld [vmem:[#allocation39_spill] sm:$0xff] }
 0xa9e   :  { %v18668_v37 = vmul.f32 %v7927_v28, %v20576_v33  ;;  %v18671_v63 = vmul.f32 %v7928_v38, %v20638_v48  ;;  %v18674_v2 = vmul.f32 %v7927_v28, %v20639_v29  ;;  %v18678_v52 = vsel %vm664_vm3, %v7923_v35, %v7924_v61  ;;  %13506 = vmatprep.subr.bf16.mxu0 %v14674_v62  ;;  %v20641_v30 = vld [vmem:[#allocation34_spill] sm:$0xff] }
 0xa9f   :  { %v18685_v9 = vsel %vm664_vm3, %v7922_v49, %v7923_v35  ;;  %v18689_v33 = vmul.f32 %v18678_v52, %v20579_v16  ;;  %v18693_v48 = vmul.f32 %v18520_v51, %v20581_v12  ;;  %v18697_v61 = vmul.f32 %v18514_v13, %v20583_v1  ;;  %v20647_v12 = vld [vmem:[#allocation38_spill] sm:$0xff] }
 0xaa0   :  { %v18703_v11 = vmul.f32 %v18685_v9, %v20578_v5  ;;  %v18706_v49 = vmul.f32 %v7629_v42, %v20585_v15  ;;  %v18710_v16 = vmul.f32 %v18594_v50, %v20584_v54  ;;  %13499 = vmatmul.mubr.bf16.gmra.mrb[28].mxu0 %v7673_v40  ;;  %v18718_v38 = vmul.f32 %v18590_v31, %v20641_v30  ;;  %v20643_v5 = vld [vmem:[#allocation33_spill] sm:$0xff]  ;;  %v14676_v40 = vld [vmem:[%s19829_s13 + $0x20] sm:$0xff]   ;;  %v20648_v54 = vld [vmem:[#allocation40_spill] sm:$0xff] }
 0xaa1   :  { %v18722_v35 = vmul.f32 %v18566_v53, %v20643_v5  ;;  %13507 = vmatpush3.bf16.msra.mxu0 %v14674_v62  ;;  %13518 = vmatprep.mubr.bf16.mxu0 %v7642_v39  ;;  %v20645_v5 = vld [vmem:[#allocation36_spill] sm:$0xff]  ;;  %v20646_v15 = vld [vmem:[#allocation35_spill] sm:$0xff]  ;;  %v18751_v29 = vmul.f32 %v18509_v60, %v20647_v12  ;;  %v18754_v39 = vmul.f32 %v7927_v28, %v20648_v54  ;;  %v20650_v30 = vld [vmem:[#allocation42_spill] sm:$0xff] }
 0xaa2   :  { %20640 = vst [vmem:[#allocation84_spill] sm:$0xff] %v18706_v49  ;;  %20642 = vst [vmem:[#allocation85_spill] sm:$0xff] %v18718_v38  ;;  %13508 = vmatprep.subr.bf16.mxu0 %v14675_v43  ;;  %v18743_v42 = vmul.f32 %v18600_v24, %v20645_v5  ;;  %v18747_v1 = vmul.f32 %v18629_v20, %v20646_v15  ;;  %v18758_v62 = vmul.f32 %v18685_v9, %v20649_v22  ;;  %v20651_v5 = vld [vmem:[#allocation41_spill] sm:$0xff]  ;;  %v20652_v15 = vld [vmem:[#allocation44_spill] sm:$0xff] }
 0xaa3   :  { %20644 = vst [vmem:[#allocation86_spill] sm:$0xff] %v18722_v35  ;;  %v18762_v38 = vmul.f32 %v18678_v52, %v20650_v30  ;;  %v18766_v35 = vmul.f32 %v18614_v8, %v20651_v5  ;;  %v18770_v49 = vmul.f32 %v18520_v51, %v20652_v15  ;;  %v20653_v12 = vld [vmem:[#allocation43_spill] sm:$0xff]  ;;  %v20654_v15 = vld [vmem:[#allocation48_spill] sm:$0xff]  ;;  %v20656_v28 = vld [vmem:[#allocation50_spill] sm:$0xff]  ;;  %v18809_v5 = vmul.f32 %v18487_v10, %v20594_v18 }
 0xaa4   :  { %v18778_v54 = vmul.f32 %v18514_v13, %v20653_v12  ;;  %v14677_v51 = vld [vmem:[%s19829_s13 + $0x28] sm:$0xff]   ;;  %v18791_v22 = vmul.f32 %v18594_v50, %v20654_v15  ;;  %v18801_v44 = vmul.f32 %v18566_v53, %v20656_v28  ;;  %v18819_v15 = vmul.f32 %v18481_v46, %v20599_v58  ;;  %v20661_v30 = vld [vmem:[#allocation74_spill] sm:$0xff] }
 0xaa5   :  { %13509 = vmatpush3.bf16.msra.mxu0 %v14675_v43  ;;  %v20655_v13 = vld [vmem:[#allocation47_spill] sm:$0xff]  ;;  %v18805_v43 = vmul.f32 %v18570_v41, %v20657_v21  ;;  %v18823_v53 = vmul.f32 %v18526_v7, %v20597_v19  ;;  %v18829_v21 = vmul.f32 %v18545_v45, %v20598_v56  ;;  %v18837_v58 = vmul.f32 %v18535_v27, %v20601_v59  ;;  %v14678_v19 = vld [vmem:[%s19829_s13 + $0x30] sm:$0xff]  }
 0xaa6   :  { %13510 = vmatprep.subr.bf16.mxu0 %v14676_v40  ;;  %v18795_v12 = vmul.f32 %v18590_v31, %v20655_v13  ;;  %v18815_v31 = vmul.f32 %v18475_v57, %v20595_v23  ;;  %v18833_v23 = vmul.f32 %v18516_v55, %v20600_v26  ;;  %v20658_v26 = vld [vmem:[#allocation71_spill] sm:$0xff]  ;;  %v20659_v13 = vld [vmem:[#allocation70_spill] sm:$0xff]  ;;  %v8834_v41 = vpack.c.bf16 %v18674_v2, %v18671_v63 }
 0xaa7   :  { %v18852_v28 = vmul.f32 %v18629_v20, %v20658_v26  ;;  %v18858_v18 = vmul.f32 %v18509_v60, %v20659_v13  ;;  %v20660_v50 = vld [vmem:[#allocation75_spill] sm:$0xff]  ;;  %v18870_v20 = vmul.f32 %v18678_v52, %v20661_v30  ;;  %v20662_v26 = vld [vmem:[#allocation77_spill] sm:$0xff]  ;;  %v20663_v60 = vld [vmem:[#allocation76_spill] sm:$0xff] }
 0xaa8   :  { %v18864_v56 = vmul.f32 %v18685_v9, %v20660_v50  ;;  %v18874_v59 = vmul.f32 %v18614_v8, %v20662_v26  ;;  %v18878_v13 = vmul.f32 %v18600_v24, %v20663_v60  ;;  %v14679_v50 = vld [vmem:[%s19829_s13 + $0x38] sm:$0xff]   ;;  %v14680_v24 = vld [vmem:[%s19829_s13 + $0x80] sm:$0xff]   ;;  %v14681_v30 = vld [vmem:[%s19829_s13 + $0x88] sm:$0xff]   ;;  %v20666_v60 = vpack.c.bf16 %v18573_v32, %v18533_v0 }
 0xaa9   :  { %13511 = vmatpush3.bf16.msra.mxu0 %v14676_v40  ;;  %v18848_v40 = vmul.f32 %v18477_v34, %v20602_v14  ;;  %v8833_v9 = vpack.c.bf16 %v18858_v18, %v18852_v28  ;;  %v20667_v8 = vld [vmem:[#allocation82_spill] sm:$0xff]  ;;  %v20668_v52 = vld [vmem:[#allocation79_spill] sm:$0xff]  ;;  %v14742_v28 = vld [vmem:[%s19831_s15 + $0x30] sm:$0xff]  }
 0xaaa   :  { %13512 = vmatprep.subr.bf16.mxu0 %v14677_v51  ;;  %v20671_v32 = vld [vmem:[#allocation83_spill] sm:$0xff]  ;;  %v14735_v18 = vld [vmem:[%s19829_s13 + $0x238] sm:$0xff]  }
 0xaab   :  { %v8686_v14 = vpack.c.bf16 %v18848_v40, %v18837_v58  ;;  %v20701_v58 = vpack.c.bf16 %v18878_v13, %v18874_v59  ;;  %v14741_v40 = vld [vmem:[%s19831_s15 + $0x28] sm:$0xff]   ;;  %v14743_v63 = vld [vmem:[%s19831_s15 + $0x38] sm:$0xff]   ;;  %v8975_v2 = vld [vmem:[%s19832_s14] sm:$0x3] }
 0xaac   :  { %v20703_v59 = vld [vmem:[#allocation57_spill] sm:$0xff] }
 0xaad   :  { %13513 = vmatpush3.bf16.msra.mxu0 %v14677_v51  ;;  %v20664_v51 = vld [vmem:[#allocation60_spill] sm:$0xff] }
 0xaae   :  { %13514 = vmatprep.subr.bf16.mxu0 %v14678_v19  ;;  %v20665_v26 = vpack.c.bf16 %v18524_v4, %v20664_v51  ;;  %v20669_v4 = vpack.c.bf16 %v20667_v8, %v20668_v52  ;;  %v20670_v51 = vld [vmem:[#allocation87_spill] sm:$0xff]  ;;  %v14686_v52 = vld [vmem:[%s19829_s13 + $0xb0] sm:$0xff]   ;;  %v14687_v8 = vld [vmem:[%s19829_s13 + $0xb8] sm:$0xff]  }
 0xaaf   :  { %v20672_v0 = vpack.c.bf16 %v20670_v51, %v20671_v32  ;;  %v14691_v51 = vld [vmem:[%s19829_s13 + $0xd8] sm:$0xff]   ;;  %v20677_v32 = vpack.c.bf16 %v18543_v17, %v18697_v61  ;;  %v20683_v61 = vpack.c.bf16 %v18487_v10, %v18477_v34  ;;  %v14704_v10 = vld [vmem:[%s19829_s13 + $0x140] sm:$0xff]  }
 0xab0   :  { %v14703_v34 = vld [vmem:[%s19829_s13 + $0x138] sm:$0xff]  }
 0xab1   :  { %13515 = vmatpush3.bf16.msra.mxu0 %v14678_v19  ;;  %v14682_v19 = vld [vmem:[%s19829_s13 + $0x90] sm:$0xff]  }
 0xab2   :  { %13516 = vmatprep.subr.bf16.mxu0 %v14679_v50 }
 0xab5   :  { %13517 = vmatpush3.bf16.msra.mxu0 %v14679_v50  ;;  %v14683_v50 = vld [vmem:[%s19829_s13 + $0x98] sm:$0xff]  }
 0xab6   :  { %13526 = vmatprep.subr.bf16.mxu0 %v14680_v24 }
 0xab8   :  { %13519 = vmatmul.mubr.bf16.vlgmr.msra.gmra.mrb[24].mxu0 %v20665_v26  ;;  %v14688_v26 = vld [vmem:[%s19829_s13 + $0xc0] sm:$0xff]  }
 0xab9   :  { %13522 = vmatprep.mubr.bf16.mxu0 %v20666_v60  ;;  %13527 = vmatpush3.bf16.msra.mxu0 %v14680_v24  ;;  %v14684_v24 = vld [vmem:[%s19829_s13 + $0xa0] sm:$0xff]   ;;  %v14689_v60 = vld [vmem:[%s19829_s13 + $0xc8] sm:$0xff]  }
 0xaba   :  { %13528 = vmatprep.subr.bf16.mxu0 %v14681_v30 }
 0xabd   :  { %13529 = vmatpush3.bf16.msra.mxu0 %v14681_v30  ;;  %v14685_v30 = vld [vmem:[%s19829_s13 + $0xa8] sm:$0xff]  }
 0xabe   :  { %13530 = vmatprep.subr.bf16.mxu0 %v14682_v19 }
 0xac0   :  { %13523 = vmatmul.mubr.bf16.gmra.mrb[28].mxu0 %v20669_v4  ;;  %v14690_v4 = vld [vmem:[%s19829_s13 + $0xd0] sm:$0xff]  }
 0xac1   :  { %13531 = vmatpush3.bf16.msra.mxu0 %v14682_v19  ;;  %13542 = vmatprep.mubr.bf16.mxu0 %v20672_v0  ;;  %v20673_v19 = vpack.c.bf16 %v18643_v25, %v18639_v36  ;;  %v20675_v36 = vpack.c.bf16 %v18689_v33, %v18703_v11  ;;  %v14692_v25 = vld [vmem:[%s19829_s13 + $0xe0] sm:$0xff]   ;;  %v14694_v33 = vld [vmem:[%s19829_s13 + $0xf0] sm:$0xff]   ;;  %v14697_v11 = vld [vmem:[%s19829_s13 + $0x108] sm:$0xff]  }
 0xac2   :  { %13532 = vmatprep.subr.bf16.mxu0 %v14683_v50  ;;  %v20678_v0 = vld [vmem:[#allocation84_spill] sm:$0xff] }
 0xac5   :  { %13533 = vmatpush3.bf16.msra.mxu0 %v14683_v50  ;;  %v20674_v50 = vpack.c.bf16 %v18668_v37, %v18662_v3  ;;  %v20676_v3 = vpack.c.bf16 %v18693_v48, %v18655_v6  ;;  %v14693_v37 = vld [vmem:[%s19829_s13 + $0xe8] sm:$0xff]   ;;  %v14695_v6 = vld [vmem:[%s19829_s13 + $0xf8] sm:$0xff]   ;;  %v14696_v48 = vld [vmem:[%s19829_s13 + $0x100] sm:$0xff]  }
 0xac6   :  { %13534 = vmatprep.subr.bf16.mxu0 %v14684_v24 }
 0xac9   :  { %13535 = vmatpush3.bf16.msra.mxu0 %v14684_v24  ;;  %v20679_v24 = vpack.c.bf16 %v18710_v16, %v20678_v0  ;;  %v14700_v16 = vld [vmem:[%s19829_s13 + $0x120] sm:$0xff]   ;;  %v14714_v0 = vld [vmem:[%s19829_s13 + $0x190] sm:$0xff]  }
 0xaca   :  { %13536 = vmatprep.subr.bf16.mxu0 %v14685_v30 }
 0xacd   :  { %13537 = vmatpush3.bf16.msra.mxu0 %v14685_v30  ;;  %v14698_v30 = vld [vmem:[%s19829_s13 + $0x110] sm:$0xff]  }
 0xace   :  { %13538 = vmatprep.subr.bf16.mxu0 %v14686_v52 }
 0xad1   :  { %13539 = vmatpush3.bf16.msra.mxu0 %v14686_v52  ;;  %v14699_v52 = vld [vmem:[%s19829_s13 + $0x118] sm:$0xff]  }
 0xad2   :  { %13540 = vmatprep.subr.bf16.mxu0 %v14687_v8 }
 0xad5   :  { %13541 = vmatpush3.bf16.msra.mxu0 %v14687_v8  ;;  %v20680_v8 = vld [vmem:[#allocation86_spill] sm:$0xff] }
 0xad6   :  { %13550 = vmatprep.subr.bf16.mxu0 %v14688_v26 }
 0xad8   :  { %13543 = vmatmul.mubr.bf16.vlgmr.msra.gmra.mrb[24].mxu0 %v20673_v19  ;;  %v14702_v19 = vld [vmem:[%s19829_s13 + $0x130] sm:$0xff]  }
 0xad9   :  { %13546 = vmatprep.mubr.bf16.mxu0 %v20674_v50  ;;  %13551 = vmatpush3.bf16.msra.mxu0 %v14688_v26  ;;  %v20681_v26 = vld [vmem:[#allocation85_spill] sm:$0xff]  ;;  %v14705_v50 = vld [vmem:[%s19829_s13 + $0x148] sm:$0xff]  }
 0xada   :  { %13552 = vmatprep.subr.bf16.mxu0 %v14689_v60  ;;  %v20682_v17 = vpack.c.bf16 %v20680_v8, %v20681_v26  ;;  %v20695_v26 = vpack.c.bf16 %v18795_v12, %v18791_v22  ;;  %v20697_v22 = vpack.c.bf16 %v18815_v31, %v18809_v5  ;;  %v14724_v12 = vld [vmem:[%s19829_s13 + $0x1e0] sm:$0xff]   ;;  %v14729_v31 = vld [vmem:[%s19829_s13 + $0x208] sm:$0xff]  }
 0xadb   :  { %v14728_v5 = vld [vmem:[%s19829_s13 + $0x200] sm:$0xff]  }
 0xadd   :  { %13553 = vmatpush3.bf16.msra.mxu0 %v14689_v60  ;;  %v14701_v60 = vld [vmem:[%s19829_s13 + $0x128] sm:$0xff]  }
 0xade   :  { %13554 = vmatprep.subr.bf16.mxu0 %v14690_v4 }
 0xae0   :  { %13547 = vmatmul.mubr.bf16.gmra.mrb[28].mxu0 %v20675_v36  ;;  %v14706_v36 = vld [vmem:[%s19829_s13 + $0x150] sm:$0xff]  }
 0xae1   :  { %13555 = vmatpush3.bf16.msra.mxu0 %v14690_v4  ;;  %13566 = vmatprep.mubr.bf16.mxu0 %v20676_v3  ;;  %v20684_v4 = vpack.c.bf16 %v18481_v46, %v18475_v57  ;;  %v14707_v3 = vld [vmem:[%s19829_s13 + $0x158] sm:$0xff]   ;;  %v20686_v57 = vpack.c.bf16 %v18535_v27, %v18516_v55  ;;  %v14708_v46 = vld [vmem:[%s19829_s13 + $0x160] sm:$0xff]   ;;  %v14709_v55 = vld [vmem:[%s19829_s13 + $0x168] sm:$0xff]  }
 0xae2   :  { %13556 = vmatprep.subr.bf16.mxu0 %v14691_v51  ;;  %v14738_v27 = vld [vmem:[%s19831_s15 + $0x10] sm:$0xff]  }
 0xae5   :  { %13557 = vmatpush3.bf16.msra.mxu0 %v14691_v51  ;;  %v20685_v51 = vpack.c.bf16 %v18545_v45, %v18526_v7  ;;  %v20687_v7 = vpack.c.bf16 %v18747_v1, %v18743_v42  ;;  %v14736_v45 = vld [vmem:[%s19831_s15] sm:$0xff]   ;;  %v14739_v1 = vld [vmem:[%s19831_s15 + $0x18] sm:$0xff]   ;;  %v14710_v42 = vld [vmem:[%s19829_s13 + $0x170] sm:$0xff]  }
 0xae6   :  { %13558 = vmatprep.subr.bf16.mxu0 %v14692_v25  ;;  %13694 = vmatprep.subr.bf16.mxu1 %v14736_v45 }
 0xae7   :  { %13695 = vmatpush3.bf16.msra.mxu1 %v14736_v45  ;;  %v20704_v45 = vld [vmem:[#allocation61_spill] sm:$0xff] }
 0xae9   :  { %13559 = vmatpush3.bf16.msra.mxu0 %v14692_v25  ;;  %v14737_v25 = vld [vmem:[%s19831_s15 + $0x8] sm:$0xff]  }
 0xaea   :  { %13560 = vmatprep.subr.bf16.mxu0 %v14693_v37  ;;  %13696 = vmatprep.subr.bf16.mxu1 %v14737_v25 }
 0xaeb   :  { %13697 = vmatpush3.bf16.msra.mxu1 %v14737_v25 }
 0xaec   :  { %13698 = vmatprep.subr.bf16.mxu1 %v14738_v27 }
 0xaed   :  { %13561 = vmatpush3.bf16.msra.mxu0 %v14693_v37  ;;  %v14740_v37 = vld [vmem:[%s19831_s15 + $0x20] sm:$0xff]  }
 0xaee   :  { %13562 = vmatprep.subr.bf16.mxu0 %v14694_v33 }
 0xaef   :  { %13699 = vmatpush3.bf16.msra.mxu1 %v14738_v27  ;;  %v20705_v27 = vld [vmem:[#allocation63_spill] sm:$0xff] }
 0xaf0   :  { %13700 = vmatprep.subr.bf16.mxu1 %v14739_v1 }
 0xaf1   :  { %13563 = vmatpush3.bf16.msra.mxu0 %v14694_v33  ;;  %v14711_v33 = vld [vmem:[%s19829_s13 + $0x178] sm:$0xff]  }
 0xaf2   :  { %13564 = vmatprep.subr.bf16.mxu0 %v14695_v6 }
 0xaf3   :  { %13701 = vmatpush3.bf16.msra.mxu1 %v14739_v1 }
 0xaf4   :  { %13702 = vmatprep.subr.bf16.mxu1 %v14740_v37 }
 0xaf5   :  { %13565 = vmatpush3.bf16.msra.mxu0 %v14695_v6  ;;  %v14712_v6 = vld [vmem:[%s19829_s13 + $0x180] sm:$0xff]  }
 0xaf6   :  { %13574 = vmatprep.subr.bf16.mxu0 %v14696_v48 }
 0xaf7   :  { %13703 = vmatpush3.bf16.msra.mxu1 %v14740_v37  ;;  %v20706_v37 = vld [vmem:[#allocation66_spill] sm:$0xff] }
 0xaf8   :  { %13567 = vmatmul.mubr.bf16.vlgmr.msra.gmra.mrb[24].mxu0 %v20677_v32  ;;  %v20689_v32 = vpack.c.bf16 %v18758_v62, %v18754_v39  ;;  %v14716_v39 = vld [vmem:[%s19829_s13 + $0x1a0] sm:$0xff]   ;;  %v14717_v62 = vld [vmem:[%s19829_s13 + $0x1a8] sm:$0xff]   ;;  %13704 = vmatprep.subr.bf16.mxu1 %v14741_v40 }
 0xaf9   :  { %13570 = vmatprep.mubr.bf16.mxu0 %v20679_v24  ;;  %13575 = vmatpush3.bf16.msra.mxu0 %v14696_v48  ;;  %v14713_v48 = vld [vmem:[%s19829_s13 + $0x188] sm:$0xff]   ;;  %v14715_v24 = vld [vmem:[%s19829_s13 + $0x198] sm:$0xff]  }
 0xafa   :  { %13576 = vmatprep.subr.bf16.mxu0 %v14697_v11 }
 0xafb   :  { %13705 = vmatpush3.bf16.msra.mxu1 %v14741_v40 }
 0xafc   :  { %13706 = vmatprep.subr.bf16.mxu1 %v14742_v28 }
 0xafd   :  { %13577 = vmatpush3.bf16.msra.mxu0 %v14697_v11  ;;  %v20688_v11 = vpack.c.bf16 %v18665_v47, %v18751_v29  ;;  %v20690_v47 = vpack.c.bf16 %v18766_v35, %v18762_v38  ;;  %v20691_v29 = vpack.c.bf16 %v18778_v54, %v18770_v49  ;;  %v14718_v38 = vld [vmem:[%s19829_s13 + $0x1b0] sm:$0xff]   ;;  %v14719_v49 = vld [vmem:[%s19829_s13 + $0x1b8] sm:$0xff]   ;;  %v14720_v35 = vld [vmem:[%s19829_s13 + $0x1c0] sm:$0xff]  }
 0xafe   :  { %13578 = vmatprep.subr.bf16.mxu0 %v14698_v30  ;;  %v14721_v54 = vld [vmem:[%s19829_s13 + $0x1c8] sm:$0xff]  }
 0xaff   :  { %13707 = vmatpush3.bf16.msra.mxu1 %v14742_v28 }
 0xb00   :  { %13571 = vmatmul.mubr.bf16.gmra.mrb[28].mxu0 %v20682_v17  ;;  %v14722_v17 = vld [vmem:[%s19829_s13 + $0x1d0] sm:$0xff]   ;;  %13708 = vmatprep.subr.bf16.mxu1 %v14743_v63 }
 0xb01   :  { %13579 = vmatpush3.bf16.msra.mxu0 %v14698_v30  ;;  %13590 = vmatprep.mubr.bf16.mxu0 %v20683_v61  ;;  %v20692_v30 = vld [vmem:[#allocation78_spill] sm:$0xff] }
 0xb02   :  { %13580 = vmatprep.subr.bf16.mxu0 %v14699_v52  ;;  %v14723_v61 = vld [vmem:[%s19829_s13 + $0x1d8] sm:$0xff]  }
 0xb03   :  { %13709 = vmatpush3.bf16.msra.mxu1 %v14743_v63 }
 0xb05   :  { %13581 = vmatpush3.bf16.msra.mxu0 %v14699_v52  ;;  %v20693_v52 = vld [vmem:[#allocation80_spill] sm:$0xff] }
 0xb06   :  { %13582 = vmatprep.subr.bf16.mxu0 %v14700_v16  ;;  %v20694_v8 = vpack.c.bf16 %v20692_v30, %v20693_v52 }
 0xb09   :  { %13583 = vmatpush3.bf16.msra.mxu0 %v14700_v16  ;;  %v20696_v16 = vpack.c.bf16 %v18805_v43, %v18801_v44  ;;  %v14726_v44 = vld [vmem:[%s19829_s13 + $0x1f0] sm:$0xff]   ;;  %v14727_v43 = vld [vmem:[%s19829_s13 + $0x1f8] sm:$0xff]  }
 0xb0a   :  { %13584 = vmatprep.subr.bf16.mxu0 %v14701_v60 }
 0xb0d   :  { %13585 = vmatpush3.bf16.msra.mxu0 %v14701_v60  ;;  %v14725_v60 = vld [vmem:[%s19829_s13 + $0x1e8] sm:$0xff]  }
 0xb0e   :  { %13586 = vmatprep.subr.bf16.mxu0 %v14702_v19 }
 0xb11   :  { %13587 = vmatpush3.bf16.msra.mxu0 %v14702_v19  ;;  %v20698_v19 = vpack.c.bf16 %v18823_v53, %v18819_v15  ;;  %v14732_v15 = vld [vmem:[%s19829_s13 + $0x220] sm:$0xff]   ;;  %v14733_v53 = vld [vmem:[%s19829_s13 + $0x228] sm:$0xff]  }
 0xb12   :  { %13588 = vmatprep.subr.bf16.mxu0 %v14703_v34 }
 0xb15   :  { %13589 = vmatpush3.bf16.msra.mxu0 %v14703_v34  ;;  %v20699_v34 = vpack.c.bf16 %v18833_v23, %v18829_v21  ;;  %v14734_v21 = vld [vmem:[%s19829_s13 + $0x230] sm:$0xff]   ;;  %v20700_v23 = vpack.c.bf16 %v18870_v20, %v18864_v56 }
 0xb16   :  { %13598 = vmatprep.subr.bf16.mxu0 %v14704_v10 }
 0xb18   :  { %13591 = vmatmul.mubr.bf16.vlgmr.msra.gmra.mrb[24].mxu0 %v20684_v4 }
 0xb19   :  { %13594 = vmatprep.mubr.bf16.mxu0 %v20685_v51  ;;  %13599 = vmatpush3.bf16.msra.mxu0 %v14704_v10  ;;  %v14730_v10 = vld [vmem:[%s19829_s13 + $0x210] sm:$0xff]  }
 0xb1a   :  { %13600 = vmatprep.subr.bf16.mxu0 %v14705_v50 }
 0xb1d   :  { %13601 = vmatpush3.bf16.msra.mxu0 %v14705_v50  ;;  %v14731_v50 = vld [vmem:[%s19829_s13 + $0x218] sm:$0xff]  }
 0xb1e   :  { %13602 = vmatprep.subr.bf16.mxu0 %v14706_v36 }
 0xb20   :  { %13595 = vmatmul.mubr.bf16.gmra.mrb[28].mxu0 %v20686_v57 }
 0xb21   :  { %13603 = vmatpush3.bf16.msra.mxu0 %v14706_v36  ;;  %13614 = vmatprep.mubr.bf16.mxu0 %v20687_v7 }
 0xb22   :  { %13604 = vmatprep.subr.bf16.mxu0 %v14707_v3 }
 0xb25   :  { %13605 = vmatpush3.bf16.msra.mxu0 %v14707_v3 }
 0xb26   :  { %13606 = vmatprep.subr.bf16.mxu0 %v14708_v46 }
 0xb29   :  { %13607 = vmatpush3.bf16.msra.mxu0 %v14708_v46 }
 0xb2a   :  { %13608 = vmatprep.subr.bf16.mxu0 %v14709_v55 }
 0xb2d   :  { %13609 = vmatpush3.bf16.msra.mxu0 %v14709_v55 }
 0xb2e   :  { %13610 = vmatprep.subr.bf16.mxu0 %v14710_v42 }
 0xb31   :  { %13611 = vmatpush3.bf16.msra.mxu0 %v14710_v42 }
 0xb32   :  { %13612 = vmatprep.subr.bf16.mxu0 %v14711_v33 }
 0xb35   :  { %13613 = vmatpush3.bf16.msra.mxu0 %v14711_v33 }
 0xb36   :  { %13622 = vmatprep.subr.bf16.mxu0 %v14712_v6 }
 0xb38   :  { %13615 = vmatmul.mubr.bf16.vlgmr.msra.gmra.mrb[24].mxu0 %v20688_v11 }
 0xb39   :  { %13618 = vmatprep.mubr.bf16.mxu0 %v20689_v32  ;;  %13623 = vmatpush3.bf16.msra.mxu0 %v14712_v6  ;;  %v20707_v6 = vld [vmem:[#allocation81_spill] sm:$0xff] }
 0xb3a   :  { %13624 = vmatprep.subr.bf16.mxu0 %v14713_v48 }
 0xb3d   :  { %13625 = vmatpush3.bf16.msra.mxu0 %v14713_v48 }
 0xb3e   :  { %13626 = vmatprep.subr.bf16.mxu0 %v14714_v0 }
 0xb40   :  { %13619 = vmatmul.mubr.bf16.gmra.mrb[28].mxu0 %v20690_v47 }
 0xb41   :  { %13627 = vmatpush3.bf16.msra.mxu0 %v14714_v0  ;;  %13638 = vmatprep.mubr.bf16.mxu0 %v20691_v29 }
 0xb42   :  { %13628 = vmatprep.subr.bf16.mxu0 %v14715_v24 }
 0xb45   :  { %13629 = vmatpush3.bf16.msra.mxu0 %v14715_v24 }
 0xb46   :  { %13630 = vmatprep.subr.bf16.mxu0 %v14716_v39 }
 0xb49   :  { %13631 = vmatpush3.bf16.msra.mxu0 %v14716_v39 }
 0xb4a   :  { %13632 = vmatprep.subr.bf16.mxu0 %v14717_v62 }
 0xb4d   :  { %13633 = vmatpush3.bf16.msra.mxu0 %v14717_v62 }
 0xb4e   :  { %13634 = vmatprep.subr.bf16.mxu0 %v14718_v38 }
 0xb51   :  { %13635 = vmatpush3.bf16.msra.mxu0 %v14718_v38 }
 0xb52   :  { %13636 = vmatprep.subr.bf16.mxu0 %v14719_v49 }
 0xb55   :  { %13637 = vmatpush3.bf16.msra.mxu0 %v14719_v49 }
 0xb56   :  { %13646 = vmatprep.subr.bf16.mxu0 %v14720_v35 }
 0xb58   :  { %13639 = vmatmul.mubr.bf16.vlgmr.msra.gmra.mrb[24].mxu0 %v20694_v8 }
 0xb59   :  { %13642 = vmatprep.mubr.bf16.mxu0 %v20695_v26  ;;  %13647 = vmatpush3.bf16.msra.mxu0 %v14720_v35 }
 0xb5a   :  { %13648 = vmatprep.subr.bf16.mxu0 %v14721_v54 }
 0xb5d   :  { %13649 = vmatpush3.bf16.msra.mxu0 %v14721_v54 }
 0xb5e   :  { %13650 = vmatprep.subr.bf16.mxu0 %v14722_v17 }
 0xb60   :  { %13643 = vmatmul.mubr.bf16.gmra.mrb[28].mxu0 %v20696_v16 }
 0xb61   :  { %13651 = vmatpush3.bf16.msra.mxu0 %v14722_v17  ;;  %13662 = vmatprep.mubr.bf16.mxu0 %v20697_v22  ;;  %v20708_v17 = vld [vmem:[#allocation69_spill] sm:$0xff]  ;;  %v20709_v22 = vld [vmem:[#allocation68_spill] sm:$0xff] }
 0xb62   :  { %13652 = vmatprep.subr.bf16.mxu0 %v14723_v61 }
 0xb65   :  { %13653 = vmatpush3.bf16.msra.mxu0 %v14723_v61 }
 0xb66   :  { %13654 = vmatprep.subr.bf16.mxu0 %v14724_v12 }
 0xb69   :  { %13655 = vmatpush3.bf16.msra.mxu0 %v14724_v12 }
 0xb6a   :  { %13656 = vmatprep.subr.bf16.mxu0 %v14725_v60 }
 0xb6d   :  { %13657 = vmatpush3.bf16.msra.mxu0 %v14725_v60 }
 0xb6e   :  { %13658 = vmatprep.subr.bf16.mxu0 %v14726_v44 }
 0xb71   :  { %13659 = vmatpush3.bf16.msra.mxu0 %v14726_v44  ;;  %v20710_v44 = vld [vmem:[#allocation62_spill] sm:$0xff] }
 0xb72   :  { %13660 = vmatprep.subr.bf16.mxu0 %v14727_v43 }
 0xb75   :  { %13661 = vmatpush3.bf16.msra.mxu0 %v14727_v43 }
 0xb76   :  { %13670 = vmatprep.subr.bf16.mxu0 %v14728_v5 }
 0xb78   :  { %13663 = vmatmul.mubr.bf16.vlgmr.msra.gmra.mrb[24].mxu0 %v20698_v19 }
 0xb79   :  { %13666 = vmatprep.mubr.bf16.mxu0 %v20699_v34  ;;  %13671 = vmatpush3.bf16.msra.mxu0 %v14728_v5  ;;  %v20711_v5 = vld [vmem:[#allocation67_spill] sm:$0xff] }
 0xb7a   :  { %13672 = vmatprep.subr.bf16.mxu0 %v14729_v31 }
 0xb7d   :  { %13673 = vmatpush3.bf16.msra.mxu0 %v14729_v31 }
 0xb7e   :  { %13674 = vmatprep.subr.bf16.mxu0 %v14730_v10 }
 0xb80   :  { %13667 = vmatmul.mubr.bf16.gmra.mrb[28].mxu0 %v8686_v14  ;;  %v8991_v14 = vrot.slane %v8975_v2, %v20703_v59 }
 0xb81   :  { %13675 = vmatpush3.bf16.msra.mxu0 %v14730_v10  ;;  %13686 = vmatprep.mubr.bf16.mxu0 %v8833_v9 }
 0xb82   :  { %13676 = vmatprep.subr.bf16.mxu0 %v14731_v50 }
 0xb85   :  { %13677 = vmatpush3.bf16.msra.mxu0 %v14731_v50 }
 0xb86   :  { %13678 = vmatprep.subr.bf16.mxu0 %v14732_v15 }
 0xb89   :  { %13679 = vmatpush3.bf16.msra.mxu0 %v14732_v15 }
 0xb8a   :  { %13680 = vmatprep.subr.bf16.mxu0 %v14733_v53 }
 0xb8d   :  { %13681 = vmatpush3.bf16.msra.mxu0 %v14733_v53 }
 0xb8e   :  { %13682 = vmatprep.subr.bf16.mxu0 %v14734_v21 }
 0xb91   :  { %13683 = vmatpush3.bf16.msra.mxu0 %v14734_v21  ;;  %v14771_v21 = vmov 2  }
 0xb92   :  { %13684 = vmatprep.subr.bf16.mxu0 %v14735_v18  ;;  %14247 = vset.pattern.permute.xlu0 %v14771_v21 }
 0xb93   :  { %14248 = vset.pattern.permute.xlu1 %v14771_v21 }
 0xb95   :  { %13685 = vmatpush3.bf16.msra.mxu0 %v14735_v18  ;;  %v9149_v18 = vld [vmem:[%s19833_s16] sm:$0x3] }
 0xb96   :  { %v9165_v40 = vrot.slane %v9149_v18, %v20703_v59 }
 0xb98   :  { %13687 = vmatmul.mubr.bf16.vlgmr.msra.gmra.mrb[24].mxu0 %v8834_v41  ;;  %v20702_v41 = vld [vmem:[#allocation55_spill] sm:$0xff] }
 0xb99   :  { %13690 = vmatprep.mubr.bf16.mxu0 %v20700_v23  ;;  %v8979_v56 = vrot.slane %v8975_v2, %v20702_v41  ;;  %v9153_v23 = vrot.slane %v9149_v18, %v20702_v41 }
 0xba0   :  { %13691 = vmatmul.mubr.bf16.gmra.mrb[28].mxu0 %v20701_v58 }
 0xc6b   :  { %v13688_v20 = vpop.f32.mrb[24].mxu0 }
 0xc6c   :  { %v8982_v13 = vmul.f32 %v13688_v20, %v8979_v56  ;;  %v8936_v9 = vpop.f32.mrb[25].mxu0 }
 0xc6d   :  { %v8980_v4 = vmul.f32 %v8979_v56, %v8936_v9  ;;  %v13689_v51 = vpop.f32.mrb[26].mxu0 }
 0xc6e   :  { %v8994_v36 = vadd.f32 %v8991_v14, %v8982_v13  ;;  %v8983_v3 = vmul.f32 %v13689_v51, %v8979_v56  ;;  %v8939_v57 = vpop.f32.mrb[27].mxu0 }
 0xc6f   :  { %v8992_v46 = vadd.f32 %v8991_v14, %v8980_v4  ;;  %v8981_v7 = vmul.f32 %v8979_v56, %v8939_v57 }
 0xc70   :  { %v9002_v25 = vadd.f32 %v8994_v36, %v20704_v45  ;;  %v8995_v55 = vadd.f32 %v8991_v14, %v8983_v3 }
 0xc71   :  { %v9000_v1 = vadd.f32 %v8992_v46, %v20705_v27  ;;  %v8993_v42 = vadd.f32 %v8991_v14, %v8981_v7  ;;  %v20093_v7 = vmov 0.0  }
 0xc72   :  { %v9003_v33 = vadd.f32 %v8995_v55, %v20706_v37  ;;  %v9010_v32 = vmax.f32 %v9002_v25, 0.0  ;;  %13730 = vmatprep.subr.bf16.mxu1 %v20093_v7  ;;  %13718 = vmatprep.subr.bf16.mxu0 %v20093_v7 }
 0xc73   :  { %v9001_v48 = vadd.f32 %v8993_v42, %v20707_v6  ;;  %v13692_v11 = vpop.f32.mrb[28].mxu0  ;;  %v9008_v29 = vmax.f32 %v9000_v1, 0.0  ;;  %13726 = vmatprep.mubr.msk.bf16.mxu0 %vm14774_vm4, %v20093_v7  ;;  %v20712_v6 = vmov 0  }
 0xc74   :  { %v9011_v0 = vmax.f32 %v9003_v33, 0.0  ;;  %v8986_v24 = vmul.f32 %v13692_v11, %v8979_v56  ;;  %v8952_v47 = vpop.f32.mrb[29].mxu0  ;;  %v14773_v33 = vmov 5   ;;  %v14776_v11 = vmov 1  }
 0xc75   :  { %v9009_v39 = vmax.f32 %v9001_v48, 0.0  ;;  %v8984_v62 = vmul.f32 %v8979_v56, %v8952_v47  ;;  %v13693_v38 = vpop.f32.mrb[30].mxu0  ;;  %v14775_v48 = vmov 3   ;;  %v14780_v47 = vmov 6  }
 0xc76   :  { %v9017_v49 = vpack.c.bf16 %v9011_v0, %v9010_v32  ;;  %v8998_v35 = vadd.f32 %v8991_v14, %v8986_v24  ;;  %v8987_v54 = vmul.f32 %v13693_v38, %v8979_v56  ;;  %v8955_v30 = vpop.f32.mrb[31].mxu0  ;;  %v14777_v32 = vmov 4  }
 0xc77   :  { %v8996_v52 = vadd.f32 %v8991_v14, %v8984_v62  ;;  %v8985_v8 = vmul.f32 %v8979_v56, %v8955_v30  ;;  %v9016_v26 = vpack.c.bf16 %v9009_v39, %v9008_v29  ;;  %v14778_v0 = vmov 8   ;;  %v19282_v29 = vld [vmem:[%s19834_s22] sm:$0xff]  ;;  %v19287_v62 = vld [vmem:[%s19834_s22 + $0x8] sm:$0xff]  ;;  %v19297_v30 = vld [vmem:[%s19834_s22 + $0x18] sm:$0xff] }
 0xc78   :  { %v9006_v61 = vadd.f32 %v8998_v35, %v20708_v17  ;;  %v8999_v16 = vadd.f32 %v8991_v14, %v8987_v54  ;;  %v14779_v24 = vmov 7   ;;  %v14781_v38 = vmov 11  }
 0xc79   :  { %v9004_v12 = vadd.f32 %v8996_v52, %v20709_v22  ;;  %v8997_v60 = vadd.f32 %v8991_v14, %v8985_v8  ;;  %13710 = vmatprep.mubr.bf16.mxu1 %v9016_v26  ;;  %v19302_v8 = vld [vmem:[%s19834_s22 + $0x10] sm:$0xff]  ;;  %v19312_v22 = vld [vmem:[%s19834_s22 + $0x20] sm:$0xff] }
 0xc7a   :  { %v9007_v43 = vadd.f32 %v8999_v16, %v20710_v44  ;;  %13711 = vmatmul.mubr.bf16.vlgmr.msra.gmra.mrb[24].mxu1 %v9017_v49  ;;  %v9014_v19 = vmax.f32 %v9006_v61, 0.0 }
 0xc7b   :  { %v9005_v31 = vadd.f32 %v8997_v60, %v20711_v5  ;;  %v9012_v10 = vmax.f32 %v9004_v12, 0.0  ;;  %v19317_v12 = vld [vmem:[%s19834_s22 + $0x28] sm:$0xff] }
 0xc7c   :  { %v9015_v34 = vmax.f32 %v9007_v43, 0.0 }
 0xc7d   :  { %v9013_v50 = vmax.f32 %v9005_v31, 0.0 }
 0xc7e   :  { %v9019_v15 = vpack.c.bf16 %v9015_v34, %v9014_v19  ;;  %v19327_v19 = vld [vmem:[%s19834_s22 + $0x30] sm:$0xff]  ;;  %v19332_v34 = vld [vmem:[%s19834_s22 + $0x38] sm:$0xff] }
 0xc7f   :  { %v9018_v53 = vpack.c.bf16 %v9013_v50, %v9012_v10 }
 0xc81   :  { %13714 = vmatprep.mubr.bf16.mxu1 %v9018_v53 }
 0xc82   :  { %13715 = vmatmul.mubr.bf16.gmra.mrb[28].mxu1 %v9019_v15  ;;  %v14782_v15 = vmov 9  }
 0xc83   :  { %13738 = vmatprep.mubr.msk.bf16.mxu1 %vm14774_vm4, %v20093_v7 }
 0xd4d   :  { %v13712_v58 = vpop.f32.mrb[24].mxu1 }
 0xd4e   :  { %v9118_v28 = vpop.f32.mrb[25].mxu1  ;;  %v9156_v9 = vmul.f32 %v13712_v58, %v9153_v23 }
 0xd4f   :  { %v9154_v63 = vmul.f32 %v9153_v23, %v9118_v28  ;;  %v13713_v2 = vpop.f32.mrb[26].mxu1 }
 0xd50   :  { %v9121_v56 = vpop.f32.mrb[27].mxu1  ;;  %v9157_v20 = vmul.f32 %v13713_v2, %v9153_v23  ;;  %v19200_v59 = vadd.f32 %v9165_v40, %v9156_v9  ;;  %v19347_v2 = vld [vmem:[%s19835_s18] sm:$0x1]  ;;  %v14783_v9 = vmov 10  }
 0xd51   :  { %v19192_v14 = vadd.f32 %v9165_v40, %v9154_v63  ;;  %v9155_v13 = vmul.f32 %v9153_v23, %v9121_v56 }
 0xd52   :  { %v19197_v51 = vadd.f32 %v9165_v40, %v9157_v20 }
 0xd53   :  { %v19194_v4 = vadd.f32 %v9165_v40, %v9155_v13  ;;  %9307 = vperm.xlu0 %14247, %v19192_v14  }
 0xd55   :  { %9311 = vperm.xlu1 %14248, %v19194_v4   ;;  %v13716_v41 = vpop.f32.mrb[28].mxu1 }
 0xd56   :  { %v9134_v36 = vpop.f32.mrb[29].mxu1  ;;  %v9160_v25 = vmul.f32 %v13716_v41, %v9153_v23 }
 0xd57   :  { %v9158_v3 = vmul.f32 %v9153_v23, %v9134_v36  ;;  %9319 = vperm.xlu0 %14247, %v19197_v51   ;;  %v13717_v57 = vpop.f32.mrb[30].mxu1 }
 0xd58   :  { %v9137_v46 = vpop.f32.mrb[31].mxu1  ;;  %v9161_v27 = vmul.f32 %v13717_v57, %v9153_v23  ;;  %v19212_v42 = vadd.f32 %v9165_v40, %v9160_v25 }
 0xd59   :  { %v9159_v45 = vmul.f32 %v9153_v23, %v9137_v46  ;;  %9315 = vperm.xlu1 %14248, %v19200_v59   ;;  %v19206_v55 = vadd.f32 %v9165_v40, %v9158_v3 }
 0xd5a   :  { %v19214_v37 = vadd.f32 %v9165_v40, %v9161_v27 }
 0xd5b   :  { %v19208_v1 = vadd.f32 %v9165_v40, %v9159_v45 }
 0xd5d   :  { %9323 = vperm.xlu1 %14248, %v19206_v55   ;;  %9327 = vperm.xlu0 %14247, %v19208_v1  }
 0xd61   :  { %9331 = vperm.xlu1 %14248, %v19212_v42   ;;  %9335 = vperm.xlu0 %14247, %v19214_v37  }
 0xd65   :  { %14249 = vset.pattern.permute.xlu1 %v14773_v33  ;;  %14250 = vset.pattern.permute.xlu0 %v14773_v33 }
 0xd66   :  { %9604 = vperm.xlu1 %14249, %v19192_v14   ;;  %9608 = vperm.xlu0 %14250, %v19194_v4  }
 0xd6a   :  { %9612 = vperm.xlu1 %14249, %v19200_v59   ;;  %9620 = vperm.xlu0 %14250, %v19206_v55  }
 0xd6e   :  { %9616 = vperm.xlu1 %14249, %v19197_v51   ;;  %9628 = vperm.xlu0 %14250, %v19212_v42  }
 0xd72   :  { %9624 = vperm.xlu1 %14249, %v19208_v1   ;;  %14251 = vset.pattern.permute.xlu0 %v20712_v6 }
 0xd73   :  { %9208 = vperm.xlu0 %14251, %v19192_v14  }
 0xd76   :  { %9632 = vperm.xlu1 %14249, %v19214_v37  }
 0xd77   :  { %9228 = vperm.xlu0 %14251, %v19206_v55  }
 0xd7a   :  { %14252 = vset.pattern.permute.xlu1 %v20712_v6 }
 0xd7b   :  { %9213 = vperm.xlu1 %14252, %v19194_v4   ;;  %14258 = vset.pattern.permute.xlu0 %v14775_v48 }
 0xd7c   :  { %9512 = vperm.xlu0 %14258, %v19192_v14  }
 0xd7f   :  { %14253 = vset.pattern.permute.xlu1 %v14776_v11 }
 0xd80   :  { %9255 = vperm.xlu1 %14253, %v19192_v14   ;;  %14259 = vset.pattern.permute.xlu0 %v14776_v11 }
 0xd81   :  { %9259 = vperm.xlu0 %14259, %v19194_v4  }
 0xd84   :  { %14254 = vset.pattern.permute.xlu1 %v20712_v6 }
 0xd85   :  { %9218 = vperm.xlu1 %14254, %v19200_v59   ;;  %9263 = vperm.xlu0 %14259, %v19200_v59  }
 0xd89   :  { %9223 = vperm.xlu1 %14254, %v19197_v51   ;;  %9279 = vperm.xlu0 %14259, %v19212_v42  }
 0xd8d   :  { %14255 = vset.pattern.permute.xlu1 %v14776_v11  ;;  %9275 = vperm.xlu0 %14259, %v19208_v1  }
 0xd8e   :  { %9267 = vperm.xlu1 %14255, %v19197_v51  }
 0xd91   :  { %14266 = vset.pattern.permute.xlu0 %v14775_v48 }
 0xd92   :  { %9271 = vperm.xlu1 %14255, %v19206_v55   ;;  %9528 = vperm.xlu0 %14266, %v19206_v55  }
 0xd96   :  { %14256 = vset.pattern.permute.xlu1 %v20712_v6  ;;  %14267 = vset.pattern.permute.xlu0 %v14777_v32 }
 0xd97   :  { %9238 = vperm.xlu1 %14256, %v19212_v42   ;;  %9556 = vperm.xlu0 %14267, %v19194_v4  }
 0xd9b   :  { %9243 = vperm.xlu1 %14256, %v19214_v37   ;;  %9560 = vperm.xlu0 %14267, %v19200_v59  }
 0xd9f   :  { %14257 = vset.pattern.permute.xlu1 %v14776_v11  ;;  %9572 = vperm.xlu0 %14267, %v19208_v1  }
 0xda0   :  { %9283 = vperm.xlu1 %14257, %v19214_v37  }
 0xda3   :  { %9576 = vperm.xlu0 %14267, %v19212_v42  }
 0xda4   :  { %14260 = vset.pattern.permute.xlu1 %v14775_v48 }
 0xda5   :  { %9516 = vperm.xlu1 %14260, %v19194_v4  }
 0xda7   :  { %14270 = vset.pattern.permute.xlu0 %v14778_v0 }
 0xda8   :  { %9883 = vperm.xlu0 %14270, %v19192_v14  }
 0xda9   :  { %14261 = vset.pattern.permute.xlu1 %v14777_v32 }
 0xdaa   :  { %9552 = vperm.xlu1 %14261, %v19192_v14  }
 0xdac   :  { %9895 = vperm.xlu0 %14270, %v19197_v51  }
 0xdae   :  { %14262 = vset.pattern.permute.xlu1 %v14775_v48 }
 0xdaf   :  { %9520 = vperm.xlu1 %14262, %v19200_v59  }
 0xdb0   :  { %9903 = vperm.xlu0 %14270, %v19208_v1  }
 0xdb3   :  { %14263 = vset.pattern.permute.xlu1 %v20712_v6 }
 0xdb4   :  { %9233 = vperm.xlu1 %14263, %v19208_v1   ;;  %9911 = vperm.xlu0 %14270, %v19214_v37  }
 0xdb8   :  { %14264 = vset.pattern.permute.xlu1 %v14775_v48  ;;  %14275 = vset.pattern.permute.xlu0 %v14779_v24 }
 0xdb9   :  { %9524 = vperm.xlu1 %14264, %v19197_v51   ;;  %9839 = vperm.xlu0 %14275, %v19200_v59  }
 0xdbd   :  { %14265 = vset.pattern.permute.xlu1 %v14777_v32  ;;  %14276 = vset.pattern.permute.xlu0 %v14780_v47 }
 0xdbe   :  { %9564 = vperm.xlu1 %14265, %v19197_v51   ;;  %9795 = vperm.xlu0 %14276, %v19194_v4  }
 0xdc2   :  { %9568 = vperm.xlu1 %14265, %v19206_v55   ;;  %9799 = vperm.xlu0 %14276, %v19200_v59  }
 0xdc6   :  { %14268 = vset.pattern.permute.xlu1 %v14775_v48  ;;  %9815 = vperm.xlu0 %14276, %v19212_v42  }
 0xdc7   :  { %9536 = vperm.xlu1 %14268, %v19212_v42  }
 0xdca   :  { %9811 = vperm.xlu0 %14276, %v19208_v1  }
 0xdcb   :  { %9540 = vperm.xlu1 %14268, %v19214_v37  }
 0xdce   :  { %14281 = vset.pattern.permute.xlu0 %v14779_v24 }
 0xdcf   :  { %9532 = vperm.xlu1 %14268, %v19208_v1   ;;  %9855 = vperm.xlu0 %14281, %v19212_v42  }
 0xdd2   :  { %v9308_v39 = vpop.permute.xlu0 %9307 }
 0xdd3   :  { %14269 = vset.pattern.permute.xlu1 %v14777_v32  ;;  %14284 = vset.pattern.permute.xlu0 %v14781_v38  ;;  %v9338_v35 = vmul.f32 %v9308_v39, %v19282_v29 }
 0xdd4   :  { %v9312_v49 = vpop.permute.xlu1 %9311  ;;  %9580 = vperm.xlu1 %14269, %v19214_v37   ;;  %10166 = vperm.xlu0 %14284, %v19194_v4  }
 0xdd5   :  { %v9339_v54 = vmul.f32 %v9312_v49, %v19287_v62 }
 0xdd6   :  { %v9320_v52 = vpop.permute.xlu0 %9319 }
 0xdd7   :  { %v9346_v26 = vpack.c.bf16 %v9339_v54, %v9338_v35  ;;  %v9341_v61 = vmul.f32 %v9320_v52, %v19297_v30  ;;  %v19385_v52 = vld [vmem:[%s19836_s19] sm:$0xff] }
 0xdd8   :  { %v9316_v17 = vpop.permute.xlu1 %9315  ;;  %14271 = vset.pattern.permute.xlu1 %v14778_v0  ;;  %10178 = vperm.xlu0 %14284, %v19206_v55  }
 0xdd9   :  { %v9340_v16 = vmul.f32 %v9316_v17, %v19302_v8  ;;  %13731 = vmatpush3.bf16.msra.mxu1 %v9346_v26  ;;  %9887 = vperm.xlu1 %14271, %v19194_v4   ;;  %v19393_v26 = vld [vmem:[%s19837_s20] sm:$0xff]  ;;  %v19398_v17 = vld [vmem:[%s19836_s19 + $0x8] sm:$0xff] }
 0xdda   :  { %13732 = vmatprep.subr.bf16.mxu1 %v20093_v7 }
 0xddb   :  { %v9347_v60 = vpack.c.bf16 %v9341_v61, %v9340_v16  ;;  %v19403_v61 = vld [vmem:[%s19837_s20 + $0x8] sm:$0xff] }
 0xddc   :  { %v9324_v44 = vpop.permute.xlu1 %9323  ;;  %10186 = vperm.xlu0 %14284, %v19212_v42   ;;  %v9328_v43 = vpop.permute.xlu0 %9327 }
 0xddd   :  { %v9342_v5 = vmul.f32 %v9324_v44, %v19312_v22  ;;  %v9343_v31 = vmul.f32 %v9328_v43, %v19317_v12  ;;  %13733 = vmatpush3.bf16.msra.mxu1 %v9347_v60  ;;  %9891 = vperm.xlu1 %14271, %v19200_v59  }
 0xdde   :  { %13734 = vmatprep.subr.bf16.mxu1 %v20093_v7 }
 0xddf   :  { %v9348_v10 = vpack.c.bf16 %v9343_v31, %v9342_v5 }
 0xde0   :  { %v9332_v50 = vpop.permute.xlu1 %9331  ;;  %14285 = vset.pattern.permute.xlu0 %v14782_v15  ;;  %v9336_v53 = vpop.permute.xlu0 %9335 }
 0xde1   :  { %v9344_v21 = vmul.f32 %v9332_v50, %v19327_v19  ;;  %v9345_v18 = vmul.f32 %v9336_v53, %v19332_v34  ;;  %9899 = vperm.xlu1 %14271, %v19206_v55   ;;  %10070 = vperm.xlu0 %14285, %v19192_v14  }
 0xde2   :  { %13735 = vmatpush3.bf16.msra.mxu1 %v9348_v10 }
 0xde3   :  { %v9349_v23 = vpack.c.bf16 %v9345_v18, %v9344_v21  ;;  %13736 = vmatprep.subr.bf16.mxu1 %v20093_v7 }
 0xde5   :  { %v9605_v58 = vpop.permute.xlu1 %9604  ;;  %9907 = vperm.xlu1 %14271, %v19212_v42   ;;  %10086 = vperm.xlu0 %14285, %v19206_v55   ;;  %v9609_v40 = vpop.permute.xlu0 %9608 }
 0xde6   :  { %v9635_v28 = vmul.f32 %v9605_v58, %v19282_v29  ;;  %13737 = vmatpush3.bf16.msra.mxu1 %v9349_v23  ;;  %v9636_v63 = vmul.f32 %v9609_v40, %v19287_v62  ;;  %v19419_v23 = vld [vmem:[%s19836_s19 + $0x10] sm:$0xff] }
 0xde7   :  { %13762 = vmatprep.subr.bf16.mxu1 %v20093_v7  ;;  %v19424_v58 = vld [vmem:[%s19837_s20 + $0x10] sm:$0xff] }
 0xde8   :  { %v9643_v56 = vpack.c.bf16 %v9636_v63, %v9635_v28  ;;  %v19429_v28 = vld [vmem:[%s19836_s19 + $0x18] sm:$0xff] }
 0xde9   :  { %13739 = vmatmul.mubr.msk.bf16.vlgmr.msra.gmra.mrb[32].mxu1 %vm9350_vm5, %v19347_v2  ;;  %v9613_v20 = vpop.permute.xlu1 %9612  ;;  %14272 = vset.pattern.permute.xlu1 %v14780_v47  ;;  %v9621_v13 = vpop.permute.xlu0 %9620  ;;  %v19435_v63 = vld [vmem:[%s19837_s20 + $0x18] sm:$0xff] }
 0xdea   :  { %14290 = vset.pattern.permute.xlu0 %v14783_v9  ;;  %9791 = vperm.xlu1 %14272, %v19192_v14   ;;  %v9637_v3 = vmul.f32 %v9613_v20, %v19302_v8  ;;  %v9639_v25 = vmul.f32 %v9621_v13, %v19312_v22 }
 0xdeb   :  { %10114 = vperm.xlu0 %14290, %v19194_v4   ;;  %13763 = vmatpush3.bf16.msra.mxu1 %v9643_v56 }
 0xdec   :  { %13764 = vmatprep.subr.bf16.mxu1 %v20093_v7  ;;  %13770 = vmatprep.mubr.msk.bf16.mxu1 %vm14774_vm4, %v20093_v7 }
 0xded   :  { %v9617_v41 = vpop.permute.xlu1 %9616  ;;  %v9629_v36 = vpop.permute.xlu0 %9628 }
 0xdee   :  { %v9638_v57 = vmul.f32 %v9617_v41, %v19297_v30  ;;  %14273 = vset.pattern.permute.xlu1 %v14779_v24  ;;  %v9641_v32 = vmul.f32 %v9629_v36, %v19327_v19 }
 0xdef   :  { %10118 = vperm.xlu0 %14290, %v19200_v59   ;;  %9831 = vperm.xlu1 %14273, %v19192_v14  }
 0xdf0   :  { %v9644_v46 = vpack.c.bf16 %v9638_v57, %v9637_v3 }
 0xdf1   :  { %v9625_v45 = vpop.permute.xlu1 %9624 }
 0xdf2   :  { %v9640_v27 = vmul.f32 %v9625_v45, %v19317_v12  ;;  %13765 = vmatpush3.bf16.msra.mxu1 %v9644_v46  ;;  %v9209_v33 = vpop.permute.xlu0 %9208 }
 0xdf3   :  { %10130 = vperm.xlu0 %14290, %v19208_v1   ;;  %9835 = vperm.xlu1 %14273, %v19194_v4   ;;  %v9246_v60 = vmul.f32 %v9209_v33, %v19385_v52 }
 0xdf4   :  { %v9645_v48 = vpack.c.bf16 %v9640_v27, %v9639_v25  ;;  %13766 = vmatprep.subr.bf16.mxu1 %v20093_v7 }
 0xdf5   :  { %v9633_v11 = vpop.permute.xlu1 %9632 }
 0xdf6   :  { %v9642_v0 = vmul.f32 %v9633_v11, %v19332_v34  ;;  %13767 = vmatpush3.bf16.msra.mxu1 %v9645_v48  ;;  %v19371_v39 = vpop.permute.xlu0 %9228 }
 0xdf7   :  { %10134 = vperm.xlu0 %14290, %v19212_v42   ;;  %14274 = vset.pattern.permute.xlu1 %v14780_v47 }
 0xdf8   :  { %v9646_v49 = vpack.c.bf16 %v9642_v0, %v9641_v32  ;;  %9803 = vperm.xlu1 %14274, %v19197_v51   ;;  %13768 = vmatprep.subr.bf16.mxu1 %v20093_v7 }
 0xdfa   :  { %v9214_v35 = vpop.permute.xlu1 %9213  ;;  %13769 = vmatpush3.bf16.msra.mxu1 %v9646_v49 }
 0xdfb   :  { %v19377_v54 = vpop.permute.xlu0 %9512  ;;  %13782 = vmatprep.subr.bf16.mxu1 %v20093_v7  ;;  %14293 = vset.pattern.permute.xlu0 %v20712_v6  ;;  %v9247_v5 = vmul.f32 %v9214_v35, %v19398_v17 }
 0xdfc   :  { %14277 = vset.pattern.permute.xlu1 %v14779_v24 }
 0xdfd   :  { %9843 = vperm.xlu1 %14277, %v19197_v51   ;;  %13771 = vmatmul.mubr.msk.bf16.vlgmr.msra.gmra.mrb[36].mxu1 %vm9350_vm5, %v19347_v2 }
 0xdfe   :  { %13790 = vmatprep.mubr.msk.bf16.mxu1 %vm14774_vm4, %v20093_v7 }
 0xdff   :  { %v9256_v16 = vpop.permute.xlu1 %9255 }
 0xe00   :  { %v9286_v44 = vmul.f32 %v9256_v16, %v19393_v26  ;;  %v9260_v43 = vpop.permute.xlu0 %9259  ;;  %v9543_v16 = vmul.f32 %v19377_v54, %v19385_v52 }
 0xe01   :  { %v9287_v31 = vmul.f32 %v9260_v43, %v19403_v61  ;;  %14278 = vset.pattern.permute.xlu1 %v14780_v47 }
 0xe02   :  { %v9294_v10 = vadd.f32 %v9286_v44, %v9246_v60  ;;  %9807 = vperm.xlu1 %14278, %v19206_v55  }
 0xe03   :  { %v9295_v50 = vadd.f32 %v9287_v31, %v9247_v5 }
 0xe04   :  { %v9219_v53 = vpop.permute.xlu1 %9218  ;;  %v9264_v40 = vpop.permute.xlu0 %9263 }
 0xe05   :  { %v9302_v21 = vpack.c.bf16 %v9295_v50, %v9294_v10  ;;  %v9248_v56 = vmul.f32 %v9219_v53, %v19419_v23  ;;  %v9288_v20 = vmul.f32 %v9264_v40, %v19424_v58  ;;  %v19469_v10 = vld [vmem:[%s19837_s20 + $0x20] sm:$0xff] }
 0xe06   :  { %14279 = vset.pattern.permute.xlu1 %v14779_v24  ;;  %v19477_v53 = vld [vmem:[%s19836_s19 + $0x20] sm:$0xff] }
 0xe07   :  { %9847 = vperm.xlu1 %14279, %v19206_v55   ;;  %13719 = vmatpush3.bf16.msra.mxu0 %v9302_v21  ;;  %v9296_v3 = vadd.f32 %v9288_v20, %v9248_v56  ;;  %v19482_v21 = vld [vmem:[%s19837_s20 + $0x28] sm:$0xff]  ;;  %v19500_v20 = vld [vmem:[%s19836_s19 + $0x30] sm:$0xff] }
 0xe08   :  { %v9224_v18 = vpop.permute.xlu1 %9223  ;;  %13720 = vmatprep.subr.bf16.mxu0 %v20093_v7  ;;  %v9280_v57 = vpop.permute.xlu0 %9279 }
 0xe09   :  { %v9249_v41 = vmul.f32 %v9224_v18, %v19429_v28  ;;  %v19487_v18 = vld [vmem:[%s19837_s20 + $0x38] sm:$0xff] }
 0xe0b   :  { %14280 = vset.pattern.permute.xlu1 %v14780_v47 }
 0xe0c   :  { %9819 = vperm.xlu1 %14280, %v19214_v37   ;;  %v9276_v25 = vpop.permute.xlu0 %9275 }
 0xe0d   :  { %v9268_v13 = vpop.permute.xlu1 %9267 }
 0xe0e   :  { %v9289_v36 = vmul.f32 %v9268_v13, %v19435_v63  ;;  %v19505_v13 = vld [vmem:[%s19836_s19 + $0x38] sm:$0xff] }
 0xe10   :  { %v9297_v46 = vadd.f32 %v9289_v36, %v9249_v41  ;;  %14282 = vset.pattern.permute.xlu1 %v14779_v24  ;;  %v9250_v36 = vmul.f32 %v19371_v39, %v19477_v53 }
 0xe11   :  { %9851 = vperm.xlu1 %14282, %v19208_v1   ;;  %v9272_v47 = vpop.permute.xlu1 %9271  ;;  %v19448_v48 = vpop.permute.xlu0 %9528 }
 0xe12   :  { %v9303_v45 = vpack.c.bf16 %v9297_v46, %v9296_v3  ;;  %v9290_v56 = vmul.f32 %v9272_v47, %v19469_v10  ;;  %v9291_v3 = vmul.f32 %v9276_v25, %v19482_v21 }
 0xe14   :  { %13721 = vmatpush3.bf16.msra.mxu0 %v9303_v45  ;;  %v19517_v45 = vld [vmem:[%s19837_s20 + $0x30] sm:$0xff] }
 0xe15   :  { %9859 = vperm.xlu1 %14282, %v19214_v37   ;;  %13722 = vmatprep.subr.bf16.mxu0 %v20093_v7  ;;  %v9292_v39 = vmul.f32 %v9280_v57, %v19517_v45 }
 0xe16   :  { %v9239_v27 = vpop.permute.xlu1 %9238  ;;  %v9557_v11 = vpop.permute.xlu0 %9556 }
 0xe17   :  { %v9584_v0 = vmul.f32 %v9557_v11, %v19403_v61  ;;  %v9298_v11 = vadd.f32 %v9290_v56, %v9250_v36 }
 0xe19   :  { %14283 = vset.pattern.permute.xlu1 %v14781_v38 }
 0xe1a   :  { %10162 = vperm.xlu1 %14283, %v19192_v14   ;;  %v9244_v33 = vpop.permute.xlu1 %9243  ;;  %v9561_v44 = vpop.permute.xlu0 %9560 }
 0xe1b   :  { %v9585_v54 = vmul.f32 %v9561_v44, %v19424_v58  ;;  %v19531_v44 = vld [vmem:[%s19838_s24] sm:$0xff]  }
 0xe1e   :  { %10170 = vperm.xlu1 %14283, %v19200_v59  }
 0xe1f   :  { %v9284_v24 = vpop.permute.xlu1 %9283 }
 0xe20   :  { %v9293_v46 = vmul.f32 %v9284_v24, %v19487_v18 }
 0xe22   :  { %10174 = vperm.xlu1 %14283, %v19197_v51  }
 0xe24   :  { %v9517_v32 = vpop.permute.xlu1 %9516 }
 0xe25   :  { %v9544_v49 = vmul.f32 %v9517_v32, %v19398_v17  ;;  %v9252_v32 = vmul.f32 %v9239_v27, %v19500_v20 }
 0xe26   :  { %10182 = vperm.xlu1 %14283, %v19208_v1  }
 0xe27   :  { %v19455_v35 = vadd.f32 %v9584_v0, %v9544_v49  ;;  %v9253_v0 = vmul.f32 %v9244_v33, %v19505_v13 }
 0xe29   :  { %v9553_v38 = vpop.permute.xlu1 %9552  ;;  %v9301_v25 = vadd.f32 %v9293_v46, %v9253_v0 }
 0xe2a   :  { %v9583_v60 = vmul.f32 %v9553_v38, %v19393_v26  ;;  %10190 = vperm.xlu1 %14283, %v19214_v37  }
 0xe2c   :  { %v19461_v43 = vadd.f32 %v9583_v60, %v9543_v16  ;;  %v9573_v60 = vpop.permute.xlu0 %9572 }
 0xe2d   :  { %v9588_v0 = vmul.f32 %v9573_v60, %v19482_v21 }
 0xe2e   :  { %14286 = vset.pattern.permute.xlu1 %v14782_v15  ;;  %v9521_v31 = vpop.permute.xlu1 %9520 }
 0xe2f   :  { %v9545_v50 = vmul.f32 %v9521_v31, %v19419_v23  ;;  %10074 = vperm.xlu1 %14286, %v19194_v4   ;;  %v19494_v4 = vld [vmem:[%s19836_s19 + $0x28] sm:$0xff] }
 0xe31   :  { %v19489_v40 = vadd.f32 %v9585_v54, %v9545_v50  ;;  %v9547_v54 = vmul.f32 %v19448_v48, %v19477_v53  ;;  %v9577_v48 = vpop.permute.xlu0 %9576 }
 0xe33   :  { %14287 = vset.pattern.permute.xlu1 %v14783_v9  ;;  %v9234_v41 = vpop.permute.xlu1 %9233 }
 0xe34   :  { %v9251_v47 = vmul.f32 %v9234_v41, %v19494_v4  ;;  %10110 = vperm.xlu1 %14287, %v19192_v14   ;;  %v9300_v14 = vadd.f32 %v9292_v39, %v9252_v32  ;;  %v19549_v41 = vld [vmem:[%s19838_s24 + $0x8] sm:$0xff]  }
 0xe36   :  { %v9299_v49 = vadd.f32 %v9291_v3, %v9251_v47  ;;  %v9305_v16 = vpack.c.bf16 %v9301_v25, %v9300_v14 }
 0xe38   :  { %v9304_v38 = vpack.c.bf16 %v9299_v49, %v9298_v11  ;;  %14288 = vset.pattern.permute.xlu1 %v14782_v15  ;;  %v9525_v24 = vpop.permute.xlu1 %9524  ;;  %v9884_v49 = vpop.permute.xlu0 %9883 }
 0xe39   :  { %10078 = vperm.xlu1 %14288, %v19200_v59   ;;  %v9546_v33 = vmul.f32 %v9525_v24, %v19429_v28  ;;  %v19582_v60 = vmul.f32 %v9884_v49, %v19282_v29 }
 0xe3a   :  { %13723 = vmatpush3.bf16.msra.mxu0 %v9304_v38 }
 0xe3b   :  { %13724 = vmatprep.subr.bf16.mxu0 %v20093_v7 }
 0xe3c   :  { %v9896_v24 = vpop.permute.xlu0 %9895 }
 0xe3d   :  { %10082 = vperm.xlu1 %14288, %v19197_v51   ;;  %v9565_v27 = vpop.permute.xlu1 %9564 }
 0xe3e   :  { %v9586_v57 = vmul.f32 %v9565_v27, %v19435_v63  ;;  %13725 = vmatpush3.bf16.msra.mxu0 %v9305_v16 }
 0xe3f   :  { %13742 = vmatprep.subr.bf16.mxu0 %v20093_v7 }
 0xe40   :  { %v19534_v59 = vadd.f32 %v9586_v57, %v9546_v33  ;;  %v9904_v57 = vpop.permute.xlu0 %9903 }
 0xe41   :  { %14289 = vset.pattern.permute.xlu1 %v14783_v9  ;;  %v9569_v31 = vpop.permute.xlu1 %9568  ;;  %13727 = vmatmul.mubr.msk.bf16.vlgmr.msra.gmra.mrb[32].mxu0 %vm9350_vm5, %v19347_v2 }
 0xe42   :  { %v9587_v56 = vmul.f32 %v9569_v31, %v19469_v10  ;;  %10122 = vperm.xlu1 %14289, %v19197_v51   ;;  %13743 = vmatpush3.bf16.msra.mxu0 %v19531_v44  ;;  %v9589_v51 = vmul.f32 %v9577_v48, %v19517_v45  ;;  %v19599_v48 = vmul.f32 %v9904_v57, %v19317_v12 }
 0xe43   :  { %13744 = vmatprep.subr.bf16.mxu0 %v20093_v7  ;;  %13746 = vmatprep.mubr.msk.bf16.mxu0 %vm14774_vm4, %v20093_v7 }
 0xe44   :  { %v19554_v36 = vadd.f32 %v9587_v56, %v9547_v54 }
 0xe46   :  { %10126 = vperm.xlu1 %14289, %v19206_v55   ;;  %v9537_v3 = vpop.permute.xlu1 %9536  ;;  %13745 = vmatpush3.bf16.msra.mxu0 %v19549_v41 }
 0xe47   :  { %v9549_v46 = vmul.f32 %v9537_v3, %v19500_v20  ;;  %13750 = vmatprep.subr.bf16.mxu0 %v20093_v7 }
 0xe49   :  { %v19561_v47 = vadd.f32 %v9589_v51, %v9549_v46  ;;  %v9912_v51 = vpop.permute.xlu0 %9911 }
 0xe4a   :  { %14291 = vset.pattern.permute.xlu1 %v14782_v15  ;;  %v9541_v11 = vpop.permute.xlu1 %9540 }
 0xe4b   :  { %10094 = vperm.xlu1 %14291, %v19212_v42   ;;  %v9550_v15 = vmul.f32 %v9541_v11, %v19505_v13  ;;  %v19607_v11 = vmul.f32 %v9912_v51, %v19332_v34 }
 0xe4d   :  { %v9840_v49 = vpop.permute.xlu0 %9839 }
 0xe4e   :  { %v9533_v32 = vpop.permute.xlu1 %9532 }
 0xe4f   :  { %v9548_v55 = vmul.f32 %v9533_v32, %v19494_v4  ;;  %10098 = vperm.xlu1 %14291, %v19214_v37  }
 0xe51   :  { %v19568_v39 = vadd.f32 %v9588_v0, %v9548_v55 }
 0xe53   :  { %10090 = vperm.xlu1 %14291, %v19208_v1   ;;  %v9581_v38 = vpop.permute.xlu1 %9580 }
 0xe54   :  { %v9590_v42 = vmul.f32 %v9581_v38, %v19487_v18 }
 0xe56   :  { %v19575_v14 = vadd.f32 %v9590_v42, %v9550_v15  ;;  %v9796_v15 = vpop.permute.xlu0 %9795 }
 0xe57   :  { %14292 = vset.pattern.permute.xlu1 %v14783_v9  ;;  %v19591_v9 = vmul.f32 %v9896_v24, %v19297_v30 }
 0xe58   :  { %10138 = vperm.xlu1 %14292, %v19214_v37   ;;  %v9888_v27 = vpop.permute.xlu1 %9887 }
 0xe59   :  { %v19585_v1 = vmul.f32 %v9888_v27, %v19287_v62  ;;  %v9823_v27 = vmul.f32 %v9796_v15, %v19398_v17 }
 0xe5a   :  { %v9800_v37 = vpop.permute.xlu0 %9799 }
 0xe5b   :  { %v9824_v0 = vmul.f32 %v9800_v37, %v19419_v23 }
 0xe5c   :  { %v9892_v31 = vpop.permute.xlu1 %9891  ;;  %14294 = vset.pattern.permute.xlu1 %v20712_v6 }
 0xe5d   :  { %v19594_v54 = vmul.f32 %v9892_v31, %v19302_v8 }
 0xe60   :  { %v9900_v56 = vpop.permute.xlu1 %9899 }
 0xe61   :  { %v19602_v3 = vmul.f32 %v9900_v56, %v19312_v22 }
 0xe64   :  { %v9908_v46 = vpop.permute.xlu1 %9907 }
 0xe65   :  { %v19610_v32 = vmul.f32 %v9908_v46, %v19327_v19 }
 0xe69   :  { %v9792_v55 = vpop.permute.xlu1 %9791 }
 0xe6a   :  { %v9822_v57 = vmul.f32 %v9792_v55, %v19385_v52 }
 0xe6e   :  { %v9832_v38 = vpop.permute.xlu1 %9831 }
 0xe6f   :  { %v9862_v42 = vmul.f32 %v9832_v38, %v19393_v26  ;;  %v9864_v38 = vmul.f32 %v9840_v49, %v19424_v58 }
 0xe71   :  { %v9870_v56 = vadd.f32 %v9862_v42, %v9822_v57  ;;  %v9872_v55 = vadd.f32 %v9864_v38, %v9824_v0 }
 0xe72   :  { %v9836_v24 = vpop.permute.xlu1 %9835 }
 0xe73   :  { %v9863_v31 = vmul.f32 %v9836_v24, %v19403_v61 }
 0xe75   :  { %v9871_v51 = vadd.f32 %v9863_v31, %v9823_v27  ;;  %v9816_v27 = vpop.permute.xlu0 %9815 }
 0xe77   :  { %v9878_v46 = vpack.c.bf16 %v9871_v51, %v9870_v56  ;;  %v9804_v6 = vpop.permute.xlu1 %9803 }
 0xe78   :  { %v9825_v16 = vmul.f32 %v9804_v6, %v19429_v28 }
 0xe79   :  { %13783 = vmatpush3.bf16.msra.mxu1 %v9878_v46  ;;  %v9812_v31 = vpop.permute.xlu0 %9811 }
 0xe7a   :  { %13784 = vmatprep.subr.bf16.mxu1 %v20093_v7  ;;  %v9827_v49 = vmul.f32 %v9812_v31, %v19494_v4  ;;  %v20713_v31 = vmov 0.0  }
 0xe7c   :  { %v9844_v33 = vpop.permute.xlu1 %9843 }
 0xe7d   :  { %v9865_v15 = vmul.f32 %v9844_v33, %v19435_v63  ;;  %v9856_v51 = vpop.permute.xlu0 %9855 }
 0xe7f   :  { %v9873_v25 = vadd.f32 %v9865_v15, %v9825_v16  ;;  %v9828_v15 = vmul.f32 %v9816_v27, %v19500_v20 }
 0xe81   :  { %v9879_v24 = vpack.c.bf16 %v9873_v25, %v9872_v55  ;;  %v9808_v42 = vpop.permute.xlu1 %9807  ;;  %v9868_v25 = vmul.f32 %v9856_v51, %v19517_v45  ;;  %v10167_v5 = vpop.permute.xlu0 %10166 }
 0xe82   :  { %v9826_v6 = vmul.f32 %v9808_v42, %v19477_v53  ;;  %v19634_v51 = vmul.f32 %v10167_v5, %v19287_v62 }
 0xe83   :  { %13785 = vmatpush3.bf16.msra.mxu1 %v9879_v24  ;;  %v9876_v50 = vadd.f32 %v9868_v25, %v9828_v15 }
 0xe84   :  { %13786 = vmatprep.subr.bf16.mxu1 %v20093_v7 }
 0xe86   :  { %v9848_v57 = vpop.permute.xlu1 %9847 }
 0xe87   :  { %v9866_v37 = vmul.f32 %v9848_v57, %v19469_v10 }
 0xe89   :  { %v9874_v16 = vadd.f32 %v9866_v37, %v9826_v6 }
 0xe8b   :  { %v9820_v56 = vpop.permute.xlu1 %9819 }
 0xe8c   :  { %v9829_v55 = vmul.f32 %v9820_v56, %v19505_v13 }
 0xe90   :  { %v9852_v46 = vpop.permute.xlu1 %9851 }
 0xe91   :  { %v9867_v33 = vmul.f32 %v9852_v46, %v19482_v21 }
 0xe93   :  { %v9875_v0 = vadd.f32 %v9867_v33, %v9827_v49 }
 0xe94   :  { %v9860_v38 = vpop.permute.xlu1 %9859 }
 0xe95   :  { %v9880_v24 = vpack.c.bf16 %v9875_v0, %v9874_v16  ;;  %v9869_v57 = vmul.f32 %v9860_v38, %v19487_v18 }
 0xe97   :  { %v9877_v7 = vadd.f32 %v9869_v57, %v9829_v55  ;;  %13787 = vmatpush3.bf16.msra.mxu1 %v9880_v24 }
 0xe98   :  { %13788 = vmatprep.subr.bf16.mxu1 %v20713_v31 }
 0xe99   :  { %v9881_v42 = vpack.c.bf16 %v9877_v7, %v9876_v50  ;;  %v10163_v46 = vpop.permute.xlu1 %10162  ;;  %v10179_v7 = vpop.permute.xlu0 %10178 }
 0xe9a   :  { %v19637_v37 = vmul.f32 %v10163_v46, %v19282_v29  ;;  %v19659_v6 = vmul.f32 %v10179_v7, %v19312_v22  ;;  %v19677_v22 = vld [vmem:[%s19839_s23] sm:$0x1]  ;;  %v20714_v7 = vpack.c.bf16 %v19455_v35, %v19461_v43  ;;  %v20717_v35 = vpack.c.bf16 %v19575_v14, %v19561_v47 }
 0xe9b   :  { %13789 = vmatpush3.bf16.msra.mxu1 %v9881_v42 }
 0xe9c   :  { %v10201_v27 = vpack.c.bf16 %v19634_v51, %v19637_v37  ;;  %13806 = vmatprep.subr.bf16.mxu1 %v20713_v31 }
 0xe9d   :  { %v10171_v56 = vpop.permute.xlu1 %10170  ;;  %v10187_v25 = vpop.permute.xlu0 %10186 }
 0xe9e   :  { %13791 = vmatmul.mubr.msk.bf16.vlgmr.msra.gmra.mrb[40].mxu1 %vm9350_vm5, %v19347_v2  ;;  %v19649_v62 = vmul.f32 %v10171_v56, %v19302_v8  ;;  %v19667_v16 = vmul.f32 %v10187_v25, %v19327_v19  ;;  %v20716_v25 = vpack.c.bf16 %v19568_v39, %v19554_v36 }
 0xe9f   :  { %13807 = vmatpush3.bf16.msra.mxu1 %v19531_v44  ;;  %13810 = vmatprep.mubr.msk.bf16.mxu1 %vm14774_vm4, %v20713_v31 }
 0xea0   :  { %13808 = vmatprep.subr.bf16.mxu1 %v20713_v31 }
 0xea1   :  { %v10175_v29 = vpop.permute.xlu1 %10174 }
 0xea2   :  { %v19652_v5 = vmul.f32 %v10175_v29, %v19297_v30 }
 0xea3   :  { %13809 = vmatpush3.bf16.msra.mxu1 %v19549_v41 }
 0xea4   :  { %v10202_v50 = vpack.c.bf16 %v19652_v5, %v19649_v62  ;;  %13826 = vmatprep.subr.bf16.mxu1 %v20713_v31 }
 0xea5   :  { %v10183_v49 = vpop.permute.xlu1 %10182 }
 0xea6   :  { %v19662_v33 = vmul.f32 %v10183_v49, %v19317_v12  ;;  %v20715_v49 = vpack.c.bf16 %v19534_v59, %v19489_v40 }
 0xea8   :  { %v10203_v8 = vpack.c.bf16 %v19662_v33, %v19659_v6 }
 0xea9   :  { %v10191_v30 = vpop.permute.xlu1 %10190 }
 0xeaa   :  { %v19670_v0 = vmul.f32 %v10191_v30, %v19332_v34 }
 0xeac   :  { %v10204_v38 = vpack.c.bf16 %v19670_v0, %v19667_v16 }
 0xeae   :  { %v10075_v15 = vpop.permute.xlu1 %10074 }
 0xeb3   :  { %v10111_v12 = vpop.permute.xlu1 %10110 }
 0xeb8   :  { %v10079_v34 = vpop.permute.xlu1 %10078 }
 0xebc   :  { %v9440_v55 = vpop.f32.mrb[32].mxu1  ;;  %v10083_v29 = vpop.permute.xlu1 %10082 }
 0xebd   :  { %v9441_v24 = vadd.f32 %v9440_v55, %v19677_v22  ;;  %v13740_v57 = vpop.f32.mrb[33].mxu1  ;;  %v10071_v55 = vpop.permute.xlu0 %10070 }
 0xebe   :  { %v9443_v42 = vpop.f32.mrb[34].mxu1 }
 0xebf   :  { %v9446_v19 = vmax.f32 %v9441_v24, 0.0  ;;  %v13741_v46 = vpop.f32.mrb[35].mxu1 }
 0xec1   :  { %v9447_v56 = vpack.c.bf16 %v9446_v19, %v9446_v19  ;;  %v10123_v30 = vpop.permute.xlu1 %10122  ;;  %v10087_v47 = vpop.permute.xlu0 %10086  ;;  %v20718_v19 = vpack.c.bf16 %v19585_v1, %v19582_v60  ;;  %v10102_v60 = vmul.f32 %v10075_v15, %v19398_v17  ;;  %v20720_v1 = vpack.c.bf16 %v19599_v48, %v19602_v3 }
 0xec3   :  { %13747 = vmatmul.mubr.msk.bf16.vlgmr.msra.gmra.mrb[36].mxu0 %vm9460_vm6, %v9447_v56 }
 0xec4   :  { %13751 = vmatpush3.bf16.msra.mxu0 %v20714_v7  ;;  %13758 = vmatprep.mubr.msk.bf16.mxu0 %vm14774_vm4, %v20713_v31  ;;  %v20719_v7 = vpack.c.bf16 %v19591_v9, %v19594_v54  ;;  %v10144_v54 = vmul.f32 %v10123_v30, %v19435_v63 }
 0xec5   :  { %13752 = vmatprep.subr.bf16.mxu0 %v20713_v31  ;;  %v10127_v57 = vpop.permute.xlu1 %10126  ;;  %v10115_v46 = vpop.permute.xlu0 %10114 }
 0xec6   :  { %v10145_v63 = vmul.f32 %v10127_v57, %v19469_v10 }
 0xec8   :  { %13753 = vmatpush3.bf16.msra.mxu0 %v20715_v49  ;;  %v10141_v49 = vmul.f32 %v10111_v12, %v19393_v26  ;;  %v10103_v26 = vmul.f32 %v10079_v34, %v19419_v23  ;;  %v10104_v12 = vmul.f32 %v10083_v29, %v19429_v28 }
 0xec9   :  { %13754 = vmatprep.subr.bf16.mxu0 %v20713_v31 }
 0xeca   :  { %v10095_v42 = vpop.permute.xlu1 %10094  ;;  %v10152_v15 = vadd.f32 %v10144_v54, %v10104_v12 }
 0xecb   :  { %v10107_v30 = vmul.f32 %v10095_v42, %v19500_v20  ;;  %v9199_v20 = vld [vmem:[%s19841_s21] sm:$0x1] }
 0xecc   :  { %13755 = vmatpush3.bf16.msra.mxu0 %v20716_v25  ;;  %v10119_v25 = vpop.permute.xlu0 %10118 }
 0xecd   :  { %13756 = vmatprep.subr.bf16.mxu0 %v20713_v31  ;;  %v10143_v48 = vmul.f32 %v10119_v25, %v19424_v58  ;;  %v10105_v58 = vmul.f32 %v10087_v47, %v19477_v53 }
 0xece   :  { %v10099_v56 = vpop.permute.xlu1 %10098 }
 0xecf   :  { %v10151_v28 = vadd.f32 %v10143_v48, %v10103_v26  ;;  %v10153_v29 = vadd.f32 %v10145_v63, %v10105_v58 }
 0xed0   :  { %13757 = vmatpush3.bf16.msra.mxu0 %v20717_v35  ;;  %v9732_v43 = vpop.f32.mrb[36].mxu1  ;;  %v10101_v35 = vmul.f32 %v10071_v55, %v19385_v52  ;;  %v20721_v52 = vpack.c.bf16 %v19607_v11, %v19610_v32  ;;  %v10131_v17 = vpop.permute.xlu0 %10130 }
 0xed1   :  { %v9733_v24 = vadd.f32 %v9732_v43, %v19677_v22  ;;  %13774 = vmatprep.subr.bf16.mxu0 %v20713_v31  ;;  %v13772_v40 = vpop.f32.mrb[37].mxu1  ;;  %v10146_v23 = vmul.f32 %v10131_v17, %v19482_v21  ;;  %v10158_v11 = vpack.c.bf16 %v10152_v15, %v10151_v28  ;;  %v10108_v21 = vmul.f32 %v10099_v56, %v19505_v13 }
 0xed2   :  { %v9735_v59 = vpop.f32.mrb[38].mxu1  ;;  %v10091_v43 = vpop.permute.xlu1 %10090  ;;  %v10149_v9 = vadd.f32 %v10141_v49, %v10101_v35 }
 0xed3   :  { %13759 = vmatmul.mubr.msk.bf16.vlgmr.msra.gmra.mrb[40].mxu0 %vm9350_vm5, %v19347_v2  ;;  %v9738_v36 = vmax.f32 %v9733_v24, 0.0  ;;  %v13773_v39 = vpop.f32.mrb[39].mxu1  ;;  %v10142_v24 = vmul.f32 %v10115_v46, %v19403_v61  ;;  %v10106_v61 = vmul.f32 %v10091_v43, %v19494_v4 }
 0xed4   :  { %13775 = vmatpush3.bf16.msra.mxu0 %v19531_v44  ;;  %13778 = vmatprep.mubr.msk.bf16.mxu0 %vm14774_vm4, %v20713_v31  ;;  %v10135_v34 = vpop.permute.xlu0 %10134 }
 0xed5   :  { %13776 = vmatprep.subr.bf16.mxu0 %v20713_v31  ;;  %v9739_v14 = vpack.c.bf16 %v9738_v36, %v9738_v36  ;;  %v10150_v40 = vadd.f32 %v10142_v24, %v10102_v60  ;;  %v10154_v32 = vadd.f32 %v10146_v23, %v10106_v61  ;;  %v10147_v10 = vmul.f32 %v10135_v34, %v19517_v45 }
 0xed7   :  { %v10157_v3 = vpack.c.bf16 %v10150_v40, %v10149_v9  ;;  %v10139_v55 = vpop.permute.xlu1 %10138  ;;  %v10159_v59 = vpack.c.bf16 %v10154_v32, %v10153_v29  ;;  %v10155_v36 = vadd.f32 %v10147_v10, %v10107_v30 }
 0xed8   :  { %13777 = vmatpush3.bf16.msra.mxu0 %v19549_v41  ;;  %v10148_v4 = vmul.f32 %v10139_v55, %v19487_v18  ;;  %v31_v18 = vstv %s19840_s25 }
 0xed9   :  { %13794 = vmatprep.subr.bf16.mxu0 %v20713_v31  ;;  %32 = vst [vmem:[#allocation2] sm:$0x1] %v31_v18 }
 0xeda   :  { %v10156_v57 = vadd.f32 %v10148_v4, %v10108_v21 }
 0xedb   :  { %13779 = vmatmul.mubr.msk.bf16.vlgmr.msra.gmra.mrb[44].mxu0 %vm9460_vm6, %v9739_v14 }
 0xedc   :  { %13795 = vmatpush3.bf16.msra.mxu0 %v20718_v19  ;;  %13802 = vmatprep.mubr.msk.bf16.mxu0 %vm14774_vm4, %v20713_v31  ;;  %v10160_v53 = vpack.c.bf16 %v10156_v57, %v10155_v36 }
 0xedd   :  { %13796 = vmatprep.subr.bf16.mxu0 %v20713_v31 }
 0xee0   :  { %13797 = vmatpush3.bf16.msra.mxu0 %v20719_v7  ;;  %v19774_v23 = vld [vmem:[#allocation2] sm:$0x1] }
 0xee1   :  { %13798 = vmatprep.subr.bf16.mxu0 %v20713_v31 }
 0xee4   :  { %13799 = vmatpush3.bf16.msra.mxu0 %v20720_v1 }
 0xee5   :  { %13800 = vmatprep.subr.bf16.mxu0 %v20713_v31 }
 0xee8   :  { %13801 = vmatpush3.bf16.msra.mxu0 %v20721_v52 }
 0xee9   :  { %13814 = vmatprep.subr.bf16.mxu0 %v20713_v31 }
 0xeeb   :  { %13803 = vmatmul.mubr.msk.bf16.vlgmr.msra.gmra.mrb[48].mxu0 %vm9350_vm5, %v19347_v2 }
 0xeec   :  { %13815 = vmatpush3.bf16.msra.mxu0 %v10157_v3  ;;  %13822 = vmatprep.mubr.msk.bf16.mxu0 %vm14774_vm4, %v20713_v31 }
 0xeed   :  { %13816 = vmatprep.subr.bf16.mxu0 %v20713_v31 }
 0xef0   :  { %13817 = vmatpush3.bf16.msra.mxu0 %v10158_v11 }
 0xef1   :  { %13818 = vmatprep.subr.bf16.mxu0 %v20713_v31 }
 0xef4   :  { %13819 = vmatpush3.bf16.msra.mxu0 %v10159_v59 }
 0xef5   :  { %13820 = vmatprep.subr.bf16.mxu0 %v20713_v31 }
 0xef8   :  { %13821 = vmatpush3.bf16.msra.mxu0 %v10160_v53 }
 0xef9   :  { %13838 = vmatprep.subr.bf16.mxu0 %v20713_v31 }
 0xefb   :  { %13823 = vmatmul.mubr.msk.bf16.vlgmr.msra.gmra.mrb[52].mxu0 %vm9350_vm5, %v19347_v2 }
 0xefc   :  { %13839 = vmatpush3.bf16.msra.mxu0 %v19531_v44  ;;  %13842 = vmatprep.mubr.msk.bf16.mxu0 %vm14774_vm4, %v20713_v31 }
 0xefd   :  { %13840 = vmatprep.subr.bf16.mxu0 %v20713_v31 }
 0xf00   :  { %13841 = vmatpush3.bf16.msra.mxu0 %v19549_v41 }
 0xf14   :  { %v9388_v13 = vpop.f32.mrb[32].mxu0 }
 0xf15   :  { %v9389_v45 = vadd.f32 %v9388_v13, %v9199_v20  ;;  %v13728_v39 = vpop.f32.mrb[33].mxu0 }
 0xf16   :  { %v9391_v47 = vpop.f32.mrb[34].mxu0 }
 0xf17   :  { %v9395_v14 = vsel %vm9394_vm7, %v9389_v45, -inf  ;;  %v13729_v42 = vpop.f32.mrb[35].mxu0 }
 0xf18   :  { %9396 = vmax.xlane.f32.xlu0 %v9395_v14 }
 0xf71   :  { %v9960_v44 = vpop.f32.mrb[40].mxu1 }
 0xf72   :  { %v19765_v19 = vadd.f32 %v9960_v44, %v9199_v20  ;;  %v13792_v46 = vpop.f32.mrb[41].mxu1 }
 0xf73   :  { %v9963_v56 = vpop.f32.mrb[42].mxu1 }
 0xf74   :  { %v9966_v41 = vsel %vm9394_vm7, %v19765_v19, -inf  ;;  %v13793_v7 = vpop.f32.mrb[43].mxu1 }
 0xf75   :  { %9967 = vmax.xlane.f32.xlu1 %v9966_v41 }
 0xf96   :  { %v9498_v49 = vpop.f32.mrb[36].mxu0 }
 0xf97   :  { %v13748_v25 = vpop.f32.mrb[37].mxu0  ;;  %v9499_v62 = vadd.f32 %v9498_v49, %v19774_v23 }
 0xf98   :  { %v9501_v35 = vpop.f32.mrb[38].mxu0 }
 0xf99   :  { %v13749_v60 = vpop.f32.mrb[39].mxu0 }
 0xfa5   :  { %v9397_v1 = vpop.xlane.xlu0 %9396 }
 0xfa6   :  { %v9681_v43 = vpop.f32.mrb[40].mxu0  ;;  %v9398_v24 = vsub.f32 %v9389_v45, %v9397_v1 }
 0xfa7   :  { %v9682_v9 = vadd.f32 %v9681_v43, %v9199_v20  ;;  %v13760_v54 = vpop.f32.mrb[41].mxu0 }
 0xfa8   :  { %v9399_v40 = vmul.f32 1.442695, %v9398_v24  ;;  %v9684_v26 = vpop.f32.mrb[42].mxu0 }
 0xfa9   :  { %v13761_v12 = vpop.f32.mrb[43].mxu0  ;;  %v9687_v52 = vsel %vm9394_vm7, %v9682_v9, -inf }
 0xfaa   :  { %14746 = vpow2.f32 %v9399_v40  ;;  %9688 = vmax.xlane.f32.xlu0 %v9687_v52 }
 0xfae   :  { %v9777_v17 = vpop.f32.mrb[44].mxu0 }
 0xfaf   :  { %v13780_v48 = vpop.f32.mrb[45].mxu0  ;;  %v9778_v28 = vadd.f32 %v9777_v17, %v19774_v23 }
 0xfb0   :  { %v9780_v3 = vpop.f32.mrb[46].mxu0 }
 0xfb1   :  { %v13781_v15 = vpop.f32.mrb[47].mxu0  ;;  %14748 = vtanh.f32 %v9778_v28 }
 0xfb2   :  { %14750 = vtanh.f32 %v9499_v62 }
 0xfb4   :  { %v19770_v61 = vpop.eup %14746 }
 0xfb5   :  { %v9401_v55 = vsel %vm9394_vm7, %v19770_v61, 0.0 }
 0xfb6   :  { %9402 = vadd.xlane.f32.xlu1 %v9401_v55 }
 0xfbb   :  { %v14749_v30 = vpop.eup %14748 }
 0xfbc   :  { %v14751_v5 = vpop.eup %14750 }
 0xfbe   :  { %v10011_v63 = vpop.f32.mrb[48].mxu0 }
 0xfbf   :  { %v10012_v58 = vadd.f32 %v10011_v63, %v19677_v22  ;;  %v13804_v11 = vpop.f32.mrb[49].mxu0 }
 0xfc0   :  { %v10014_v32 = vpop.f32.mrb[50].mxu0 }
 0xfc1   :  { %v10017_v4 = vmax.f32 %v10012_v58, 0.0  ;;  %v13805_v34 = vpop.f32.mrb[51].mxu0 }
 0xfc3   :  { %v10018_v29 = vpack.c.bf16 %v10017_v4, %v10017_v4 }
 0xfc5   :  { %13811 = vmatmul.mubr.msk.bf16.vlgmr.msra.gmra.mrb[44].mxu1 %vm9460_vm6, %v10018_v29 }
 0xfc6   :  { %13827 = vmatpush3.bf16.msra.mxu1 %v10201_v27  ;;  %13834 = vmatprep.mubr.msk.bf16.mxu1 %vm14774_vm4, %v20713_v31 }
 0xfc7   :  { %13828 = vmatprep.subr.bf16.mxu1 %v20713_v31  ;;  %9786 = vperm.xlu1 %14294, %v14749_v30  }
 0xfca   :  { %13829 = vmatpush3.bf16.msra.mxu1 %v10202_v50 }
 0xfcb   :  { %13830 = vmatprep.subr.bf16.mxu1 %v20713_v31 }
 0xfce   :  { %13831 = vmatpush3.bf16.msra.mxu1 %v10203_v8  ;;  %v10239_v21 = vpop.f32.mrb[52].mxu0 }
 0xfcf   :  { %v10240_v10 = vadd.f32 %v10239_v21, %v9199_v20  ;;  %13832 = vmatprep.subr.bf16.mxu1 %v20713_v31  ;;  %v13824_v51 = vpop.f32.mrb[53].mxu0 }
 0xfd0   :  { %v10242_v37 = vpop.f32.mrb[54].mxu0 }
 0xfd1   :  { %v10245_v27 = vsel %vm9394_vm7, %v10240_v10, -inf  ;;  %v13825_v59 = vpop.f32.mrb[55].mxu0 }
 0xfd2   :  { %13833 = vmatpush3.bf16.msra.mxu1 %v10204_v38  ;;  %10246 = vmax.xlane.f32.xlu0 %v10245_v27 }
 0xfd5   :  { %13835 = vmatmul.mubr.msk.bf16.vlgmr.msra.gmra.mrb[48].mxu1 %vm9350_vm5, %v19347_v2 }
 0xfe8   :  { %9507 = vperm.xlu0 %14293, %v14751_v5  }
0x1002   :  { %v9968_v50 = vpop.xlane.xlu1 %9967 }
0x1003   :  { %v9969_v31 = vsub.f32 %v19765_v19, %v9968_v50 }
0x1005   :  { %v9970_v6 = vmul.f32 1.442695, %v9969_v31 }
0x1007   :  { %14752 = vpow2.f32 %v9970_v6 }
0x1011   :  { %v14753_v33 = vpop.eup %14752 }
0x1012   :  { %v9972_v8 = vsel %vm9394_vm7, %v14753_v33, 0.0 }
0x1013   :  { %9973 = vadd.xlane.f32.xlu1 %v9972_v8 }
0x1037   :  { %v9689_v16 = vpop.xlane.xlu0 %9688 }
0x1038   :  { %v9690_v0 = vsub.f32 %v9682_v9, %v9689_v16 }
0x103a   :  { %v9691_v38 = vmul.f32 1.442695, %v9690_v0 }
0x103c   :  { %14754 = vpow2.f32 %v9691_v38 }
0x1043   :  { %v9403_v54 = vpop.xlane.xlu1 %9402 }
0x1046   :  { %v14755_v57 = vpop.eup %14754 }
0x1047   :  { %v9693_v2 = vsel %vm9394_vm7, %v14755_v57, 0.0  ;;  %v9787_v40 = vpop.permute.xlu1 %9786 }
0x1048   :  { %9694 = vadd.xlane.f32.xlu1 %v9693_v2 }
0x105f   :  { %v10247_v36 = vpop.xlane.xlu0 %10246 }
0x1060   :  { %v10248_v53 = vsub.f32 %v10240_v10, %v10247_v36 }
0x1062   :  { %v10249_v18 = vmul.f32 1.442695, %v10248_v53 }
0x1064   :  { %14756 = vpow2.f32 %v10249_v18 }
0x1067   :  { %v9508_v12 = vpop.permute.xlu0 %9507 }
0x106e   :  { %v14757_v20 = vpop.eup %14756 }
0x106f   :  { %v10251_v13 = vsel %vm9394_vm7, %v14757_v20, 0.0 }
0x1070   :  { %10252 = vadd.xlane.f32.xlu0 %v10251_v13 }
0x1098   :  { %v10056_v45 = vpop.f32.mrb[44].mxu1 }
0x1099   :  { %v10057_v39 = vadd.f32 %v10056_v45, %v19774_v23  ;;  %v13812_v47 = vpop.f32.mrb[45].mxu1 }
0x109a   :  { %v10059_v14 = vpop.f32.mrb[46].mxu1 }
0x109b   :  { %14758 = vtanh.f32 %v10057_v39  ;;  %v13813_v42 = vpop.f32.mrb[47].mxu1 }
0x10a0   :  { %v9974_v26 = vpop.xlane.xlu1 %9973 }
0x10a5   :  { %v14759_v44 = vpop.eup %14758 }
0x10a6   :  { %10065 = vperm.xlu1 %14294, %v14759_v44  }
0x10a8   :  { %v10290_v19 = vpop.f32.mrb[48].mxu1 }
0x10a9   :  { %v10291_v46 = vadd.f32 %v10290_v19, %v19677_v22  ;;  %v13836_v56 = vpop.f32.mrb[49].mxu1 }
0x10aa   :  { %v10293_v41 = vpop.f32.mrb[50].mxu1 }
0x10ab   :  { %v10296_v7 = vmax.f32 %v10291_v46, 0.0  ;;  %v13837_v49 = vpop.f32.mrb[51].mxu1 }
0x10ad   :  { %v10297_v25 = vpack.c.bf16 %v10296_v7, %v10296_v7 }
0x10af   :  { %13843 = vmatmul.mubr.msk.bf16.vlgmr.msra.gmra.mrb[56].mxu0 %vm9460_vm6, %v10297_v25 }
0x10d5   :  { %v9695_v22 = vpop.xlane.xlu1 %9694 }
0x10fd   :  { %v10253_v52 = vpop.xlane.xlu0 %10252 }
0x1125   :  { %v10066_v15 = vpop.permute.xlu1 %10065 }
0x1182   :  { %v10335_v35 = vpop.f32.mrb[56].mxu0 }
0x1183   :  { %v10336_v60 = vadd.f32 %v10335_v35, %v19774_v23  ;;  %v13844_v1 = vpop.f32.mrb[57].mxu0 }
0x1184   :  { %v10338_v43 = vpop.f32.mrb[58].mxu0 }
0x1185   :  { %14760 = vtanh.f32 %v10336_v60  ;;  %v13845_v24 = vpop.f32.mrb[59].mxu0 }
0x1186   :  { %14762 = vrcp.f32 %v9695_v22 }
0x1187   :  { %14764 = vrcp.f32 %v9974_v26 }
0x1188   :  { %14766 = vrcp.f32 %v9403_v54 }
0x1189   :  { %14768 = vrcp.f32 %v10253_v52 }
0x118f   :  { %v14761_v9 = vpop.eup %14760 }
0x1190   :  { %10344 = vperm.xlu0 %14293, %v14761_v9   ;;  %v14763_v17 = vpop.eup %14762 }
0x1191   :  { %v14765_v48 = vpop.eup %14764  ;;  %v9697_v3 = vmul.f32 %v14763_v17, %v14755_v57 }
0x1192   :  { %v9976_v55 = vmul.f32 %v14765_v48, %v14753_v33  ;;  %v14767_v23 = vpop.eup %14766 }
0x1193   :  { %v9789_v28 = vsel %vm9350_vm5, %v9697_v3, %v9787_v40  ;;  %v14769_v63 = vpop.eup %14768  ;;  %v9405_v32 = vmul.f32 %v14767_v23, %v19770_v61 }
0x1194   :  { %v10068_v58 = vsel %vm9350_vm5, %v9976_v55, %v10066_v15  ;;  %v10349_v11 = vrot.slane %v9789_v28, 7  ;;  %v10255_v34 = vmul.f32 %v14769_v63, %v14757_v20 }
0x1195   :  { %v10352_v4 = vrot.slane %v10068_v58, 6  ;;  %v9510_v30 = vsel %vm9350_vm5, %v9405_v32, %v9508_v12 }
0x1196   :  { %v10358_v10 = vsel %vm10357_vm8, %v9510_v30, %v10349_v11 }
0x1197   :  { %v10360_v37 = vsel %vm10359_vm9, %v10358_v10, %v10352_v4 }
0x120f   :  { %v10345_v29 = vpop.permute.xlu0 %10344 }
0x1210   :  { %v10347_v21 = vsel %vm9350_vm5, %v10255_v34, %v10345_v29 }
0x1211   :  { %v10355_v51 = vrot.slane %v10347_v21, 5 }
0x1213   :  { %v10362_v27 = vsel %vm10361_vm10, %v10360_v37, %v10355_v51 }
0x1214   :  { %10363 = vst [vmem:[%s19842_s26] sm:$0xf] %v10362_v27 }

</bundles_post_ra>
